<compile_context>
chip_gen: v7x
topology: tpu7x:2x2x1
jax: 0.10.0
libtpu: 0.0.40
codegen_flags: <defaults>
</compile_context>

<pallas_src>
import jax
import jax.numpy as jnp
from jax.experimental import pallas as pl
from jax.experimental.pallas import tpu as pltpu

D_BERT = 768          # BERT hidden size (fixed by the module: Conv1d(768, ...))
N_FILT = 100          # conv out channels
CP = 128              # lane-padded channel width (100 -> 128)
KS = (3, 4, 5)        # kernel sizes of convs1 / convs2
N_CLASSES = 3
NEG = -1e30           # mask fill before max-pool (tanh*relu can be negative)


# ----------------------------- Pallas kernel ------------------------------- #
def make_gcae_kernel(bb, Lp, Lap, L_act, La_act):
    """bb: batch elems per grid step; Lp/Lap: padded time lengths; *_act: real lengths."""
    Mf = bb * Lp
    Ma = bb * Lap

    def kernel(feat_ref, asp_ref,
               wctx_ref, bctx_ref, wasp_ref, basp_ref,
               wfa_ref, bfa_ref, wfc_ref, bfc_ref, out_ref):
        # ---- aspect branch: convs3 (K=3, pad=1) -> relu -> masked max over time ----
        acc_a = jnp.dot(asp_ref[...], wasp_ref[0],
                        preferred_element_type=jnp.float32)            # (Ma, 128)
        for k in range(1, 3):
            y = jnp.dot(asp_ref[...], wasp_ref[k],
                        preferred_element_type=jnp.float32)
            # bring y[row t+k] to row t via an XLU sublane rotation (narrow data only)
            acc_a = acc_a + pltpu.roll(y, shift=Ma - k, axis=0)
        ca = jnp.maximum(acc_a + basp_ref[...], 0.0).reshape(bb, Lap, CP)
        pos_a = jax.lax.broadcasted_iota(jnp.int32, (bb, Lap, CP), 1)
        ca = jnp.where(pos_a < La_act, ca, NEG)      # valid conv positions: 0 .. La-1
        asp_feat = jnp.max(ca, axis=1)                                  # (bb, 128)

        # fc_aspect gate (tiny matmul -> keep f32, no extra rounding of asp_feat)
        gate = jnp.dot(asp_feat, wfa_ref[...],
                       preferred_element_type=jnp.float32) + bfa_ref[...]
        gate_b = jnp.broadcast_to(gate[:, None, :], (bb, Lp, CP))       # hoisted

        pos_c = jax.lax.broadcasted_iota(jnp.int32, (bb, Lp, CP), 1)

        # ---- context branches: tanh(conv1) * relu(conv2 + gate) -> masked max ----
        logits = bfc_ref[...]                                           # (1, 128)
        off = 0
        for ki, K in enumerate(KS):
            # fused conv1/conv2 weight: lanes [0,100) = conv1, [128,228) = conv2
            acc = jnp.dot(feat_ref[...], wctx_ref[off],
                          preferred_element_type=jnp.float32)           # (Mf, 256)
            for k in range(1, K):
                y = jnp.dot(feat_ref[...], wctx_ref[off + k],
                            preferred_element_type=jnp.float32)
                acc = acc + pltpu.roll(y, shift=Mf - k, axis=0)
            off += K
            acc = (acc + bctx_ref[ki]).reshape(bb, Lp, 2 * CP)
            c1 = acc[:, :, 0:CP]
            c2 = acc[:, :, CP:2 * CP] + gate_b
            g = jnp.tanh(c1) * jnp.maximum(c2, 0.0)
            g = jnp.where(pos_c <= L_act - K, g, NEG)   # valid positions: 0 .. L-K
            pooled = jnp.max(g, axis=1)                                 # (bb, 128)
            logits = logits + jnp.dot(pooled, wfc_ref[ki],
                                      preferred_element_type=jnp.float32)
        out_ref[...] = logits[:, None, :]                               # (bb, 1, 128)

    return kernel


# ------------------------------ wrapper ------------------------------------ #
def _round_up(x, m):
    return ((x + m - 1) // m) * m


def gcae_head(feature, aspect_v, params):
    """feature: (B, L, 768) f32; aspect_v: (B, La, 768) f32 -> logits (B, 3) f32."""
    B, L, D = feature.shape
    assert D == D_BERT
    La = aspect_v.shape[1]
    assert L >= max(KS) and La >= 1, "sequence too short for the conv stack"
    # TODO(synk): contexts shorter than max(K)=5 would need extra padding + masking
    # (PyTorch's Conv1d errors in that case as well).

    Lp = _round_up(L, 16)          # multiple of 16 -> clean bf16 sublane tiling
    Lap = _round_up(La + 2, 16)    # +2 = the padding=K-2=1 of convs3 on both sides

    # Batch-stacking of the matmul M dimension; keep >= 2 grid steps when B > 1
    # so both v7x TensorCores get work on the "parallel" axis.
    bb = max(1, min(B, 128 // Lp))
    if B > 1:
        bb = max(1, min(bb, (B + 1) // 2))
    Bp = _round_up(B, bb)
    n_steps = Bp // bb

    f32, bf16 = jnp.float32, jnp.bfloat16

    # activations: zero-pad, cast to bf16 once, flatten (batch, time) for the MXU
    featp = jnp.zeros((Bp, Lp, D), bf16).at[:B, :L].set(feature.astype(bf16))
    aspp = jnp.zeros((Bp, Lap, D), bf16).at[:B, 1:1 + La].set(aspect_v.astype(bf16))
    feat2 = featp.reshape(Bp * Lp, D)
    asp2 = aspp.reshape(Bp * Lap, D)

    # weight packing: fuse conv1/conv2 per K into 256 lanes, pad channels 100 -> 128
    wctx = jnp.zeros((sum(KS), D, 2 * CP), f32)
    bctx = jnp.zeros((len(KS), 1, 2 * CP), f32)
    off = 0
    for i, K in enumerate(KS):
        wctx = wctx.at[off:off + K, :, 0:N_FILT].set(params[f"w1_{K}"])
        wctx = wctx.at[off:off + K, :, CP:CP + N_FILT].set(params[f"w2_{K}"])
        bctx = bctx.at[i, 0, 0:N_FILT].set(params[f"b1_{K}"][0])
        bctx = bctx.at[i, 0, CP:CP + N_FILT].set(params[f"b2_{K}"][0])
        off += K
    wctx = wctx.astype(bf16)

    wasp = jnp.zeros((3, D, CP), f32).at[:, :, 0:N_FILT].set(params["w3"]).astype(bf16)
    basp = jnp.zeros((1, CP), f32).at[0, 0:N_FILT].set(params["b3"][0])
    wfa = jnp.zeros((CP, CP), f32).at[0:N_FILT, 0:N_FILT].set(params["wfa"])
    bfa = jnp.zeros((1, CP), f32).at[0, 0:N_FILT].set(params["bfa"][0])
    wfc = jnp.zeros((len(KS), CP, CP), f32).at[:, 0:N_FILT, 0:N_CLASSES].set(params["wfc"])
    bfc = jnp.zeros((1, CP), f32).at[0, 0:N_CLASSES].set(params["bfc"][0])

    weights = (wctx, bctx, wasp, basp, wfa, bfa, wfc, bfc)

    def wspec(w):   # grid-invariant full-array block
        return pl.BlockSpec(w.shape, lambda i, n=w.ndim: (0,) * n)

    kernel = make_gcae_kernel(bb, Lp, Lap, L, La)

    out = pl.pallas_call(
        kernel,
        out_shape=jax.ShapeDtypeStruct((Bp, 1, CP), jnp.float32),
        grid_spec=pltpu.PrefetchScalarGridSpec(
            num_scalar_prefetch=0,
            grid=(n_steps,),
            in_specs=([pl.BlockSpec((bb * Lp, D), lambda i: (i, 0)),
                       pl.BlockSpec((bb * Lap, D), lambda i: (i, 0))]
                      + [wspec(w) for w in weights]),
            out_specs=pl.BlockSpec((bb, 1, CP), lambda i: (i, 0, 0)),
        ),
        compiler_params=pltpu.CompilerParams(
            dimension_semantics=("parallel",),
            vmem_limit_bytes=48 * 1024 * 1024,   # v7x-safe (64 MiB physical VMEM)
        ),
    )(feat2, asp2, *weights)
    return out[:B, 0, :N_CLASSES]


# ----------------------- pure-JAX reference (checking) --------------------- #
def reference_head(feature, aspect_v, params):
    asp_pad = jnp.pad(aspect_v, ((0, 0), (1, 1), (0, 0)))

    def conv1d(x, w, b):     # x: (B, L, D), w: (K, D, C), b: (1, C)
        K = w.shape[0]
        l_out = x.shape[1] - K + 1
        out = jnp.zeros((x.shape[0], l_out, w.shape[2]), jnp.float32) + b
        for k in range(K):
            out = out + jnp.einsum("bld,dc->blc", x[:, k:k + l_out, :], w[k])
        return out

    a = jax.nn.relu(conv1d(asp_pad, params["w3"], params["b3"]))
    asp_feat = a.max(axis=1)                                   # (B, 100)
    gate = asp_feat @ params["wfa"] + params["bfa"]            # (B, 100)

    pooled = []
    for K in KS:
        c1 = jnp.tanh(conv1d(feature, params[f"w1_{K}"], params[f"b1_{K}"]))
        c2 = jax.nn.relu(conv1d(feature, params[f"w2_{K}"], params[f"b2_{K}"])
                         + gate[:, None, :])
        pooled.append((c1 * c2).max(axis=1))
    pooled = jnp.concatenate(pooled, axis=1)                   # (B, 300)
    wfc = params["wfc"].reshape(len(KS) * N_FILT, N_CLASSES)
    return pooled @ wfc + params["bfc"]


# ------------------------------- glue --------------------------------------- #
def squeeze_embedding(tokens):
    # SqueezeEmbedding: trim the batch to its longest non-pad (token != 0) length.
    # (host sync via int() -- demo glue only, not meant to run under jit)
    lens = (tokens != 0).sum(-1)
    max_len = int(jnp.max(lens))
    return tokens[:, :max_len]


def init_params(key):
    keys = iter(jax.random.split(key, 24))
    s = 0.05
    p = {}
    p["w3"] = s * jax.random.normal(next(keys), (3, D_BERT, N_FILT), jnp.float32)
    p["b3"] = s * jax.random.normal(next(keys), (1, N_FILT), jnp.float32)
    for K in KS:
        p[f"w1_{K}"] = s * jax.random.normal(next(keys), (K, D_BERT, N_FILT), jnp.float32)
        p[f"b1_{K}"] = s * jax.random.normal(next(keys), (1, N_FILT), jnp.float32)
    for K in KS:
        p[f"w2_{K}"] = s * jax.random.normal(next(keys), (K, D_BERT, N_FILT), jnp.float32)
        p[f"b2_{K}"] = s * jax.random.normal(next(keys), (1, N_FILT), jnp.float32)
    p["wfa"] = s * jax.random.normal(next(keys), (N_FILT, N_FILT), jnp.float32)
    p["bfa"] = s * jax.random.normal(next(keys), (1, N_FILT), jnp.float32)
    p["wfc"] = s * jax.random.normal(next(keys), (len(KS), N_FILT, N_CLASSES), jnp.float32)
    p["bfc"] = s * jax.random.normal(next(keys), (1, N_CLASSES), jnp.float32)
    return p


if __name__ == "__main__":
    key = jax.random.PRNGKey(0)
    B, L_CTX, L_ASP, VOCAB = 2, 16, 8, 50
    k_tok, k_asp, k_emb, k_par = jax.random.split(key, 4)

    # Non-zero tokens (no padding), so SqueezeEmbedding is a no-op trim here.
    bert_token = jax.random.randint(k_tok, (B, L_CTX), 1, VOCAB, dtype=jnp.int32)
    bert_token_aspect = jax.random.randint(k_asp, (B, L_ASP), 1, VOCAB, dtype=jnp.int32)
    bert_token = squeeze_embedding(bert_token)
    bert_token_aspect = squeeze_embedding(bert_token_aspect)

    # TODO(synk): self.bert(...) (full BERT encoder) is replaced by a deterministic
    # embedding-table lookup; drop_bert/dropout are identity (eval mode).
    emb_table = jax.random.normal(k_emb, (VOCAB, D_BERT), dtype=jnp.float32)
    feature = emb_table[bert_token]          # (B, L_ctx, 768)
    aspect_v = emb_table[bert_token_aspect]  # (B, L_asp, 768)

    params = init_params(k_par)

    logits = jax.block_until_ready(gcae_head(feature, aspect_v, params))
    assert logits.shape == (B, N_CLASSES), logits.shape

    # (1) tight check vs. a reference fed the same bf16-rounded conv operands
    rnd = lambda x: x.astype(jnp.bfloat16).astype(jnp.float32)
    params_rnd = dict(params)
    for name in ["w3"] + [f"w1_{K}" for K in KS] + [f"w2_{K}" for K in KS]:
        params_rnd[name] = rnd(params[name])
    ref_bf = reference_head(rnd(feature), rnd(aspect_v), params_rnd)
    assert jnp.allclose(logits, ref_bf, rtol=3e-2, atol=3e-2), (logits, ref_bf)

    # (2) loose sanity check vs. the full-f32 reference (bf16 MXU inputs)
    ref_f32 = reference_head(feature, aspect_v, params)
    assert jnp.allclose(logits, ref_f32, rtol=1e-1, atol=3e-1), (logits, ref_f32)

    print("KERNEL_OK")
</pallas_src>

<mosaic_0001>
module attributes {stable_mosaic.version = 11 : i64} {
  func.func @kernel(%arg0: i32, %arg1: memref<16x768xbf16, #tpu.memory_space<vmem>>, %arg2: memref<16x768xbf16, #tpu.memory_space<vmem>>, %arg3: memref<12x768x256xbf16, #tpu.memory_space<vmem>>, %arg4: memref<3x1x256xf32, #tpu.memory_space<vmem>>, %arg5: memref<3x768x128xbf16, #tpu.memory_space<vmem>>, %arg6: memref<1x128xf32, #tpu.memory_space<vmem>>, %arg7: memref<128x128xf32, #tpu.memory_space<vmem>>, %arg8: memref<1x128xf32, #tpu.memory_space<vmem>>, %arg9: memref<3x128x128xf32, #tpu.memory_space<vmem>>, %arg10: memref<1x128xf32, #tpu.memory_space<vmem>>, %arg11: memref<1x1x128xf32, #tpu.memory_space<vmem>>) attributes {dimension_semantics = [#tpu.dimension_semantics<parallel>], iteration_bounds = array<i64: 2>, scalar_prefetch = 0 : i64, scratch_operands = 0 : i64, tpu.core_type = #tpu.core_type<tc>, window_params = [{transform_indices = @transform_0, window_bounds = array<i64: 16, 768>}, {transform_indices = @transform_1, window_bounds = array<i64: 16, 768>}, {pipeline_mode = #tpu.pipeline_mode<synchronous>, transform_indices = @transform_2, window_bounds = array<i64: 12, 768, 256>}, {pipeline_mode = #tpu.pipeline_mode<synchronous>, transform_indices = @transform_3, window_bounds = array<i64: 3, 1, 256>}, {pipeline_mode = #tpu.pipeline_mode<synchronous>, transform_indices = @transform_4, window_bounds = array<i64: 3, 768, 128>}, {pipeline_mode = #tpu.pipeline_mode<synchronous>, transform_indices = @transform_5, window_bounds = array<i64: 1, 128>}, {pipeline_mode = #tpu.pipeline_mode<synchronous>, transform_indices = @transform_6, window_bounds = array<i64: 128, 128>}, {pipeline_mode = #tpu.pipeline_mode<synchronous>, transform_indices = @transform_7, window_bounds = array<i64: 1, 128>}, {pipeline_mode = #tpu.pipeline_mode<synchronous>, transform_indices = @transform_8, window_bounds = array<i64: 3, 128, 128>}, {pipeline_mode = #tpu.pipeline_mode<synchronous>, transform_indices = @transform_9, window_bounds = array<i64: 1, 128>}, {transform_indices = @transform_10, window_bounds = array<i64: 1, 1, 128>}]} {
    %c0 = arith.constant 0 : index
    %c0_0 = arith.constant 0 : index
    %0 = vector.load %arg2[%c0, %c0_0] : memref<16x768xbf16, #tpu.memory_space<vmem>>, vector<16x768xbf16>
    %c0_1 = arith.constant 0 : index
    %c0_2 = arith.constant 0 : index
    %c0_3 = arith.constant 0 : index
    %1 = vector.load %arg5[%c0_1, %c0_2, %c0_3] : memref<3x768x128xbf16, #tpu.memory_space<vmem>>, vector<1x768x128xbf16>
    %2 = vector.shape_cast %1 : vector<1x768x128xbf16> to vector<768x128xbf16>
    %cst = arith.constant dense<0.000000e+00> : vector<16x128xf32>
    %3 = tpu.matmul %0, %2, %cst {dimension_numbers = #tpu.dot_dimension_numbers<[1], [0], [0], [1], [0, 0, 1, 1], [], []>} : vector<16x768xbf16>, vector<768x128xbf16>, vector<16x128xf32> -> vector<16x128xf32>
    %c0_4 = arith.constant 0 : index
    %c0_5 = arith.constant 0 : index
    %4 = vector.load %arg2[%c0_4, %c0_5] : memref<16x768xbf16, #tpu.memory_space<vmem>>, vector<16x768xbf16>
    %c1 = arith.constant 1 : index
    %c0_6 = arith.constant 0 : index
    %c0_7 = arith.constant 0 : index
    %5 = vector.load %arg5[%c1, %c0_6, %c0_7] : memref<3x768x128xbf16, #tpu.memory_space<vmem>>, vector<1x768x128xbf16>
    %6 = vector.shape_cast %5 : vector<1x768x128xbf16> to vector<768x128xbf16>
    %cst_8 = arith.constant dense<0.000000e+00> : vector<16x128xf32>
    %7 = tpu.matmul %4, %6, %cst_8 {dimension_numbers = #tpu.dot_dimension_numbers<[1], [0], [0], [1], [0, 0, 1, 1], [], []>} : vector<16x768xbf16>, vector<768x128xbf16>, vector<16x128xf32> -> vector<16x128xf32>
    %c15_i32 = arith.constant 15 : i32
    %8 = tpu.dynamic_rotate %7 by %c15_i32 dim 0 : vector<16x128xf32>, i32 -> vector<16x128xf32>
    %9 = arith.addf %3, %8 : vector<16x128xf32>
    %c0_9 = arith.constant 0 : index
    %c0_10 = arith.constant 0 : index
    %10 = vector.load %arg2[%c0_9, %c0_10] : memref<16x768xbf16, #tpu.memory_space<vmem>>, vector<16x768xbf16>
    %c2 = arith.constant 2 : index
    %c0_11 = arith.constant 0 : index
    %c0_12 = arith.constant 0 : index
    %11 = vector.load %arg5[%c2, %c0_11, %c0_12] : memref<3x768x128xbf16, #tpu.memory_space<vmem>>, vector<1x768x128xbf16>
    %12 = vector.shape_cast %11 : vector<1x768x128xbf16> to vector<768x128xbf16>
    %cst_13 = arith.constant dense<0.000000e+00> : vector<16x128xf32>
    %13 = tpu.matmul %10, %12, %cst_13 {dimension_numbers = #tpu.dot_dimension_numbers<[1], [0], [0], [1], [0, 0, 1, 1], [], []>} : vector<16x768xbf16>, vector<768x128xbf16>, vector<16x128xf32> -> vector<16x128xf32>
    %c14_i32 = arith.constant 14 : i32
    %14 = tpu.dynamic_rotate %13 by %c14_i32 dim 0 : vector<16x128xf32>, i32 -> vector<16x128xf32>
    %15 = arith.addf %9, %14 : vector<16x128xf32>
    %c0_14 = arith.constant 0 : index
    %c0_15 = arith.constant 0 : index
    %16 = vector.load %arg6[%c0_14, %c0_15] : memref<1x128xf32, #tpu.memory_space<vmem>>, vector<1x128xf32>
    %17 = vector.broadcast %16 : vector<1x128xf32> to vector<16x128xf32>
    %18 = arith.addf %15, %17 : vector<16x128xf32>
    %cst_16 = arith.constant 0.000000e+00 : f32
    %19 = vector.broadcast %cst_16 : f32 to vector<16x128xf32>
    %20 = arith.maximumf %18, %19 : vector<16x128xf32>
    %21 = vector.shape_cast %20 : vector<16x128xf32> to vector<1x16x128xf32>
    %22 = tpu.iota {dimensions = array<i32: 1>} : vector<1x16x128xi32>
    %c8_i32 = arith.constant 8 : i32
    %23 = vector.broadcast %c8_i32 : i32 to vector<1x16x128xi32>
    %24 = arith.cmpi slt, %22, %23 : vector<1x16x128xi32>
    %cst_17 = arith.constant -1.000000e+30 : f32
    %25 = vector.broadcast %cst_17 : f32 to vector<1x16x128xf32>
    %26 = arith.select %24, %21, %25 : vector<1x16x128xi1>, vector<1x16x128xf32>
    %cst_18 = arith.constant dense<0xFF800000> : vector<1x128xf32>
    %27 = vector.multi_reduction <maximumf>, %26, %cst_18 [1] : vector<1x16x128xf32> to vector<1x128xf32>
    %c0_19 = arith.constant 0 : index
    %c0_20 = arith.constant 0 : index
    %28 = vector.load %arg7[%c0_19, %c0_20] : memref<128x128xf32, #tpu.memory_space<vmem>>, vector<128x128xf32>
    %cst_21 = arith.constant dense<0.000000e+00> : vector<1x128xf32>
    %29 = tpu.matmul %27, %28, %cst_21 {dimension_numbers = #tpu.dot_dimension_numbers<[1], [0], [0], [1], [0, 0, 1, 1], [], []>} : vector<1x128xf32>, vector<128x128xf32>, vector<1x128xf32> -> vector<1x128xf32>
    %c0_22 = arith.constant 0 : index
    %c0_23 = arith.constant 0 : index
    %30 = vector.load %arg8[%c0_22, %c0_23] : memref<1x128xf32, #tpu.memory_space<vmem>>, vector<1x128xf32>
    %31 = arith.addf %29, %30 : vector<1x128xf32>
    %32 = vector.shape_cast %31 : vector<1x128xf32> to vector<1x1x128xf32>
    %33 = vector.shape_cast %32 : vector<1x1x128xf32> to vector<1x1x128xf32>
    %34 = vector.broadcast %33 : vector<1x1x128xf32> to vector<1x16x128xf32>
    %35 = tpu.iota {dimensions = array<i32: 1>} : vector<1x16x128xi32>
    %c0_24 = arith.constant 0 : index
    %c0_25 = arith.constant 0 : index
    %36 = vector.load %arg10[%c0_24, %c0_25] : memref<1x128xf32, #tpu.memory_space<vmem>>, vector<1x128xf32>
    %c0_26 = arith.constant 0 : index
    %c0_27 = arith.constant 0 : index
    %37 = vector.load %arg1[%c0_26, %c0_27] : memref<16x768xbf16, #tpu.memory_space<vmem>>, vector<16x768xbf16>
    %c0_28 = arith.constant 0 : index
    %c0_29 = arith.constant 0 : index
    %c0_30 = arith.constant 0 : index
    %38 = vector.load %arg3[%c0_28, %c0_29, %c0_30] : memref<12x768x256xbf16, #tpu.memory_space<vmem>>, vector<1x768x256xbf16>
    %39 = vector.shape_cast %38 : vector<1x768x256xbf16> to vector<768x256xbf16>
    %cst_31 = arith.constant dense<0.000000e+00> : vector<16x256xf32>
    %40 = tpu.matmul %37, %39, %cst_31 {dimension_numbers = #tpu.dot_dimension_numbers<[1], [0], [0], [1], [0, 0, 1, 1], [], []>} : vector<16x768xbf16>, vector<768x256xbf16>, vector<16x256xf32> -> vector<16x256xf32>
    %c0_32 = arith.constant 0 : index
    %c0_33 = arith.constant 0 : index
    %41 = vector.load %arg1[%c0_32, %c0_33] : memref<16x768xbf16, #tpu.memory_space<vmem>>, vector<16x768xbf16>
    %c1_34 = arith.constant 1 : index
    %c0_35 = arith.constant 0 : index
    %c0_36 = arith.constant 0 : index
    %42 = vector.load %arg3[%c1_34, %c0_35, %c0_36] : memref<12x768x256xbf16, #tpu.memory_space<vmem>>, vector<1x768x256xbf16>
    %43 = vector.shape_cast %42 : vector<1x768x256xbf16> to vector<768x256xbf16>
    %cst_37 = arith.constant dense<0.000000e+00> : vector<16x256xf32>
    %44 = tpu.matmul %41, %43, %cst_37 {dimension_numbers = #tpu.dot_dimension_numbers<[1], [0], [0], [1], [0, 0, 1, 1], [], []>} : vector<16x768xbf16>, vector<768x256xbf16>, vector<16x256xf32> -> vector<16x256xf32>
    %c15_i32_38 = arith.constant 15 : i32
    %45 = tpu.dynamic_rotate %44 by %c15_i32_38 dim 0 : vector<16x256xf32>, i32 -> vector<16x256xf32>
    %46 = arith.addf %40, %45 : vector<16x256xf32>
    %c0_39 = arith.constant 0 : index
    %c0_40 = arith.constant 0 : index
    %47 = vector.load %arg1[%c0_39, %c0_40] : memref<16x768xbf16, #tpu.memory_space<vmem>>, vector<16x768xbf16>
    %c2_41 = arith.constant 2 : index
    %c0_42 = arith.constant 0 : index
    %c0_43 = arith.constant 0 : index
    %48 = vector.load %arg3[%c2_41, %c0_42, %c0_43] : memref<12x768x256xbf16, #tpu.memory_space<vmem>>, vector<1x768x256xbf16>
    %49 = vector.shape_cast %48 : vector<1x768x256xbf16> to vector<768x256xbf16>
    %cst_44 = arith.constant dense<0.000000e+00> : vector<16x256xf32>
    %50 = tpu.matmul %47, %49, %cst_44 {dimension_numbers = #tpu.dot_dimension_numbers<[1], [0], [0], [1], [0, 0, 1, 1], [], []>} : vector<16x768xbf16>, vector<768x256xbf16>, vector<16x256xf32> -> vector<16x256xf32>
    %c14_i32_45 = arith.constant 14 : i32
    %51 = tpu.dynamic_rotate %50 by %c14_i32_45 dim 0 : vector<16x256xf32>, i32 -> vector<16x256xf32>
    %52 = arith.addf %46, %51 : vector<16x256xf32>
    %c0_46 = arith.constant 0 : index
    %c0_47 = arith.constant 0 : index
    %c0_48 = arith.constant 0 : index
    %53 = vector.load %arg4[%c0_46, %c0_47, %c0_48] : memref<3x1x256xf32, #tpu.memory_space<vmem>>, vector<1x1x256xf32>
    %54 = vector.shape_cast %53 : vector<1x1x256xf32> to vector<1x256xf32>
    %55 = vector.broadcast %54 : vector<1x256xf32> to vector<16x256xf32>
    %56 = arith.addf %52, %55 : vector<16x256xf32>
    %57 = vector.shape_cast %56 : vector<16x256xf32> to vector<1x16x256xf32>
    %58 = vector.extract_strided_slice %57 {offsets = [0, 0, 0], sizes = [1, 16, 128], strides = [1, 1, 1]} : vector<1x16x256xf32> to vector<1x16x128xf32>
    %59 = vector.extract_strided_slice %57 {offsets = [0, 0, 128], sizes = [1, 16, 128], strides = [1, 1, 1]} : vector<1x16x256xf32> to vector<1x16x128xf32>
    %60 = arith.addf %59, %34 : vector<1x16x128xf32>
    %61 = math.tanh %58 : vector<1x16x128xf32>
    %cst_49 = arith.constant 0.000000e+00 : f32
    %62 = vector.broadcast %cst_49 : f32 to vector<1x16x128xf32>
    %63 = arith.maximumf %60, %62 : vector<1x16x128xf32>
    %64 = arith.mulf %61, %63 : vector<1x16x128xf32>
    %c13_i32 = arith.constant 13 : i32
    %65 = vector.broadcast %c13_i32 : i32 to vector<1x16x128xi32>
    %66 = arith.cmpi sle, %35, %65 : vector<1x16x128xi32>
    %cst_50 = arith.constant -1.000000e+30 : f32
    %67 = vector.broadcast %cst_50 : f32 to vector<1x16x128xf32>
    %68 = arith.select %66, %64, %67 : vector<1x16x128xi1>, vector<1x16x128xf32>
    %cst_51 = arith.constant dense<0xFF800000> : vector<1x128xf32>
    %69 = vector.multi_reduction <maximumf>, %68, %cst_51 [1] : vector<1x16x128xf32> to vector<1x128xf32>
    %c0_52 = arith.constant 0 : index
    %c0_53 = arith.constant 0 : index
    %c0_54 = arith.constant 0 : index
    %70 = vector.load %arg9[%c0_52, %c0_53, %c0_54] : memref<3x128x128xf32, #tpu.memory_space<vmem>>, vector<1x128x128xf32>
    %71 = vector.shape_cast %70 : vector<1x128x128xf32> to vector<128x128xf32>
    %cst_55 = arith.constant dense<0.000000e+00> : vector<1x128xf32>
    %72 = tpu.matmul %69, %71, %cst_55 {dimension_numbers = #tpu.dot_dimension_numbers<[1], [0], [0], [1], [0, 0, 1, 1], [], []>} : vector<1x128xf32>, vector<128x128xf32>, vector<1x128xf32> -> vector<1x128xf32>
    %73 = arith.addf %36, %72 : vector<1x128xf32>
    %c0_56 = arith.constant 0 : index
    %c0_57 = arith.constant 0 : index
    %74 = vector.load %arg1[%c0_56, %c0_57] : memref<16x768xbf16, #tpu.memory_space<vmem>>, vector<16x768xbf16>
    %c3 = arith.constant 3 : index
    %c0_58 = arith.constant 0 : index
    %c0_59 = arith.constant 0 : index
    %75 = vector.load %arg3[%c3, %c0_58, %c0_59] : memref<12x768x256xbf16, #tpu.memory_space<vmem>>, vector<1x768x256xbf16>
    %76 = vector.shape_cast %75 : vector<1x768x256xbf16> to vector<768x256xbf16>
    %cst_60 = arith.constant dense<0.000000e+00> : vector<16x256xf32>
    %77 = tpu.matmul %74, %76, %cst_60 {dimension_numbers = #tpu.dot_dimension_numbers<[1], [0], [0], [1], [0, 0, 1, 1], [], []>} : vector<16x768xbf16>, vector<768x256xbf16>, vector<16x256xf32> -> vector<16x256xf32>
    %c0_61 = arith.constant 0 : index
    %c0_62 = arith.constant 0 : index
    %78 = vector.load %arg1[%c0_61, %c0_62] : memref<16x768xbf16, #tpu.memory_space<vmem>>, vector<16x768xbf16>
    %c4 = arith.constant 4 : index
    %c0_63 = arith.constant 0 : index
    %c0_64 = arith.constant 0 : index
    %79 = vector.load %arg3[%c4, %c0_63, %c0_64] : memref<12x768x256xbf16, #tpu.memory_space<vmem>>, vector<1x768x256xbf16>
    %80 = vector.shape_cast %79 : vector<1x768x256xbf16> to vector<768x256xbf16>
    %cst_65 = arith.constant dense<0.000000e+00> : vector<16x256xf32>
    %81 = tpu.matmul %78, %80, %cst_65 {dimension_numbers = #tpu.dot_dimension_numbers<[1], [0], [0], [1], [0, 0, 1, 1], [], []>} : vector<16x768xbf16>, vector<768x256xbf16>, vector<16x256xf32> -> vector<16x256xf32>
    %c15_i32_66 = arith.constant 15 : i32
    %82 = tpu.dynamic_rotate %81 by %c15_i32_66 dim 0 : vector<16x256xf32>, i32 -> vector<16x256xf32>
    %83 = arith.addf %77, %82 : vector<16x256xf32>
    %c0_67 = arith.constant 0 : index
    %c0_68 = arith.constant 0 : index
    %84 = vector.load %arg1[%c0_67, %c0_68] : memref<16x768xbf16, #tpu.memory_space<vmem>>, vector<16x768xbf16>
    %c5 = arith.constant 5 : index
    %c0_69 = arith.constant 0 : index
    %c0_70 = arith.constant 0 : index
    %85 = vector.load %arg3[%c5, %c0_69, %c0_70] : memref<12x768x256xbf16, #tpu.memory_space<vmem>>, vector<1x768x256xbf16>
    %86 = vector.shape_cast %85 : vector<1x768x256xbf16> to vector<768x256xbf16>
    %cst_71 = arith.constant dense<0.000000e+00> : vector<16x256xf32>
    %87 = tpu.matmul %84, %86, %cst_71 {dimension_numbers = #tpu.dot_dimension_numbers<[1], [0], [0], [1], [0, 0, 1, 1], [], []>} : vector<16x768xbf16>, vector<768x256xbf16>, vector<16x256xf32> -> vector<16x256xf32>
    %c14_i32_72 = arith.constant 14 : i32
    %88 = tpu.dynamic_rotate %87 by %c14_i32_72 dim 0 : vector<16x256xf32>, i32 -> vector<16x256xf32>
    %89 = arith.addf %83, %88 : vector<16x256xf32>
    %c0_73 = arith.constant 0 : index
    %c0_74 = arith.constant 0 : index
    %90 = vector.load %arg1[%c0_73, %c0_74] : memref<16x768xbf16, #tpu.memory_space<vmem>>, vector<16x768xbf16>
    %c6 = arith.constant 6 : index
    %c0_75 = arith.constant 0 : index
    %c0_76 = arith.constant 0 : index
    %91 = vector.load %arg3[%c6, %c0_75, %c0_76] : memref<12x768x256xbf16, #tpu.memory_space<vmem>>, vector<1x768x256xbf16>
    %92 = vector.shape_cast %91 : vector<1x768x256xbf16> to vector<768x256xbf16>
    %cst_77 = arith.constant dense<0.000000e+00> : vector<16x256xf32>
    %93 = tpu.matmul %90, %92, %cst_77 {dimension_numbers = #tpu.dot_dimension_numbers<[1], [0], [0], [1], [0, 0, 1, 1], [], []>} : vector<16x768xbf16>, vector<768x256xbf16>, vector<16x256xf32> -> vector<16x256xf32>
    %c13_i32_78 = arith.constant 13 : i32
    %94 = tpu.dynamic_rotate %93 by %c13_i32_78 dim 0 : vector<16x256xf32>, i32 -> vector<16x256xf32>
    %95 = arith.addf %89, %94 : vector<16x256xf32>
    %c1_79 = arith.constant 1 : index
    %c0_80 = arith.constant 0 : index
    %c0_81 = arith.constant 0 : index
    %96 = vector.load %arg4[%c1_79, %c0_80, %c0_81] : memref<3x1x256xf32, #tpu.memory_space<vmem>>, vector<1x1x256xf32>
    %97 = vector.shape_cast %96 : vector<1x1x256xf32> to vector<1x256xf32>
    %98 = vector.broadcast %97 : vector<1x256xf32> to vector<16x256xf32>
    %99 = arith.addf %95, %98 : vector<16x256xf32>
    %100 = vector.shape_cast %99 : vector<16x256xf32> to vector<1x16x256xf32>
    %101 = vector.extract_strided_slice %100 {offsets = [0, 0, 0], sizes = [1, 16, 128], strides = [1, 1, 1]} : vector<1x16x256xf32> to vector<1x16x128xf32>
    %102 = vector.extract_strided_slice %100 {offsets = [0, 0, 128], sizes = [1, 16, 128], strides = [1, 1, 1]} : vector<1x16x256xf32> to vector<1x16x128xf32>
    %103 = arith.addf %102, %34 : vector<1x16x128xf32>
    %104 = math.tanh %101 : vector<1x16x128xf32>
    %cst_82 = arith.constant 0.000000e+00 : f32
    %105 = vector.broadcast %cst_82 : f32 to vector<1x16x128xf32>
    %106 = arith.maximumf %103, %105 : vector<1x16x128xf32>
    %107 = arith.mulf %104, %106 : vector<1x16x128xf32>
    %c12_i32 = arith.constant 12 : i32
    %108 = vector.broadcast %c12_i32 : i32 to vector<1x16x128xi32>
    %109 = arith.cmpi sle, %35, %108 : vector<1x16x128xi32>
    %cst_83 = arith.constant -1.000000e+30 : f32
    %110 = vector.broadcast %cst_83 : f32 to vector<1x16x128xf32>
    %111 = arith.select %109, %107, %110 : vector<1x16x128xi1>, vector<1x16x128xf32>
    %cst_84 = arith.constant dense<0xFF800000> : vector<1x128xf32>
    %112 = vector.multi_reduction <maximumf>, %111, %cst_84 [1] : vector<1x16x128xf32> to vector<1x128xf32>
    %c1_85 = arith.constant 1 : index
    %c0_86 = arith.constant 0 : index
    %c0_87 = arith.constant 0 : index
    %113 = vector.load %arg9[%c1_85, %c0_86, %c0_87] : memref<3x128x128xf32, #tpu.memory_space<vmem>>, vector<1x128x128xf32>
    %114 = vector.shape_cast %113 : vector<1x128x128xf32> to vector<128x128xf32>
    %cst_88 = arith.constant dense<0.000000e+00> : vector<1x128xf32>
    %115 = tpu.matmul %112, %114, %cst_88 {dimension_numbers = #tpu.dot_dimension_numbers<[1], [0], [0], [1], [0, 0, 1, 1], [], []>} : vector<1x128xf32>, vector<128x128xf32>, vector<1x128xf32> -> vector<1x128xf32>
    %116 = arith.addf %73, %115 : vector<1x128xf32>
    %c0_89 = arith.constant 0 : index
    %c0_90 = arith.constant 0 : index
    %117 = vector.load %arg1[%c0_89, %c0_90] : memref<16x768xbf16, #tpu.memory_space<vmem>>, vector<16x768xbf16>
    %c7 = arith.constant 7 : index
    %c0_91 = arith.constant 0 : index
    %c0_92 = arith.constant 0 : index
    %118 = vector.load %arg3[%c7, %c0_91, %c0_92] : memref<12x768x256xbf16, #tpu.memory_space<vmem>>, vector<1x768x256xbf16>
    %119 = vector.shape_cast %118 : vector<1x768x256xbf16> to vector<768x256xbf16>
    %cst_93 = arith.constant dense<0.000000e+00> : vector<16x256xf32>
    %120 = tpu.matmul %117, %119, %cst_93 {dimension_numbers = #tpu.dot_dimension_numbers<[1], [0], [0], [1], [0, 0, 1, 1], [], []>} : vector<16x768xbf16>, vector<768x256xbf16>, vector<16x256xf32> -> vector<16x256xf32>
    %c0_94 = arith.constant 0 : index
    %c0_95 = arith.constant 0 : index
    %121 = vector.load %arg1[%c0_94, %c0_95] : memref<16x768xbf16, #tpu.memory_space<vmem>>, vector<16x768xbf16>
    %c8 = arith.constant 8 : index
    %c0_96 = arith.constant 0 : index
    %c0_97 = arith.constant 0 : index
    %122 = vector.load %arg3[%c8, %c0_96, %c0_97] : memref<12x768x256xbf16, #tpu.memory_space<vmem>>, vector<1x768x256xbf16>
    %123 = vector.shape_cast %122 : vector<1x768x256xbf16> to vector<768x256xbf16>
    %cst_98 = arith.constant dense<0.000000e+00> : vector<16x256xf32>
    %124 = tpu.matmul %121, %123, %cst_98 {dimension_numbers = #tpu.dot_dimension_numbers<[1], [0], [0], [1], [0, 0, 1, 1], [], []>} : vector<16x768xbf16>, vector<768x256xbf16>, vector<16x256xf32> -> vector<16x256xf32>
    %c15_i32_99 = arith.constant 15 : i32
    %125 = tpu.dynamic_rotate %124 by %c15_i32_99 dim 0 : vector<16x256xf32>, i32 -> vector<16x256xf32>
    %126 = arith.addf %120, %125 : vector<16x256xf32>
    %c0_100 = arith.constant 0 : index
    %c0_101 = arith.constant 0 : index
    %127 = vector.load %arg1[%c0_100, %c0_101] : memref<16x768xbf16, #tpu.memory_space<vmem>>, vector<16x768xbf16>
    %c9 = arith.constant 9 : index
    %c0_102 = arith.constant 0 : index
    %c0_103 = arith.constant 0 : index
    %128 = vector.load %arg3[%c9, %c0_102, %c0_103] : memref<12x768x256xbf16, #tpu.memory_space<vmem>>, vector<1x768x256xbf16>
    %129 = vector.shape_cast %128 : vector<1x768x256xbf16> to vector<768x256xbf16>
    %cst_104 = arith.constant dense<0.000000e+00> : vector<16x256xf32>
    %130 = tpu.matmul %127, %129, %cst_104 {dimension_numbers = #tpu.dot_dimension_numbers<[1], [0], [0], [1], [0, 0, 1, 1], [], []>} : vector<16x768xbf16>, vector<768x256xbf16>, vector<16x256xf32> -> vector<16x256xf32>
    %c14_i32_105 = arith.constant 14 : i32
    %131 = tpu.dynamic_rotate %130 by %c14_i32_105 dim 0 : vector<16x256xf32>, i32 -> vector<16x256xf32>
    %132 = arith.addf %126, %131 : vector<16x256xf32>
    %c0_106 = arith.constant 0 : index
    %c0_107 = arith.constant 0 : index
    %133 = vector.load %arg1[%c0_106, %c0_107] : memref<16x768xbf16, #tpu.memory_space<vmem>>, vector<16x768xbf16>
    %c10 = arith.constant 10 : index
    %c0_108 = arith.constant 0 : index
    %c0_109 = arith.constant 0 : index
    %134 = vector.load %arg3[%c10, %c0_108, %c0_109] : memref<12x768x256xbf16, #tpu.memory_space<vmem>>, vector<1x768x256xbf16>
    %135 = vector.shape_cast %134 : vector<1x768x256xbf16> to vector<768x256xbf16>
    %cst_110 = arith.constant dense<0.000000e+00> : vector<16x256xf32>
    %136 = tpu.matmul %133, %135, %cst_110 {dimension_numbers = #tpu.dot_dimension_numbers<[1], [0], [0], [1], [0, 0, 1, 1], [], []>} : vector<16x768xbf16>, vector<768x256xbf16>, vector<16x256xf32> -> vector<16x256xf32>
    %c13_i32_111 = arith.constant 13 : i32
    %137 = tpu.dynamic_rotate %136 by %c13_i32_111 dim 0 : vector<16x256xf32>, i32 -> vector<16x256xf32>
    %138 = arith.addf %132, %137 : vector<16x256xf32>
    %c0_112 = arith.constant 0 : index
    %c0_113 = arith.constant 0 : index
    %139 = vector.load %arg1[%c0_112, %c0_113] : memref<16x768xbf16, #tpu.memory_space<vmem>>, vector<16x768xbf16>
    %c11 = arith.constant 11 : index
    %c0_114 = arith.constant 0 : index
    %c0_115 = arith.constant 0 : index
    %140 = vector.load %arg3[%c11, %c0_114, %c0_115] : memref<12x768x256xbf16, #tpu.memory_space<vmem>>, vector<1x768x256xbf16>
    %141 = vector.shape_cast %140 : vector<1x768x256xbf16> to vector<768x256xbf16>
    %cst_116 = arith.constant dense<0.000000e+00> : vector<16x256xf32>
    %142 = tpu.matmul %139, %141, %cst_116 {dimension_numbers = #tpu.dot_dimension_numbers<[1], [0], [0], [1], [0, 0, 1, 1], [], []>} : vector<16x768xbf16>, vector<768x256xbf16>, vector<16x256xf32> -> vector<16x256xf32>
    %c12_i32_117 = arith.constant 12 : i32
    %143 = tpu.dynamic_rotate %142 by %c12_i32_117 dim 0 : vector<16x256xf32>, i32 -> vector<16x256xf32>
    %144 = arith.addf %138, %143 : vector<16x256xf32>
    %c2_118 = arith.constant 2 : index
    %c0_119 = arith.constant 0 : index
    %c0_120 = arith.constant 0 : index
    %145 = vector.load %arg4[%c2_118, %c0_119, %c0_120] : memref<3x1x256xf32, #tpu.memory_space<vmem>>, vector<1x1x256xf32>
    %146 = vector.shape_cast %145 : vector<1x1x256xf32> to vector<1x256xf32>
    %147 = vector.broadcast %146 : vector<1x256xf32> to vector<16x256xf32>
    %148 = arith.addf %144, %147 : vector<16x256xf32>
    %149 = vector.shape_cast %148 : vector<16x256xf32> to vector<1x16x256xf32>
    %150 = vector.extract_strided_slice %149 {offsets = [0, 0, 0], sizes = [1, 16, 128], strides = [1, 1, 1]} : vector<1x16x256xf32> to vector<1x16x128xf32>
    %151 = vector.extract_strided_slice %149 {offsets = [0, 0, 128], sizes = [1, 16, 128], strides = [1, 1, 1]} : vector<1x16x256xf32> to vector<1x16x128xf32>
    %152 = arith.addf %151, %34 : vector<1x16x128xf32>
    %153 = math.tanh %150 : vector<1x16x128xf32>
    %cst_121 = arith.constant 0.000000e+00 : f32
    %154 = vector.broadcast %cst_121 : f32 to vector<1x16x128xf32>
    %155 = arith.maximumf %152, %154 : vector<1x16x128xf32>
    %156 = arith.mulf %153, %155 : vector<1x16x128xf32>
    %c11_i32 = arith.constant 11 : i32
    %157 = vector.broadcast %c11_i32 : i32 to vector<1x16x128xi32>
    %158 = arith.cmpi sle, %35, %157 : vector<1x16x128xi32>
    %cst_122 = arith.constant -1.000000e+30 : f32
    %159 = vector.broadcast %cst_122 : f32 to vector<1x16x128xf32>
    %160 = arith.select %158, %156, %159 : vector<1x16x128xi1>, vector<1x16x128xf32>
    %cst_123 = arith.constant dense<0xFF800000> : vector<1x128xf32>
    %161 = vector.multi_reduction <maximumf>, %160, %cst_123 [1] : vector<1x16x128xf32> to vector<1x128xf32>
    %c2_124 = arith.constant 2 : index
    %c0_125 = arith.constant 0 : index
    %c0_126 = arith.constant 0 : index
    %162 = vector.load %arg9[%c2_124, %c0_125, %c0_126] : memref<3x128x128xf32, #tpu.memory_space<vmem>>, vector<1x128x128xf32>
    %163 = vector.shape_cast %162 : vector<1x128x128xf32> to vector<128x128xf32>
    %cst_127 = arith.constant dense<0.000000e+00> : vector<1x128xf32>
    %164 = tpu.matmul %161, %163, %cst_127 {dimension_numbers = #tpu.dot_dimension_numbers<[1], [0], [0], [1], [0, 0, 1, 1], [], []>} : vector<1x128xf32>, vector<128x128xf32>, vector<1x128xf32> -> vector<1x128xf32>
    %165 = arith.addf %116, %164 : vector<1x128xf32>
    %166 = vector.shape_cast %165 : vector<1x128xf32> to vector<1x1x128xf32>
    %c0_128 = arith.constant 0 : index
    %c0_129 = arith.constant 0 : index
    %c0_130 = arith.constant 0 : index
    %167 = vector.load %arg11[%c0_128, %c0_129, %c0_130] : memref<1x1x128xf32, #tpu.memory_space<vmem>>, vector<1x1x128xf32>
    tpu.vector_store %arg11[%c0_128, %c0_129, %c0_130], %166 {strides = array<i32>} : memref<1x1x128xf32, #tpu.memory_space<vmem>>, vector<1x1x128xf32>,
    return
  }
  func.func @transform_0(%arg0: i32) -> (i32, i32) {
    %c0_i32 = arith.constant 0 : i32
    %c0_i32_0 = arith.constant 0 : i32
    return %arg0, %c0_i32 : i32, i32
  }
  func.func @transform_1(%arg0: i32) -> (i32, i32) {
    %c0_i32 = arith.constant 0 : i32
    %c0_i32_0 = arith.constant 0 : i32
    return %arg0, %c0_i32 : i32, i32
  }
  func.func @transform_2(%arg0: i32) -> (i32, i32, i32) {
    %c0_i32 = arith.constant 0 : i32
    %c0_i32_0 = arith.constant 0 : i32
    %c0_i32_1 = arith.constant 0 : i32
    %c0_i32_2 = arith.constant 0 : i32
    return %c0_i32, %c0_i32_0, %c0_i32_1 : i32, i32, i32
  }
  func.func @transform_3(%arg0: i32) -> (i32, i32, i32) {
    %c0_i32 = arith.constant 0 : i32
    %c0_i32_0 = arith.constant 0 : i32
    %c0_i32_1 = arith.constant 0 : i32
    %c0_i32_2 = arith.constant 0 : i32
    return %c0_i32, %c0_i32_0, %c0_i32_1 : i32, i32, i32
  }
  func.func @transform_4(%arg0: i32) -> (i32, i32, i32) {
    %c0_i32 = arith.constant 0 : i32
    %c0_i32_0 = arith.constant 0 : i32
    %c0_i32_1 = arith.constant 0 : i32
    %c0_i32_2 = arith.constant 0 : i32
    return %c0_i32, %c0_i32_0, %c0_i32_1 : i32, i32, i32
  }
  func.func @transform_5(%arg0: i32) -> (i32, i32) {
    %c0_i32 = arith.constant 0 : i32
    %c0_i32_0 = arith.constant 0 : i32
    %c0_i32_1 = arith.constant 0 : i32
    return %c0_i32, %c0_i32_0 : i32, i32
  }
  func.func @transform_6(%arg0: i32) -> (i32, i32) {
    %c0_i32 = arith.constant 0 : i32
    %c0_i32_0 = arith.constant 0 : i32
    %c0_i32_1 = arith.constant 0 : i32
    return %c0_i32, %c0_i32_0 : i32, i32
  }
  func.func @transform_7(%arg0: i32) -> (i32, i32) {
    %c0_i32 = arith.constant 0 : i32
    %c0_i32_0 = arith.constant 0 : i32
    %c0_i32_1 = arith.constant 0 : i32
    return %c0_i32, %c0_i32_0 : i32, i32
  }
  func.func @transform_8(%arg0: i32) -> (i32, i32, i32) {
    %c0_i32 = arith.constant 0 : i32
    %c0_i32_0 = arith.constant 0 : i32
    %c0_i32_1 = arith.constant 0 : i32
    %c0_i32_2 = arith.constant 0 : i32
    return %c0_i32, %c0_i32_0, %c0_i32_1 : i32, i32, i32
  }
  func.func @transform_9(%arg0: i32) -> (i32, i32) {
    %c0_i32 = arith.constant 0 : i32
    %c0_i32_0 = arith.constant 0 : i32
    %c0_i32_1 = arith.constant 0 : i32
    return %c0_i32, %c0_i32_0 : i32, i32
  }
  func.func @transform_10(%arg0: i32) -> (i32, i32, i32) {
    %c0_i32 = arith.constant 0 : i32
    %c0_i32_0 = arith.constant 0 : i32
    %c0_i32_1 = arith.constant 0 : i32
    return %arg0, %c0_i32, %c0_i32_0 : i32, i32, i32
  }
}

</mosaic_0001>

<bundles_post_ra>
// kernel: tpu_custom_call.1
= control target key start
LH: loop header
LB: loop body
LE: loop exit
PB: predicated region body
PF: predicated region fallthrough
CT: control target
= control target key end

     0   :  { %s16716_s0 = inlined_call_operand.hbm [shape: bf16[32,768], index: 0, kind: input, shape index: {}]   ;;  %s16717_s1 = inlined_call_operand.hbm [shape: bf16[32,768], index: 1, kind: input, shape index: {}]   ;;  %s16718_s2 = inlined_call_operand.hbm [shape: bf16[12,768,256], index: 2, kind: input, shape index: {}]   ;;  %s16719_s3 = inlined_call_operand.hbm [shape: f32[3,1,256], index: 3, kind: input, shape index: {}]   ;;  %s16720_s4 = inlined_call_operand.hbm [shape: bf16[3,768,128], index: 4, kind: input, shape index: {}]   ;;  %s16721_s5 = inlined_call_operand.hbm [shape: f32[1,128], index: 5, kind: input, shape index: {}]   ;;  %s16722_s6 = inlined_call_operand.hbm [shape: f32[128,128], index: 6, kind: input, shape index: {}]   ;;  %s16723_s7 = inlined_call_operand.hbm [shape: f32[1,128], index: 7, kind: input, shape index: {}]   ;;  %s16724_s8 = inlined_call_operand.hbm [shape: f32[3,128,128], index: 8, kind: input, shape index: {}]   ;;  %s16725_s9 = inlined_call_operand.hbm [shape: f32[1,128], index: 9, kind: input, shape index: {}]   ;;  %s16726_s10 = inlined_call_operand.hbm [shape: f32[2,1,128], index: 10, kind: output, shape index: {}]  }
   0x1   :  { %16737 = sst [smem:[#allocation29_spill]] %s16716_s0 }
   0x2   :  { %16738 = sst [smem:[#allocation30_spill]] %s16718_s2 }
   0x3   :  { %16739 = sst [smem:[#allocation31_spill]] %s16719_s3 }
   0x4   :  { %16740 = sst [smem:[#allocation32_spill]] %s16720_s4 }
   0x5   :  { %16741 = sst [smem:[#allocation33_spill]] %s16721_s5 }
   0x6   :  { %16742 = sst [smem:[#allocation34_spill]] %s16726_s10 }
   0x7   :  { %15 = vsyncpa [#allocation3], 0 }
   0x8   :  { %17 = vsyncpa [#allocation3 + $0x1], 0 }
   0x9   :  { %18 = vsyncpa [#allocation6], 0 }
   0xa   :  { %20 = vsyncpa [#allocation6 + $0x1], 0 }
   0xb   :  { %21 = vsyncpa [#allocation9], 0 }
   0xc   :  { %22 = vsyncpa [#allocation12], 0 }
   0xd   :  { %23 = vsyncpa [#allocation15], 0 }
   0xe   :  { %24 = vsyncpa [#allocation18], 0 }
   0xf   :  { %25 = vsyncpa [#allocation4], 0 }
  0x10   :  { %27 = vsyncpa [#allocation4 + $0x1], 0  ;;  %s15858_s13 = smov 0   ;;  %s15860_s14 = smov 0  }
  0x11   :  { %s15862_s15 = smov 0   ;;  %s15864_s16 = smov 0  }
  0x12 LB: > { %s15781_s17 = smov [#allocation7]   ;;  %s15879_s19 = sadd.s32 4294967295, %s15779_s16   ;;  %s15779_s16 = sphi %s15864_s16, %s16779_s16   ;;  %s15775_s15 = sphi %s15862_s15, %s16778_s15   ;;  %s15771_s14 = sphi %s15860_s14, %s16777_s14   ;;  %s15767_s13 = sphi %s15858_s13, %s16776_s13  }
  0x13   : > { %s296_s18 = sshll.u32 %s15781_s17, 4  ;;  %p11375_p0 = scmp.ge.s32.totalorder %s15779_s16, 1  ;;  %s15884_s18 = int_to_ptr.vmem [resolvable:$true] %s296_s18 }
  0x14   : > { %p16731_p1 = scmp.eq.s32.totalorder %s15879_s19, 0  ;;  %p284_p2 = scmp.lt.s32.totalorder %s15779_s16, 3 }
  0x15   : > { %s15782_s21 = smov [#allocation8]   ;;  %s15783_s24 = smov [#allocation11]  }
  0x16   : > { %p15886_p3 = pnand %p11375_p0, %p284_p2  ;;  %s309_s22 = sshll.u32 %s15782_s21, 4  ;;  %s15899_s22 = int_to_ptr.vmem [resolvable:$true] %s309_s22 }
  0x17   : > { %s15901_s25 = sshll.u32 %s15783_s24, 4  ;;  %s16746_s2 = sld [smem:[#allocation30_spill]]  ;;  %s337_s25 = int_to_ptr.vmem [resolvable:$true] %s15901_s25 }
  0x18   : > { %s16743_s20 = scalar_select %p15886_p3, 1, 0 }
  0x19   : > { %p13370_p5 = pneg %p15886_p3 }
  0x1a   : > { %16744 = sst [smem:[#allocation28_spill]] %s16743_s20 }
  0x1b   : > { %p15895_p6 = pnand %p13370_p5, %p16731_p1 }
  0x1d   : > { %s15405_s28 = scalar_lea.hbm %s16746_s2, 147456  ;;  %p15911_p8 = pneg %p15895_p6 }
  0x1e   : > { %p15406_p7 = scmp.ne.s32.totalorder %s16746_s2, %s15405_s28  ;;  %p15412_p11 = scmp.lt.u32.totalorder %s15405_s28, %s16746_s2 }
  0x20   : > { %p15408_p9 = pnand %p15911_p8, %p15406_p7 }
  0x22   : > { %p15409_p10 = pneg %p15408_p9 }
  0x24   : > { %p15414_p12 = pnand %p15412_p11, %p15409_p10 }
  0x26   : > { %15417 = shalt.err (!%p15414_p12)
}
  0x27   : > { %s15418_s21 = scalar_lea.vmem %s15884_s18, 147456  ;;  %p15426_p5 = scmp.lt.s32.totalorder %s15884_s18, %s15884_s18 }
  0x28   : > { %p15419_p13 = scmp.ne.s32.totalorder %s15884_s18, %s15418_s21  ;;  %p15427_p4 = scmp.lt.s32.totalorder %s15418_s21, %s15418_s21 }
  0x2a   : > { %p15421_p0 = pnand %p15419_p13, %p15911_p8  ;;  %p15428_p7 = por %p15427_p4, %p15426_p5 }
  0x2c   : > { %p15422_p2 = pneg %p15421_p0 }
  0x2e   : > { %p15429_p9 = pnand %p15428_p7, %p15422_p2 }
  0x30   : > { %15432 = shalt.err (!%p15429_p9)
}
  0x31   : > { %s16729_s24 = smov 128   ;;  %s16733_s26 = smov 8  }
  0x32   : > { %13373 = dma.hbm_to_vmem [thread:$0]  (!%p15895_p6), %s16746_s2, 147456, %s15884_s18, [#allocation6], %s16729_s24, %s16729_s24, %s16733_s26  }
  0x33   : > { %s16748_s3 = sld [smem:[#allocation31_spill]] }
  0x39   : > { %s15433_s12 = scalar_lea.hbm %s16748_s3, 96 }
  0x3a   : > { %p15434_p4 = scmp.ne.s32.totalorder %s16748_s3, %s15433_s12  ;;  %p15440_p12 = scmp.lt.u32.totalorder %s15433_s12, %s16748_s3 }
  0x3c   : > { %p15436_p10 = pnand %p15434_p4, %p15911_p8 }
  0x3e   : > { %p15437_p11 = pneg %p15436_p10 }
  0x40   : > { %p15442_p13 = pnand %p15440_p12, %p15437_p11 }
  0x42   : > { %15445 = shalt.err (!%p15442_p13)
}
  0x43   : > { %s15446_s18 = scalar_lea.vmem %s15899_s22, 96  ;;  %p15454_p7 = scmp.lt.s32.totalorder %s15899_s22, %s15899_s22 }
  0x44   : > { %p15447_p0 = scmp.ne.s32.totalorder %s15899_s22, %s15446_s18  ;;  %p15455_p9 = scmp.lt.s32.totalorder %s15446_s18, %s15446_s18 }
  0x46   : > { %p15449_p2 = pnand %p15447_p0, %p15911_p8  ;;  %p15456_p4 = por %p15455_p9, %p15454_p7 }
  0x48   : > { %p15450_p5 = pneg %p15449_p2 }
  0x4a   : > { %p15457_p10 = pnand %p15456_p4, %p15450_p5 }
  0x4c   : > { %15460 = shalt.err (!%p15457_p10)
}
  0x4d   : > { %s15786_s27 = smov 32   ;;  %s15787_s10 = smov 2  }
  0x4e   : > { %13376 = dma.hbm_to_vmem [thread:$0]  (!%p15895_p6), %s16748_s3, 96, %s15899_s22, [#allocation9], %s15786_s27, %s15786_s27, %s15787_s10  }
  0x4f   : > { %s16749_s5 = sld [smem:[#allocation33_spill]] }
  0x55   : > { %s15461_s12 = scalar_lea.hbm %s16749_s5, 16 }
  0x56   : > { %p15462_p11 = scmp.ne.s32.totalorder %s16749_s5, %s15461_s12  ;;  %p15468_p0 = scmp.lt.u32.totalorder %s15461_s12, %s16749_s5 }
  0x58   : > { %p15464_p12 = pnand %p15462_p11, %p15911_p8 }
  0x5a   : > { %p15465_p13 = pneg %p15464_p12 }
  0x5c   : > { %p15470_p2 = pnand %p15468_p0, %p15465_p13 }
  0x5e   : > { %15473 = shalt.err (!%p15470_p2)
}
  0x5f   : > { %s15474_s20 = scalar_lea.vmem %s337_s25, 16  ;;  %s15481_s22 = scalar_lea.vmem %s337_s25, 32 }
  0x60   : > { %p15475_p5 = scmp.ne.s32.totalorder %s337_s25, %s15474_s20  ;;  %p15482_p4 = scmp.lt.s32.totalorder %s337_s25, %s337_s25 }
  0x61   : > { %p15483_p10 = scmp.lt.s32.totalorder %s15481_s22, %s15474_s20 }
  0x62   : > { %p15477_p7 = pnand %p15475_p5, %p15911_p8 }
  0x63   : > { %p15484_p1 = por %p15483_p10, %p15482_p4 }
  0x64   : > { %p15478_p9 = pneg %p15477_p7 }
  0x66   : > { %p15485_p3 = pnand %p15484_p1, %p15478_p9 }
  0x68   : > { %15488 = shalt.err (!%p15485_p3)
}
  0x69   : > { %13382 = dma.hbm_to_vmem [thread:$0]  (!%p15895_p6), %s16749_s5, 16, %s337_s25, [#allocation12]  }
  0x6a   : > { %s15788_s24 = smov [#allocation14]   ;;  %s15789_s29 = smov [#allocation10]  }
  0x6b   : > { %s360_s28 = sshll.u32 %s15788_s24, 4  ;;  %s322_s30 = sshll.u32 %s15789_s29, 4  ;;  %s361_s28 = int_to_ptr.vmem [resolvable:$true] %s360_s28  ;;  %s323_s30 = int_to_ptr.vmem [resolvable:$true] %s322_s30 }
  0x6c   : > { %s15489_s21 = scalar_lea.hbm %s16723_s7, 16 }
  0x6d   : > { %p15490_p1 = scmp.ne.s32.totalorder %s16723_s7, %s15489_s21  ;;  %p15496_p12 = scmp.lt.u32.totalorder %s15489_s21, %s16723_s7 }
  0x6f   : > { %p15492_p3 = pnand %p15490_p1, %p15911_p8 }
  0x71   : > { %p15493_p11 = pneg %p15492_p3 }
  0x73   : > { %p15498_p13 = pnand %p15496_p12, %p15493_p11 }
  0x75   : > { %15501 = shalt.err (!%p15498_p13)
}
  0x76   : > { %s15502_s25 = scalar_lea.vmem %s361_s28, 16  ;;  %s15509_s10 = scalar_lea.vmem %s361_s28, 32 }
  0x77   : > { %p15503_p0 = scmp.ne.s32.totalorder %s361_s28, %s15502_s25  ;;  %p15510_p7 = scmp.lt.s32.totalorder %s361_s28, %s361_s28 }
  0x78   : > { %p15511_p9 = scmp.lt.s32.totalorder %s15509_s10, %s15502_s25 }
  0x79   : > { %p15505_p2 = pnand %p15503_p0, %p15911_p8 }
  0x7a   : > { %p15512_p4 = por %p15511_p9, %p15510_p7 }
  0x7b   : > { %p15506_p5 = pneg %p15505_p2 }
  0x7d   : > { %p15513_p10 = pnand %p15512_p4, %p15506_p5 }
  0x7f   : > { %15516 = shalt.err (!%p15513_p10)
}
  0x80   : > { %13388 = dma.hbm_to_vmem [thread:$0]  (!%p15895_p6), %s16723_s7, 16, %s361_s28, [#allocation15]  }
  0x81   : > { %s16750_s4 = sld [smem:[#allocation32_spill]] }
  0x87   : > { %s15517_s21 = scalar_lea.hbm %s16750_s4, 18432 }
  0x88   : > { %p15518_p1 = scmp.ne.s32.totalorder %s16750_s4, %s15517_s21  ;;  %p15524_p12 = scmp.lt.u32.totalorder %s15517_s21, %s16750_s4 }
  0x8a   : > { %p15520_p3 = pnand %p15518_p1, %p15911_p8 }
  0x8c   : > { %p15521_p11 = pneg %p15520_p3 }
  0x8e   : > { %p15526_p13 = pnand %p15524_p12, %p15521_p11 }
  0x90   : > { %15529 = shalt.err (!%p15526_p13)
}
  0x91   : > { %s15530_s25 = scalar_lea.vmem %s323_s30, 18432  ;;  %p15538_p7 = scmp.lt.s32.totalorder %s323_s30, %s323_s30 }
  0x92   : > { %p15531_p0 = scmp.ne.s32.totalorder %s323_s30, %s15530_s25  ;;  %p15539_p9 = scmp.lt.s32.totalorder %s15530_s25, %s15530_s25 }
  0x94   : > { %p15533_p2 = pnand %p15531_p0, %p15911_p8  ;;  %p15540_p4 = por %p15539_p9, %p15538_p7 }
  0x96   : > { %p15534_p5 = pneg %p15533_p2 }
  0x98   : > { %p15541_p10 = pnand %p15540_p4, %p15534_p5 }
  0x9a   : > { %15544 = shalt.err (!%p15541_p10)
}
  0x9b   : > { %s15790_s28 = smov 64   ;;  %s15791_s10 = smov 4  }
  0x9c   : > { %13379 = dma.hbm_to_vmem [thread:$0]  (!%p15895_p6), %s16750_s4, 18432, %s323_s30, [#allocation9], %s15790_s28, %s15790_s28, %s15791_s10  }
  0x9d   : > { %s15792_s12 = smov [#allocation13]   ;;  %s15793_s21 = smov [#allocation16]  }
  0x9e   : > { %s346_s17 = sshll.u32 %s15792_s12, 4  ;;  %s370_s18 = sshll.u32 %s15793_s21, 4  ;;  %s347_s17 = int_to_ptr.vmem [resolvable:$true] %s346_s17  ;;  %s371_s18 = int_to_ptr.vmem [resolvable:$true] %s370_s18 }
  0x9f   : > { %s15545_s27 = scalar_lea.hbm %s16722_s6, 2048 }
  0xa0   : > { %p15546_p1 = scmp.ne.s32.totalorder %s16722_s6, %s15545_s27  ;;  %p15552_p12 = scmp.lt.u32.totalorder %s15545_s27, %s16722_s6 }
  0xa2   : > { %p15548_p3 = pnand %p15546_p1, %p15911_p8 }
  0xa4   : > { %p15549_p11 = pneg %p15548_p3 }
  0xa6   : > { %p15554_p13 = pnand %p15552_p12, %p15549_p11 }
  0xa8   : > { %15557 = shalt.err (!%p15554_p13)
}
  0xa9   : > { %s15558_s30 = scalar_lea.vmem %s347_s17, 2048  ;;  %p15566_p7 = scmp.lt.s32.totalorder %s347_s17, %s347_s17 }
  0xaa   : > { %p15559_p0 = scmp.ne.s32.totalorder %s347_s17, %s15558_s30  ;;  %p15567_p9 = scmp.lt.s32.totalorder %s15558_s30, %s15558_s30 }
  0xac   : > { %p15561_p2 = pnand %p15559_p0, %p15911_p8  ;;  %p15568_p4 = por %p15567_p9, %p15566_p7 }
  0xae   : > { %p15562_p5 = pneg %p15561_p2 }
  0xb0   : > { %p15569_p10 = pnand %p15568_p4, %p15562_p5 }
  0xb2   : > { %15572 = shalt.err (!%p15569_p10)
}
  0xb3   : > { %s16751_s26 = smov 8   ;;  %s16752_s28 = smov 128  }
  0xb4   : > { %13385 = dma.hbm_to_vmem [thread:$0]  (!%p15895_p6), %s16722_s6, 2048, %s347_s17, [#allocation12], %s16752_s28, %s16752_s28, %s16751_s26  }
  0xb5   : > { %s15573_s29 = scalar_lea.hbm %s16724_s8, 6144 }
  0xb6   : > { %p15574_p1 = scmp.ne.s32.totalorder %s16724_s8, %s15573_s29  ;;  %p15580_p12 = scmp.lt.u32.totalorder %s15573_s29, %s16724_s8 }
  0xb8   : > { %p15576_p3 = pnand %p15574_p1, %p15911_p8 }
  0xba   : > { %p15577_p11 = pneg %p15576_p3 }
  0xbc   : > { %p15582_p13 = pnand %p15580_p12, %p15577_p11 }
  0xbe   : > { %15585 = shalt.err (!%p15582_p13)
}
  0xbf   : > { %s15586_s27 = scalar_lea.vmem %s371_s18, 6144  ;;  %p15594_p7 = scmp.lt.s32.totalorder %s371_s18, %s371_s18 }
  0xc0   : > { %p15587_p0 = scmp.ne.s32.totalorder %s371_s18, %s15586_s27  ;;  %p15595_p9 = scmp.lt.s32.totalorder %s15586_s27, %s15586_s27 }
  0xc2   : > { %p15589_p2 = pnand %p15587_p0, %p15911_p8  ;;  %p15596_p4 = por %p15595_p9, %p15594_p7 }
  0xc4   : > { %p15590_p5 = pneg %p15589_p2 }
  0xc6   : > { %p15597_p10 = pnand %p15596_p4, %p15590_p5 }
  0xc8   : > { %15600 = shalt.err (!%p15597_p10)
}
  0xc9   : > { %13391 = dma.hbm_to_vmem [thread:$0]  (!%p15895_p6), %s16724_s8, 6144, %s371_s18, [#allocation15], %s16752_s28, %s16752_s28, %s16751_s26  }
  0xca   : > { %s15794_s30 = smov [#allocation17]   ;;  %s15601_s24 = scalar_lea.hbm %s16725_s9, 16 }
  0xcb   : > { %s384_s2 = sshll.u32 %s15794_s30, 4  ;;  %p15602_p1 = scmp.ne.s32.totalorder %s16725_s9, %s15601_s24  ;;  %s385_s2 = int_to_ptr.vmem [resolvable:$true] %s384_s2 }
  0xcc   : > { %p15608_p12 = scmp.lt.u32.totalorder %s15601_s24, %s16725_s9 }
  0xcd   : > { %p15604_p3 = pnand %p15602_p1, %p15911_p8 }
  0xcf   : > { %p15605_p11 = pneg %p15604_p3 }
  0xd1   : > { %p15610_p13 = pnand %p15608_p12, %p15605_p11 }
  0xd3   : > { %15613 = shalt.err (!%p15610_p13)
}
  0xd4   : > { %s15614_s18 = scalar_lea.vmem %s385_s2, 16  ;;  %s15621_s26 = scalar_lea.vmem %s385_s2, 32 }
  0xd5   : > { %p15615_p0 = scmp.ne.s32.totalorder %s385_s2, %s15614_s18  ;;  %p15622_p7 = scmp.lt.s32.totalorder %s385_s2, %s385_s2 }
  0xd6   : > { %p15623_p9 = scmp.lt.s32.totalorder %s15621_s26, %s15614_s18 }
  0xd7   : > { %p15617_p2 = pnand %p15615_p0, %p15911_p8 }
  0xd8   : > { %p15624_p4 = por %p15623_p9, %p15622_p7 }
  0xd9   : > { %p15618_p5 = pneg %p15617_p2 }
  0xdb   : > { %p15625_p10 = pnand %p15624_p4, %p15618_p5 }
  0xdd   : > { %15628 = shalt.err (!%p15625_p10)
}
  0xde   : > { %13394 = dma.hbm_to_vmem [thread:$0]  (!%p15895_p6), %s16725_s9, 16, %s385_s2, [#allocation18]  }
  0xdf   : > { %s11374_s11 = sadd.s32 4294967294, %s15779_s16   ;;  %s16075_s23 = sadd.s32 1, %s15779_s16  }
  0xe0   : > { %s37_s27 = ssub.s32 %s15779_s16, %s16075_s23  ;;  %s40_s17 = sadd.s32 1, %s15775_s15 }
  0xe1   : > { %p38_p8 = scmp.eq.s32.totalorder %s37_s27, 0  ;;  %p47_p1 = scmp.ne.s32.totalorder %s15775_s15, %s15771_s14 }
  0xe2   : > { %p48_p3 = scmp.eq.s32.totalorder %s15779_s16, 0  ;;  %p53_p11 = scmp.ne.s32.totalorder %s15771_s14, %s15767_s13 }
  0xe3   : > { %s16086_s25 = scalar_select %p38_p8, %s15775_s15, %s40_s17  }
  0xe4   : > { %p49_p12 = por %p48_p3, %p47_p1  ;;  %p16753_p13 = scmp.eq.s32.totalorder %s15879_s19, 0 }
  0xe5   : > { %p271_p6 = scmp.eq.s32.totalorder %s15879_s19, 1  ;;  %p277_p2 = scmp.eq.s32.totalorder %s11374_s11, 1 }
  0xe6   : > { %p16090_p0 = por %p16753_p13, %p53_p11  ;;  %p13414_p5 = scmp.lt.s32.totalorder %s15779_s16, 2 }
  0xe7   : > { %s395_s2 = sand.u32 1, %s15775_s15   ;;  %p16097_p7 = por %p271_p6, %p47_p1 }
  0xe8   : > { %p16101_p9 = por %p277_p2, %p53_p11  ;;  %s16105_s24 = smul.u32 48, %s395_s2 }
  0xe9   : > { %s16755_s3 = scalar_select %p16097_p7, 1, 0 }
  0xea   : > { %s16756_s10 = scalar_select %p16101_p9, 1, 0 }
  0xeb   : > { %s16735_s29 = smul.u32 768, %s15779_s16  ;;  %p16108_p4 = pnand %p13414_p5, %p49_p12 }
  0xec   : > { %s16758_s0 = sld [smem:[#allocation29_spill]]  ;;  %s399_s26 = scalar_lea.vmem [#allocation2], %s16105_s24 }
  0xed   : > { %s407_s28 = sshll.u32 %s399_s26, 4  ;;  %s417_s22 = sand.u32 1, %s15779_s16   ;;  %s16120_s28 = int_to_ptr.vmem [resolvable:$true] %s407_s28 }
  0xee   : > { %s16123_s11 = scalar_lea.sflag [#allocation3], %s395_s2  ;;  %p15631_p8 = pneg %p16108_p4 }
  0xf2   : > { %s16117_s18 = scalar_lea.hbm %s16758_s0, %s16735_s29  ;;  %s15634_s20 = scalar_lea.hbm %s16758_s0, 1536 }
  0xf3   : > { %s15629_s27 = scalar_lea.hbm %s16117_s18, 768  ;;  %p15635_p11 = scmp.lt.u32.totalorder %s16117_s18, %s16758_s0 }
  0xf4   : > { %p15630_p10 = scmp.ne.s32.totalorder %s16117_s18, %s15629_s27  ;;  %p15636_p12 = scmp.lt.u32.totalorder %s15634_s20, %s15629_s27 }
  0xf5   : > { %p15638_p6 = scmp.lt.u32.totalorder %s15629_s27, %s16117_s18 }
  0xf6   : > { %p15632_p1 = pnand %p15631_p8, %p15630_p10  ;;  %p15637_p13 = por %p15636_p12, %p15635_p11 }
  0xf8   : > { %p15633_p3 = pneg %p15632_p1  ;;  %p15639_p2 = por %p15638_p6, %p15637_p13 }
  0xfa   : > { %p15640_p5 = pnand %p15639_p2, %p15633_p3 }
  0xfc   : > { %15643 = shalt.err (!%p15640_p5)
}
  0xfd   : > { %s15644_s2 = scalar_lea.vmem %s16120_s28, 768  ;;  %s15795_s26 = smov [#allocation2]  }
  0xfe   : > { %p15645_p10 = scmp.ne.s32.totalorder %s16120_s28, %s15644_s2  ;;  %s15649_s17 = sshll.u32 %s15795_s26, 4  ;;  %s15650_s17 = int_to_ptr.vmem [resolvable:$false] %s15649_s17 }
  0xff   : > { %s15651_s4 = scalar_lea.vmem %s15650_s17, 1536  ;;  %p15652_p7 = scmp.lt.s32.totalorder %s16120_s28, %s15650_s17 }
 0x100   : > { %p15647_p1 = pnand %p15645_p10, %p15631_p8  ;;  %p15653_p11 = scmp.lt.s32.totalorder %s15651_s4, %s15644_s2 }
 0x102   : > { %p15648_p9 = pneg %p15647_p1  ;;  %p15654_p12 = por %p15653_p11, %p15652_p7 }
 0x104   : > { %p15655_p13 = pnand %p15654_p12, %p15648_p9 }
 0x106   : > { %15658 = shalt.err (!%p15655_p13)
}
 0x107   : > { %s15796_s29 = smov 384   ;;  %s15797_s27 = smov 24  }
 0x108   : > { %13398 = dma.hbm_to_vmem [thread:$0]  (!%p16108_p4), %s16117_s18, 768, %s16120_s28, %s16123_s11, %s15796_s29, %s15796_s29, %s15797_s27  }
 0x109   : > { %s16759_s21 = smul.u32 768, %s15779_s16  ;;  %s421_s17 = scalar_lea.vmem [#allocation5], %s16105_s24 }
 0x10a   : > { %s429_s4 = sshll.u32 %s421_s17, 4  ;;  %s16166_s0 = scalar_lea.sflag [#allocation6], %s417_s22  ;;  %s16162_s4 = int_to_ptr.vmem [resolvable:$true] %s429_s4 }
 0x10b   : > { %s16159_s26 = scalar_lea.hbm %s16717_s1, %s16759_s21  ;;  %s15664_s11 = scalar_lea.hbm %s16717_s1, 1536 }
 0x10c   : > { %s15659_s5 = scalar_lea.hbm %s16159_s26, 768  ;;  %p15665_p6 = scmp.lt.u32.totalorder %s16159_s26, %s16717_s1 }
 0x10d   : > { %p15660_p7 = scmp.ne.s32.totalorder %s16159_s26, %s15659_s5  ;;  %p15666_p2 = scmp.lt.u32.totalorder %s15664_s11, %s15659_s5 }
 0x10e   : > { %p15668_p10 = scmp.lt.u32.totalorder %s15659_s5, %s16159_s26 }
 0x10f   : > { %p15662_p9 = pnand %p15660_p7, %p15631_p8  ;;  %p15667_p5 = por %p15666_p2, %p15665_p6 }
 0x111   : > { %p15663_p3 = pneg %p15662_p9  ;;  %p15669_p1 = por %p15668_p10, %p15667_p5 }
 0x113   : > { %p15670_p11 = pnand %p15669_p1, %p15663_p3 }
 0x115   : > { %15673 = shalt.err (!%p15670_p11)
}
 0x116   : > { %s15674_s24 = scalar_lea.vmem %s16162_s4, 768  ;;  %s15798_s22 = smov [#allocation5]  }
 0x117   : > { %p15675_p12 = scmp.ne.s32.totalorder %s16162_s4, %s15674_s24  ;;  %s15679_s2 = sshll.u32 %s15798_s22, 4  ;;  %s15680_s2 = int_to_ptr.vmem [resolvable:$false] %s15679_s2 }
 0x118   : > { %s15681_s17 = scalar_lea.vmem %s15680_s2, 1536  ;;  %p15682_p9 = scmp.lt.s32.totalorder %s16162_s4, %s15680_s2 }
 0x119   : > { %p15677_p13 = pnand %p15675_p12, %p15631_p8  ;;  %p15683_p6 = scmp.lt.s32.totalorder %s15681_s17, %s15674_s24 }
 0x11b   : > { %p15678_p7 = pneg %p15677_p13  ;;  %p15684_p2 = por %p15683_p6, %p15682_p9 }
 0x11d   : > { %p15685_p5 = pnand %p15684_p2, %p15678_p7 }
 0x11f   : > { %15688 = shalt.err (!%p15685_p5)
}
 0x120   : > { %13401 = dma.hbm_to_vmem [thread:$0]  (!%p16108_p4), %s16159_s26, 768, %s16162_s4, %s16166_s0, %s15796_s29, %s15796_s29, %s15797_s27  }
 0x121   : > { %s16760_s5 = sld [smem:[#allocation28_spill]] }
 0x127   : > { %p16761_p8 = scmp.ne.s32.totalorder %s16760_s5, 0 }
 0x128   : > { %s16198_s18 = sand.u32 (!%p16761_p8), 1, %s15771_s14  }
 0x129   : > { %441 = sbr.rel (%p16761_p8) target bundleno = 2889 (0xb49), region = 60  ;;  %s444_s11 = scalar_lea.sflag (!%p16761_p8), [#allocation3], %s16198_s18 }
 0x12a   : > { %s13331_s28 = smul.u32 (!%p16761_p8), 48, %s16198_s18 }
 0x12c   : > { %s16202_s21 = scalar_lea.vmem (!%p16761_p8), [#allocation2], %s13331_s28 }
 0x130   : > { %15734 = dma.done.wait (%p16090_p0), %s444_s11, 768  }
 0x131   : > { %15736 = vsyncadd (%p16090_p0), %s444_s11, 4294966528  ;;  %s452_s0 = sand.u32 1, %s15879_s19   ;;  %s16209_s29 = scalar_lea.vmem [#allocation5], %s13331_s28 }
 0x132   : > { %s453_s12 = scalar_lea.sflag [#allocation6], %s452_s0 }
 0x133   : > { %15738 = dma.done.wait (%p16090_p0), %s453_s12, 768  }
 0x134   : > { %15740 = vsyncadd (%p16090_p0), %s453_s12, 4294966528  ;;  %p16762_p4 = scmp.eq.s32.totalorder %s15879_s19, 0 }
 0x136   : > { %15742 = dma.done.wait (%p16762_p4), [#allocation6], 147456   ;;  %p16763_p3 = pmov %p16762_p4 }
 0x138   : > { %15744 = vsyncadd (%p16763_p3), [#allocation6], 4294819840  ;;  %p16764_p10 = pmov %p16763_p3 }
 0x139   : > { %p16765_p1 = pmov %p16763_p3 }
 0x13a   : > { %15746 = dma.done.wait (%p16764_p10), [#allocation9], 18528  }
 0x13b   : > { %15748 = vsyncadd (%p16765_p1), [#allocation9], 4294948768  ;;  %p16766_p11 = pmov %p16765_p1 }
 0x13c   : > { %p16767_p12 = pmov %p16765_p1 }
 0x13d   : > { %15750 = dma.done.wait (%p16766_p11), [#allocation12], 2064  }
 0x13e   : > { %15752 = vsyncadd (%p16767_p12), [#allocation12], 4294965232  ;;  %p16768_p0 = pmov %p16765_p1 }
 0x140   : > { %15754 = dma.done.wait (%p16768_p0), [#allocation15], 6160   ;;  %p16769_p13 = pmov %p16768_p0 }
 0x141   : > { %p16770_p7 = pmov %p16768_p0 }
 0x142   : > { %15756 = vsyncadd (%p16769_p13), [#allocation15], 4294961136 }
 0x143   : > { %15758 = dma.done.wait (%p16770_p7), [#allocation18], 16   ;;  %p16771_p9 = pmov %p16768_p0 }
 0x144   : > { %v13475_v0 = vld [vmem:[#allocation10 + $0x1c0] sm:$0xff]   ;;  %v13477_v2 = vld [vmem:[#allocation10 + $0x1c8] sm:$0xff]   ;;  %v13479_v4 = vld [vmem:[#allocation10 + $0x1d0] sm:$0xff]   ;;  %vm15800_vm0 = vmmov 0   ;;  %s12709_s30 = sshll.u32 %s15879_s19, 4  ;;  %s528_s27 = scalar_lea.vmem [#allocation19], %s16198_s18 }
 0x145   : > { %15760 = vsyncadd (%p16771_p9), [#allocation18], 4294967280  ;;  %v13476_v1 = vld [vmem:[#allocation10 + $0x180] sm:$0xff]   ;;  %12712 = vmatprep.subr.bf16.mxu0 %v13475_v0  ;;  %v13478_v3 = vld [vmem:[#allocation10 + $0x188] sm:$0xff]   ;;  %s11209_s26 = sshll.u32 %s528_s27, 4  ;;  %s16772_s24 = sld [smem:[#allocation34_spill]]  ;;  %s16674_s26 = int_to_ptr.vmem [resolvable:$true] %s11209_s26 }
 0x146   : > { %12713 = vmatpush3.bf16.msra.mxu0 %v13476_v1  ;;  %v13480_v5 = vld [vmem:[#allocation10 + $0x190] sm:$0xff]   ;;  %v13481_v6 = vld [vmem:[#allocation10 + $0x1d8] sm:$0xff]   ;;  %v13483_v8 = vld [vmem:[#allocation10 + $0x1e0] sm:$0xff]   ;;  %s11197_s2 = scalar_lea.sflag [#allocation4], %s16198_s18  ;;  %s15689_s17 = scalar_lea.vmem %s16674_s26, 16 }
 0x147   : > { %12714 = vmatprep.subr.bf16.mxu0 %v13477_v2  ;;  %v13482_v7 = vld [vmem:[#allocation10 + $0x198] sm:$0xff]   ;;  %v13484_v9 = vld [vmem:[#allocation10 + $0x1a0] sm:$0xff]   ;;  %v13485_v10 = vld [vmem:[#allocation10 + $0x1e8] sm:$0xff]   ;;  %p15690_p6 = scmp.ne.s32.totalorder %s16674_s26, %s15689_s17  ;;  %p16773_p2 = scmp.ne.s32.totalorder %s16755_s3, 0 }
 0x148   : > { %v16236_v11 = vld [vmem:[%s16209_s29 + $0x4] ss:$24 sps:$4 sm:$0xff]   ;;  %v16241_v18 = vld [vmem:[%s16209_s29] ss:$24 sps:$4 sm:$0xff]   ;;  %v16253_v56 = vld [vmem:[%s16209_s29 + $0x14] ss:$24 sps:$4 sm:$0xff]  }
 0x149   : > { %1081 = vmatprep.mubr.bf16.mxu0 %v16236_v11  ;;  %1499 = vmatprep.mubr.bf16.mxu1 %v16236_v11  ;;  %v13486_v12 = vld [vmem:[#allocation10 + $0x1a8] sm:$0xff]   ;;  %v13487_v13 = vld [vmem:[#allocation10 + $0x1f0] sm:$0xff]   ;;  %v13489_v15 = vld [vmem:[#allocation10 + $0x1f8] sm:$0xff]   ;;  %p15691_p5 = pnand %p15690_p6, %p16773_p2  ;;  %s15802_s19 = smov [#allocation19]  }
 0x14a   : > { %12715 = vmatpush3.bf16.msra.mxu0 %v13478_v3  ;;  %v13488_v14 = vld [vmem:[#allocation10 + $0x1b0] sm:$0xff]   ;;  %v13490_v16 = vld [vmem:[#allocation10 + $0x1b8] sm:$0xff]   ;;  %v13494_v17 = vld [vmem:[#allocation10 + $0x240] sm:$0xff]   ;;  %s15693_s5 = sshll.u32 %s15802_s19, 4  ;;  %s15694_s5 = int_to_ptr.vmem [resolvable:$false] %s15693_s5 }
 0x14b   : > { %12716 = vmatprep.subr.bf16.mxu0 %v13479_v4  ;;  %v13495_v19 = vld [vmem:[#allocation10 + $0x200] sm:$0xff]   ;;  %v13496_v20 = vld [vmem:[#allocation10 + $0x248] sm:$0xff]   ;;  %v13498_v23 = vld [vmem:[#allocation10 + $0x250] sm:$0xff]   ;;  %s16672_s22 = scalar_lea.hbm %s16772_s24, %s12709_s30  ;;  %p15692_p8 = pneg %p15691_p5 }
 0x14c   : > { %v13497_v21 = vld [vmem:[#allocation10 + $0x208] sm:$0xff]   ;;  %v13514_v24 = vld [vmem:[#allocation10 + $0x40] sm:$0xff]   ;;  %v13499_v25 = vld [vmem:[#allocation10 + $0x210] sm:$0xff]   ;;  %s15695_s28 = scalar_lea.vmem %s15694_s5, 32  ;;  %p15696_p4 = scmp.lt.s32.totalorder %s16674_s26, %s15694_s5 }
 0x14d   : > { %v16245_v22 = vld [vmem:[%s16209_s29 + $0xc] ss:$24 sps:$4 sm:$0xff]   ;;  %12778 = vmatprep.subr.bf16.mxu1 %v13514_v24  ;;  %v16249_v48 = vld [vmem:[%s16209_s29 + $0x8] ss:$24 sps:$4 sm:$0xff]   ;;  %p15697_p3 = scmp.lt.s32.totalorder %s15695_s28, %s15689_s17 }
 0x14e   : > { %12717 = vmatpush3.bf16.msra.mxu0 %v13480_v5  ;;  %v13516_v26 = vld [vmem:[#allocation10] sm:$0xff]   ;;  %v13500_v27 = vld [vmem:[#allocation10 + $0x258] sm:$0xff]   ;;  %v13518_v28 = vld [vmem:[#allocation10 + $0x48] sm:$0xff]  }
 0x14f   : > { %12718 = vmatprep.subr.bf16.mxu0 %v13481_v6  ;;  %12779 = vmatpush3.bf16.msra.mxu1 %v13516_v26  ;;  %v13501_v29 = vld [vmem:[#allocation10 + $0x218] sm:$0xff]   ;;  %v13520_v30 = vld [vmem:[#allocation10 + $0x8] sm:$0xff]   ;;  %v13502_v31 = vld [vmem:[#allocation10 + $0x260] sm:$0xff]   ;;  %p15698_p10 = por %p15697_p3, %p15696_p4 }
 0x150   : > { %12780 = vmatprep.subr.bf16.mxu1 %v13518_v28  ;;  %v13522_v32 = vld [vmem:[#allocation10 + $0x50] sm:$0xff]   ;;  %v13503_v33 = vld [vmem:[#allocation10 + $0x220] sm:$0xff]   ;;  %v13504_v35 = vld [vmem:[#allocation10 + $0x268] sm:$0xff]  }
 0x151   : > { %v13524_v34 = vld [vmem:[#allocation10 + $0x10] sm:$0xff]   ;;  %v13526_v36 = vld [vmem:[#allocation10 + $0x58] sm:$0xff]   ;;  %v13505_v37 = vld [vmem:[#allocation10 + $0x228] sm:$0xff]   ;;  %p15699_p1 = pnand %p15698_p10, %p15692_p8 }
 0x152   : > { %12719 = vmatpush3.bf16.msra.mxu0 %v13482_v7  ;;  %v13528_v38 = vld [vmem:[#allocation10 + $0x18] sm:$0xff]   ;;  %v13506_v39 = vld [vmem:[#allocation10 + $0x270] sm:$0xff]   ;;  %v13530_v40 = vld [vmem:[#allocation10 + $0x60] sm:$0xff]  }
 0x153   : > { %12720 = vmatprep.subr.bf16.mxu0 %v13483_v8  ;;  %12781 = vmatpush3.bf16.msra.mxu1 %v13520_v30  ;;  %v13507_v41 = vld [vmem:[#allocation10 + $0x230] sm:$0xff]   ;;  %v13532_v42 = vld [vmem:[#allocation10 + $0x20] sm:$0xff]   ;;  %v13508_v43 = vld [vmem:[#allocation10 + $0x278] sm:$0xff]  }
 0x154   : > { %12782 = vmatprep.subr.bf16.mxu1 %v13522_v32  ;;  %v13534_v44 = vld [vmem:[#allocation10 + $0x68] sm:$0xff]   ;;  %v13509_v45 = vld [vmem:[#allocation10 + $0x238] sm:$0xff]   ;;  %v13513_v47 = vld [vmem:[#allocation10 + $0x2c0] sm:$0xff]  }
 0x155   : > { %v13536_v46 = vld [vmem:[#allocation10 + $0x28] sm:$0xff]   ;;  %v13538_v49 = vld [vmem:[#allocation10 + $0x70] sm:$0xff]   ;;  %v13515_v50 = vld [vmem:[#allocation10 + $0x280] sm:$0xff]  }
 0x156   : > { %12721 = vmatpush3.bf16.msra.mxu0 %v13484_v9  ;;  %v13540_v51 = vld [vmem:[#allocation10 + $0x30] sm:$0xff]   ;;  %v13517_v52 = vld [vmem:[#allocation10 + $0x2c8] sm:$0xff]   ;;  %v13542_v53 = vld [vmem:[#allocation10 + $0x78] sm:$0xff]  }
 0x157   : > { %12722 = vmatprep.subr.bf16.mxu0 %v13485_v10  ;;  %12783 = vmatpush3.bf16.msra.mxu1 %v13524_v34  ;;  %v13544_v54 = vld [vmem:[#allocation10 + $0x38] sm:$0xff]   ;;  %v13519_v55 = vld [vmem:[#allocation10 + $0x288] sm:$0xff]   ;;  %v13521_v57 = vld [vmem:[#allocation10 + $0x2d0] sm:$0xff]  }
 0x158   : > { %12784 = vmatprep.subr.bf16.mxu1 %v13526_v36  ;;  %v13549_v58 = vld [vmem:[#allocation10 + $0x140] sm:$0xff]   ;;  %v13523_v59 = vld [vmem:[#allocation10 + $0x290] sm:$0xff]   ;;  %v13525_v61 = vld [vmem:[#allocation10 + $0x2d8] sm:$0xff]  }
 0x159   : > { %v13551_v60 = vld [vmem:[#allocation10 + $0x100] sm:$0xff]   ;;  %v13553_v62 = vld [vmem:[#allocation10 + $0x148] sm:$0xff]   ;;  %v13527_v63 = vld [vmem:[#allocation10 + $0x298] sm:$0xff]  }
 0x15a   : > { %12723 = vmatpush3.bf16.msra.mxu0 %v13486_v12  ;;  %v13555_v0 = vld [vmem:[#allocation10 + $0x108] sm:$0xff]   ;;  %v13529_v1 = vld [vmem:[#allocation10 + $0x2e0] sm:$0xff]   ;;  %v13557_v2 = vld [vmem:[#allocation10 + $0x150] sm:$0xff]  }
 0x15b   : > { %12724 = vmatprep.subr.bf16.mxu0 %v13487_v13  ;;  %12785 = vmatpush3.bf16.msra.mxu1 %v13528_v38  ;;  %v13531_v3 = vld [vmem:[#allocation10 + $0x2a0] sm:$0xff]   ;;  %v13559_v4 = vld [vmem:[#allocation10 + $0x110] sm:$0xff]   ;;  %v13533_v5 = vld [vmem:[#allocation10 + $0x2e8] sm:$0xff]  }
 0x15c   : > { %12786 = vmatprep.subr.bf16.mxu1 %v13530_v40  ;;  %v13561_v6 = vld [vmem:[#allocation10 + $0x158] sm:$0xff]   ;;  %v13535_v7 = vld [vmem:[#allocation10 + $0x2a8] sm:$0xff]   ;;  %v13537_v9 = vld [vmem:[#allocation10 + $0x2f0] sm:$0xff]  }
 0x15d   : > { %v13563_v8 = vld [vmem:[#allocation10 + $0x118] sm:$0xff]   ;;  %v13565_v10 = vld [vmem:[#allocation10 + $0x160] sm:$0xff]   ;;  %v13539_v12 = vld [vmem:[#allocation10 + $0x2b0] sm:$0xff]  }
 0x15e   : > { %12725 = vmatpush3.bf16.msra.mxu0 %v13488_v14  ;;  %v13567_v13 = vld [vmem:[#allocation10 + $0x120] sm:$0xff]   ;;  %v13541_v14 = vld [vmem:[#allocation10 + $0x2f8] sm:$0xff]   ;;  %v13575_v24 = vld [vmem:[#allocation10 + $0x130] sm:$0xff]  }
 0x15f   : > { %12726 = vmatprep.subr.bf16.mxu0 %v13489_v15  ;;  %12787 = vmatpush3.bf16.msra.mxu1 %v13532_v42  ;;  %v13569_v15 = vld [vmem:[#allocation10 + $0x168] sm:$0xff]   ;;  %v13577_v26 = vld [vmem:[#allocation10 + $0x178] sm:$0xff]   ;;  %v13581_v30 = vld [vmem:[#allocation10 + $0x3c0] sm:$0xff]  }
 0x160   : > { %12788 = vmatprep.subr.bf16.mxu1 %v13534_v44  ;;  %v13579_v28 = vld [vmem:[#allocation10 + $0x138] sm:$0xff]   ;;  %v13583_v32 = vld [vmem:[#allocation10 + $0x380] sm:$0xff]   ;;  %v13585_v34 = vld [vmem:[#allocation10 + $0x3c8] sm:$0xff]  }
 0x161   : > { %v13587_v36 = vld [vmem:[#allocation10 + $0x388] sm:$0xff]   ;;  %v13589_v38 = vld [vmem:[#allocation10 + $0x3d0] sm:$0xff]   ;;  %v13593_v42 = vld [vmem:[#allocation10 + $0x3d8] sm:$0xff]  }
 0x162   : > { %12727 = vmatpush3.bf16.msra.mxu0 %v13490_v16  ;;  %v13543_v16 = vld [vmem:[#allocation10 + $0x2b8] sm:$0xff]   ;;  %v13591_v40 = vld [vmem:[#allocation10 + $0x390] sm:$0xff]  }
 0x163   : > { %12734 = vmatprep.subr.bf16.mxu0 %v13494_v17  ;;  %12789 = vmatpush3.bf16.msra.mxu1 %v13536_v46  ;;  %v13571_v17 = vld [vmem:[#allocation10 + $0x128] sm:$0xff]   ;;  %v13572_v44 = vld [vmem:[#allocation10 + $0xf0] sm:$0xff]  }
 0x164   : > { %12790 = vmatprep.subr.bf16.mxu1 %v13538_v49  ;;  %v13574_v46 = vld [vmem:[#allocation10 + $0xb0] sm:$0xff]   ;;  %v13576_v49 = vld [vmem:[#allocation10 + $0xf8] sm:$0xff]  }
 0x165   : > { %1082 = vmatmul.mubr.bf16.vlgmr.msra.gmra.mrb[0].mxu0 %v16241_v18 }
 0x166   : > { %12735 = vmatpush3.bf16.msra.mxu0 %v13495_v19  ;;  %1122 = vmatprep.mubr.bf16.mxu0 %v16245_v22  ;;  %v16259_v19 = vld [vmem:[%s16209_s29 + $0x10] ss:$24 sps:$4 sm:$0xff]  }
 0x167   : > { %12736 = vmatprep.subr.bf16.mxu0 %v13496_v20  ;;  %12791 = vmatpush3.bf16.msra.mxu1 %v13540_v51  ;;  %v13548_v20 = vld [vmem:[#allocation10 + $0xc0] sm:$0xff]   ;;  %v13578_v51 = vld [vmem:[#allocation10 + $0xb8] sm:$0xff]  }
 0x168   : > { %12792 = vmatprep.subr.bf16.mxu1 %v13542_v53  ;;  %v13580_v53 = vld [vmem:[#allocation10 + $0x340] sm:$0xff]  }
 0x16a   : > { %12737 = vmatpush3.bf16.msra.mxu0 %v13497_v21  ;;  %v13573_v21 = vld [vmem:[#allocation10 + $0x170] sm:$0xff]  }
 0x16b   : > { %12738 = vmatprep.subr.bf16.mxu0 %v13498_v23  ;;  %12793 = vmatpush3.bf16.msra.mxu1 %v13544_v54  ;;  %v13550_v23 = vld [vmem:[#allocation10 + $0x80] sm:$0xff]   ;;  %v13605_v54 = vld [vmem:[#allocation10 + $0x3f0] sm:$0xff]  }
 0x16c   : > { %12822 = vmatprep.subr.bf16.mxu1 %v13549_v58  ;;  %v13584_v58 = vld [vmem:[#allocation10 + $0x348] sm:$0xff]  }
 0x16e   : > { %12739 = vmatpush3.bf16.msra.mxu0 %v13499_v25  ;;  %1500 = vmatmul.mubr.bf16.vlgmr.msra.gmra.mrb[0].mxu1 %v16241_v18  ;;  %v13552_v25 = vld [vmem:[#allocation10 + $0xc8] sm:$0xff]  }
 0x16f   : > { %12740 = vmatprep.subr.bf16.mxu0 %v13500_v27  ;;  %12823 = vmatpush3.bf16.msra.mxu1 %v13551_v60  ;;  %v13554_v27 = vld [vmem:[#allocation10 + $0x88] sm:$0xff]  }
 0x170   : > { %1581 = vmatprep.mubr.bf16.mxu1 %v16253_v56  ;;  %12824 = vmatprep.subr.bf16.mxu1 %v13553_v62  ;;  %v13586_v60 = vld [vmem:[#allocation10 + $0x308] sm:$0xff]   ;;  %v13588_v62 = vld [vmem:[#allocation10 + $0x350] sm:$0xff]  }
 0x172   : > { %12741 = vmatpush3.bf16.msra.mxu0 %v13501_v29  ;;  %v13556_v29 = vld [vmem:[#allocation10 + $0xd0] sm:$0xff]  }
 0x173   : > { %12742 = vmatprep.subr.bf16.mxu0 %v13502_v31  ;;  %12825 = vmatpush3.bf16.msra.mxu1 %v13555_v0  ;;  %v13558_v31 = vld [vmem:[#allocation10 + $0x90] sm:$0xff]   ;;  %v13592_v0 = vld [vmem:[#allocation10 + $0x358] sm:$0xff]  }
 0x174   : > { %12826 = vmatprep.subr.bf16.mxu1 %v13557_v2  ;;  %v13596_v2 = vld [vmem:[#allocation10 + $0x360] sm:$0xff]  }
 0x176   : > { %12743 = vmatpush3.bf16.msra.mxu0 %v13503_v33  ;;  %v13560_v33 = vld [vmem:[#allocation10 + $0xd8] sm:$0xff]  }
 0x177   : > { %12744 = vmatprep.subr.bf16.mxu0 %v13504_v35  ;;  %12827 = vmatpush3.bf16.msra.mxu1 %v13559_v4  ;;  %v13562_v35 = vld [vmem:[#allocation10 + $0x98] sm:$0xff]   ;;  %v13600_v4 = vld [vmem:[#allocation10 + $0x368] sm:$0xff]  }
 0x178   : > { %12828 = vmatprep.subr.bf16.mxu1 %v13561_v6  ;;  %v13604_v6 = vld [vmem:[#allocation10 + $0x370] sm:$0xff]  }
 0x17a   : > { %12745 = vmatpush3.bf16.msra.mxu0 %v13505_v37  ;;  %v13564_v37 = vld [vmem:[#allocation10 + $0xe0] sm:$0xff]  }
 0x17b   : > { %12746 = vmatprep.subr.bf16.mxu0 %v13506_v39  ;;  %12829 = vmatpush3.bf16.msra.mxu1 %v13563_v8  ;;  %v13566_v39 = vld [vmem:[#allocation10 + $0xa0] sm:$0xff]   ;;  %v13610_v8 = vld [vmem:[#allocation10 + $0x338] sm:$0xff]  }
 0x17c   : > { %12830 = vmatprep.subr.bf16.mxu1 %v13565_v10  ;;  %v13614_v10 = vld [vmem:[#allocation10 + $0x448] sm:$0xff]  }
 0x17e   : > { %12747 = vmatpush3.bf16.msra.mxu0 %v13507_v41  ;;  %v13568_v41 = vld [vmem:[#allocation10 + $0xe8] sm:$0xff]  }
 0x17f   : > { %12748 = vmatprep.subr.bf16.mxu0 %v13508_v43  ;;  %12831 = vmatpush3.bf16.msra.mxu1 %v13567_v13  ;;  %v13570_v43 = vld [vmem:[#allocation10 + $0xa8] sm:$0xff]   ;;  %v13616_v13 = vld [vmem:[#allocation10 + $0x450] sm:$0xff]  }
 0x180   : > { %12832 = vmatprep.subr.bf16.mxu1 %v13569_v15  ;;  %v13618_v15 = vld [vmem:[#allocation10 + $0x458] sm:$0xff]  }
 0x182   : > { %12749 = vmatpush3.bf16.msra.mxu0 %v13509_v45  ;;  %v13597_v45 = vld [vmem:[#allocation10 + $0x3e0] sm:$0xff]  }
 0x183   : > { %12756 = vmatprep.subr.bf16.mxu0 %v13513_v47  ;;  %12833 = vmatpush3.bf16.msra.mxu1 %v13571_v17  ;;  %v13599_v47 = vld [vmem:[#allocation10 + $0x3a0] sm:$0xff]  }
 0x184   : > { %12834 = vmatprep.subr.bf16.mxu1 %v13573_v21  ;;  %v13620_v17 = vld [vmem:[#allocation10 + $0x460] sm:$0xff]   ;;  %v13622_v21 = vld [vmem:[#allocation10 + $0x468] sm:$0xff]  }
 0x185   : > { %1123 = vmatmul.mubr.bf16.vlgmr.msra.gmra.mrb[4].mxu0 %v16249_v48 }
 0x186   : > { %12757 = vmatpush3.bf16.msra.mxu0 %v13515_v50  ;;  %1163 = vmatprep.mubr.bf16.mxu0 %v16253_v56  ;;  %v13601_v50 = vld [vmem:[#allocation10 + $0x3e8] sm:$0xff]  }
 0x187   : > { %12758 = vmatprep.subr.bf16.mxu0 %v13517_v52  ;;  %12835 = vmatpush3.bf16.msra.mxu1 %v13575_v24  ;;  %v13603_v52 = vld [vmem:[#allocation10 + $0x3a8] sm:$0xff]   ;;  %v13626_v24 = vld [vmem:[#allocation10 + $0x478] sm:$0xff]  }
 0x188   : > { %12836 = vmatprep.subr.bf16.mxu1 %v13577_v26  ;;  %v13630_v26 = vld [vmem:[#allocation7 + $0x304] ss:$8 sps:$4 sm:$0xff]  }
 0x18a   : > { %12759 = vmatpush3.bf16.msra.mxu0 %v13519_v55  ;;  %v13582_v55 = vld [vmem:[#allocation10 + $0x300] sm:$0xff]  }
 0x18b   : > { %12760 = vmatprep.subr.bf16.mxu0 %v13521_v57  ;;  %12837 = vmatpush3.bf16.msra.mxu1 %v13579_v28  ;;  %v13607_v57 = vld [vmem:[#allocation10 + $0x3b0] sm:$0xff]  }
 0x18c   : > { %12866 = vmatprep.subr.bf16.mxu1 %v13581_v30  ;;  %v13676_v28 = vld [vmem:[%s16202_s21 + $0x4] ss:$24 sps:$4 sm:$0xff]   ;;  %v13631_v30 = vld [vmem:[#allocation7 + $0x310] ss:$8 sps:$4 sm:$0xff]  }
 0x18e   : > { %12761 = vmatpush3.bf16.msra.mxu0 %v13523_v59  ;;  %1582 = vmatmul.mubr.bf16.vlgmr.msra.gmra.mrb[4].mxu1 %v16259_v19  ;;  %v13609_v59 = vld [vmem:[#allocation10 + $0x3f8] sm:$0xff]  }
 0x18f   : > { %12762 = vmatprep.subr.bf16.mxu0 %v13525_v61  ;;  %12867 = vmatpush3.bf16.msra.mxu1 %v13583_v32  ;;  %v13611_v61 = vld [vmem:[#allocation10 + $0x3b8] sm:$0xff]  }
 0x190   : > { %2048 = vmatprep.mubr.bf16.mxu1 %v16245_v22  ;;  %12868 = vmatprep.subr.bf16.mxu1 %v13585_v34  ;;  %v13634_v32 = vld [vmem:[#allocation7 + $0x320] ss:$8 sps:$4 sm:$0xff]   ;;  %v13637_v34 = vld [vmem:[#allocation7 + $0x330] ss:$8 sps:$4 sm:$0xff]  }
 0x192   : > { %12763 = vmatpush3.bf16.msra.mxu0 %v13527_v63  ;;  %v13590_v63 = vld [vmem:[#allocation10 + $0x310] sm:$0xff]  }
 0x193   : > { %12764 = vmatprep.subr.bf16.mxu0 %v13529_v1  ;;  %12869 = vmatpush3.bf16.msra.mxu1 %v13587_v36  ;;  %v13594_v1 = vld [vmem:[#allocation10 + $0x318] sm:$0xff]  }
 0x194   : > { %12870 = vmatprep.subr.bf16.mxu1 %v13589_v38  ;;  %v13640_v36 = vld [vmem:[#allocation7 + $0x340] ss:$8 sps:$4 sm:$0xff]   ;;  %v13643_v38 = vld [vmem:[#allocation7 + $0x350] ss:$8 sps:$4 sm:$0xff]  }
 0x196   : > { %12765 = vmatpush3.bf16.msra.mxu0 %v13531_v3  ;;  %v13598_v3 = vld [vmem:[#allocation10 + $0x320] sm:$0xff]  }
 0x197   : > { %12766 = vmatprep.subr.bf16.mxu0 %v13533_v5  ;;  %12871 = vmatpush3.bf16.msra.mxu1 %v13591_v40  ;;  %v13602_v5 = vld [vmem:[#allocation10 + $0x328] sm:$0xff]  }
 0x198   : > { %12872 = vmatprep.subr.bf16.mxu1 %v13593_v42  ;;  %v13651_v40 = vld [vmem:[#allocation7 + $0x374] ss:$8 sps:$4 sm:$0xff]   ;;  %v13654_v42 = vld [vmem:[#allocation7 + $0x384] ss:$8 sps:$4 sm:$0xff]  }
 0x19a   : > { %12767 = vmatpush3.bf16.msra.mxu0 %v13535_v7  ;;  %v13608_v7 = vld [vmem:[#allocation10 + $0x378] sm:$0xff]  }
 0x19b   : > { %12768 = vmatprep.subr.bf16.mxu0 %v13537_v9  ;;  %v13613_v9 = vld [vmem:[#allocation10 + $0x400] sm:$0xff]  }
 0x19e   : > { %12769 = vmatpush3.bf16.msra.mxu0 %v13539_v12  ;;  %v13615_v12 = vld [vmem:[#allocation10 + $0x408] sm:$0xff]  }
 0x19f   : > { %12770 = vmatprep.subr.bf16.mxu0 %v13541_v14  ;;  %v13617_v14 = vld [vmem:[#allocation10 + $0x410] sm:$0xff]  }
 0x1a2   : > { %12771 = vmatpush3.bf16.msra.mxu0 %v13543_v16  ;;  %v13619_v16 = vld [vmem:[#allocation10 + $0x418] sm:$0xff]  }
 0x1a3   : > { %12800 = vmatprep.subr.bf16.mxu0 %v13548_v20  ;;  %v13621_v20 = vld [vmem:[#allocation10 + $0x420] sm:$0xff]  }
 0x1a5   : > { %1164 = vmatmul.mubr.bf16.vlgmr.msra.gmra.mrb[8].mxu0 %v16259_v19 }
 0x1a6   : > { %12801 = vmatpush3.bf16.msra.mxu0 %v13550_v23  ;;  %1540 = vmatprep.mubr.bf16.mxu0 %v16245_v22  ;;  %v13595_v22 = vld [vmem:[#allocation10 + $0x398] sm:$0xff]   ;;  %v13624_v23 = vld [vmem:[#allocation10 + $0x470] sm:$0xff]  }
 0x1a7   : > { %12802 = vmatprep.subr.bf16.mxu0 %v13552_v25  ;;  %12873 = vmatpush3.bf16.msra.mxu1 %v13595_v22  ;;  %v13627_v25 = vld [vmem:[#allocation10 + $0x438] sm:$0xff]  }
 0x1a8   : > { %12874 = vmatprep.subr.bf16.mxu1 %v13597_v45  ;;  %v13657_v22 = vld [vmem:[#allocation7 + $0x394] ss:$8 sps:$4 sm:$0xff]   ;;  %v13660_v45 = vld [vmem:[#allocation7 + $0x3a4] ss:$8 sps:$4 sm:$0xff]  }
 0x1aa   : > { %12803 = vmatpush3.bf16.msra.mxu0 %v13554_v27  ;;  %v13628_v27 = vld [vmem:[#allocation7 + $0x300] ss:$8 sps:$4 sm:$0xff]  }
 0x1ab   : > { %12804 = vmatprep.subr.bf16.mxu0 %v13556_v29  ;;  %12875 = vmatpush3.bf16.msra.mxu1 %v13599_v47  ;;  %v13633_v29 = vld [vmem:[#allocation7 + $0x314] ss:$8 sps:$4 sm:$0xff]  }
 0x1ac   : > { %12876 = vmatprep.subr.bf16.mxu1 %v13601_v50  ;;  %v13663_v47 = vld [vmem:[#allocation7 + $0x3b4] ss:$8 sps:$4 sm:$0xff]   ;;  %v13666_v50 = vld [vmem:[#allocation7 + $0x3c4] ss:$8 sps:$4 sm:$0xff]  }
 0x1ae   : > { %12805 = vmatpush3.bf16.msra.mxu0 %v13558_v31  ;;  %v13636_v31 = vld [vmem:[#allocation7 + $0x324] ss:$8 sps:$4 sm:$0xff]  }
 0x1af   : > { %12806 = vmatprep.subr.bf16.mxu0 %v13560_v33  ;;  %12877 = vmatpush3.bf16.msra.mxu1 %v13603_v52  ;;  %v13639_v33 = vld [vmem:[#allocation7 + $0x334] ss:$8 sps:$4 sm:$0xff]  }
 0x1b0   : > { %12878 = vmatprep.subr.bf16.mxu1 %v13605_v54  ;;  %v13669_v52 = vld [vmem:[#allocation7 + $0x3d4] ss:$8 sps:$4 sm:$0xff]   ;;  %v13672_v54 = vld [vmem:[#allocation7 + $0x3e4] ss:$8 sps:$4 sm:$0xff]  }
 0x1b2   : > { %12807 = vmatpush3.bf16.msra.mxu0 %v13562_v35  ;;  %v13642_v35 = vld [vmem:[#allocation7 + $0x344] ss:$8 sps:$4 sm:$0xff]  }
 0x1b3   : > { %12808 = vmatprep.subr.bf16.mxu0 %v13564_v37  ;;  %12879 = vmatpush3.bf16.msra.mxu1 %v13607_v57  ;;  %v13645_v37 = vld [vmem:[#allocation7 + $0x354] ss:$8 sps:$4 sm:$0xff]   ;;  %v13670_v57 = vld [vmem:[#allocation7 + $0x3e0] ss:$8 sps:$4 sm:$0xff]  }
 0x1b4   : > { %12880 = vmatprep.subr.bf16.mxu1 %v13609_v59 }
 0x1b6   : > { %12809 = vmatpush3.bf16.msra.mxu0 %v13566_v39  ;;  %v13646_v39 = vld [vmem:[#allocation7 + $0x360] ss:$8 sps:$4 sm:$0xff]  }
 0x1b7   : > { %12810 = vmatprep.subr.bf16.mxu0 %v13568_v41  ;;  %12881 = vmatpush3.bf16.msra.mxu1 %v13611_v61  ;;  %v13649_v41 = vld [vmem:[#allocation7 + $0x370] ss:$8 sps:$4 sm:$0xff]  }
 0x1ba   : > { %12811 = vmatpush3.bf16.msra.mxu0 %v13570_v43  ;;  %2049 = vmatmul.mubr.bf16.vlgmr.msra.gmra.mrb[8].mxu1 %v16249_v48  ;;  %v13652_v43 = vld [vmem:[#allocation7 + $0x380] ss:$8 sps:$4 sm:$0xff]  }
 0x1bb   : > { %12812 = vmatprep.subr.bf16.mxu0 %v13572_v44  ;;  %v13655_v44 = vld [vmem:[#allocation7 + $0x390] ss:$8 sps:$4 sm:$0xff]  }
 0x1be   : > { %12813 = vmatpush3.bf16.msra.mxu0 %v13574_v46  ;;  %v13658_v46 = vld [vmem:[#allocation7 + $0x3a0] ss:$8 sps:$4 sm:$0xff]  }
 0x1bf   : > { %12814 = vmatprep.subr.bf16.mxu0 %v13576_v49  ;;  %v13661_v49 = vld [vmem:[#allocation7 + $0x3b0] ss:$8 sps:$4 sm:$0xff]  }
 0x1c2   : > { %12815 = vmatpush3.bf16.msra.mxu0 %v13578_v51  ;;  %v13664_v51 = vld [vmem:[#allocation7 + $0x3c0] ss:$8 sps:$4 sm:$0xff]  }
 0x1c3   : > { %12844 = vmatprep.subr.bf16.mxu0 %v13580_v53  ;;  %v13667_v53 = vld [vmem:[#allocation7 + $0x3d0] ss:$8 sps:$4 sm:$0xff]  }
 0x1c5   : > { %1541 = vmatmul.mubr.bf16.vlgmr.msra.gmra.mrb[12].mxu0 %v16249_v48  ;;  %v13612_v48 = vld [vmem:[#allocation10 + $0x440] sm:$0xff]  }
 0x1c6   : > { %12845 = vmatpush3.bf16.msra.mxu0 %v13582_v55  ;;  %2007 = vmatprep.mubr.bf16.mxu0 %v16236_v11  ;;  %v13606_v11 = vld [vmem:[#allocation10 + $0x330] sm:$0xff]  }
 0x1c7   : > { %12846 = vmatprep.subr.bf16.mxu0 %v13584_v58 }
 0x1ca   : > { %12847 = vmatpush3.bf16.msra.mxu0 %v13586_v60 }
 0x1cb   : > { %12848 = vmatprep.subr.bf16.mxu0 %v13588_v62  ;;  %v13675_v62 = vld [vmem:[#allocation7 + $0x3f4] ss:$8 sps:$4 sm:$0xff]  }
 0x1ce   : > { %12849 = vmatpush3.bf16.msra.mxu0 %v13590_v63 }
 0x1cf   : > { %12850 = vmatprep.subr.bf16.mxu0 %v13592_v0  ;;  %v13673_v0 = vld [vmem:[#allocation7 + $0x3f0] ss:$8 sps:$4 sm:$0xff]  }
 0x1d2   : > { %12851 = vmatpush3.bf16.msra.mxu0 %v13594_v1  ;;  %v13680_v1 = vld [vmem:[#allocation7 + $0x404] ss:$8 sps:$4 sm:$0xff]  }
 0x1d3   : > { %12852 = vmatprep.subr.bf16.mxu0 %v13596_v2  ;;  %v13681_v2 = vld [vmem:[%s16202_s21] ss:$24 sps:$4 sm:$0xff]  }
 0x1d6   : > { %12853 = vmatpush3.bf16.msra.mxu0 %v13598_v3  ;;  %v13678_v3 = vld [vmem:[#allocation7 + $0x400] ss:$8 sps:$4 sm:$0xff]  }
 0x1d7   : > { %12854 = vmatprep.subr.bf16.mxu0 %v13600_v4  ;;  %v13727_v4 = vld [vmem:[%s16202_s21 + $0xc] ss:$24 sps:$4 sm:$0xff]  }
 0x1da   : > { %12855 = vmatpush3.bf16.msra.mxu0 %v13602_v5  ;;  %v13684_v5 = vld [vmem:[#allocation7 + $0x414] ss:$8 sps:$4 sm:$0xff]  }
 0x1db   : > { %12856 = vmatprep.subr.bf16.mxu0 %v13604_v6  ;;  %v13682_v6 = vld [vmem:[#allocation7 + $0x410] ss:$8 sps:$4 sm:$0xff]  }
 0x1de   : > { %12857 = vmatpush3.bf16.msra.mxu0 %v13606_v11  ;;  %v13687_v11 = vld [vmem:[#allocation7 + $0x424] ss:$8 sps:$4 sm:$0xff]  }
 0x1df   : > { %12858 = vmatprep.subr.bf16.mxu0 %v13608_v7  ;;  %v13685_v7 = vld [vmem:[#allocation7 + $0x420] ss:$8 sps:$4 sm:$0xff]  }
 0x1e2   : > { %12859 = vmatpush3.bf16.msra.mxu0 %v13610_v8  ;;  %v13690_v8 = vld [vmem:[#allocation7 + $0x434] ss:$8 sps:$4 sm:$0xff]  }
 0x1e3   : > { %12888 = vmatprep.subr.bf16.mxu0 %v13612_v48  ;;  %v13688_v48 = vld [vmem:[#allocation7 + $0x430] ss:$8 sps:$4 sm:$0xff]  }
 0x1e5   : > { %2008 = vmatmul.mubr.bf16.vlgmr.msra.gmra.mrb[16].mxu0 %v16241_v18  ;;  %v13623_v18 = vld [vmem:[#allocation10 + $0x428] sm:$0xff]  }
 0x1e6   : > { %12889 = vmatpush3.bf16.msra.mxu0 %v13613_v9  ;;  %2089 = vmatprep.mubr.bf16.mxu0 %v16253_v56  ;;  %v13625_v56 = vld [vmem:[#allocation10 + $0x430] sm:$0xff]   ;;  %v13693_v9 = vld [vmem:[#allocation7 + $0x444] ss:$8 sps:$4 sm:$0xff]  }
 0x1e7   : > { %12890 = vmatprep.subr.bf16.mxu0 %v13614_v10  ;;  %v13691_v10 = vld [vmem:[#allocation7 + $0x440] ss:$8 sps:$4 sm:$0xff]  }
 0x1ea   : > { %12891 = vmatpush3.bf16.msra.mxu0 %v13615_v12  ;;  %v13696_v12 = vld [vmem:[#allocation7 + $0x454] ss:$8 sps:$4 sm:$0xff]  }
 0x1eb   : > { %12892 = vmatprep.subr.bf16.mxu0 %v13616_v13  ;;  %v13694_v13 = vld [vmem:[#allocation7 + $0x450] ss:$8 sps:$4 sm:$0xff]  }
 0x1ee   : > { %12893 = vmatpush3.bf16.msra.mxu0 %v13617_v14  ;;  %v15799_v14 = vmov 0.0|0.0  }
 0x1ef   : > { %12894 = vmatprep.subr.bf16.mxu0 %v13618_v15  ;;  %13118 = vmatprep.subr.bf16.mxu1 %v15799_v14  ;;  %v2128_v15 = vld [vmem:[#allocation13] sm:$0xff] }
 0x1f2   : > { %12895 = vmatpush3.bf16.msra.mxu0 %v13619_v16  ;;  %v2129_v16 = vld [vmem:[#allocation13 + $0x8] sm:$0xff] }
 0x1f3   : > { %12896 = vmatprep.subr.bf16.mxu0 %v13620_v17  ;;  %v13119_v17 = vpack.c.bf16 %v2129_v16, %v2128_v15 }
 0x1f5   : > { %13120 = vmatpush3.bf16.msra.mxu1 %v13119_v17 }
 0x1f6   : > { %12897 = vmatpush3.bf16.msra.mxu0 %v13621_v20  ;;  %v13699_v20 = vld [vmem:[#allocation7 + $0x464] ss:$8 sps:$4 sm:$0xff]   ;;  %13121 = vmatprep.subr.bf16.mxu1 %v15799_v14 }
 0x1f7   : > { %12898 = vmatprep.subr.bf16.mxu0 %v13622_v21 }
 0x1fa   : > { %12899 = vmatpush3.bf16.msra.mxu0 %v13623_v18  ;;  %v13697_v18 = vld [vmem:[#allocation7 + $0x460] ss:$8 sps:$4 sm:$0xff]  }
 0x1fb   : > { %12900 = vmatprep.subr.bf16.mxu0 %v13624_v23  ;;  %v2130_v23 = vld [vmem:[#allocation13 + $0x10] sm:$0xff] }
 0x1fe   : > { %12901 = vmatpush3.bf16.msra.mxu0 %v13625_v56  ;;  %v2131_v56 = vld [vmem:[#allocation13 + $0x18] sm:$0xff] }
 0x1ff   : > { %12902 = vmatprep.subr.bf16.mxu0 %v13626_v24 }
 0x202   : > { %12903 = vmatpush3.bf16.msra.mxu0 %v13627_v25  ;;  %v13122_v25 = vpack.c.bf16 %v2131_v56, %v2130_v23 }
 0x203   : > { %2929 = vmatprep.subr.bf16.mxu0 %v13630_v26 }
 0x204   : > { %13123 = vmatpush3.bf16.msra.mxu1 %v13122_v25 }
 0x205   : > { %2090 = vmatmul.mubr.bf16.vlgmr.msra.gmra.mrb[20].mxu0 %v16259_v19  ;;  %v13648_v19 = vld [vmem:[#allocation7 + $0x364] ss:$8 sps:$4 sm:$0xff]   ;;  %13124 = vmatprep.subr.bf16.mxu1 %v15799_v14 }
 0x206   : > { %2930 = vmatpush1.bf16.msra.mxu0 %v13628_v27  ;;  %2961 = vmatprep.mubr.bf16.mxu0 %v13676_v28 }
 0x207   : > { %2931 = vmatprep.subr.bf16.mxu0 %v13633_v29  ;;  %v13702_v29 = vld [vmem:[#allocation7 + $0x474] ss:$8 sps:$4 sm:$0xff]  }
 0x20a   : > { %2932 = vmatpush1.bf16.msra.mxu0 %v13631_v30 }
 0x20b   : > { %2933 = vmatprep.subr.bf16.mxu0 %v13636_v31 }
 0x20e   : > { %2934 = vmatpush1.bf16.msra.mxu0 %v13634_v32  ;;  %v13700_v32 = vld [vmem:[#allocation7 + $0x470] ss:$8 sps:$4 sm:$0xff]  }
 0x20f   : > { %2935 = vmatprep.subr.bf16.mxu0 %v13639_v33  ;;  %v2132_v33 = vld [vmem:[#allocation13 + $0x20] sm:$0xff] }
 0x212   : > { %2936 = vmatpush1.bf16.msra.mxu0 %v13637_v34  ;;  %v2133_v34 = vld [vmem:[#allocation13 + $0x28] sm:$0xff] }
 0x213   : > { %2937 = vmatprep.subr.bf16.mxu0 %v13642_v35  ;;  %v13125_v35 = vpack.c.bf16 %v2133_v34, %v2132_v33  ;;  %v13778_v33 = vld [vmem:[%s16202_s21 + $0x14] ss:$24 sps:$4 sm:$0xff]  }
 0x215   : > { %13126 = vmatpush3.bf16.msra.mxu1 %v13125_v35 }
 0x216   : > { %2938 = vmatpush1.bf16.msra.mxu0 %v13640_v36  ;;  %13127 = vmatprep.subr.bf16.mxu1 %v15799_v14 }
 0x217   : > { %2939 = vmatprep.subr.bf16.mxu0 %v13645_v37 }
 0x21a   : > { %2940 = vmatpush1.bf16.msra.mxu0 %v13643_v38  ;;  %v13705_v38 = vld [vmem:[#allocation7 + $0x484] ss:$8 sps:$4 sm:$0xff]  }
 0x21b   : > { %2941 = vmatprep.subr.bf16.mxu0 %v13648_v19 }
 0x21e   : > { %2942 = vmatpush1.bf16.msra.mxu0 %v13646_v39  ;;  %v13703_v39 = vld [vmem:[#allocation7 + $0x480] ss:$8 sps:$4 sm:$0xff]  }
 0x21f   : > { %2943 = vmatprep.subr.bf16.mxu0 %v13651_v40 }
 0x222   : > { %2944 = vmatpush1.bf16.msra.mxu0 %v13649_v41 }
 0x223   : > { %2945 = vmatprep.subr.bf16.mxu0 %v13654_v42  ;;  %v2134_v42 = vld [vmem:[#allocation13 + $0x30] sm:$0xff] }
 0x226   : > { %2946 = vmatpush1.bf16.msra.mxu0 %v13652_v43  ;;  %v2135_v43 = vld [vmem:[#allocation13 + $0x38] sm:$0xff] }
 0x227   : > { %2947 = vmatprep.subr.bf16.mxu0 %v13657_v22 }
 0x22a   : > { %2948 = vmatpush1.bf16.msra.mxu0 %v13655_v44  ;;  %v13128_v44 = vpack.c.bf16 %v2135_v43, %v2134_v42  ;;  %v13742_v42 = vld [vmem:[#allocation7 + $0x540] ss:$8 sps:$4 sm:$0xff]   ;;  %v13747_v43 = vld [vmem:[#allocation7 + $0x554] ss:$8 sps:$4 sm:$0xff]  }
 0x22b   : > { %2949 = vmatprep.subr.bf16.mxu0 %v13660_v45  ;;  %v13708_v45 = vld [vmem:[#allocation7 + $0x494] ss:$8 sps:$4 sm:$0xff]  }
 0x22c   : > { %13129 = vmatpush3.bf16.msra.mxu1 %v13128_v44 }
 0x22d   : > { %13130 = vmatprep.subr.bf16.mxu1 %v15799_v14 }
 0x22e   : > { %2950 = vmatpush1.bf16.msra.mxu0 %v13658_v46  ;;  %v13706_v46 = vld [vmem:[#allocation7 + $0x490] ss:$8 sps:$4 sm:$0xff]  }
 0x22f   : > { %2951 = vmatprep.subr.bf16.mxu0 %v13663_v47  ;;  %v2136_v47 = vld [vmem:[#allocation13 + $0x40] sm:$0xff] }
 0x232   : > { %2952 = vmatpush1.bf16.msra.mxu0 %v13661_v49  ;;  %v2137_v49 = vld [vmem:[#allocation13 + $0x48] sm:$0xff] }
 0x233   : > { %2953 = vmatprep.subr.bf16.mxu0 %v13666_v50  ;;  %v13131_v50 = vpack.c.bf16 %v2137_v49, %v2136_v47  ;;  %v13753_v47 = vld [vmem:[#allocation7 + $0x574] ss:$8 sps:$4 sm:$0xff]  }
 0x235   : > { %13132 = vmatpush3.bf16.msra.mxu1 %v13131_v50 }
 0x236   : > { %2954 = vmatpush1.bf16.msra.mxu0 %v13664_v51  ;;  %v13711_v51 = vld [vmem:[#allocation7 + $0x4a4] ss:$8 sps:$4 sm:$0xff]   ;;  %13133 = vmatprep.subr.bf16.mxu1 %v15799_v14 }
 0x237   : > { %2955 = vmatprep.subr.bf16.mxu0 %v13669_v52  ;;  %v2138_v52 = vld [vmem:[#allocation13 + $0x50] sm:$0xff] }
 0x238   : > { %v12728_v55 = vpop.f32.mrb[0].mxu0 }
 0x239   : > { %v12729_v58 = vpop.f32.mrb[1].mxu0 }
 0x23a   : > { %v12730_v59 = vadd.f32 %v12729_v58, %v12728_v55  ;;  %v12731_v60 = vpop.f32.mrb[2].mxu0  ;;  %2956 = vmatpush1.bf16.msra.mxu0 %v13667_v53  ;;  %v2139_v53 = vld [vmem:[#allocation13 + $0x58] sm:$0xff]  ;;  %v2140_v58 = vld [vmem:[#allocation13 + $0x60] sm:$0xff] }
 0x23b   : > { %v12732_v61 = vpop.f32.mrb[3].mxu0  ;;  %2957 = vmatprep.subr.bf16.mxu0 %v13672_v54  ;;  %v13134_v54 = vpack.c.bf16 %v2139_v53, %v2138_v52  ;;  %v13709_v55 = vld [vmem:[#allocation7 + $0x4a0] ss:$8 sps:$4 sm:$0xff]   ;;  %v13751_v53 = vld [vmem:[#allocation7 + $0x570] ss:$8 sps:$4 sm:$0xff]  }
 0x23c   : > { %v12733_v63 = vadd.f32 %v12732_v61, %v12731_v60  ;;  %v13712_v61 = vld [vmem:[#allocation7 + $0x4b0] ss:$8 sps:$4 sm:$0xff]  }
 0x23d   : > { %13135 = vmatpush3.bf16.msra.mxu1 %v13134_v54  ;;  %v13756_v54 = vld [vmem:[#allocation7 + $0x584] ss:$8 sps:$4 sm:$0xff]  }
 0x23e   : > { %2958 = vmatpush1.bf16.msra.mxu0 %v13670_v57  ;;  %v13714_v57 = vld [vmem:[#allocation7 + $0x4b4] ss:$8 sps:$4 sm:$0xff]   ;;  %13136 = vmatprep.subr.bf16.mxu1 %v15799_v14 }
 0x23f   : > { %2959 = vmatprep.subr.bf16.mxu0 %v13675_v62  ;;  %v13717_v62 = vld [vmem:[#allocation7 + $0x4c4] ss:$8 sps:$4 sm:$0xff]  }
 0x241   : > { %v12794_v37 = vpop.f32.mrb[0].mxu1 }
 0x242   : > { %2960 = vmatpush1.bf16.msra.mxu0 %v13673_v0  ;;  %v12795_v19 = vpop.f32.mrb[1].mxu1  ;;  %v2143_v0 = vld [vmem:[#allocation13 + $0x78] sm:$0xff] }
 0x243   : > { %2972 = vmatprep.subr.bf16.mxu0 %v13680_v1  ;;  %v16281_v40 = vadd.f32 %v12795_v19, %v12794_v37  ;;  %v12797_v41 = vpop.f32.mrb[2].mxu1  ;;  %v13738_v37 = vld [vmem:[#allocation7 + $0x524] ss:$8 sps:$4 sm:$0xff]   ;;  %v13741_v19 = vld [vmem:[#allocation7 + $0x534] ss:$8 sps:$4 sm:$0xff]  }
 0x244   : > { %v12798_v22 = vpop.f32.mrb[3].mxu1  ;;  %v13744_v41 = vld [vmem:[#allocation7 + $0x544] ss:$8 sps:$4 sm:$0xff]  }
 0x245   : > { %2962 = vmatmul.mubr.bf16.vlgmr.msra.gmra.mrb[24].mxu0 %v13681_v2  ;;  %v13715_v2 = vld [vmem:[#allocation7 + $0x4c0] ss:$8 sps:$4 sm:$0xff]   ;;  %v13750_v22 = vld [vmem:[#allocation7 + $0x564] ss:$8 sps:$4 sm:$0xff]  }
 0x246   : > { %2973 = vmatpush1.bf16.msra.mxu0 %v13678_v3  ;;  %3004 = vmatprep.mubr.bf16.mxu0 %v13727_v4  ;;  %v13720_v3 = vld [vmem:[#allocation7 + $0x4d4] ss:$8 sps:$4 sm:$0xff]   ;;  %v13822_v4 = vld [vmem:[#allocation7 + $0x4] ss:$8 sps:$4 sm:$0xff]  }
 0x247   : > { %2974 = vmatprep.subr.bf16.mxu0 %v13684_v5  ;;  %v13718_v5 = vld [vmem:[#allocation7 + $0x4d0] ss:$8 sps:$4 sm:$0xff]  }
 0x24a   : > { %2975 = vmatpush1.bf16.msra.mxu0 %v13682_v6  ;;  %v15801_v6 = vmov 0.0  }
 0x24b   : > { %2976 = vmatprep.subr.bf16.mxu0 %v13687_v11  ;;  %13010 = vmatprep.mubr.msk.f32.mxu1 %vm15800_vm0, %v15801_v6  ;;  %v13723_v11 = vld [vmem:[#allocation7 + $0x4e4] ss:$8 sps:$4 sm:$0xff]  }
 0x24e   : > { %2977 = vmatpush1.bf16.msra.mxu0 %v13685_v7  ;;  %v1174_v7 = vlaneseq }
 0x24f   : > { %2978 = vmatprep.subr.bf16.mxu0 %v13690_v8 }
 0x250   : > { %v16290_v16 = vshrl.u32 %v1174_v7, 7  ;;  %v13766_v7 = vld [vmem:[#allocation7 + $0x5c0] ss:$8 sps:$4 sm:$0xff]  }
 0x252   : > { %2979 = vmatpush1.bf16.msra.mxu0 %v13688_v48  ;;  %vm1176_vm1 = vcmp.lt.s32.totalorder %v16290_v16, 7  ;;  %vm2100_vm2 = vcmp.lt.s32.totalorder %v16290_v16, 6  ;;  %vm7363_vm4 = vcmp.lt.s32.totalorder %v16290_v16, 5  ;;  %vm11062_vm6 = vcmp.lt.s32.totalorder %v16290_v16, 4 }
 0x253   : > { %2980 = vmatprep.subr.bf16.mxu0 %v13693_v9  ;;  %v13721_v9 = vld [vmem:[#allocation7 + $0x4e0] ss:$8 sps:$4 sm:$0xff]  }
 0x256   : > { %2981 = vmatpush1.bf16.msra.mxu0 %v13691_v10  ;;  %v13726_v10 = vld [vmem:[#allocation7 + $0x4f4] ss:$8 sps:$4 sm:$0xff]  }
 0x257   : > { %2982 = vmatprep.subr.bf16.mxu0 %v13696_v12 }
 0x258   : > { %v12750_v21 = vpop.f32.mrb[4].mxu0 }
 0x259   : > { %v12751_v24 = vpop.f32.mrb[5].mxu0 }
 0x25a   : > { %v12752_v26 = vadd.f32 %v12751_v24, %v12750_v21  ;;  %v12753_v27 = vpop.f32.mrb[6].mxu0  ;;  %2983 = vmatpush1.bf16.msra.mxu0 %v13694_v13  ;;  %v13724_v21 = vld [vmem:[#allocation7 + $0x4f0] ss:$8 sps:$4 sm:$0xff]  }
 0x25b   : > { %v12754_v28 = vpop.f32.mrb[7].mxu0  ;;  %2984 = vmatprep.subr.bf16.mxu0 %v13699_v20 }
 0x25c   : > { %v16276_v30 = vadd.f32 %v12752_v26, %v12730_v59  ;;  %v12755_v31 = vadd.f32 %v12754_v28, %v12753_v27  ;;  %v2141_v59 = vld [vmem:[#allocation13 + $0x68] sm:$0xff]  ;;  %v13729_v27 = vld [vmem:[#allocation7 + $0x500] ss:$8 sps:$4 sm:$0xff]  }
 0x25d   : > { %v13137_v60 = vpack.c.bf16 %v2141_v59, %v2140_v58  ;;  %v13732_v28 = vld [vmem:[%s16202_s21 + $0x8] ss:$24 sps:$4 sm:$0xff]  }
 0x25e   : > { %v16279_v36 = vadd.f32 %v12755_v31, %v12733_v63  ;;  %2985 = vmatpush1.bf16.msra.mxu0 %v13697_v18  ;;  %v2142_v63 = vld [vmem:[#allocation13 + $0x70] sm:$0xff]  ;;  %v13731_v18 = vld [vmem:[#allocation7 + $0x504] ss:$8 sps:$4 sm:$0xff]  }
 0x25f   : > { %2986 = vmatprep.subr.bf16.mxu0 %v13702_v29  ;;  %13138 = vmatpush3.bf16.msra.mxu1 %v13137_v60  ;;  %v13140_v1 = vpack.c.bf16 %v2143_v0, %v2142_v63 }
 0x260   : > { %13139 = vmatprep.subr.bf16.mxu1 %v15799_v14 }
 0x261   : > { %v12838_v56 = vpop.f32.mrb[4].mxu1 }
 0x262   : > { %2987 = vmatpush1.bf16.msra.mxu0 %v13700_v32  ;;  %v12839_v24 = vpop.f32.mrb[5].mxu1  ;;  %v13735_v32 = vld [vmem:[#allocation7 + $0x514] ss:$8 sps:$4 sm:$0xff]  }
 0x263   : > { %2988 = vmatprep.subr.bf16.mxu0 %v13705_v38  ;;  %13141 = vmatpush3.bf16.msra.mxu1 %v13140_v1  ;;  %v12840_v29 = vadd.f32 %v12839_v24, %v12838_v56  ;;  %v12841_v31 = vpop.f32.mrb[6].mxu1  ;;  %v13736_v38 = vld [vmem:[#allocation7 + $0x520] ss:$8 sps:$4 sm:$0xff]   ;;  %v13757_v1 = vld [vmem:[#allocation7 + $0x590] ss:$8 sps:$4 sm:$0xff]  }
 0x264   : > { %3546 = vmatprep.subr.bf16.mxu1 %v13822_v4  ;;  %v13765_v4 = vld [vmem:[#allocation7 + $0x5b4] ss:$8 sps:$4 sm:$0xff]   ;;  %v13775_v56 = vld [vmem:[#allocation7 + $0x5f0] ss:$8 sps:$4 sm:$0xff]   ;;  %v13783_v24 = vld [vmem:[#allocation7 + $0x604] ss:$8 sps:$4 sm:$0xff]  }
 0x265   : > { %v13789_v31 = vld [vmem:[#allocation7 + $0x624] ss:$8 sps:$4 sm:$0xff]  }
 0x266   : > { %2989 = vmatpush1.bf16.msra.mxu0 %v13703_v39  ;;  %v13739_v39 = vld [vmem:[#allocation7 + $0x530] ss:$8 sps:$4 sm:$0xff]  }
 0x267   : > { %2990 = vmatprep.subr.bf16.mxu0 %v13708_v45 }
 0x26a   : > { %2991 = vmatpush1.bf16.msra.mxu0 %v13706_v46  ;;  %v13748_v46 = vld [vmem:[#allocation7 + $0x560] ss:$8 sps:$4 sm:$0xff]  }
 0x26b   : > { %2992 = vmatprep.subr.bf16.mxu0 %v13711_v51 }
 0x26e   : > { %2993 = vmatpush1.bf16.msra.mxu0 %v13709_v55 }
 0x26f   : > { %2994 = vmatprep.subr.bf16.mxu0 %v13714_v57 }
 0x272   : > { %2995 = vmatpush1.bf16.msra.mxu0 %v13712_v61  ;;  %v13754_v61 = vld [vmem:[#allocation7 + $0x580] ss:$8 sps:$4 sm:$0xff]  }
 0x273   : > { %2996 = vmatprep.subr.bf16.mxu0 %v13717_v62  ;;  %v13759_v62 = vld [vmem:[#allocation7 + $0x594] ss:$8 sps:$4 sm:$0xff]  }
 0x276   : > { %2997 = vmatpush1.bf16.msra.mxu0 %v13715_v2  ;;  %v13762_v2 = vld [vmem:[#allocation7 + $0x5a4] ss:$8 sps:$4 sm:$0xff]  }
 0x277   : > { %2998 = vmatprep.subr.bf16.mxu0 %v13720_v3  ;;  %v13760_v3 = vld [vmem:[#allocation7 + $0x5a0] ss:$8 sps:$4 sm:$0xff]  }
 0x278   : > { %v12772_v8 = vpop.f32.mrb[8].mxu0 }
 0x279   : > { %v12773_v48 = vpop.f32.mrb[9].mxu0 }
 0x27a   : > { %v12774_v12 = vadd.f32 %v12773_v48, %v12772_v8  ;;  %v12775_v13 = vpop.f32.mrb[10].mxu0  ;;  %2999 = vmatpush1.bf16.msra.mxu0 %v13718_v5  ;;  %v13763_v5 = vld [vmem:[#allocation7 + $0x5b0] ss:$8 sps:$4 sm:$0xff]   ;;  %v13771_v8 = vld [vmem:[#allocation7 + $0x5d4] ss:$8 sps:$4 sm:$0xff]  }
 0x27b   : > { %v12776_v15 = vpop.f32.mrb[11].mxu0  ;;  %3000 = vmatprep.subr.bf16.mxu0 %v13723_v11  ;;  %v13768_v11 = vld [vmem:[#allocation7 + $0x5c4] ss:$8 sps:$4 sm:$0xff]   ;;  %v13769_v48 = vld [vmem:[#allocation7 + $0x5d0] ss:$8 sps:$4 sm:$0xff]  }
 0x27c   : > { %v1166_v17 = vadd.f32 %v12774_v12, %v16276_v30  ;;  %v12777_v20 = vadd.f32 %v12776_v15, %v12775_v13  ;;  %v12842_v30 = vpop.f32.mrb[7].mxu1  ;;  %v13772_v13 = vld [vmem:[#allocation7 + $0x5e0] ss:$8 sps:$4 sm:$0xff]   ;;  %v13777_v15 = vld [vmem:[#allocation7 + $0x5f4] ss:$8 sps:$4 sm:$0xff]  }
 0x27d   : > { %v13787_v30 = vld [vmem:[#allocation7 + $0x620] ss:$8 sps:$4 sm:$0xff]  }
 0x27e   : > { %v1169_v23 = vadd.f32 %v12777_v20, %v16279_v36  ;;  %3001 = vmatpush1.bf16.msra.mxu0 %v13721_v9  ;;  %v1172_v25 = vrot.slane %v1166_v17, 1  ;;  %v13733_v36 = vld [vmem:[#allocation7 + $0x510] ss:$8 sps:$4 sm:$0xff]   ;;  %v13774_v9 = vld [vmem:[#allocation7 + $0x5e4] ss:$8 sps:$4 sm:$0xff]  }
 0x27f   : > { %3002 = vmatprep.subr.bf16.mxu0 %v13726_v10 }
 0x280   : > { %v1173_v26 = vrot.slane %v1169_v23, 1 }
 0x282   : > { %v1177_v34 = vsel %vm1176_vm1, %v1172_v25, %v1173_v26  ;;  %3003 = vmatpush1.bf16.msra.mxu0 %v13724_v21  ;;  %v13780_v26 = vld [vmem:[%s16202_s21 + $0x10] ss:$24 sps:$4 sm:$0xff]  }
 0x283   : > { %v1502_v35 = vadd.f32 %v16281_v40, %v1177_v34  ;;  %3015 = vmatprep.subr.bf16.mxu0 %v13731_v18  ;;  %v13745_v40 = vld [vmem:[#allocation7 + $0x550] ss:$8 sps:$4 sm:$0xff]  }
 0x284   : > { %v13790_v34 = vld [vmem:[#allocation7 + $0x630] ss:$8 sps:$4 sm:$0xff]  }
 0x285   : > { %3005 = vmatmul.mubr.bf16.vlgmr.msra.gmra.mrb[24].mxu0 %v13732_v28  ;;  %v13786_v28 = vld [vmem:[#allocation7 + $0x614] ss:$8 sps:$4 sm:$0xff]  }
 0x286   : > { %3016 = vmatpush1.bf16.msra.mxu0 %v13729_v27  ;;  %3047 = vmatprep.mubr.bf16.mxu0 %v13778_v33  ;;  %v13781_v27 = vld [vmem:[#allocation7 + $0x600] ss:$8 sps:$4 sm:$0xff]   ;;  %v13792_v33 = vld [vmem:[#allocation7 + $0x634] ss:$8 sps:$4 sm:$0xff]  }
 0x287   : > { %3017 = vmatprep.subr.bf16.mxu0 %v13735_v32  ;;  %v16304_v32 = vld [vmem:[%s16202_s21 + $0x4] ss:$24 sps:$4 sm:$0xff]  }
 0x28a   : > { %3018 = vmatpush1.bf16.msra.mxu0 %v13733_v36  ;;  %v13793_v36 = vld [vmem:[#allocation7 + $0x640] ss:$8 sps:$4 sm:$0xff]  }
 0x28b   : > { %3019 = vmatprep.subr.bf16.mxu0 %v13738_v37  ;;  %v13798_v37 = vld [vmem:[#allocation7 + $0x654] ss:$8 sps:$4 sm:$0xff]  }
 0x28d   : > { %v12882_v57 = vpop.f32.mrb[8].mxu1 }
 0x28e   : > { %3020 = vmatpush1.bf16.msra.mxu0 %v13736_v38  ;;  %v12883_v58 = vpop.f32.mrb[9].mxu1  ;;  %v13796_v38 = vld [vmem:[#allocation7 + $0x650] ss:$8 sps:$4 sm:$0xff]  }
 0x28f   : > { %3021 = vmatprep.subr.bf16.mxu0 %v13741_v19  ;;  %v12884_v59 = vadd.f32 %v12883_v58, %v12882_v57  ;;  %v12885_v60 = vpop.f32.mrb[10].mxu1  ;;  %v13801_v19 = vld [vmem:[#allocation7 + $0x664] ss:$8 sps:$4 sm:$0xff]   ;;  %v13810_v57 = vld [vmem:[#allocation7 + $0x694] ss:$8 sps:$4 sm:$0xff]  }
 0x290   : > { %v12886_v63 = vpop.f32.mrb[11].mxu1 }
 0x291   : > { %v12887_v0 = vadd.f32 %v12886_v63, %v12885_v60  ;;  %v13808_v60 = vld [vmem:[#allocation7 + $0x690] ss:$8 sps:$4 sm:$0xff]  }
 0x292   : > { %3022 = vmatpush1.bf16.msra.mxu0 %v13739_v39 }
 0x293   : > { %3023 = vmatprep.subr.bf16.mxu0 %v13744_v41 }
 0x296   : > { %3024 = vmatpush1.bf16.msra.mxu0 %v13742_v42  ;;  %v13799_v42 = vld [vmem:[#allocation7 + $0x660] ss:$8 sps:$4 sm:$0xff]  }
 0x297   : > { %3025 = vmatprep.subr.bf16.mxu0 %v13747_v43  ;;  %v13804_v43 = vld [vmem:[#allocation7 + $0x674] ss:$8 sps:$4 sm:$0xff]  }
 0x298   : > { %v12816_v44 = vpop.f32.mrb[12].mxu0 }
 0x299   : > { %v12817_v45 = vpop.f32.mrb[13].mxu0 }
 0x29a   : > { %v12818_v49 = vadd.f32 %v12817_v45, %v12816_v44  ;;  %v12819_v50 = vpop.f32.mrb[14].mxu0  ;;  %3026 = vmatpush1.bf16.msra.mxu0 %v13745_v40 }
 0x29b   : > { %v12820_v51 = vpop.f32.mrb[15].mxu0  ;;  %3027 = vmatprep.subr.bf16.mxu0 %v13750_v22 }
 0x29c   : > { %v1543_v52 = vadd.f32 %v12818_v49, %v1502_v35  ;;  %v13795_v35 = vld [vmem:[#allocation7 + $0x644] ss:$8 sps:$4 sm:$0xff]  }
 0x29d   : > { %v13807_v49 = vld [vmem:[#allocation7 + $0x684] ss:$8 sps:$4 sm:$0xff]  }
 0x29e   : > { %v16300_v55 = vadd.f32 %v12840_v29, %v1543_v52  ;;  %3028 = vmatpush1.bf16.msra.mxu0 %v13748_v46  ;;  %v13784_v29 = vld [vmem:[#allocation7 + $0x610] ss:$8 sps:$4 sm:$0xff]  }
 0x29f   : > { %3029 = vmatprep.subr.bf16.mxu0 %v13753_v47  ;;  %v13802_v47 = vld [vmem:[#allocation7 + $0x670] ss:$8 sps:$4 sm:$0xff]  }
 0x2a2   : > { %3030 = vmatpush1.bf16.msra.mxu0 %v13751_v53  ;;  %v11550_v53 = vld [vmem:[#allocation11] ss:$0 sm:$0xff] }
 0x2a3   : > { %3031 = vmatprep.subr.bf16.mxu0 %v13756_v54  ;;  %v13805_v54 = vld [vmem:[#allocation7 + $0x680] ss:$8 sps:$4 sm:$0xff]  }
 0x2a6   : > { %3032 = vmatpush1.bf16.msra.mxu0 %v13754_v61 }
 0x2a7   : > { %3033 = vmatprep.subr.bf16.mxu0 %v13759_v62  ;;  %v13813_v62 = vld [vmem:[#allocation7 + $0x6a4] ss:$8 sps:$4 sm:$0xff]  }
 0x2aa   : > { %3034 = vmatpush1.bf16.msra.mxu0 %v13757_v1 }
 0x2ab   : > { %3035 = vmatprep.subr.bf16.mxu0 %v13762_v2  ;;  %v13816_v2 = vld [vmem:[#allocation7 + $0x6b4] ss:$8 sps:$4 sm:$0xff]  }
 0x2ae   : > { %3036 = vmatpush1.bf16.msra.mxu0 %v13760_v3 }
 0x2af   : > { %3037 = vmatprep.subr.bf16.mxu0 %v13765_v4  ;;  %v13814_v4 = vld [vmem:[#allocation7 + $0x6b0] ss:$8 sps:$4 sm:$0xff]  }
 0x2b2   : > { %3038 = vmatpush1.bf16.msra.mxu0 %v13763_v5  ;;  %v13819_v5 = vld [vmem:[#allocation7 + $0x6c4] ss:$8 sps:$4 sm:$0xff]  }
 0x2b3   : > { %3039 = vmatprep.subr.bf16.mxu0 %v13768_v11 }
 0x2b6   : > { %3040 = vmatpush1.bf16.msra.mxu0 %v13766_v7 }
 0x2b7   : > { %3041 = vmatprep.subr.bf16.mxu0 %v13771_v8 }
 0x2b8   : > { %v12860_v10 = vpop.f32.mrb[16].mxu0 }
 0x2b9   : > { %v12861_v12 = vpop.f32.mrb[17].mxu0 }
 0x2ba   : > { %v12862_v17 = vadd.f32 %v12861_v12, %v12860_v10  ;;  %v12863_v20 = vpop.f32.mrb[18].mxu0  ;;  %3042 = vmatpush1.bf16.msra.mxu0 %v13769_v48  ;;  %v13825_v48 = vld [vmem:[#allocation7 + $0x6d4] ss:$8 sps:$4 sm:$0xff]   ;;  %v13820_v10 = vld [vmem:[#allocation7] ss:$8 sps:$4 sm:$0xff]  }
 0x2bb   : > { %v12864_v21 = vpop.f32.mrb[19].mxu0  ;;  %3043 = vmatprep.subr.bf16.mxu0 %v13774_v9  ;;  %v13823_v12 = vld [vmem:[#allocation7 + $0x6d0] ss:$8 sps:$4 sm:$0xff]  }
 0x2bc   : > { %v2051_v18 = vadd.f32 %v12884_v59, %v12862_v17  ;;  %v12865_v23 = vadd.f32 %v12864_v21, %v12863_v20  ;;  %v13831_v17 = vld [vmem:[#allocation7 + $0x6e4] ss:$8 sps:$4 sm:$0xff]   ;;  %v13826_v20 = vld [vmem:[#allocation7 + $0x10] ss:$8 sps:$4 sm:$0xff]   ;;  %v13829_v21 = vld [vmem:[#allocation7 + $0x6e0] ss:$8 sps:$4 sm:$0xff]  }
 0x2be   : > { %v2054_v25 = vadd.f32 %v12887_v0, %v12865_v23  ;;  %3044 = vmatpush1.bf16.msra.mxu0 %v13772_v13  ;;  %v13811_v0 = vld [vmem:[#allocation7 + $0x6a0] ss:$8 sps:$4 sm:$0xff]   ;;  %v13828_v13 = vld [vmem:[#allocation7 + $0x14] ss:$8 sps:$4 sm:$0xff]  }
 0x2bf   : > { %3045 = vmatprep.subr.bf16.mxu0 %v13777_v15  ;;  %v13837_v23 = vld [vmem:[#allocation7 + $0x6f4] ss:$8 sps:$4 sm:$0xff]  }
 0x2c2   : > { %3046 = vmatpush1.bf16.msra.mxu0 %v13775_v56  ;;  %v13832_v56 = vld [vmem:[#allocation7 + $0x20] ss:$8 sps:$4 sm:$0xff]  }
 0x2c3   : > { %4252 = vmatprep.subr.bf16.mxu0 %v13783_v24  ;;  %v13835_v24 = vld [vmem:[#allocation7 + $0x6f0] ss:$8 sps:$4 sm:$0xff]  }
 0x2c5   : > { %3048 = vmatmul.mubr.bf16.vlgmr.msra.gmra.mrb[24].mxu0 %v13780_v26  ;;  %v13843_v26 = vld [vmem:[#allocation7 + $0x704] ss:$8 sps:$4 sm:$0xff]  }
 0x2c6   : > { %4253 = vmatpush1.bf16.msra.mxu0 %v13781_v27  ;;  %4284 = vmatprep.mubr.bf16.mxu0 %v16304_v32  ;;  %v13838_v27 = vld [vmem:[#allocation7 + $0x30] ss:$8 sps:$4 sm:$0xff]  }
 0x2c7   : > { %4254 = vmatprep.subr.bf16.mxu0 %v13786_v28  ;;  %v13841_v28 = vld [vmem:[#allocation7 + $0x700] ss:$8 sps:$4 sm:$0xff]  }
 0x2ca   : > { %4255 = vmatpush1.bf16.msra.mxu0 %v13784_v29  ;;  %v13846_v29 = vld [vmem:[#allocation7 + $0x44] ss:$8 sps:$4 sm:$0xff]  }
 0x2cb   : > { %4256 = vmatprep.subr.bf16.mxu0 %v13789_v31  ;;  %v13849_v31 = vld [vmem:[#allocation7 + $0x714] ss:$8 sps:$4 sm:$0xff]  }
 0x2ce   : > { %4257 = vmatpush1.bf16.msra.mxu0 %v13787_v30  ;;  %v13847_v30 = vld [vmem:[#allocation7 + $0x710] ss:$8 sps:$4 sm:$0xff]  }
 0x2cf   : > { %4258 = vmatprep.subr.bf16.mxu0 %v13792_v33  ;;  %v16313_v33 = vld [vmem:[%s16202_s21] ss:$24 sps:$4 sm:$0xff]  }
 0x2d2   : > { %4259 = vmatpush1.bf16.msra.mxu0 %v13790_v34  ;;  %v13852_v34 = vld [vmem:[#allocation7 + $0x54] ss:$8 sps:$4 sm:$0xff]  }
 0x2d3   : > { %4260 = vmatprep.subr.bf16.mxu0 %v13795_v35  ;;  %v13855_v35 = vld [vmem:[#allocation7 + $0x724] ss:$8 sps:$4 sm:$0xff]  }
 0x2d6   : > { %4261 = vmatpush1.bf16.msra.mxu0 %v13793_v36  ;;  %v13850_v36 = vld [vmem:[#allocation7 + $0x50] ss:$8 sps:$4 sm:$0xff]  }
 0x2d7   : > { %4262 = vmatprep.subr.bf16.mxu0 %v13798_v37  ;;  %v16317_v37 = vld [vmem:[%s16202_s21 + $0xc] ss:$24 sps:$4 sm:$0xff]  }
 0x2d8   : > { %v12904_v39 = vpop.f32.mrb[20].mxu0 }
 0x2d9   : > { %v12905_v41 = vpop.f32.mrb[21].mxu0 }
 0x2da   : > { %v12906_v40 = vadd.f32 %v12905_v41, %v12904_v39  ;;  %v12907_v22 = vpop.f32.mrb[22].mxu0  ;;  %4263 = vmatpush1.bf16.msra.mxu0 %v13796_v38  ;;  %v13853_v38 = vld [vmem:[#allocation7 + $0x720] ss:$8 sps:$4 sm:$0xff]   ;;  %v13861_v39 = vld [vmem:[#allocation7 + $0x734] ss:$8 sps:$4 sm:$0xff]  }
 0x2db   : > { %v12908_v44 = vpop.f32.mrb[23].mxu0  ;;  %4264 = vmatprep.subr.bf16.mxu0 %v13801_v19  ;;  %v13858_v19 = vld [vmem:[#allocation7 + $0x64] ss:$8 sps:$4 sm:$0xff]   ;;  %v13856_v41 = vld [vmem:[#allocation7 + $0x60] ss:$8 sps:$4 sm:$0xff]  }
 0x2dc   : > { %v2092_v45 = vadd.f32 %v12906_v40, %v2051_v18  ;;  %v12909_v46 = vadd.f32 %v12908_v44, %v12907_v22  ;;  %v13834_v18 = vld [vmem:[#allocation7 + $0x24] ss:$8 sps:$4 sm:$0xff]   ;;  %v13862_v22 = vld [vmem:[#allocation7 + $0x70] ss:$8 sps:$4 sm:$0xff]   ;;  %v13865_v44 = vld [vmem:[#allocation7 + $0x740] ss:$8 sps:$4 sm:$0xff]  }
 0x2dd   : > { %v13867_v40 = vld [vmem:[#allocation7 + $0x744] ss:$8 sps:$4 sm:$0xff]  }
 0x2de   : > { %v2095_v50 = vadd.f32 %v12909_v46, %v2054_v25  ;;  %4265 = vmatpush1.bf16.msra.mxu0 %v13799_v42  ;;  %v2098_v51 = vrot.slane %v2092_v45, 2  ;;  %v13840_v25 = vld [vmem:[#allocation7 + $0x34] ss:$8 sps:$4 sm:$0xff]   ;;  %v13859_v42 = vld [vmem:[#allocation7 + $0x730] ss:$8 sps:$4 sm:$0xff]  }
 0x2df   : > { %4266 = vmatprep.subr.bf16.mxu0 %v13804_v43  ;;  %v13864_v43 = vld [vmem:[#allocation7 + $0x74] ss:$8 sps:$4 sm:$0xff]   ;;  %v13870_v45 = vld [vmem:[#allocation7 + $0x84] ss:$8 sps:$4 sm:$0xff]  }
 0x2e0   : > { %v2099_v52 = vrot.slane %v2095_v50, 2  ;;  %v13873_v46 = vld [vmem:[#allocation7 + $0x754] ss:$8 sps:$4 sm:$0xff]  }
 0x2e1   : > { %v13876_v50 = vld [vmem:[#allocation7 + $0x94] ss:$8 sps:$4 sm:$0xff]  }
 0x2e2   : > { %v2101_v58 = vsel %vm2100_vm2, %v2098_v51, %v2099_v52  ;;  %4267 = vmatpush1.bf16.msra.mxu0 %v13802_v47  ;;  %v13868_v47 = vld [vmem:[#allocation7 + $0x80] ss:$8 sps:$4 sm:$0xff]   ;;  %v13879_v51 = vld [vmem:[#allocation7 + $0x764] ss:$8 sps:$4 sm:$0xff]   ;;  %v13874_v52 = vld [vmem:[#allocation7 + $0x90] ss:$8 sps:$4 sm:$0xff]  }
 0x2e3   : > { %v2103_v59 = vadd.f32 %v2101_v58, %v16300_v55  ;;  %4268 = vmatprep.subr.bf16.mxu0 %v13807_v49  ;;  %v13817_v55 = vld [vmem:[#allocation7 + $0x6c0] ss:$8 sps:$4 sm:$0xff]   ;;  %v13871_v49 = vld [vmem:[#allocation7 + $0x750] ss:$8 sps:$4 sm:$0xff]   ;;  %v13885_v58 = vld [vmem:[#allocation7 + $0x774] ss:$8 sps:$4 sm:$0xff]  }
 0x2e5   : > { %v2112_v61 = vadd.f32 %v11550_v53, %v2103_v59  ;;  %v13877_v53 = vld [vmem:[#allocation7 + $0x760] ss:$8 sps:$4 sm:$0xff]   ;;  %v13883_v59 = vld [vmem:[#allocation7 + $0x770] ss:$8 sps:$4 sm:$0xff]  }
 0x2e6   : > { %4269 = vmatpush1.bf16.msra.mxu0 %v13805_v54  ;;  %v13882_v54 = vld [vmem:[#allocation7 + $0xa4] ss:$8 sps:$4 sm:$0xff]  }
 0x2e7   : > { %v2114_v63 = vmax.f32 %v2112_v61, 0.0  ;;  %4270 = vmatprep.subr.bf16.mxu0 %v13810_v57  ;;  %v13880_v57 = vld [vmem:[#allocation7 + $0xa0] ss:$8 sps:$4 sm:$0xff]   ;;  %v13891_v61 = vld [vmem:[#allocation7 + $0x784] ss:$8 sps:$4 sm:$0xff]  }
 0x2e9   : > { %v2121_v1 = vmax.f32 %v2114_v63, -1e+30  ;;  %v13889_v63 = vld [vmem:[#allocation7 + $0x780] ss:$8 sps:$4 sm:$0xff]  }
 0x2ea   : > { %4271 = vmatpush1.bf16.msra.mxu0 %v13808_v60  ;;  %v13888_v60 = vld [vmem:[#allocation7 + $0xb4] ss:$8 sps:$4 sm:$0xff]  }
 0x2eb   : > { %4272 = vmatprep.subr.bf16.mxu0 %v13813_v62  ;;  %v2122_v3 = vrot.slane %v2121_v1, 4  ;;  %v13886_v62 = vld [vmem:[#allocation7 + $0xb0] ss:$8 sps:$4 sm:$0xff]  }
 0x2ed   : > { %v2123_v11 = vmax.f32 %v2121_v1, %v2122_v3  ;;  %v13897_v1 = vld [vmem:[#allocation7 + $0x794] ss:$8 sps:$4 sm:$0xff]   ;;  %v13895_v3 = vld [vmem:[#allocation7 + $0x790] ss:$8 sps:$4 sm:$0xff]  }
 0x2ee   : > { %4273 = vmatpush1.bf16.msra.mxu0 %v13811_v0  ;;  %v13894_v0 = vld [vmem:[#allocation7 + $0xc4] ss:$8 sps:$4 sm:$0xff]  }
 0x2ef   : > { %4274 = vmatprep.subr.bf16.mxu0 %v13816_v2  ;;  %v2124_v7 = vrot.slane %v2123_v11, 2  ;;  %v13892_v2 = vld [vmem:[#allocation7 + $0xc0] ss:$8 sps:$4 sm:$0xff]  }
 0x2f1   : > { %v2125_v8 = vmax.f32 %v2123_v11, %v2124_v7  ;;  %v13898_v11 = vld [vmem:[#allocation7 + $0xd0] ss:$8 sps:$4 sm:$0xff]   ;;  %v13901_v7 = vld [vmem:[#allocation7 + $0x7a0] ss:$8 sps:$4 sm:$0xff]  }
 0x2f2   : > { %4275 = vmatpush1.bf16.msra.mxu0 %v13814_v4  ;;  %v13900_v4 = vld [vmem:[#allocation7 + $0xd4] ss:$8 sps:$4 sm:$0xff]  }
 0x2f3   : > { %4276 = vmatprep.subr.bf16.mxu0 %v13819_v5  ;;  %v2126_v9 = vrot.slane %v2125_v8, 1  ;;  %v13903_v5 = vld [vmem:[#allocation7 + $0x7a4] ss:$8 sps:$4 sm:$0xff]  }
 0x2f5   : > { %v2127_v15 = vmax.f32 %v2125_v8, %v2126_v9  ;;  %v13909_v8 = vld [vmem:[#allocation7 + $0x7b4] ss:$8 sps:$4 sm:$0xff]   ;;  %v13907_v9 = vld [vmem:[#allocation7 + $0x7b0] ss:$8 sps:$4 sm:$0xff]  }
 0x2f6   : > { %4277 = vmatpush1.bf16.msra.mxu0 %v13817_v55  ;;  %v13906_v55 = vld [vmem:[#allocation7 + $0xe4] ss:$8 sps:$4 sm:$0xff]  }
 0x2f7   : > { %13011 = vmatmul.mubr.f32.vlgmr.msra.gmra.mrb[12].mxu1 %v2127_v15  ;;  %4278 = vmatprep.subr.bf16.mxu0 %v13825_v48  ;;  %v13904_v48 = vld [vmem:[#allocation7 + $0xe0] ss:$8 sps:$4 sm:$0xff]  }
 0x2f8   : > { %3547 = vmatpush1.bf16.msra.mxu1 %v13820_v10  ;;  %3578 = vmatprep.mubr.bf16.mxu1 %v16304_v32  ;;  %v13844_v32 = vld [vmem:[#allocation7 + $0x40] ss:$8 sps:$4 sm:$0xff]   ;;  %v13912_v10 = vld [vmem:[#allocation7 + $0xf4] ss:$8 sps:$4 sm:$0xff]  }
 0x2f9   : > { %3548 = vmatprep.subr.bf16.mxu1 %v13828_v13  ;;  %v13910_v13 = vld [vmem:[#allocation7 + $0xf0] ss:$8 sps:$4 sm:$0xff]   ;;  %v13913_v15 = vld [vmem:[#allocation7 + $0x7c0] ss:$8 sps:$4 sm:$0xff]  }
 0x2fa   : > { %4279 = vmatpush1.bf16.msra.mxu0 %v13823_v12  ;;  %v13915_v12 = vld [vmem:[#allocation7 + $0x7c4] ss:$8 sps:$4 sm:$0xff]  }
 0x2fb   : > { %4280 = vmatprep.subr.bf16.mxu0 %v13831_v17  ;;  %v13918_v17 = vld [vmem:[#allocation7 + $0x104] ss:$8 sps:$4 sm:$0xff]  }
 0x2fc   : > { %3549 = vmatpush1.bf16.msra.mxu1 %v13826_v20  ;;  %v13921_v20 = vld [vmem:[#allocation7 + $0x7d4] ss:$8 sps:$4 sm:$0xff]  }
 0x2fd   : > { %3550 = vmatprep.subr.bf16.mxu1 %v13834_v18  ;;  %v13924_v18 = vld [vmem:[#allocation7 + $0x114] ss:$8 sps:$4 sm:$0xff]  }
 0x2fe   : > { %4281 = vmatpush1.bf16.msra.mxu0 %v13829_v21  ;;  %v13916_v21 = vld [vmem:[#allocation7 + $0x100] ss:$8 sps:$4 sm:$0xff]  }
 0x2ff   : > { %4282 = vmatprep.subr.bf16.mxu0 %v13837_v23  ;;  %v13919_v23 = vld [vmem:[#allocation7 + $0x7d0] ss:$8 sps:$4 sm:$0xff]  }
 0x300   : > { %3551 = vmatpush1.bf16.msra.mxu1 %v13832_v56  ;;  %v13927_v56 = vld [vmem:[#allocation7 + $0x7e4] ss:$8 sps:$4 sm:$0xff]  }
 0x301   : > { %3552 = vmatprep.subr.bf16.mxu1 %v13840_v25  ;;  %v13930_v25 = vld [vmem:[#allocation7 + $0x124] ss:$8 sps:$4 sm:$0xff]  }
 0x302   : > { %4283 = vmatpush1.bf16.msra.mxu0 %v13835_v24  ;;  %v13922_v24 = vld [vmem:[#allocation7 + $0x110] ss:$8 sps:$4 sm:$0xff]  }
 0x303   : > { %4295 = vmatprep.subr.bf16.mxu0 %v13843_v26  ;;  %v13925_v26 = vld [vmem:[#allocation7 + $0x7e0] ss:$8 sps:$4 sm:$0xff]  }
 0x304   : > { %3553 = vmatpush1.bf16.msra.mxu1 %v13838_v27  ;;  %v13933_v27 = vld [vmem:[#allocation7 + $0x7f4] ss:$8 sps:$4 sm:$0xff]  }
 0x305   : > { %3554 = vmatprep.subr.bf16.mxu1 %v13846_v29  ;;  %4285 = vmatmul.mubr.bf16.vlgmr.msra.gmra.mrb[28].mxu0 %v16313_v33  ;;  %v13936_v29 = vld [vmem:[#allocation7 + $0x134] ss:$8 sps:$4 sm:$0xff]  }
 0x306   : > { %4296 = vmatpush1.bf16.msra.mxu0 %v13841_v28  ;;  %4327 = vmatprep.mubr.bf16.mxu0 %v16317_v37  ;;  %v13928_v28 = vld [vmem:[#allocation7 + $0x120] ss:$8 sps:$4 sm:$0xff]  }
 0x307   : > { %4297 = vmatprep.subr.bf16.mxu0 %v13849_v31  ;;  %v13931_v31 = vld [vmem:[#allocation7 + $0x7f0] ss:$8 sps:$4 sm:$0xff]  }
 0x308   : > { %3555 = vmatpush1.bf16.msra.mxu1 %v13844_v32  ;;  %v13939_v32 = vld [vmem:[#allocation7 + $0x804] ss:$8 sps:$4 sm:$0xff]  }
 0x309   : > { %3556 = vmatprep.subr.bf16.mxu1 %v13852_v34  ;;  %v13937_v34 = vld [vmem:[#allocation7 + $0x800] ss:$8 sps:$4 sm:$0xff]  }
 0x30a   : > { %4298 = vmatpush1.bf16.msra.mxu0 %v13847_v30  ;;  %v13934_v30 = vld [vmem:[#allocation7 + $0x130] ss:$8 sps:$4 sm:$0xff]  }
 0x30b   : > { %4299 = vmatprep.subr.bf16.mxu0 %v13855_v35  ;;  %v13945_v35 = vld [vmem:[#allocation7 + $0x814] ss:$8 sps:$4 sm:$0xff]  }
 0x30c   : > { %3557 = vmatpush1.bf16.msra.mxu1 %v13850_v36  ;;  %v13940_v36 = vld [vmem:[#allocation7 + $0x140] ss:$8 sps:$4 sm:$0xff]  }
 0x30d   : > { %3558 = vmatprep.subr.bf16.mxu1 %v13858_v19  ;;  %v16323_v19 = vld [vmem:[%s16202_s21 + $0x8] ss:$24 sps:$4 sm:$0xff]  }
 0x30e   : > { %4300 = vmatpush1.bf16.msra.mxu0 %v13853_v38  ;;  %v13943_v38 = vld [vmem:[#allocation7 + $0x810] ss:$8 sps:$4 sm:$0xff]  }
 0x30f   : > { %4301 = vmatprep.subr.bf16.mxu0 %v13861_v39  ;;  %v13951_v39 = vld [vmem:[#allocation7 + $0x824] ss:$8 sps:$4 sm:$0xff]  }
 0x310   : > { %3559 = vmatpush1.bf16.msra.mxu1 %v13856_v41  ;;  %v13946_v41 = vld [vmem:[#allocation7 + $0x150] ss:$8 sps:$4 sm:$0xff]  }
 0x311   : > { %3560 = vmatprep.subr.bf16.mxu1 %v13864_v43  ;;  %v13954_v43 = vld [vmem:[#allocation7 + $0x164] ss:$8 sps:$4 sm:$0xff]  }
 0x312   : > { %4302 = vmatpush1.bf16.msra.mxu0 %v13859_v42  ;;  %v16327_v42 = vld [vmem:[%s16202_s21 + $0x14] ss:$24 sps:$4 sm:$0xff]  }
 0x313   : > { %4303 = vmatprep.subr.bf16.mxu0 %v13867_v40  ;;  %v13949_v40 = vld [vmem:[#allocation7 + $0x820] ss:$8 sps:$4 sm:$0xff]  }
 0x314   : > { %3561 = vmatpush1.bf16.msra.mxu1 %v13862_v22  ;;  %v13957_v22 = vld [vmem:[#allocation7 + $0x834] ss:$8 sps:$4 sm:$0xff]  }
 0x315   : > { %3562 = vmatprep.subr.bf16.mxu1 %v13870_v45  ;;  %v13960_v45 = vld [vmem:[#allocation7 + $0x174] ss:$8 sps:$4 sm:$0xff]  }
 0x316   : > { %4304 = vmatpush1.bf16.msra.mxu0 %v13865_v44  ;;  %v13952_v44 = vld [vmem:[#allocation7 + $0x160] ss:$8 sps:$4 sm:$0xff]  }
 0x317   : > { %4305 = vmatprep.subr.bf16.mxu0 %v13873_v46  ;;  %v13955_v46 = vld [vmem:[#allocation7 + $0x830] ss:$8 sps:$4 sm:$0xff]  }
 0x318   : > { %3563 = vmatpush1.bf16.msra.mxu1 %v13868_v47  ;;  %v13963_v47 = vld [vmem:[#allocation7 + $0x844] ss:$8 sps:$4 sm:$0xff]  }
 0x319   : > { %3564 = vmatprep.subr.bf16.mxu1 %v13876_v50  ;;  %v13966_v50 = vld [vmem:[#allocation7 + $0x184] ss:$8 sps:$4 sm:$0xff]  }
 0x31a   : > { %4306 = vmatpush1.bf16.msra.mxu0 %v13871_v49  ;;  %v13958_v49 = vld [vmem:[#allocation7 + $0x170] ss:$8 sps:$4 sm:$0xff]  }
 0x31b   : > { %4307 = vmatprep.subr.bf16.mxu0 %v13879_v51  ;;  %v13961_v51 = vld [vmem:[#allocation7 + $0x840] ss:$8 sps:$4 sm:$0xff]  }
 0x31c   : > { %3565 = vmatpush1.bf16.msra.mxu1 %v13874_v52  ;;  %v13964_v52 = vld [vmem:[#allocation7 + $0x180] ss:$8 sps:$4 sm:$0xff]  }
 0x31d   : > { %3566 = vmatprep.subr.bf16.mxu1 %v13882_v54  ;;  %v13967_v54 = vld [vmem:[#allocation7 + $0x850] ss:$8 sps:$4 sm:$0xff]  }
 0x31e   : > { %4308 = vmatpush1.bf16.msra.mxu0 %v13877_v53  ;;  %v13969_v53 = vld [vmem:[#allocation7 + $0x854] ss:$8 sps:$4 sm:$0xff]  }
 0x31f   : > { %4309 = vmatprep.subr.bf16.mxu0 %v13885_v58  ;;  %v13975_v58 = vld [vmem:[#allocation7 + $0x864] ss:$8 sps:$4 sm:$0xff]  }
 0x320   : > { %3567 = vmatpush1.bf16.msra.mxu1 %v13880_v57  ;;  %v13972_v57 = vld [vmem:[#allocation7 + $0x194] ss:$8 sps:$4 sm:$0xff]  }
 0x321   : > { %3568 = vmatprep.subr.bf16.mxu1 %v13888_v60  ;;  %v13978_v60 = vld [vmem:[#allocation7 + $0x1a4] ss:$8 sps:$4 sm:$0xff]  }
 0x322   : > { %4310 = vmatpush1.bf16.msra.mxu0 %v13883_v59  ;;  %v13970_v59 = vld [vmem:[#allocation7 + $0x190] ss:$8 sps:$4 sm:$0xff]  }
 0x323   : > { %4311 = vmatprep.subr.bf16.mxu0 %v13891_v61  ;;  %v13973_v61 = vld [vmem:[#allocation7 + $0x860] ss:$8 sps:$4 sm:$0xff]  }
 0x324   : > { %3569 = vmatpush1.bf16.msra.mxu1 %v13886_v62  ;;  %v13981_v62 = vld [vmem:[#allocation7 + $0x874] ss:$8 sps:$4 sm:$0xff]  }
 0x325   : > { %3570 = vmatprep.subr.bf16.mxu1 %v13894_v0  ;;  %v13984_v0 = vld [vmem:[#allocation7 + $0x1b4] ss:$8 sps:$4 sm:$0xff]  }
 0x326   : > { %4312 = vmatpush1.bf16.msra.mxu0 %v13889_v63  ;;  %v13976_v63 = vld [vmem:[#allocation7 + $0x1a0] ss:$8 sps:$4 sm:$0xff]  }
 0x327   : > { %4313 = vmatprep.subr.bf16.mxu0 %v13897_v1  ;;  %v13979_v1 = vld [vmem:[#allocation7 + $0x870] ss:$8 sps:$4 sm:$0xff]  }
 0x328   : > { %3571 = vmatpush1.bf16.msra.mxu1 %v13892_v2  ;;  %v13987_v2 = vld [vmem:[#allocation7 + $0x884] ss:$8 sps:$4 sm:$0xff]  }
 0x329   : > { %3572 = vmatprep.subr.bf16.mxu1 %v13900_v4  ;;  %v13990_v4 = vld [vmem:[#allocation7 + $0x1c4] ss:$8 sps:$4 sm:$0xff]  }
 0x32a   : > { %4314 = vmatpush1.bf16.msra.mxu0 %v13895_v3  ;;  %v13982_v3 = vld [vmem:[#allocation7 + $0x1b0] ss:$8 sps:$4 sm:$0xff]  }
 0x32b   : > { %4315 = vmatprep.subr.bf16.mxu0 %v13903_v5  ;;  %v13985_v5 = vld [vmem:[#allocation7 + $0x880] ss:$8 sps:$4 sm:$0xff]  }
 0x32c   : > { %3573 = vmatpush1.bf16.msra.mxu1 %v13898_v11  ;;  %v13993_v11 = vld [vmem:[#allocation7 + $0x894] ss:$8 sps:$4 sm:$0xff]  }
 0x32d   : > { %3574 = vmatprep.subr.bf16.mxu1 %v13906_v55  ;;  %v13996_v55 = vld [vmem:[#allocation7 + $0x1d4] ss:$8 sps:$4 sm:$0xff]  }
 0x32e   : > { %4316 = vmatpush1.bf16.msra.mxu0 %v13901_v7  ;;  %v13988_v7 = vld [vmem:[#allocation7 + $0x1c0] ss:$8 sps:$4 sm:$0xff]  }
 0x32f   : > { %4317 = vmatprep.subr.bf16.mxu0 %v13909_v8  ;;  %v13991_v8 = vld [vmem:[#allocation7 + $0x890] ss:$8 sps:$4 sm:$0xff]  }
 0x330   : > { %3575 = vmatpush1.bf16.msra.mxu1 %v13904_v48  ;;  %v13999_v48 = vld [vmem:[#allocation7 + $0x8a4] ss:$8 sps:$4 sm:$0xff]  }
 0x331   : > { %3576 = vmatprep.subr.bf16.mxu1 %v13912_v10  ;;  %v14002_v10 = vld [vmem:[#allocation7 + $0x1e4] ss:$8 sps:$4 sm:$0xff]  }
 0x332   : > { %4318 = vmatpush1.bf16.msra.mxu0 %v13907_v9  ;;  %v13994_v9 = vld [vmem:[#allocation7 + $0x1d0] ss:$8 sps:$4 sm:$0xff]  }
 0x333   : > { %4319 = vmatprep.subr.bf16.mxu0 %v13915_v12  ;;  %v13997_v12 = vld [vmem:[#allocation7 + $0x8a0] ss:$8 sps:$4 sm:$0xff]  }
 0x334   : > { %3577 = vmatpush1.bf16.msra.mxu1 %v13910_v13  ;;  %v14005_v13 = vld [vmem:[#allocation7 + $0x8b4] ss:$8 sps:$4 sm:$0xff]  }
 0x335   : > { %3589 = vmatprep.subr.bf16.mxu1 %v13918_v17  ;;  %v14008_v17 = vld [vmem:[#allocation7 + $0x1f4] ss:$8 sps:$4 sm:$0xff]  }
 0x336   : > { %4320 = vmatpush1.bf16.msra.mxu0 %v13913_v15  ;;  %v14000_v15 = vld [vmem:[#allocation7 + $0x1e0] ss:$8 sps:$4 sm:$0xff]  }
 0x337   : > { %3579 = vmatmul.mubr.bf16.vlgmr.msra.gmra.mrb[16].mxu1 %v16313_v33  ;;  %4321 = vmatprep.subr.bf16.mxu0 %v13921_v20  ;;  %v13942_v33 = vld [vmem:[#allocation7 + $0x144] ss:$8 sps:$4 sm:$0xff]   ;;  %v14003_v20 = vld [vmem:[#allocation7 + $0x8b0] ss:$8 sps:$4 sm:$0xff]  }
 0x338   : > { %3590 = vmatpush1.bf16.msra.mxu1 %v13916_v21  ;;  %3621 = vmatprep.mubr.bf16.mxu1 %v16317_v37  ;;  %v13948_v37 = vld [vmem:[#allocation7 + $0x154] ss:$8 sps:$4 sm:$0xff]   ;;  %v14011_v21 = vld [vmem:[#allocation7 + $0x8c4] ss:$8 sps:$4 sm:$0xff]  }
 0x339   : > { %3591 = vmatprep.subr.bf16.mxu1 %v13924_v18  ;;  %v14006_v18 = vld [vmem:[#allocation7 + $0x1f0] ss:$8 sps:$4 sm:$0xff]  }
 0x33a   : > { %4322 = vmatpush1.bf16.msra.mxu0 %v13919_v23  ;;  %v14014_v23 = vld [vmem:[#allocation7 + $0x204] ss:$8 sps:$4 sm:$0xff]  }
 0x33b   : > { %4323 = vmatprep.subr.bf16.mxu0 %v13927_v56  ;;  %v14009_v56 = vld [vmem:[#allocation7 + $0x8c0] ss:$8 sps:$4 sm:$0xff]  }
 0x33c   : > { %3592 = vmatpush1.bf16.msra.mxu1 %v13922_v24  ;;  %v14017_v24 = vld [vmem:[#allocation7 + $0x8d4] ss:$8 sps:$4 sm:$0xff]  }
 0x33d   : > { %3593 = vmatprep.subr.bf16.mxu1 %v13930_v25  ;;  %v14012_v25 = vld [vmem:[#allocation7 + $0x200] ss:$8 sps:$4 sm:$0xff]  }
 0x33e   : > { %4324 = vmatpush1.bf16.msra.mxu0 %v13925_v26  ;;  %v14020_v26 = vld [vmem:[#allocation7 + $0x214] ss:$8 sps:$4 sm:$0xff]  }
 0x33f   : > { %4325 = vmatprep.subr.bf16.mxu0 %v13933_v27  ;;  %v14015_v27 = vld [vmem:[#allocation7 + $0x8d0] ss:$8 sps:$4 sm:$0xff]  }
 0x340   : > { %3594 = vmatpush1.bf16.msra.mxu1 %v13928_v28  ;;  %v14023_v28 = vld [vmem:[#allocation7 + $0x8e4] ss:$8 sps:$4 sm:$0xff]  }
 0x341   : > { %3595 = vmatprep.subr.bf16.mxu1 %v13936_v29  ;;  %v14018_v29 = vld [vmem:[#allocation7 + $0x210] ss:$8 sps:$4 sm:$0xff]  }
 0x342   : > { %4326 = vmatpush1.bf16.msra.mxu0 %v13931_v31  ;;  %v14026_v31 = vld [vmem:[#allocation7 + $0x224] ss:$8 sps:$4 sm:$0xff]  }
 0x343   : > { %4338 = vmatprep.subr.bf16.mxu0 %v13939_v32  ;;  %v14021_v32 = vld [vmem:[#allocation7 + $0x8e0] ss:$8 sps:$4 sm:$0xff]  }
 0x344   : > { %3596 = vmatpush1.bf16.msra.mxu1 %v13934_v30  ;;  %v14029_v30 = vld [vmem:[#allocation7 + $0x8f4] ss:$8 sps:$4 sm:$0xff]  }
 0x345   : > { %3597 = vmatprep.subr.bf16.mxu1 %v13942_v33  ;;  %4328 = vmatmul.mubr.bf16.vlgmr.msra.gmra.mrb[28].mxu0 %v16323_v19  ;;  %v14024_v33 = vld [vmem:[#allocation7 + $0x220] ss:$8 sps:$4 sm:$0xff]  }
 0x346   : > { %4339 = vmatpush1.bf16.msra.mxu0 %v13937_v34  ;;  %4370 = vmatprep.mubr.bf16.mxu0 %v16327_v42  ;;  %v14032_v34 = vld [vmem:[#allocation7 + $0x234] ss:$8 sps:$4 sm:$0xff]  }
 0x347   : > { %4340 = vmatprep.subr.bf16.mxu0 %v13945_v35  ;;  %v14027_v35 = vld [vmem:[#allocation7 + $0x8f0] ss:$8 sps:$4 sm:$0xff]  }
 0x348   : > { %3598 = vmatpush1.bf16.msra.mxu1 %v13940_v36  ;;  %v14071_v36 = vld [vmem:[#allocation7 + $0x904] ss:$8 sps:$4 sm:$0xff]  }
 0x349   : > { %3599 = vmatprep.subr.bf16.mxu1 %v13948_v37  ;;  %v14030_v37 = vld [vmem:[#allocation7 + $0x230] ss:$8 sps:$4 sm:$0xff]  }
 0x34a   : > { %4341 = vmatpush1.bf16.msra.mxu0 %v13943_v38  ;;  %v14035_v38 = vld [vmem:[#allocation7 + $0x244] ss:$8 sps:$4 sm:$0xff]  }
 0x34b   : > { %4342 = vmatprep.subr.bf16.mxu0 %v13951_v39  ;;  %v14074_v39 = vld [vmem:[#allocation7 + $0x914] ss:$8 sps:$4 sm:$0xff]  }
 0x34c   : > { %3600 = vmatpush1.bf16.msra.mxu1 %v13946_v41  ;;  %v14033_v41 = vld [vmem:[#allocation7 + $0x240] ss:$8 sps:$4 sm:$0xff]  }
 0x34d   : > { %3601 = vmatprep.subr.bf16.mxu1 %v13954_v43  ;;  %v14072_v43 = vld [vmem:[#allocation7 + $0x910] ss:$8 sps:$4 sm:$0xff]  }
 0x34e   : > { %4343 = vmatpush1.bf16.msra.mxu0 %v13949_v40  ;;  %v16333_v40 = vld [vmem:[%s16202_s21 + $0x10] ss:$24 sps:$4 sm:$0xff]  }
 0x34f   : > { %4344 = vmatprep.subr.bf16.mxu0 %v13957_v22  ;;  %v14077_v22 = vld [vmem:[#allocation7 + $0x924] ss:$8 sps:$4 sm:$0xff]  }
 0x350   : > { %3602 = vmatpush1.bf16.msra.mxu1 %v13952_v44  ;;  %v14036_v44 = vld [vmem:[#allocation7 + $0x250] ss:$8 sps:$4 sm:$0xff]  }
 0x351   : > { %3603 = vmatprep.subr.bf16.mxu1 %v13960_v45  ;;  %v16337_v45 = vld [vmem:[%s16202_s21 + $0x4] ss:$24 sps:$4 sm:$0xff]  }
 0x352   : > { %4345 = vmatpush1.bf16.msra.mxu0 %v13955_v46  ;;  %v14041_v46 = vld [vmem:[#allocation7 + $0x264] ss:$8 sps:$4 sm:$0xff]  }
 0x353   : > { %4346 = vmatprep.subr.bf16.mxu0 %v13963_v47  ;;  %v14075_v47 = vld [vmem:[#allocation7 + $0x920] ss:$8 sps:$4 sm:$0xff]  }
 0x354   : > { %3604 = vmatpush1.bf16.msra.mxu1 %v13958_v49  ;;  %v14080_v49 = vld [vmem:[#allocation7 + $0x934] ss:$8 sps:$4 sm:$0xff]  }
 0x355   : > { %3605 = vmatprep.subr.bf16.mxu1 %v13966_v50  ;;  %v14039_v50 = vld [vmem:[#allocation7 + $0x260] ss:$8 sps:$4 sm:$0xff]  }
 0x356   : > { %4347 = vmatpush1.bf16.msra.mxu0 %v13961_v51  ;;  %v14044_v51 = vld [vmem:[#allocation7 + $0x274] ss:$8 sps:$4 sm:$0xff]  }
 0x357   : > { %4348 = vmatprep.subr.bf16.mxu0 %v13969_v53  ;;  %v14083_v53 = vld [vmem:[#allocation7 + $0x944] ss:$8 sps:$4 sm:$0xff]  }
 0x358   : > { %3606 = vmatpush1.bf16.msra.mxu1 %v13964_v52  ;;  %v14078_v52 = vld [vmem:[#allocation7 + $0x930] ss:$8 sps:$4 sm:$0xff]  }
 0x359   : > { %3607 = vmatprep.subr.bf16.mxu1 %v13972_v57  ;;  %v14047_v57 = vld [vmem:[#allocation7 + $0x284] ss:$8 sps:$4 sm:$0xff]  }
 0x35a   : > { %4349 = vmatpush1.bf16.msra.mxu0 %v13967_v54  ;;  %v14042_v54 = vld [vmem:[#allocation7 + $0x270] ss:$8 sps:$4 sm:$0xff]  }
 0x35b   : > { %4350 = vmatprep.subr.bf16.mxu0 %v13975_v58  ;;  %v14081_v58 = vld [vmem:[#allocation7 + $0x940] ss:$8 sps:$4 sm:$0xff]  }
 0x35c   : > { %3608 = vmatpush1.bf16.msra.mxu1 %v13970_v59  ;;  %v14086_v59 = vld [vmem:[#allocation7 + $0x954] ss:$8 sps:$4 sm:$0xff]  }
 0x35d   : > { %3609 = vmatprep.subr.bf16.mxu1 %v13978_v60  ;;  %v14045_v60 = vld [vmem:[#allocation7 + $0x280] ss:$8 sps:$4 sm:$0xff]  }
 0x35e   : > { %4351 = vmatpush1.bf16.msra.mxu0 %v13973_v61  ;;  %v14050_v61 = vld [vmem:[#allocation7 + $0x294] ss:$8 sps:$4 sm:$0xff]  }
 0x35f   : > { %4352 = vmatprep.subr.bf16.mxu0 %v13981_v62  ;;  %v14084_v62 = vld [vmem:[#allocation7 + $0x950] ss:$8 sps:$4 sm:$0xff]  }
 0x360   : > { %3610 = vmatpush1.bf16.msra.mxu1 %v13976_v63  ;;  %v14089_v63 = vld [vmem:[#allocation7 + $0x964] ss:$8 sps:$4 sm:$0xff]  }
 0x361   : > { %3611 = vmatprep.subr.bf16.mxu1 %v13984_v0  ;;  %v14048_v0 = vld [vmem:[#allocation7 + $0x290] ss:$8 sps:$4 sm:$0xff]  }
 0x362   : > { %4353 = vmatpush1.bf16.msra.mxu0 %v13979_v1  ;;  %v14053_v1 = vld [vmem:[#allocation7 + $0x2a4] ss:$8 sps:$4 sm:$0xff]  }
 0x363   : > { %4354 = vmatprep.subr.bf16.mxu0 %v13987_v2 }
 0x364   : > { %3612 = vmatpush1.bf16.msra.mxu1 %v13982_v3  ;;  %v14087_v3 = vld [vmem:[#allocation7 + $0x960] ss:$8 sps:$4 sm:$0xff]  }
 0x365   : > { %3613 = vmatprep.subr.bf16.mxu1 %v13990_v4 }
 0x366   : > { %4355 = vmatpush1.bf16.msra.mxu0 %v13985_v5  ;;  %v14092_v5 = vld [vmem:[#allocation7 + $0x974] ss:$8 sps:$4 sm:$0xff]  }
 0x367   : > { %4356 = vmatprep.subr.bf16.mxu0 %v13993_v11 }
 0x368   : > { %3614 = vmatpush1.bf16.msra.mxu1 %v13988_v7  ;;  %v14051_v7 = vld [vmem:[#allocation7 + $0x2a0] ss:$8 sps:$4 sm:$0xff]  }
 0x369   : > { %3615 = vmatprep.subr.bf16.mxu1 %v13996_v55 }
 0x36a   : > { %4357 = vmatpush1.bf16.msra.mxu0 %v13991_v8 }
 0x36b   : > { %4358 = vmatprep.subr.bf16.mxu0 %v13999_v48 }
 0x36c   : > { %3616 = vmatpush1.bf16.msra.mxu1 %v13994_v9  ;;  %v14056_v9 = vld [vmem:[#allocation7 + $0x2b4] ss:$8 sps:$4 sm:$0xff]  }
 0x36d   : > { %3617 = vmatprep.subr.bf16.mxu1 %v14002_v10 }
 0x36e   : > { %4359 = vmatpush1.bf16.msra.mxu0 %v13997_v12 }
 0x36f   : > { %4360 = vmatprep.subr.bf16.mxu0 %v14005_v13  ;;  %v14090_v13 = vld [vmem:[#allocation7 + $0x970] ss:$8 sps:$4 sm:$0xff]  }
 0x370   : > { %3618 = vmatpush1.bf16.msra.mxu1 %v14000_v15  ;;  %v14095_v15 = vld [vmem:[#allocation7 + $0x984] ss:$8 sps:$4 sm:$0xff]  }
 0x371   : > { %3619 = vmatprep.subr.bf16.mxu1 %v14008_v17 }
 0x372   : > { %4361 = vmatpush1.bf16.msra.mxu0 %v14003_v20 }
 0x373   : > { %4362 = vmatprep.subr.bf16.mxu0 %v14011_v21  ;;  %v14054_v21 = vld [vmem:[#allocation7 + $0x2b0] ss:$8 sps:$4 sm:$0xff]  }
 0x374   : > { %3620 = vmatpush1.bf16.msra.mxu1 %v14006_v18 }
 0x375   : > { %3632 = vmatprep.subr.bf16.mxu1 %v14014_v23 }
 0x376   : > { %4363 = vmatpush1.bf16.msra.mxu0 %v14009_v56  ;;  %v14059_v56 = vld [vmem:[#allocation7 + $0x2c4] ss:$8 sps:$4 sm:$0xff]  }
 0x377   : > { %3622 = vmatmul.mubr.bf16.vlgmr.msra.gmra.mrb[16].mxu1 %v16323_v19  ;;  %4364 = vmatprep.subr.bf16.mxu0 %v14017_v24  ;;  %v14069_v19 = vld [vmem:[#allocation7 + $0x900] ss:$8 sps:$4 sm:$0xff]  }
 0x378   : > { %3633 = vmatpush1.bf16.msra.mxu1 %v14012_v25  ;;  %3664 = vmatprep.mubr.bf16.mxu1 %v16327_v42  ;;  %v14038_v42 = vld [vmem:[#allocation7 + $0x254] ss:$8 sps:$4 sm:$0xff]   ;;  %v14093_v24 = vld [vmem:[#allocation7 + $0x980] ss:$8 sps:$4 sm:$0xff]  }
 0x379   : > { %3634 = vmatprep.subr.bf16.mxu1 %v14020_v26  ;;  %v14098_v25 = vld [vmem:[#allocation7 + $0x994] ss:$8 sps:$4 sm:$0xff]   ;;  %v14057_v26 = vld [vmem:[#allocation7 + $0x2c0] ss:$8 sps:$4 sm:$0xff]  }
 0x37a   : > { %4365 = vmatpush1.bf16.msra.mxu0 %v14015_v27  ;;  %v14062_v27 = vld [vmem:[#allocation7 + $0x2d4] ss:$8 sps:$4 sm:$0xff]  }
 0x37b   : > { %4366 = vmatprep.subr.bf16.mxu0 %v14023_v28  ;;  %v14096_v28 = vld [vmem:[#allocation7 + $0x990] ss:$8 sps:$4 sm:$0xff]  }
 0x37c   : > { %3635 = vmatpush1.bf16.msra.mxu1 %v14018_v29  ;;  %v14101_v29 = vld [vmem:[#allocation7 + $0x9a4] ss:$8 sps:$4 sm:$0xff]  }
 0x37d   : > { %3636 = vmatprep.subr.bf16.mxu1 %v14026_v31  ;;  %v14060_v31 = vld [vmem:[#allocation7 + $0x2d0] ss:$8 sps:$4 sm:$0xff]  }
 0x37e   : > { %4367 = vmatpush1.bf16.msra.mxu0 %v14021_v32  ;;  %v14065_v32 = vld [vmem:[#allocation7 + $0x2e4] ss:$8 sps:$4 sm:$0xff]  }
 0x37f   : > { %4368 = vmatprep.subr.bf16.mxu0 %v14029_v30  ;;  %v14099_v30 = vld [vmem:[#allocation7 + $0x9a0] ss:$8 sps:$4 sm:$0xff]  }
 0x380   : > { %3637 = vmatpush1.bf16.msra.mxu1 %v14024_v33  ;;  %v14063_v33 = vld [vmem:[#allocation7 + $0x2e0] ss:$8 sps:$4 sm:$0xff]  }
 0x381   : > { %3638 = vmatprep.subr.bf16.mxu1 %v14032_v34  ;;  %v14068_v34 = vld [vmem:[#allocation7 + $0x2f4] ss:$8 sps:$4 sm:$0xff]  }
 0x382   : > { %4369 = vmatpush1.bf16.msra.mxu0 %v14027_v35  ;;  %v14066_v35 = vld [vmem:[#allocation7 + $0x2f0] ss:$8 sps:$4 sm:$0xff]  }
 0x383   : > { %5806 = vmatprep.subr.bf16.mxu0 %v14071_v36 }
 0x384   : > { %3639 = vmatpush1.bf16.msra.mxu1 %v14030_v37 }
 0x385   : > { %4371 = vmatmul.mubr.bf16.vlgmr.msra.gmra.mrb[28].mxu0 %v16333_v40  ;;  %3640 = vmatprep.subr.bf16.mxu1 %v14035_v38  ;;  %v14104_v38 = vld [vmem:[#allocation7 + $0x9b4] ss:$8 sps:$4 sm:$0xff]  }
 0x386   : > { %5807 = vmatpush1.bf16.msra.mxu0 %v14069_v19  ;;  %5838 = vmatprep.mubr.bf16.mxu0 %v16337_v45  ;;  %v14102_v19 = vld [vmem:[#allocation7 + $0x9b0] ss:$8 sps:$4 sm:$0xff]  }
 0x387   : > { %5808 = vmatprep.subr.bf16.mxu0 %v14074_v39  ;;  %v14105_v39 = vld [vmem:[#allocation7 + $0x9c0] ss:$8 sps:$4 sm:$0xff]  }
 0x388   : > { %3641 = vmatpush1.bf16.msra.mxu1 %v14033_v41  ;;  %v14107_v41 = vld [vmem:[#allocation7 + $0x9c4] ss:$8 sps:$4 sm:$0xff]  }
 0x389   : > { %3642 = vmatprep.subr.bf16.mxu1 %v14038_v42  ;;  %v14110_v42 = vld [vmem:[#allocation7 + $0x9d4] ss:$8 sps:$4 sm:$0xff]  }
 0x38a   : > { %5809 = vmatpush1.bf16.msra.mxu0 %v14072_v43  ;;  %v14108_v43 = vld [vmem:[#allocation7 + $0x9d0] ss:$8 sps:$4 sm:$0xff]  }
 0x38b   : > { %5810 = vmatprep.subr.bf16.mxu0 %v14077_v22  ;;  %v14113_v22 = vld [vmem:[#allocation7 + $0x9e4] ss:$8 sps:$4 sm:$0xff]  }
 0x38c   : > { %3643 = vmatpush1.bf16.msra.mxu1 %v14036_v44  ;;  %v14116_v44 = vld [vmem:[#allocation7 + $0x9f4] ss:$8 sps:$4 sm:$0xff]  }
 0x38d   : > { %3644 = vmatprep.subr.bf16.mxu1 %v14041_v46  ;;  %v14114_v46 = vld [vmem:[#allocation7 + $0x9f0] ss:$8 sps:$4 sm:$0xff]  }
 0x38e   : > { %5811 = vmatpush1.bf16.msra.mxu0 %v14075_v47  ;;  %v14119_v47 = vld [vmem:[#allocation7 + $0xa04] ss:$8 sps:$4 sm:$0xff]  }
 0x38f   : > { %5812 = vmatprep.subr.bf16.mxu0 %v14080_v49  ;;  %v14117_v49 = vld [vmem:[#allocation7 + $0xa00] ss:$8 sps:$4 sm:$0xff]  }
 0x390   : > { %3645 = vmatpush1.bf16.msra.mxu1 %v14039_v50  ;;  %v14122_v50 = vld [vmem:[#allocation7 + $0xa14] ss:$8 sps:$4 sm:$0xff]  }
 0x391   : > { %3646 = vmatprep.subr.bf16.mxu1 %v14044_v51  ;;  %v16363_v51 = vld [vmem:[%s16202_s21] ss:$24 sps:$4 sm:$0xff]  }
 0x392   : > { %5813 = vmatpush1.bf16.msra.mxu0 %v14078_v52  ;;  %v14120_v52 = vld [vmem:[#allocation7 + $0xa10] ss:$8 sps:$4 sm:$0xff]  }
 0x393   : > { %5814 = vmatprep.subr.bf16.mxu0 %v14083_v53  ;;  %v16367_v53 = vld [vmem:[%s16202_s21 + $0xc] ss:$24 sps:$4 sm:$0xff]  }
 0x394   : > { %3647 = vmatpush1.bf16.msra.mxu1 %v14042_v54  ;;  %v14125_v54 = vld [vmem:[#allocation7 + $0xa24] ss:$8 sps:$4 sm:$0xff]  }
 0x395   : > { %3648 = vmatprep.subr.bf16.mxu1 %v14047_v57  ;;  %v14123_v57 = vld [vmem:[#allocation7 + $0xa20] ss:$8 sps:$4 sm:$0xff]  }
 0x396   : > { %5815 = vmatpush1.bf16.msra.mxu0 %v14081_v58  ;;  %v14128_v58 = vld [vmem:[#allocation7 + $0xa34] ss:$8 sps:$4 sm:$0xff]  }
 0x397   : > { %5816 = vmatprep.subr.bf16.mxu0 %v14086_v59  ;;  %v14126_v59 = vld [vmem:[#allocation7 + $0xa30] ss:$8 sps:$4 sm:$0xff]  }
 0x398   : > { %3649 = vmatpush1.bf16.msra.mxu1 %v14045_v60  ;;  %v3049_v2 = vpop.f32.mrb[24].mxu0  ;;  %v14131_v60 = vld [vmem:[#allocation7 + $0xa44] ss:$8 sps:$4 sm:$0xff]  }
 0x399   : > { %v3051_v4 = vpop.f32.mrb[25].mxu0  ;;  %3650 = vmatprep.subr.bf16.mxu1 %v14050_v61  ;;  %v3058_v55 = vrot.slane %v3049_v2, 1  ;;  %v14129_v61 = vld [vmem:[#allocation7 + $0xa40] ss:$8 sps:$4 sm:$0xff]   ;;  %v14140_v2 = vld [vmem:[#allocation7 + $0xa74] ss:$8 sps:$4 sm:$0xff]  }
 0x39a   : > { %v3053_v11 = vpop.f32.mrb[26].mxu0  ;;  %5817 = vmatpush1.bf16.msra.mxu0 %v14084_v62  ;;  %v3059_v10 = vrot.slane %v3051_v4, 1  ;;  %v14134_v62 = vld [vmem:[#allocation7 + $0xa54] ss:$8 sps:$4 sm:$0xff]   ;;  %v14143_v4 = vld [vmem:[#allocation7 + $0xa84] ss:$8 sps:$4 sm:$0xff]  }
 0x39b   : > { %v3060_v8 = vrot.slane %v3053_v11, 1  ;;  %v3055_v48 = vpop.f32.mrb[27].mxu0  ;;  %5818 = vmatprep.subr.bf16.mxu0 %v14089_v63  ;;  %v14132_v63 = vld [vmem:[#allocation7 + $0xa50] ss:$8 sps:$4 sm:$0xff]   ;;  %v14141_v11 = vld [vmem:[#allocation7 + $0xa80] ss:$8 sps:$4 sm:$0xff]  }
 0x39c   : > { %v3061_v12 = vrot.slane %v3055_v48, 1  ;;  %3651 = vmatpush1.bf16.msra.mxu1 %v14048_v0  ;;  %v14137_v0 = vld [vmem:[#allocation7 + $0xa64] ss:$8 sps:$4 sm:$0xff]   ;;  %v4430_v48 = vld [vmem:[#allocation16 + $0x10] sm:$0xff] }
 0x39d   : > { %3652 = vmatprep.subr.bf16.mxu1 %v14053_v1  ;;  %v16342_v17 = vsel %vm1176_vm1, %v3058_v55, %v3060_v8  ;;  %v16346_v20 = vsel %vm1176_vm1, %v3060_v8, %v3058_v55  ;;  %v14135_v1 = vld [vmem:[#allocation7 + $0xa60] ss:$8 sps:$4 sm:$0xff]   ;;  %v14146_v8 = vld [vmem:[#allocation7 + $0xa94] ss:$8 sps:$4 sm:$0xff]  }
 0x39e   : > { %5819 = vmatpush1.bf16.msra.mxu0 %v14087_v3  ;;  %v16350_v18 = vsel %vm1176_vm1, %v3059_v10, %v3061_v12  ;;  %v16354_v23 = vsel %vm1176_vm1, %v3061_v12, %v3059_v10  ;;  %v14138_v3 = vld [vmem:[#allocation7 + $0xa70] ss:$8 sps:$4 sm:$0xff]  }
 0x39f   : > { %5820 = vmatprep.subr.bf16.mxu0 %v14092_v5  ;;  %v4428_v5 = vld [vmem:[#allocation16] sm:$0xff] }
 0x3a0   : > { %3653 = vmatpush1.bf16.msra.mxu1 %v14051_v7  ;;  %v4429_v7 = vld [vmem:[#allocation16 + $0x8] sm:$0xff] }
 0x3a1   : > { %3654 = vmatprep.subr.bf16.mxu1 %v14056_v9  ;;  %v13143_v55 = vpack.c.bf16 %v4429_v7, %v4428_v5  ;;  %v4431_v9 = vld [vmem:[#allocation16 + $0x18] sm:$0xff]  ;;  %v14144_v10 = vld [vmem:[#allocation7 + $0xa90] ss:$8 sps:$4 sm:$0xff]   ;;  %v14200_v5 = vld [vmem:[#allocation7 + $0xb54] ss:$8 sps:$4 sm:$0xff]  }
 0x3a2   : > { %5821 = vmatpush1.bf16.msra.mxu0 %v14090_v13  ;;  %v13146_v12 = vpack.c.bf16 %v4431_v9, %v4430_v48  ;;  %v14149_v13 = vld [vmem:[#allocation7 + $0xaa4] ss:$8 sps:$4 sm:$0xff]   ;;  %v14216_v48 = vld [vmem:[#allocation7 + $0xb80] ss:$8 sps:$4 sm:$0xff]  }
 0x3a3   : > { %5822 = vmatprep.subr.bf16.mxu0 %v14095_v15  ;;  %v4432_v15 = vld [vmem:[#allocation16 + $0x20] sm:$0xff] }
 0x3a4   : > { %3655 = vmatpush1.bf16.msra.mxu1 %v14054_v21  ;;  %v4433_v21 = vld [vmem:[#allocation16 + $0x28] sm:$0xff]  ;;  %v14206_v7 = vld [vmem:[#allocation7 + $0xb64] ss:$8 sps:$4 sm:$0xff]  }
 0x3a5   : > { %3656 = vmatprep.subr.bf16.mxu1 %v14059_v56  ;;  %v14147_v56 = vld [vmem:[#allocation7 + $0xaa0] ss:$8 sps:$4 sm:$0xff]   ;;  %v14218_v9 = vld [vmem:[#allocation7 + $0xb84] ss:$8 sps:$4 sm:$0xff]  }
 0x3a6   : > { %5823 = vmatpush1.bf16.msra.mxu0 %v14093_v24  ;;  %v13149_v24 = vpack.c.bf16 %v4433_v21, %v4432_v15  ;;  %v14230_v15 = vld [vmem:[#allocation7 + $0xba4] ss:$8 sps:$4 sm:$0xff]  }
 0x3a7   : > { %5824 = vmatprep.subr.bf16.mxu0 %v14098_v25  ;;  %v14152_v25 = vld [vmem:[#allocation7 + $0xab4] ss:$8 sps:$4 sm:$0xff]  }
 0x3a8   : > { %3657 = vmatpush1.bf16.msra.mxu1 %v14057_v26  ;;  %v4434_v26 = vld [vmem:[#allocation16 + $0x30] sm:$0xff] }
 0x3a9   : > { %3658 = vmatprep.subr.bf16.mxu1 %v14062_v27  ;;  %v4435_v27 = vld [vmem:[#allocation16 + $0x38] sm:$0xff] }
 0x3aa   : > { %5825 = vmatpush1.bf16.msra.mxu0 %v14096_v28  ;;  %v14150_v28 = vld [vmem:[#allocation7 + $0xab0] ss:$8 sps:$4 sm:$0xff]  }
 0x3ab   : > { %5826 = vmatprep.subr.bf16.mxu0 %v14101_v29  ;;  %v13152_v29 = vpack.c.bf16 %v4435_v27, %v4434_v26 }
 0x3ac   : > { %3659 = vmatpush1.bf16.msra.mxu1 %v14060_v31  ;;  %v14155_v31 = vld [vmem:[#allocation7 + $0xac4] ss:$8 sps:$4 sm:$0xff]  }
 0x3ad   : > { %3660 = vmatprep.subr.bf16.mxu1 %v14065_v32  ;;  %v4436_v32 = vld [vmem:[#allocation16 + $0x40] sm:$0xff] }
 0x3ae   : > { %5827 = vmatpush1.bf16.msra.mxu0 %v14099_v30  ;;  %v4437_v30 = vld [vmem:[#allocation16 + $0x48] sm:$0xff] }
 0x3af   : > { %5828 = vmatprep.subr.bf16.mxu0 %v14104_v38  ;;  %v4439_v38 = vld [vmem:[#allocation16 + $0x58] sm:$0xff] }
 0x3b0   : > { %3661 = vmatpush1.bf16.msra.mxu1 %v14063_v33  ;;  %v14153_v33 = vld [vmem:[#allocation7 + $0xac0] ss:$8 sps:$4 sm:$0xff]  }
 0x3b1   : > { %3662 = vmatprep.subr.bf16.mxu1 %v14068_v34  ;;  %v13155_v34 = vpack.c.bf16 %v4437_v30, %v4436_v32 }
 0x3b2   : > { %5829 = vmatpush1.bf16.msra.mxu0 %v14102_v19  ;;  %v14156_v19 = vld [vmem:[#allocation7 + $0xad0] ss:$8 sps:$4 sm:$0xff]  }
 0x3b3   : > { %5830 = vmatprep.subr.bf16.mxu0 %v14107_v41  ;;  %v14161_v41 = vld [vmem:[#allocation7 + $0xae4] ss:$8 sps:$4 sm:$0xff]  }
 0x3b4   : > { %3663 = vmatpush1.bf16.msra.mxu1 %v14066_v35  ;;  %v14158_v35 = vld [vmem:[#allocation7 + $0xad4] ss:$8 sps:$4 sm:$0xff]  }
 0x3b5   : > { %13142 = vmatprep.subr.bf16.mxu1 %v15799_v14 }
 0x3b6   : > { %5831 = vmatpush1.bf16.msra.mxu0 %v14105_v39 }
 0x3b7   : > { %3665 = vmatmul.mubr.bf16.vlgmr.msra.gmra.mrb[16].mxu1 %v16333_v40  ;;  %5832 = vmatprep.subr.bf16.mxu0 %v14110_v42  ;;  %v14111_v40 = vld [vmem:[#allocation7 + $0x9e0] ss:$8 sps:$4 sm:$0xff]  }
 0x3b8   : > { %13045 = vmatprep.mubr.msk.f32.mxu1 %vm15800_vm0, %v15801_v6  ;;  %13144 = vmatpush3.bf16.msra.mxu1 %v13143_v55  ;;  %v4440_v42 = vld [vmem:[#allocation16 + $0x60] sm:$0xff] }
 0x3b9   : > { %13145 = vmatprep.subr.bf16.mxu1 %v15799_v14  ;;  %v14210_v55 = vld [vmem:[#allocation7 + $0xb70] ss:$8 sps:$4 sm:$0xff]  }
 0x3ba   : > { %5833 = vmatpush1.bf16.msra.mxu0 %v14108_v43  ;;  %v4441_v43 = vld [vmem:[#allocation16 + $0x68] sm:$0xff] }
 0x3bb   : > { %5834 = vmatprep.subr.bf16.mxu0 %v14113_v22  ;;  %v14159_v22 = vld [vmem:[#allocation7 + $0xae0] ss:$8 sps:$4 sm:$0xff]  }
 0x3bc   : > { %13147 = vmatpush3.bf16.msra.mxu1 %v13146_v12  ;;  %v14224_v12 = vld [vmem:[#allocation7 + $0xb94] ss:$8 sps:$4 sm:$0xff]  }
 0x3bd   : > { %13148 = vmatprep.subr.bf16.mxu1 %v15799_v14 }
 0x3be   : > { %5835 = vmatpush1.bf16.msra.mxu0 %v14111_v40  ;;  %v13161_v40 = vpack.c.bf16 %v4441_v43, %v4440_v42  ;;  %v14254_v42 = vld [vmem:[#allocation7 + $0xbe4] ss:$8 sps:$4 sm:$0xff]   ;;  %v14258_v43 = vld [vmem:[#allocation7 + $0xbf0] ss:$8 sps:$4 sm:$0xff]  }
 0x3bf   : > { %5836 = vmatprep.subr.bf16.mxu0 %v14116_v44  ;;  %v14164_v44 = vld [vmem:[#allocation7 + $0xaf4] ss:$8 sps:$4 sm:$0xff]  }
 0x3c0   : > { %13150 = vmatpush3.bf16.msra.mxu1 %v13149_v24  ;;  %v14234_v24 = vld [vmem:[#allocation7 + $0xbb0] ss:$8 sps:$4 sm:$0xff]  }
 0x3c1   : > { %13151 = vmatprep.subr.bf16.mxu1 %v15799_v14 }
 0x3c2   : > { %5837 = vmatpush1.bf16.msra.mxu0 %v14114_v46  ;;  %v4442_v46 = vld [vmem:[#allocation16 + $0x70] sm:$0xff] }
 0x3c3   : > { %5849 = vmatprep.subr.bf16.mxu0 %v14119_v47  ;;  %v4443_v47 = vld [vmem:[#allocation16 + $0x78] sm:$0xff] }
 0x3c4   : > { %13153 = vmatpush3.bf16.msra.mxu1 %v13152_v29 }
 0x3c5   : > { %5839 = vmatmul.mubr.bf16.vlgmr.msra.gmra.mrb[32].mxu0 %v16363_v51  ;;  %13154 = vmatprep.subr.bf16.mxu1 %v15799_v14 }
 0x3c6   : > { %5850 = vmatpush1.bf16.msra.mxu0 %v14117_v49  ;;  %5881 = vmatprep.mubr.bf16.mxu0 %v16367_v53  ;;  %v14162_v49 = vld [vmem:[#allocation7 + $0xaf0] ss:$8 sps:$4 sm:$0xff]  }
 0x3c7   : > { %5851 = vmatprep.subr.bf16.mxu0 %v14122_v50  ;;  %v13164_v50 = vpack.c.bf16 %v4443_v47, %v4442_v46  ;;  %v16402_v46 = vld [vmem:[%s16202_s21 + $0x10] ss:$24 sps:$4 sm:$0xff]  }
 0x3c8   : > { %13156 = vmatpush3.bf16.msra.mxu1 %v13155_v34  ;;  %v14240_v34 = vld [vmem:[#allocation7 + $0xbc0] ss:$8 sps:$4 sm:$0xff]   ;;  %v14270_v47 = vld [vmem:[#allocation7 + $0x1210] ss:$8 sps:$4 sm:$0xff]  }
 0x3c9   : > { %13157 = vmatprep.subr.bf16.mxu1 %v15799_v14 }
 0x3ca   : > { %v16360_v36 = vpop.f32.mrb[12].mxu1  ;;  %5852 = vmatpush1.bf16.msra.mxu0 %v14120_v52  ;;  %v14170_v52 = vld [vmem:[#allocation7 + $0xb04] ss:$8 sps:$4 sm:$0xff]  }
 0x3cb   : > { %v13012_v37 = vpop.f32.mrb[13].mxu1  ;;  %5853 = vmatprep.subr.bf16.mxu0 %v14125_v54  ;;  %v14167_v54 = vld [vmem:[#allocation7 + $0xc04] ss:$8 sps:$4 sm:$0xff]  }
 0x3cc   : > { %v4438_v37 = vld [vmem:[#allocation16 + $0x50] sm:$0xff] }
 0x3cd   : > { %v13158_v39 = vpack.c.bf16 %v4439_v38, %v4438_v37 }
 0x3ce   : > { %5854 = vmatpush1.bf16.msra.mxu0 %v14123_v57  ;;  %v14168_v57 = vld [vmem:[#allocation7 + $0xb00] ss:$8 sps:$4 sm:$0xff]  }
 0x3cf   : > { %5855 = vmatprep.subr.bf16.mxu0 %v14128_v58  ;;  %13159 = vmatpush3.bf16.msra.mxu1 %v13158_v39  ;;  %v16378_v58 = vld [vmem:[%s16202_s21 + $0x8] ss:$24 sps:$4 sm:$0xff]   ;;  %v14248_v39 = vld [vmem:[#allocation7 + $0xbd4] ss:$8 sps:$4 sm:$0xff]  }
 0x3d0   : > { %13160 = vmatprep.subr.bf16.mxu1 %v15799_v14 }
 0x3d2   : > { %5856 = vmatpush1.bf16.msra.mxu0 %v14126_v59  ;;  %v16382_v59 = vld [vmem:[%s16202_s21 + $0x14] ss:$24 sps:$4 sm:$0xff]  }
 0x3d3   : > { %5857 = vmatprep.subr.bf16.mxu0 %v14131_v60  ;;  %13162 = vmatpush3.bf16.msra.mxu1 %v13161_v40  ;;  %v14174_v60 = vld [vmem:[#allocation7 + $0xb10] ss:$8 sps:$4 sm:$0xff]   ;;  %v14264_v40 = vld [vmem:[#allocation7 + $0x1200] ss:$8 sps:$4 sm:$0xff]  }
 0x3d4   : > { %13163 = vmatprep.subr.bf16.mxu1 %v15799_v14 }
 0x3d6   : > { %5858 = vmatpush1.bf16.msra.mxu0 %v14129_v61  ;;  %v14176_v61 = vld [vmem:[#allocation7 + $0xb14] ss:$8 sps:$4 sm:$0xff]  }
 0x3d7   : > { %5859 = vmatprep.subr.bf16.mxu0 %v14134_v62  ;;  %13165 = vmatpush3.bf16.msra.mxu1 %v13164_v50  ;;  %v14180_v62 = vld [vmem:[#allocation7 + $0xb20] ss:$8 sps:$4 sm:$0xff]  }
 0x3d8   : > { %5189 = vmatprep.subr.bf16.mxu1 %v14167_v54  ;;  %v14276_v50 = vld [vmem:[#allocation7 + $0x1220] ss:$8 sps:$4 sm:$0xff]   ;;  %v14282_v54 = vld [vmem:[#allocation7 + $0x1230] ss:$8 sps:$4 sm:$0xff]  }
 0x3da   : > { %5860 = vmatpush1.bf16.msra.mxu0 %v14132_v63  ;;  %v14182_v63 = vld [vmem:[#allocation7 + $0xb24] ss:$8 sps:$4 sm:$0xff]  }
 0x3db   : > { %5861 = vmatprep.subr.bf16.mxu0 %v14137_v0  ;;  %v14186_v0 = vld [vmem:[#allocation7 + $0xb30] ss:$8 sps:$4 sm:$0xff]  }
 0x3de   : > { %5862 = vmatpush1.bf16.msra.mxu0 %v14135_v1  ;;  %v14188_v1 = vld [vmem:[#allocation7 + $0xb34] ss:$8 sps:$4 sm:$0xff]  }
 0x3df   : > { %5863 = vmatprep.subr.bf16.mxu0 %v14140_v2  ;;  %v14192_v2 = vld [vmem:[#allocation7 + $0xb40] ss:$8 sps:$4 sm:$0xff]  }
 0x3e2   : > { %5864 = vmatpush1.bf16.msra.mxu0 %v14138_v3  ;;  %v14194_v3 = vld [vmem:[#allocation7 + $0xb44] ss:$8 sps:$4 sm:$0xff]  }
 0x3e3   : > { %5865 = vmatprep.subr.bf16.mxu0 %v14143_v4  ;;  %v14198_v4 = vld [vmem:[#allocation7 + $0xb50] ss:$8 sps:$4 sm:$0xff]  }
 0x3e6   : > { %5866 = vmatpush1.bf16.msra.mxu0 %v14141_v11  ;;  %v14204_v11 = vld [vmem:[#allocation7 + $0xb60] ss:$8 sps:$4 sm:$0xff]  }
 0x3e7   : > { %5867 = vmatprep.subr.bf16.mxu0 %v14146_v8  ;;  %v14212_v8 = vld [vmem:[#allocation7 + $0xb74] ss:$8 sps:$4 sm:$0xff]  }
 0x3ea   : > { %5868 = vmatpush1.bf16.msra.mxu0 %v14144_v10  ;;  %v14222_v10 = vld [vmem:[#allocation7 + $0xb90] ss:$8 sps:$4 sm:$0xff]  }
 0x3eb   : > { %5869 = vmatprep.subr.bf16.mxu0 %v14149_v13  ;;  %v14228_v13 = vld [vmem:[#allocation7 + $0xba0] ss:$8 sps:$4 sm:$0xff]  }
 0x3ee   : > { %5870 = vmatpush1.bf16.msra.mxu0 %v14147_v56 }
 0x3ef   : > { %5871 = vmatprep.subr.bf16.mxu0 %v14152_v25  ;;  %v14236_v25 = vld [vmem:[#allocation7 + $0xbb4] ss:$8 sps:$4 sm:$0xff]  }
 0x3f2   : > { %5872 = vmatpush1.bf16.msra.mxu0 %v14150_v28 }
 0x3f3   : > { %5873 = vmatprep.subr.bf16.mxu0 %v14155_v31 }
 0x3f6   : > { %5874 = vmatpush1.bf16.msra.mxu0 %v14153_v33 }
 0x3f7   : > { %5875 = vmatprep.subr.bf16.mxu0 %v14158_v35  ;;  %v14242_v35 = vld [vmem:[#allocation7 + $0xbc4] ss:$8 sps:$4 sm:$0xff]  }
 0x3fa   : > { %5876 = vmatpush1.bf16.msra.mxu0 %v14156_v19  ;;  %v14246_v19 = vld [vmem:[#allocation7 + $0xbd0] ss:$8 sps:$4 sm:$0xff]  }
 0x3fb   : > { %5877 = vmatprep.subr.bf16.mxu0 %v14161_v41  ;;  %v14252_v41 = vld [vmem:[#allocation7 + $0xbe0] ss:$8 sps:$4 sm:$0xff]  }
 0x3fe   : > { %5878 = vmatpush1.bf16.msra.mxu0 %v14159_v22  ;;  %v14260_v22 = vld [vmem:[#allocation7 + $0xbf4] ss:$8 sps:$4 sm:$0xff]  }
 0x3ff   : > { %5879 = vmatprep.subr.bf16.mxu0 %v14164_v44  ;;  %v14266_v44 = vld [vmem:[#allocation7 + $0x1204] ss:$8 sps:$4 sm:$0xff]  }
 0x402   : > { %5880 = vmatpush1.bf16.msra.mxu0 %v14162_v49  ;;  %v14272_v49 = vld [vmem:[#allocation7 + $0x1214] ss:$8 sps:$4 sm:$0xff]  }
 0x403   : > { %5892 = vmatprep.subr.bf16.mxu0 %v14170_v52  ;;  %v14278_v52 = vld [vmem:[#allocation7 + $0x1224] ss:$8 sps:$4 sm:$0xff]  }
 0x405   : > { %5882 = vmatmul.mubr.bf16.vlgmr.msra.gmra.mrb[32].mxu0 %v16378_v58 }
 0x406   : > { %5893 = vmatpush1.bf16.msra.mxu0 %v14168_v57  ;;  %5924 = vmatprep.mubr.bf16.mxu0 %v16382_v59  ;;  %v14284_v57 = vld [vmem:[#allocation7 + $0x1234] ss:$8 sps:$4 sm:$0xff]  }
 0x407   : > { %5894 = vmatprep.subr.bf16.mxu0 %v14176_v61  ;;  %v14290_v61 = vld [vmem:[#allocation7 + $0x1244] ss:$8 sps:$4 sm:$0xff]  }
 0x40a   : > { %5895 = vmatpush1.bf16.msra.mxu0 %v14174_v60  ;;  %v14288_v60 = vld [vmem:[#allocation7 + $0x1240] ss:$8 sps:$4 sm:$0xff]  }
 0x40b   : > { %5896 = vmatprep.subr.bf16.mxu0 %v14182_v63  ;;  %v14296_v63 = vld [vmem:[#allocation7 + $0x1254] ss:$8 sps:$4 sm:$0xff]  }
 0x40e   : > { %5897 = vmatpush1.bf16.msra.mxu0 %v14180_v62  ;;  %v14294_v62 = vld [vmem:[#allocation7 + $0x1250] ss:$8 sps:$4 sm:$0xff]  }
 0x40f   : > { %5898 = vmatprep.subr.bf16.mxu0 %v14188_v1  ;;  %v4393_v1 = vld [vmem:[#allocation8] sm:$0x3] }
 0x412   : > { %5899 = vmatpush1.bf16.msra.mxu0 %v14186_v0  ;;  %v14302_v0 = vld [vmem:[#allocation7 + $0x1264] ss:$8 sps:$4 sm:$0xff]  }
 0x413   : > { %5900 = vmatprep.subr.bf16.mxu0 %v14194_v3  ;;  %v14306_v3 = vld [vmem:[#allocation7 + $0x1270] ss:$8 sps:$4 sm:$0xff]  }
 0x416   : > { %5901 = vmatpush1.bf16.msra.mxu0 %v14192_v2  ;;  %v16407_v2 = vsub.s32 0, %v16290_v16 }
 0x417   : > { %5902 = vmatprep.subr.bf16.mxu0 %v14200_v5 }
 0x41a   : > { %5903 = vmatpush1.bf16.msra.mxu0 %v14198_v4  ;;  %v14308_v4 = vld [vmem:[#allocation7 + $0x1274] ss:$8 sps:$4 sm:$0xff]  }
 0x41b   : > { %5904 = vmatprep.subr.bf16.mxu0 %v14206_v7 }
 0x41e   : > { %5905 = vmatpush1.bf16.msra.mxu0 %v14204_v11  ;;  %v16410_v11 = vsub.s32 1, %v16290_v16 }
 0x41f   : > { %5906 = vmatprep.subr.bf16.mxu0 %v14212_v8 }
 0x422   : > { %5907 = vmatpush1.bf16.msra.mxu0 %v14210_v55  ;;  %v4398_v55 = vrot.slane %v4393_v1, %v16407_v2 }
 0x423   : > { %5908 = vmatprep.subr.bf16.mxu0 %v14218_v9 }
 0x426   : > { %5909 = vmatpush1.bf16.msra.mxu0 %v14216_v48  ;;  %v2144_v48 = vld [vmem:[#allocation14] sm:$0x1] }
 0x427   : > { %5910 = vmatprep.subr.bf16.mxu0 %v14224_v12 }
 0x42a   : > { %5911 = vmatpush1.bf16.msra.mxu0 %v14222_v10 }
 0x42b   : > { %5912 = vmatprep.subr.bf16.mxu0 %v14230_v15 }
 0x42e   : > { %5913 = vmatpush1.bf16.msra.mxu0 %v14228_v13 }
 0x42f   : > { %5914 = vmatprep.subr.bf16.mxu0 %v14236_v25 }
 0x432   : > { %5915 = vmatpush1.bf16.msra.mxu0 %v14234_v24 }
 0x433   : > { %5916 = vmatprep.subr.bf16.mxu0 %v14242_v35 }
 0x436   : > { %5917 = vmatpush1.bf16.msra.mxu0 %v14240_v34  ;;  %v14324_v34 = vld [vmem:[#allocation7 + $0x12a0] ss:$8 sps:$4 sm:$0xff]  }
 0x437   : > { %5918 = vmatprep.subr.bf16.mxu0 %v14248_v39 }
 0x43a   : > { %5919 = vmatpush1.bf16.msra.mxu0 %v14246_v19  ;;  %v14332_v19 = vld [vmem:[#allocation7 + $0x12b4] ss:$8 sps:$4 sm:$0xff]  }
 0x43b   : > { %5920 = vmatprep.subr.bf16.mxu0 %v14254_v42 }
 0x43e   : > { %5921 = vmatpush1.bf16.msra.mxu0 %v14252_v41 }
 0x43f   : > { %5922 = vmatprep.subr.bf16.mxu0 %v14260_v22 }
 0x442   : > { %5923 = vmatpush1.bf16.msra.mxu0 %v14258_v43 }
 0x443   : > { %7230 = vmatprep.subr.bf16.mxu0 %v14266_v44  ;;  %v14338_v44 = vld [vmem:[#allocation7 + $0x12c4] ss:$8 sps:$4 sm:$0xff]  }
 0x445   : > { %5925 = vmatmul.mubr.bf16.vlgmr.msra.gmra.mrb[32].mxu0 %v16402_v46 }
 0x446   : > { %7231 = vmatpush1.bf16.msra.mxu0 %v14264_v40  ;;  %7262 = vmatprep.mubr.bf16.mxu0 %v16337_v45  ;;  %v14300_v45 = vld [vmem:[#allocation7 + $0x1260] ss:$8 sps:$4 sm:$0xff]  }
 0x447   : > { %7232 = vmatprep.subr.bf16.mxu0 %v14272_v49  ;;  %v14336_v40 = vld [vmem:[#allocation7 + $0x12c0] ss:$8 sps:$4 sm:$0xff]  }
 0x44a   : > { %7233 = vmatpush1.bf16.msra.mxu0 %v14270_v47 }
 0x44b   : > { %7234 = vmatprep.subr.bf16.mxu0 %v14278_v52  ;;  %v14342_v52 = vld [vmem:[#allocation7 + $0x12d0] ss:$8 sps:$4 sm:$0xff]  }
 0x44e   : > { %7235 = vmatpush1.bf16.msra.mxu0 %v14276_v50 }
 0x44f   : > { %7236 = vmatprep.subr.bf16.mxu0 %v14284_v57 }
 0x452   : > { %7237 = vmatpush1.bf16.msra.mxu0 %v14282_v54  ;;  %v14344_v54 = vld [vmem:[#allocation7 + $0x12d4] ss:$8 sps:$4 sm:$0xff]  }
 0x453   : > { %7238 = vmatprep.subr.bf16.mxu0 %v14290_v61  ;;  %v14348_v61 = vld [vmem:[#allocation7 + $0x12e0] ss:$8 sps:$4 sm:$0xff]  }
 0x456   : > { %7239 = vmatpush1.bf16.msra.mxu0 %v14288_v60 }
 0x457   : > { %7240 = vmatprep.subr.bf16.mxu0 %v14296_v63 }
 0x458   : > { %v4372_v21 = vpop.f32.mrb[28].mxu0 }
 0x459   : > { %v4374_v56 = vpop.f32.mrb[29].mxu0  ;;  %v4381_v27 = vrot.slane %v4372_v21, 2  ;;  %v14312_v21 = vld [vmem:[#allocation7 + $0x1280] ss:$8 sps:$4 sm:$0xff]  }
 0x45a   : > { %v4376_v26 = vpop.f32.mrb[30].mxu0  ;;  %v4382_v31 = vrot.slane %v4374_v56, 2  ;;  %7241 = vmatpush1.bf16.msra.mxu0 %v14294_v62  ;;  %v14314_v56 = vld [vmem:[#allocation7 + $0x1284] ss:$8 sps:$4 sm:$0xff]  }
 0x45b   : > { %v4383_v28 = vrot.slane %v4376_v26, 2  ;;  %v4378_v29 = vpop.f32.mrb[31].mxu0  ;;  %7242 = vmatprep.subr.bf16.mxu0 %v14302_v0  ;;  %v14350_v62 = vld [vmem:[#allocation7 + $0x12e4] ss:$8 sps:$4 sm:$0xff]   ;;  %v14354_v0 = vld [vmem:[#allocation7 + $0x12f0] ss:$8 sps:$4 sm:$0xff]  }
 0x45c   : > { %v4384_v32 = vrot.slane %v4378_v29, 2  ;;  %v14318_v29 = vld [vmem:[#allocation7 + $0x1290] ss:$8 sps:$4 sm:$0xff]  }
 0x45d   : > { %v16387_v30 = vsel %vm2100_vm2, %v4381_v27, %v4383_v28  ;;  %v16391_v33 = vsel %vm2100_vm2, %v4383_v28, %v4381_v27 }
 0x45e   : > { %v16395_v37 = vsel %vm2100_vm2, %v4382_v31, %v4384_v32  ;;  %v16399_v38 = vsel %vm2100_vm2, %v4384_v32, %v4382_v31  ;;  %7243 = vmatpush1.bf16.msra.mxu0 %v14300_v45  ;;  %v14320_v31 = vld [vmem:[#allocation7 + $0x1294] ss:$8 sps:$4 sm:$0xff]  }
 0x45f   : > { %7244 = vmatprep.subr.bf16.mxu0 %v14308_v4  ;;  %v14165_v4 = vld [vmem:[#allocation7 + $0xc00] ss:$8 sps:$4 sm:$0xff]  }
 0x462   : > { %7245 = vmatpush1.bf16.msra.mxu0 %v14306_v3 }
 0x463   : > { %7246 = vmatprep.subr.bf16.mxu0 %v14314_v56  ;;  %v14374_v56 = vld [vmem:[#allocation7 + $0x1324] ss:$8 sps:$4 sm:$0xff]  }
 0x466   : > { %7247 = vmatpush1.bf16.msra.mxu0 %v14312_v21  ;;  %v14185_v21 = vld [vmem:[#allocation7 + $0xc34] ss:$8 sps:$4 sm:$0xff]  }
 0x467   : > { %7248 = vmatprep.subr.bf16.mxu0 %v14320_v31  ;;  %v14195_v31 = vld [vmem:[#allocation7 + $0xc50] ss:$8 sps:$4 sm:$0xff]  }
 0x46a   : > { %7249 = vmatpush1.bf16.msra.mxu0 %v14318_v29  ;;  %v14384_v29 = vld [vmem:[#allocation7 + $0x1340] ss:$8 sps:$4 sm:$0xff]  }
 0x48a   : > { %v3666_v5 = vpop.f32.mrb[16].mxu1 }
 0x48b   : > { %v13214_v7 = vadd.f32 %v3666_v5, %v16342_v17  ;;  %v3668_v8 = vpop.f32.mrb[17].mxu1  ;;  %v4402_v17 = vrot.slane %v4393_v1, %v16410_v11  ;;  %v14356_v1 = vld [vmem:[#allocation7 + $0x12f4] ss:$8 sps:$4 sm:$0xff]  }
 0x48c   : > { %v13215_v9 = vadd.f32 %v3668_v8, %v16350_v18  ;;  %v3670_v10 = vpop.f32.mrb[18].mxu1  ;;  %v2212_v18 = vadd.f32 %v16360_v36, %v2144_v48  ;;  %v14360_v8 = vld [vmem:[#allocation7 + $0x1300] ss:$8 sps:$4 sm:$0xff]   ;;  %v14171_v48 = vld [vmem:[#allocation7 + $0xc10] ss:$8 sps:$4 sm:$0xff]  }
 0x48d   : > { %v4389_v12 = vadd.f32 %v13214_v7, %v16387_v30  ;;  %v13216_v13 = vadd.f32 %v3670_v10, %v16346_v20  ;;  %v3672_v15 = vpop.f32.mrb[19].mxu1  ;;  %v14173_v7 = vld [vmem:[#allocation7 + $0xc14] ss:$8 sps:$4 sm:$0xff]   ;;  %v14179_v10 = vld [vmem:[#allocation7 + $0xc24] ss:$8 sps:$4 sm:$0xff]  }
 0x48e   : > { %v4390_v24 = vadd.f32 %v13215_v9, %v16395_v37  ;;  %v13217_v25 = vadd.f32 %v3672_v15, %v16354_v23  ;;  %v16424_v30 = vrot.slane %v2212_v18, %v16407_v2  ;;  %v16429_v37 = vadd.s32 8, %v16290_v16  ;;  %v16433_v9 = vld [vmem:[%s16202_s21 + $0x4] ss:$24 sps:$4 sm:$0xff]   ;;  %v14177_v15 = vld [vmem:[#allocation7 + $0xc20] ss:$8 sps:$4 sm:$0xff]  }
 0x48f   : > { %v4405_v26 = vadd.f32 %v4398_v55, %v4389_v12  ;;  %v4391_v27 = vadd.f32 %v13216_v13, %v16391_v33  ;;  %v14326_v33 = vld [vmem:[#allocation7 + $0x12a4] ss:$8 sps:$4 sm:$0xff]   ;;  %v14368_v12 = vld [vmem:[#allocation7 + $0x1314] ss:$8 sps:$4 sm:$0xff]   ;;  %v14366_v13 = vld [vmem:[#allocation7 + $0x1310] ss:$8 sps:$4 sm:$0xff]  }
 0x490   : > { %v4392_v28 = vadd.f32 %v13217_v25, %v16399_v38  ;;  %v4406_v32 = vadd.f32 %v4402_v17, %v4390_v24  ;;  %7250 = vmatprep.subr.bf16.mxu0 %v14326_v33  ;;  %v14330_v38 = vld [vmem:[#allocation7 + $0x12b0] ss:$8 sps:$4 sm:$0xff]   ;;  %vm4418_vm3 = vcmp.le.s32.totalorder %v16429_v37, 13  ;;  %v14372_v24 = vld [vmem:[#allocation7 + $0x1320] ss:$8 sps:$4 sm:$0xff]   ;;  %vm7398_vm5 = vcmp.le.s32.totalorder %v16429_v37, 12 }
 0x491   : > { %15365 = vtanh.f32 %v4405_v26  ;;  %v4407_v20 = vadd.f32 %v4398_v55, %v4391_v27  ;;  %7251 = vmatpush1.bf16.msra.mxu0 %v14324_v34  ;;  %v14362_v55 = vld [vmem:[#allocation7 + $0x1304] ss:$8 sps:$4 sm:$0xff]   ;;  %v14380_v26 = vld [vmem:[#allocation7 + $0x1334] ss:$8 sps:$4 sm:$0xff]   ;;  %v14378_v27 = vld [vmem:[#allocation7 + $0x1330] ss:$8 sps:$4 sm:$0xff]  }
 0x492   : > { %v4408_v23 = vadd.f32 %v4402_v17, %v4392_v28  ;;  %v4409_v35 = vadd.f32 %v4406_v32, %v16424_v30  ;;  %7252 = vmatprep.subr.bf16.mxu0 %v14332_v19  ;;  %v14183_v17 = vld [vmem:[#allocation7 + $0xc30] ss:$8 sps:$4 sm:$0xff]   ;;  %v14191_v25 = vld [vmem:[#allocation7 + $0xc44] ss:$8 sps:$4 sm:$0xff]   ;;  %v14189_v18 = vld [vmem:[#allocation7 + $0xc40] ss:$8 sps:$4 sm:$0xff]  }
 0x493   : > { %15367 = vtanh.f32 %v4407_v20  ;;  %v14197_v28 = vld [vmem:[#allocation7 + $0xc54] ss:$8 sps:$4 sm:$0xff]   ;;  %v14386_v20 = vld [vmem:[#allocation7 + $0x1344] ss:$8 sps:$4 sm:$0xff]   ;;  %v14390_v34 = vld [vmem:[#allocation7 + $0x1350] ss:$8 sps:$4 sm:$0xff]  }
 0x494   : > { %v4410_v36 = vadd.f32 %v4408_v23, %v16424_v30  ;;  %v4413_v39 = vmax.f32 %v4409_v35, 0.0  ;;  %v14203_v32 = vld [vmem:[#allocation7 + $0xc64] ss:$8 sps:$4 sm:$0xff]   ;;  %v14392_v23 = vld [vmem:[#allocation7 + $0x1354] ss:$8 sps:$4 sm:$0xff]   ;;  %vm11097_vm7 = vcmp.le.s32.totalorder %v16429_v37, 11 }
 0x495   : > { %7253 = vmatpush1.bf16.msra.mxu0 %v14330_v38  ;;  %v14201_v33 = vld [vmem:[#allocation7 + $0xc60] ss:$8 sps:$4 sm:$0xff]   ;;  %v14209_v35 = vld [vmem:[#allocation7 + $0xc74] ss:$8 sps:$4 sm:$0xff]   ;;  %v14207_v19 = vld [vmem:[#allocation7 + $0xc70] ss:$8 sps:$4 sm:$0xff]  }
 0x496   : > { %v4414_v43 = vmax.f32 %v4410_v36, 0.0  ;;  %7254 = vmatprep.subr.bf16.mxu0 %v14338_v44  ;;  %v14398_v36 = vld [vmem:[#allocation7 + $0x1364] ss:$8 sps:$4 sm:$0xff]   ;;  %v14396_v38 = vld [vmem:[#allocation7 + $0x1360] ss:$8 sps:$4 sm:$0xff]  }
 0x497   : > { %v14408_v44 = vld [vmem:[#allocation7 + $0x1380] ss:$8 sps:$4 sm:$0xff]  }
 0x499   : > { %7255 = vmatpush1.bf16.msra.mxu0 %v14336_v40  ;;  %v14410_v40 = vld [vmem:[#allocation7 + $0x1384] ss:$8 sps:$4 sm:$0xff]  }
 0x49a   : > { %7256 = vmatprep.subr.bf16.mxu0 %v14344_v54  ;;  %v14225_v54 = vld [vmem:[#allocation7 + $0xca0] ss:$8 sps:$4 sm:$0xff]  }
 0x49b   : > { %v15366_v41 = vpop.eup %15365 }
 0x49c   : > { %v4415_v42 = vmul.f32 %v15366_v41, %v4413_v39  ;;  %v14215_v39 = vld [vmem:[#allocation7 + $0xc84] ss:$8 sps:$4 sm:$0xff]   ;;  %v14404_v41 = vld [vmem:[#allocation7 + $0x1374] ss:$8 sps:$4 sm:$0xff]  }
 0x49d   : > { %v15368_v22 = vpop.eup %15367  ;;  %7257 = vmatpush1.bf16.msra.mxu0 %v14342_v52  ;;  %v14414_v52 = vld [vmem:[#allocation7 + $0x1390] ss:$8 sps:$4 sm:$0xff]  }
 0x49e   : > { %v4416_v47 = vmul.f32 %v15368_v22, %v4414_v43  ;;  %7258 = vmatprep.subr.bf16.mxu0 %v14350_v62  ;;  %v14213_v43 = vld [vmem:[#allocation7 + $0xc80] ss:$8 sps:$4 sm:$0xff]   ;;  %v14221_v22 = vld [vmem:[#allocation7 + $0xc94] ss:$8 sps:$4 sm:$0xff]   ;;  %v14231_v62 = vld [vmem:[#allocation7 + $0xcb0] ss:$8 sps:$4 sm:$0xff]  }
 0x4a0   : > { %v4420_v49 = vsel %vm4418_vm3, %v4416_v47, -1e+30  ;;  %v14219_v47 = vld [vmem:[#allocation7 + $0xc90] ss:$8 sps:$4 sm:$0xff]  }
 0x4a1   : > { %v4421_v50 = vmax.f32 %v4415_v42, %v4420_v49  ;;  %7259 = vmatpush1.bf16.msra.mxu0 %v14348_v61  ;;  %v14402_v42 = vld [vmem:[#allocation7 + $0x1370] ss:$8 sps:$4 sm:$0xff]   ;;  %v14227_v49 = vld [vmem:[#allocation7 + $0xca4] ss:$8 sps:$4 sm:$0xff]   ;;  %v14420_v61 = vld [vmem:[#allocation7 + $0x13a0] ss:$8 sps:$4 sm:$0xff]  }
 0x4a2   : > { %7260 = vmatprep.subr.bf16.mxu0 %v14356_v1  ;;  %v14237_v1 = vld [vmem:[#allocation7 + $0xcc0] ss:$8 sps:$4 sm:$0xff]  }
 0x4a3   : > { %v4422_v57 = vrot.slane %v4421_v50, 4 }
 0x4a5   : > { %v4423_v60 = vmax.f32 %v4421_v50, %v4422_v57  ;;  %7261 = vmatpush1.bf16.msra.mxu0 %v14354_v0  ;;  %v14416_v50 = vld [vmem:[#allocation7 + $0x1394] ss:$8 sps:$4 sm:$0xff]   ;;  %v14426_v0 = vld [vmem:[#allocation7 + $0x13b0] ss:$8 sps:$4 sm:$0xff]  }
 0x4a6   : > { %7273 = vmatprep.subr.bf16.mxu0 %v14362_v55  ;;  %v14233_v57 = vld [vmem:[#allocation7 + $0xcb4] ss:$8 sps:$4 sm:$0xff]   ;;  %v14251_v55 = vld [vmem:[#allocation7 + $0xce4] ss:$8 sps:$4 sm:$0xff]  }
 0x4a7   : > { %v4424_v63 = vrot.slane %v4423_v60, 2 }
 0x4a8   : > { %7263 = vmatmul.mubr.bf16.vlgmr.msra.gmra.mrb[36].mxu0 %v16363_v51 }
 0x4a9   : > { %v4425_v45 = vmax.f32 %v4423_v60, %v4424_v63  ;;  %7274 = vmatpush1.bf16.msra.mxu0 %v14360_v8  ;;  %7305 = vmatprep.mubr.bf16.mxu0 %v16367_v53  ;;  %v14422_v60 = vld [vmem:[#allocation7 + $0x13a4] ss:$8 sps:$4 sm:$0xff]   ;;  %v14440_v8 = vld [vmem:[#allocation7 + $0x13d4] ss:$8 sps:$4 sm:$0xff]  }
 0x4aa   : > { %7275 = vmatprep.subr.bf16.mxu0 %v14368_v12  ;;  %v14239_v63 = vld [vmem:[#allocation7 + $0xcc4] ss:$8 sps:$4 sm:$0xff]   ;;  %v14257_v12 = vld [vmem:[#allocation7 + $0xcf4] ss:$8 sps:$4 sm:$0xff]  }
 0x4ab   : > { %v4426_v3 = vrot.slane %v4425_v45, 1 }
 0x4ad   : > { %v4427_v5 = vmax.f32 %v4425_v45, %v4426_v3  ;;  %7276 = vmatpush1.bf16.msra.mxu0 %v14366_v13  ;;  %v14428_v45 = vld [vmem:[#allocation7 + $0x13b4] ss:$8 sps:$4 sm:$0xff]   ;;  %v14446_v13 = vld [vmem:[#allocation7 + $0x13e4] ss:$8 sps:$4 sm:$0xff]  }
 0x4ae   : > { %7277 = vmatprep.subr.bf16.mxu0 %v14374_v56  ;;  %v14245_v3 = vld [vmem:[#allocation7 + $0xcd4] ss:$8 sps:$4 sm:$0xff]   ;;  %v14263_v56 = vld [vmem:[#allocation7 + $0xd04] ss:$8 sps:$4 sm:$0xff]  }
 0x4af   : > { %13046 = vmatmul.mubr.f32.vlgmr.msra.gmra.mrb[14].mxu1 %v4427_v5  ;;  %v14432_v5 = vld [vmem:[#allocation7 + $0x13c0] ss:$8 sps:$4 sm:$0xff]  }
 0x4b0   : > { %5190 = vmatpush1.bf16.msra.mxu1 %v14165_v4  ;;  %5221 = vmatprep.mubr.bf16.mxu1 %v16433_v9  ;;  %v14434_v4 = vld [vmem:[#allocation7 + $0x13c4] ss:$8 sps:$4 sm:$0xff]  }
 0x4b1   : > { %5191 = vmatprep.subr.bf16.mxu1 %v14173_v7  ;;  %7278 = vmatpush1.bf16.msra.mxu0 %v14372_v24  ;;  %v14243_v7 = vld [vmem:[#allocation7 + $0xcd0] ss:$8 sps:$4 sm:$0xff]   ;;  %v14452_v24 = vld [vmem:[#allocation7 + $0x13f4] ss:$8 sps:$4 sm:$0xff]  }
 0x4b2   : > { %7279 = vmatprep.subr.bf16.mxu0 %v14380_v26  ;;  %v14269_v26 = vld [vmem:[#allocation7 + $0xd14] ss:$8 sps:$4 sm:$0xff]  }
 0x4b4   : > { %5192 = vmatpush1.bf16.msra.mxu1 %v14171_v48  ;;  %v14438_v48 = vld [vmem:[#allocation7 + $0x13d0] ss:$8 sps:$4 sm:$0xff]  }
 0x4b5   : > { %5193 = vmatprep.subr.bf16.mxu1 %v14179_v10  ;;  %7280 = vmatpush1.bf16.msra.mxu0 %v14378_v27  ;;  %v14249_v10 = vld [vmem:[#allocation7 + $0xce0] ss:$8 sps:$4 sm:$0xff]   ;;  %v14458_v27 = vld [vmem:[#allocation7 + $0x1404] ss:$8 sps:$4 sm:$0xff]  }
 0x4b6   : > { %7281 = vmatprep.subr.bf16.mxu0 %v14386_v20  ;;  %v14275_v20 = vld [vmem:[#allocation7 + $0xd24] ss:$8 sps:$4 sm:$0xff]  }
 0x4b8   : > { %5194 = vmatpush1.bf16.msra.mxu1 %v14177_v15  ;;  %v14444_v15 = vld [vmem:[#allocation7 + $0x13e0] ss:$8 sps:$4 sm:$0xff]  }
 0x4b9   : > { %5195 = vmatprep.subr.bf16.mxu1 %v14185_v21  ;;  %7282 = vmatpush1.bf16.msra.mxu0 %v14384_v29  ;;  %v14255_v21 = vld [vmem:[#allocation7 + $0xcf0] ss:$8 sps:$4 sm:$0xff]   ;;  %v14464_v29 = vld [vmem:[#allocation7 + $0x1414] ss:$8 sps:$4 sm:$0xff]  }
 0x4ba   : > { %7283 = vmatprep.subr.bf16.mxu0 %v14392_v23  ;;  %v14281_v23 = vld [vmem:[#allocation7 + $0xd34] ss:$8 sps:$4 sm:$0xff]  }
 0x4bc   : > { %5196 = vmatpush1.bf16.msra.mxu1 %v14183_v17  ;;  %v14450_v17 = vld [vmem:[#allocation7 + $0x13f0] ss:$8 sps:$4 sm:$0xff]  }
 0x4bd   : > { %5197 = vmatprep.subr.bf16.mxu1 %v14191_v25  ;;  %7284 = vmatpush1.bf16.msra.mxu0 %v14390_v34  ;;  %v14261_v25 = vld [vmem:[#allocation7 + $0xd00] ss:$8 sps:$4 sm:$0xff]  }
 0x4be   : > { %7285 = vmatprep.subr.bf16.mxu0 %v14398_v36  ;;  %v14468_v34 = vld [vmem:[#allocation7 + $0x1420] ss:$8 sps:$4 sm:$0xff]   ;;  %v14474_v36 = vld [vmem:[#allocation7 + $0x1430] ss:$8 sps:$4 sm:$0xff]  }
 0x4c0   : > { %5198 = vmatpush1.bf16.msra.mxu1 %v14189_v18  ;;  %v14456_v18 = vld [vmem:[#allocation7 + $0x1400] ss:$8 sps:$4 sm:$0xff]  }
 0x4c1   : > { %5199 = vmatprep.subr.bf16.mxu1 %v14197_v28  ;;  %7286 = vmatpush1.bf16.msra.mxu0 %v14396_v38  ;;  %v14267_v28 = vld [vmem:[#allocation7 + $0xd10] ss:$8 sps:$4 sm:$0xff]   ;;  %v14285_v38 = vld [vmem:[#allocation7 + $0xd40] ss:$8 sps:$4 sm:$0xff]  }
 0x4c2   : > { %7287 = vmatprep.subr.bf16.mxu0 %v14404_v41  ;;  %v14480_v41 = vld [vmem:[#allocation7 + $0x1440] ss:$8 sps:$4 sm:$0xff]  }
 0x4c4   : > { %5200 = vmatpush1.bf16.msra.mxu1 %v14195_v31  ;;  %v14462_v31 = vld [vmem:[#allocation7 + $0x1410] ss:$8 sps:$4 sm:$0xff]  }
 0x4c5   : > { %5201 = vmatprep.subr.bf16.mxu1 %v14203_v32  ;;  %7288 = vmatpush1.bf16.msra.mxu0 %v14402_v42  ;;  %v14273_v32 = vld [vmem:[#allocation7 + $0xd20] ss:$8 sps:$4 sm:$0xff]   ;;  %v14291_v42 = vld [vmem:[#allocation7 + $0xd50] ss:$8 sps:$4 sm:$0xff]  }
 0x4c6   : > { %7289 = vmatprep.subr.bf16.mxu0 %v14410_v40  ;;  %v14486_v40 = vld [vmem:[#allocation7 + $0x1450] ss:$8 sps:$4 sm:$0xff]  }
 0x4c8   : > { %5202 = vmatpush1.bf16.msra.mxu1 %v14201_v33  ;;  %v14287_v33 = vld [vmem:[#allocation7 + $0xd44] ss:$8 sps:$4 sm:$0xff]  }
 0x4c9   : > { %5203 = vmatprep.subr.bf16.mxu1 %v14209_v35  ;;  %7290 = vmatpush1.bf16.msra.mxu0 %v14408_v44  ;;  %v14476_v35 = vld [vmem:[#allocation7 + $0x1434] ss:$8 sps:$4 sm:$0xff]   ;;  %v14297_v44 = vld [vmem:[#allocation7 + $0xd60] ss:$8 sps:$4 sm:$0xff]  }
 0x4ca   : > { %7291 = vmatprep.subr.bf16.mxu0 %v14416_v50  ;;  %v14492_v50 = vld [vmem:[#allocation7 + $0x1460] ss:$8 sps:$4 sm:$0xff]  }
 0x4cc   : > { %5204 = vmatpush1.bf16.msra.mxu1 %v14207_v19  ;;  %v14293_v19 = vld [vmem:[#allocation7 + $0xd54] ss:$8 sps:$4 sm:$0xff]  }
 0x4cd   : > { %5205 = vmatprep.subr.bf16.mxu1 %v14215_v39  ;;  %7292 = vmatpush1.bf16.msra.mxu0 %v14414_v52  ;;  %v14482_v39 = vld [vmem:[#allocation7 + $0x1444] ss:$8 sps:$4 sm:$0xff]   ;;  %v14303_v52 = vld [vmem:[#allocation7 + $0xd70] ss:$8 sps:$4 sm:$0xff]  }
 0x4ce   : > { %7293 = vmatprep.subr.bf16.mxu0 %v14422_v60  ;;  %v14498_v60 = vld [vmem:[#allocation7 + $0x1470] ss:$8 sps:$4 sm:$0xff]  }
 0x4d0   : > { %5206 = vmatpush1.bf16.msra.mxu1 %v14213_v43  ;;  %v14299_v43 = vld [vmem:[#allocation7 + $0xd64] ss:$8 sps:$4 sm:$0xff]  }
 0x4d1   : > { %5207 = vmatprep.subr.bf16.mxu1 %v14221_v22  ;;  %7294 = vmatpush1.bf16.msra.mxu0 %v14420_v61  ;;  %v14488_v22 = vld [vmem:[#allocation7 + $0x1454] ss:$8 sps:$4 sm:$0xff]   ;;  %v14309_v61 = vld [vmem:[#allocation7 + $0xd80] ss:$8 sps:$4 sm:$0xff]  }
 0x4d2   : > { %7295 = vmatprep.subr.bf16.mxu0 %v14428_v45  ;;  %v14504_v45 = vld [vmem:[#allocation7 + $0x1480] ss:$8 sps:$4 sm:$0xff]  }
 0x4d4   : > { %5208 = vmatpush1.bf16.msra.mxu1 %v14219_v47  ;;  %v14305_v47 = vld [vmem:[#allocation7 + $0xd74] ss:$8 sps:$4 sm:$0xff]  }
 0x4d5   : > { %5209 = vmatprep.subr.bf16.mxu1 %v14227_v49  ;;  %7296 = vmatpush1.bf16.msra.mxu0 %v14426_v0  ;;  %v14494_v49 = vld [vmem:[#allocation7 + $0x1464] ss:$8 sps:$4 sm:$0xff]   ;;  %v14315_v0 = vld [vmem:[#allocation7 + $0xd90] ss:$8 sps:$4 sm:$0xff]  }
 0x4d6   : > { %7297 = vmatprep.subr.bf16.mxu0 %v14434_v4  ;;  %v14510_v4 = vld [vmem:[#allocation7 + $0x1490] ss:$8 sps:$4 sm:$0xff]  }
 0x4d8   : > { %5210 = vmatpush1.bf16.msra.mxu1 %v14225_v54  ;;  %v14311_v54 = vld [vmem:[#allocation7 + $0xd84] ss:$8 sps:$4 sm:$0xff]  }
 0x4d9   : > { %5211 = vmatprep.subr.bf16.mxu1 %v14233_v57  ;;  %7298 = vmatpush1.bf16.msra.mxu0 %v14432_v5  ;;  %v14500_v57 = vld [vmem:[#allocation7 + $0x1474] ss:$8 sps:$4 sm:$0xff]   ;;  %v14321_v5 = vld [vmem:[#allocation7 + $0xda0] ss:$8 sps:$4 sm:$0xff]  }
 0x4da   : > { %7299 = vmatprep.subr.bf16.mxu0 %v14440_v8  ;;  %v14516_v8 = vld [vmem:[#allocation7 + $0x14a0] ss:$8 sps:$4 sm:$0xff]  }
 0x4dc   : > { %5212 = vmatpush1.bf16.msra.mxu1 %v14231_v62  ;;  %v14317_v62 = vld [vmem:[#allocation7 + $0xd94] ss:$8 sps:$4 sm:$0xff]  }
 0x4dd   : > { %5213 = vmatprep.subr.bf16.mxu1 %v14239_v63  ;;  %7300 = vmatpush1.bf16.msra.mxu0 %v14438_v48  ;;  %v14506_v63 = vld [vmem:[#allocation7 + $0x1484] ss:$8 sps:$4 sm:$0xff]   ;;  %v14327_v48 = vld [vmem:[#allocation7 + $0xdb0] ss:$8 sps:$4 sm:$0xff]  }
 0x4de   : > { %7301 = vmatprep.subr.bf16.mxu0 %v14446_v13  ;;  %v14522_v13 = vld [vmem:[#allocation7 + $0x14b0] ss:$8 sps:$4 sm:$0xff]  }
 0x4e0   : > { %5214 = vmatpush1.bf16.msra.mxu1 %v14237_v1  ;;  %v14323_v1 = vld [vmem:[#allocation7 + $0xda4] ss:$8 sps:$4 sm:$0xff]  }
 0x4e1   : > { %5215 = vmatprep.subr.bf16.mxu1 %v14245_v3  ;;  %7302 = vmatpush1.bf16.msra.mxu0 %v14444_v15  ;;  %v14512_v3 = vld [vmem:[#allocation7 + $0x1494] ss:$8 sps:$4 sm:$0xff]   ;;  %v14333_v15 = vld [vmem:[#allocation7 + $0xdc0] ss:$8 sps:$4 sm:$0xff]  }
 0x4e2   : > { %7303 = vmatprep.subr.bf16.mxu0 %v14452_v24  ;;  %v14528_v24 = vld [vmem:[#allocation7 + $0x14c0] ss:$8 sps:$4 sm:$0xff]  }
 0x4e4   : > { %5216 = vmatpush1.bf16.msra.mxu1 %v14243_v7  ;;  %v14329_v7 = vld [vmem:[#allocation7 + $0xdb4] ss:$8 sps:$4 sm:$0xff]  }
 0x4e5   : > { %5217 = vmatprep.subr.bf16.mxu1 %v14251_v55  ;;  %7304 = vmatpush1.bf16.msra.mxu0 %v14450_v17  ;;  %v14518_v55 = vld [vmem:[#allocation7 + $0x14a4] ss:$8 sps:$4 sm:$0xff]   ;;  %v14339_v17 = vld [vmem:[#allocation7 + $0xdd0] ss:$8 sps:$4 sm:$0xff]  }
 0x4e6   : > { %7316 = vmatprep.subr.bf16.mxu0 %v14458_v27  ;;  %v14534_v27 = vld [vmem:[#allocation7 + $0x14d0] ss:$8 sps:$4 sm:$0xff]  }
 0x4e8   : > { %5218 = vmatpush1.bf16.msra.mxu1 %v14249_v10  ;;  %7306 = vmatmul.mubr.bf16.vlgmr.msra.gmra.mrb[36].mxu0 %v16378_v58  ;;  %v14335_v10 = vld [vmem:[#allocation7 + $0xdc4] ss:$8 sps:$4 sm:$0xff]  }
 0x4e9   : > { %5219 = vmatprep.subr.bf16.mxu1 %v14257_v12  ;;  %7317 = vmatpush1.bf16.msra.mxu0 %v14456_v18  ;;  %v14524_v12 = vld [vmem:[#allocation7 + $0x14b4] ss:$8 sps:$4 sm:$0xff]   ;;  %v14345_v18 = vld [vmem:[#allocation7 + $0xde0] ss:$8 sps:$4 sm:$0xff]  }
 0x4ea   : > { %7348 = vmatprep.mubr.bf16.mxu0 %v16382_v59  ;;  %7318 = vmatprep.subr.bf16.mxu0 %v14464_v29  ;;  %v14540_v29 = vld [vmem:[#allocation7 + $0x14e0] ss:$8 sps:$4 sm:$0xff]  }
 0x4ec   : > { %5220 = vmatpush1.bf16.msra.mxu1 %v14255_v21  ;;  %v14341_v21 = vld [vmem:[#allocation7 + $0xdd4] ss:$8 sps:$4 sm:$0xff]  }
 0x4ed   : > { %5232 = vmatprep.subr.bf16.mxu1 %v14263_v56  ;;  %7319 = vmatpush1.bf16.msra.mxu0 %v14462_v31  ;;  %v14530_v56 = vld [vmem:[#allocation7 + $0x14c4] ss:$8 sps:$4 sm:$0xff]   ;;  %v14351_v31 = vld [vmem:[#allocation7 + $0xdf0] ss:$8 sps:$4 sm:$0xff]  }
 0x4ef   : > { %5222 = vmatmul.mubr.bf16.vlgmr.msra.gmra.mrb[20].mxu1 %v16363_v51  ;;  %v14470_v51 = vld [vmem:[#allocation7 + $0x1424] ss:$8 sps:$4 sm:$0xff]  }
 0x4f0   : > { %5233 = vmatpush1.bf16.msra.mxu1 %v14261_v25  ;;  %5264 = vmatprep.mubr.bf16.mxu1 %v16367_v53  ;;  %v14279_v53 = vld [vmem:[#allocation7 + $0xd30] ss:$8 sps:$4 sm:$0xff]   ;;  %v14347_v25 = vld [vmem:[#allocation7 + $0xde4] ss:$8 sps:$4 sm:$0xff]  }
 0x4f1   : > { %5234 = vmatprep.subr.bf16.mxu1 %v14269_v26  ;;  %7320 = vmatprep.subr.bf16.mxu0 %v14470_v51  ;;  %v14536_v26 = vld [vmem:[#allocation7 + $0x14d4] ss:$8 sps:$4 sm:$0xff]   ;;  %v14546_v51 = vld [vmem:[#allocation7 + $0x14f0] ss:$8 sps:$4 sm:$0xff]  }
 0x4f2   : > { %7321 = vmatpush1.bf16.msra.mxu0 %v14468_v34  ;;  %v14357_v34 = vld [vmem:[#allocation7 + $0xe00] ss:$8 sps:$4 sm:$0xff]  }
 0x4f3   : > { %7322 = vmatprep.subr.bf16.mxu0 %v14476_v35  ;;  %v14371_v35 = vld [vmem:[#allocation7 + $0xe24] ss:$8 sps:$4 sm:$0xff]  }
 0x4f4   : > { %5235 = vmatpush1.bf16.msra.mxu1 %v14267_v28  ;;  %v14353_v28 = vld [vmem:[#allocation7 + $0xdf4] ss:$8 sps:$4 sm:$0xff]  }
 0x4f5   : > { %5236 = vmatprep.subr.bf16.mxu1 %v14275_v20  ;;  %v14542_v20 = vld [vmem:[#allocation7 + $0x14e4] ss:$8 sps:$4 sm:$0xff]  }
 0x4f6   : > { %7323 = vmatpush1.bf16.msra.mxu0 %v14474_v36  ;;  %v14369_v36 = vld [vmem:[#allocation7 + $0xe20] ss:$8 sps:$4 sm:$0xff]  }
 0x4f7   : > { %7324 = vmatprep.subr.bf16.mxu0 %v14482_v39  ;;  %v14383_v39 = vld [vmem:[#allocation7 + $0xe44] ss:$8 sps:$4 sm:$0xff]  }
 0x4f8   : > { %5237 = vmatpush1.bf16.msra.mxu1 %v14273_v32  ;;  %v14359_v32 = vld [vmem:[#allocation7 + $0xe04] ss:$8 sps:$4 sm:$0xff]  }
 0x4f9   : > { %5238 = vmatprep.subr.bf16.mxu1 %v14281_v23  ;;  %v14548_v23 = vld [vmem:[#allocation7 + $0x14f4] ss:$8 sps:$4 sm:$0xff]  }
 0x4fa   : > { %7325 = vmatpush1.bf16.msra.mxu0 %v14480_v41  ;;  %v14389_v41 = vld [vmem:[#allocation7 + $0xe54] ss:$8 sps:$4 sm:$0xff]  }
 0x4fb   : > { %7326 = vmatprep.subr.bf16.mxu0 %v14488_v22 }
 0x4fc   : > { %5239 = vmatpush1.bf16.msra.mxu1 %v14279_v53  ;;  %v14365_v53 = vld [vmem:[#allocation7 + $0xe14] ss:$8 sps:$4 sm:$0xff]  }
 0x4fd   : > { %5240 = vmatprep.subr.bf16.mxu1 %v14287_v33  ;;  %v14363_v33 = vld [vmem:[#allocation7 + $0xe10] ss:$8 sps:$4 sm:$0xff]  }
 0x4fe   : > { %7327 = vmatpush1.bf16.msra.mxu0 %v14486_v40  ;;  %v14393_v40 = vld [vmem:[#allocation7 + $0xe60] ss:$8 sps:$4 sm:$0xff]  }
 0x4ff   : > { %7328 = vmatprep.subr.bf16.mxu0 %v14494_v49 }
 0x500   : > { %5241 = vmatpush1.bf16.msra.mxu1 %v14285_v38  ;;  %v14377_v38 = vld [vmem:[#allocation7 + $0xe34] ss:$8 sps:$4 sm:$0xff]  }
 0x501   : > { %5242 = vmatprep.subr.bf16.mxu1 %v14293_v19  ;;  %v14375_v19 = vld [vmem:[#allocation7 + $0xe30] ss:$8 sps:$4 sm:$0xff]  }
 0x502   : > { %7329 = vmatpush1.bf16.msra.mxu0 %v14492_v50  ;;  %v14399_v50 = vld [vmem:[#allocation7 + $0xe70] ss:$8 sps:$4 sm:$0xff]  }
 0x503   : > { %7330 = vmatprep.subr.bf16.mxu0 %v14500_v57  ;;  %v14413_v57 = vld [vmem:[#allocation7 + $0xe94] ss:$8 sps:$4 sm:$0xff]  }
 0x504   : > { %5243 = vmatpush1.bf16.msra.mxu1 %v14291_v42  ;;  %v14395_v42 = vld [vmem:[#allocation7 + $0xe64] ss:$8 sps:$4 sm:$0xff]  }
 0x505   : > { %5244 = vmatprep.subr.bf16.mxu1 %v14299_v43 }
 0x506   : > { %7331 = vmatpush1.bf16.msra.mxu0 %v14498_v60  ;;  %v14411_v60 = vld [vmem:[#allocation7 + $0xe90] ss:$8 sps:$4 sm:$0xff]  }
 0x507   : > { %7332 = vmatprep.subr.bf16.mxu0 %v14506_v63  ;;  %v14425_v63 = vld [vmem:[#allocation7 + $0xeb4] ss:$8 sps:$4 sm:$0xff]  }
 0x508   : > { %5245 = vmatpush1.bf16.msra.mxu1 %v14297_v44 }
 0x509   : > { %5246 = vmatprep.subr.bf16.mxu1 %v14305_v47  ;;  %v14401_v47 = vld [vmem:[#allocation7 + $0xe74] ss:$8 sps:$4 sm:$0xff]  }
 0x50a   : > { %7333 = vmatpush1.bf16.msra.mxu0 %v14504_v45  ;;  %v14423_v45 = vld [vmem:[#allocation7 + $0xeb0] ss:$8 sps:$4 sm:$0xff]  }
 0x50b   : > { %7334 = vmatprep.subr.bf16.mxu0 %v14512_v3  ;;  %v14437_v3 = vld [vmem:[#allocation7 + $0xed4] ss:$8 sps:$4 sm:$0xff]  }
 0x50c   : > { %5247 = vmatpush1.bf16.msra.mxu1 %v14303_v52  ;;  %v14407_v52 = vld [vmem:[#allocation7 + $0xe84] ss:$8 sps:$4 sm:$0xff]  }
 0x50d   : > { %5248 = vmatprep.subr.bf16.mxu1 %v14311_v54  ;;  %v14405_v54 = vld [vmem:[#allocation7 + $0xe80] ss:$8 sps:$4 sm:$0xff]  }
 0x50e   : > { %7335 = vmatpush1.bf16.msra.mxu0 %v14510_v4  ;;  %v14435_v4 = vld [vmem:[#allocation7 + $0xed0] ss:$8 sps:$4 sm:$0xff]  }
 0x50f   : > { %7336 = vmatprep.subr.bf16.mxu0 %v14518_v55  ;;  %v14449_v55 = vld [vmem:[#allocation7 + $0xef4] ss:$8 sps:$4 sm:$0xff]  }
 0x510   : > { %5249 = vmatpush1.bf16.msra.mxu1 %v14309_v61  ;;  %v14419_v61 = vld [vmem:[#allocation7 + $0xea4] ss:$8 sps:$4 sm:$0xff]  }
 0x511   : > { %5250 = vmatprep.subr.bf16.mxu1 %v14317_v62  ;;  %v14417_v62 = vld [vmem:[#allocation7 + $0xea0] ss:$8 sps:$4 sm:$0xff]  }
 0x512   : > { %7337 = vmatpush1.bf16.msra.mxu0 %v14516_v8  ;;  %v14447_v8 = vld [vmem:[#allocation7 + $0xef0] ss:$8 sps:$4 sm:$0xff]  }
 0x513   : > { %7338 = vmatprep.subr.bf16.mxu0 %v14524_v12  ;;  %v14461_v12 = vld [vmem:[#allocation7 + $0xf14] ss:$8 sps:$4 sm:$0xff]  }
 0x514   : > { %5251 = vmatpush1.bf16.msra.mxu1 %v14315_v0  ;;  %v14431_v0 = vld [vmem:[#allocation7 + $0xec4] ss:$8 sps:$4 sm:$0xff]  }
 0x515   : > { %5252 = vmatprep.subr.bf16.mxu1 %v14323_v1  ;;  %v14429_v1 = vld [vmem:[#allocation7 + $0xec0] ss:$8 sps:$4 sm:$0xff]  }
 0x516   : > { %7339 = vmatpush1.bf16.msra.mxu0 %v14522_v13  ;;  %v14459_v13 = vld [vmem:[#allocation7 + $0xf10] ss:$8 sps:$4 sm:$0xff]  }
 0x517   : > { %7340 = vmatprep.subr.bf16.mxu0 %v14530_v56  ;;  %v14473_v56 = vld [vmem:[#allocation7 + $0xf34] ss:$8 sps:$4 sm:$0xff]  }
 0x518   : > { %5253 = vmatpush1.bf16.msra.mxu1 %v14321_v5  ;;  %v16446_v43 = vpop.f32.mrb[32].mxu0  ;;  %v14443_v5 = vld [vmem:[#allocation7 + $0xee4] ss:$8 sps:$4 sm:$0xff]  }
 0x519   : > { %5254 = vmatprep.subr.bf16.mxu1 %v14329_v7  ;;  %v16448_v22 = vpop.f32.mrb[33].mxu0  ;;  %v14441_v7 = vld [vmem:[#allocation7 + $0xee0] ss:$8 sps:$4 sm:$0xff]  }
 0x51a   : > { %7341 = vmatpush1.bf16.msra.mxu0 %v14528_v24  ;;  %v16450_v44 = vpop.f32.mrb[34].mxu0  ;;  %v14471_v24 = vld [vmem:[#allocation7 + $0xf30] ss:$8 sps:$4 sm:$0xff]  }
 0x51b   : > { %7342 = vmatprep.subr.bf16.mxu0 %v14536_v26  ;;  %v16452_v49 = vpop.f32.mrb[35].mxu0  ;;  %v14485_v26 = vld [vmem:[#allocation7 + $0xf54] ss:$8 sps:$4 sm:$0xff]  }
 0x51c   : > { %5255 = vmatpush1.bf16.msra.mxu1 %v14327_v48  ;;  %v14455_v48 = vld [vmem:[#allocation7 + $0xf04] ss:$8 sps:$4 sm:$0xff]  }
 0x51d   : > { %5256 = vmatprep.subr.bf16.mxu1 %v14335_v10  ;;  %v14453_v10 = vld [vmem:[#allocation7 + $0xf00] ss:$8 sps:$4 sm:$0xff]  }
 0x51e   : > { %7343 = vmatpush1.bf16.msra.mxu0 %v14534_v27  ;;  %v14491_v27 = vld [vmem:[#allocation7 + $0xf64] ss:$8 sps:$4 sm:$0xff]  }
 0x51f   : > { %7344 = vmatprep.subr.bf16.mxu0 %v14542_v20  ;;  %v14503_v20 = vld [vmem:[#allocation7 + $0xf84] ss:$8 sps:$4 sm:$0xff]  }
 0x520   : > { %5257 = vmatpush1.bf16.msra.mxu1 %v14333_v15  ;;  %v14467_v15 = vld [vmem:[#allocation7 + $0xf24] ss:$8 sps:$4 sm:$0xff]  }
 0x521   : > { %5258 = vmatprep.subr.bf16.mxu1 %v14341_v21  ;;  %v14465_v21 = vld [vmem:[#allocation7 + $0xf20] ss:$8 sps:$4 sm:$0xff]  }
 0x522   : > { %7345 = vmatpush1.bf16.msra.mxu0 %v14540_v29  ;;  %v14501_v29 = vld [vmem:[#allocation7 + $0xf80] ss:$8 sps:$4 sm:$0xff]  }
 0x523   : > { %7346 = vmatprep.subr.bf16.mxu0 %v14548_v23  ;;  %v14515_v23 = vld [vmem:[#allocation7 + $0xfa4] ss:$8 sps:$4 sm:$0xff]  }
 0x524   : > { %5259 = vmatpush1.bf16.msra.mxu1 %v14339_v17  ;;  %v14479_v17 = vld [vmem:[#allocation7 + $0xf44] ss:$8 sps:$4 sm:$0xff]  }
 0x525   : > { %5260 = vmatprep.subr.bf16.mxu1 %v14347_v25  ;;  %v14477_v25 = vld [vmem:[#allocation7 + $0xf40] ss:$8 sps:$4 sm:$0xff]  }
 0x526   : > { %7347 = vmatpush1.bf16.msra.mxu0 %v14546_v51  ;;  %v14513_v51 = vld [vmem:[#allocation7 + $0xfa0] ss:$8 sps:$4 sm:$0xff]  }
 0x528   : > { %5261 = vmatpush1.bf16.msra.mxu1 %v14345_v18  ;;  %v14497_v18 = vld [vmem:[#allocation7 + $0xf74] ss:$8 sps:$4 sm:$0xff]  }
 0x529   : > { %5262 = vmatprep.subr.bf16.mxu1 %v14353_v28  ;;  %7349 = vmatmul.mubr.bf16.vlgmr.msra.gmra.mrb[36].mxu0 %v16402_v46  ;;  %v14495_v28 = vld [vmem:[#allocation7 + $0xf70] ss:$8 sps:$4 sm:$0xff]  }
 0x52a   : > { %8819 = vmatprep.mubr.bf16.mxu0 %v16433_v9 }
 0x52c   : > { %5263 = vmatpush1.bf16.msra.mxu1 %v14351_v31  ;;  %v14509_v31 = vld [vmem:[#allocation7 + $0xf94] ss:$8 sps:$4 sm:$0xff]  }
 0x52d   : > { %5275 = vmatprep.subr.bf16.mxu1 %v14359_v32  ;;  %v14507_v32 = vld [vmem:[#allocation7 + $0xf90] ss:$8 sps:$4 sm:$0xff]  }
 0x52f   : > { %5265 = vmatmul.mubr.bf16.vlgmr.msra.gmra.mrb[20].mxu1 %v16378_v58  ;;  %v14381_v58 = vld [vmem:[#allocation7 + $0xe40] ss:$8 sps:$4 sm:$0xff]  }
 0x530   : > { %5276 = vmatpush1.bf16.msra.mxu1 %v14357_v34  ;;  %5307 = vmatprep.mubr.bf16.mxu1 %v16382_v59  ;;  %v14387_v59 = vld [vmem:[#allocation7 + $0xe50] ss:$8 sps:$4 sm:$0xff]   ;;  %v14521_v34 = vld [vmem:[#allocation7 + $0xfb4] ss:$8 sps:$4 sm:$0xff]  }
 0x531   : > { %5277 = vmatprep.subr.bf16.mxu1 %v14365_v53  ;;  %v14519_v53 = vld [vmem:[#allocation7 + $0xfb0] ss:$8 sps:$4 sm:$0xff]  }
 0x534   : > { %5278 = vmatpush1.bf16.msra.mxu1 %v14363_v33  ;;  %v14527_v33 = vld [vmem:[#allocation7 + $0xfc4] ss:$8 sps:$4 sm:$0xff]  }
 0x535   : > { %5279 = vmatprep.subr.bf16.mxu1 %v14371_v35  ;;  %v14525_v35 = vld [vmem:[#allocation7 + $0xfc0] ss:$8 sps:$4 sm:$0xff]  }
 0x538   : > { %5280 = vmatpush1.bf16.msra.mxu1 %v14369_v36  ;;  %v14533_v36 = vld [vmem:[#allocation7 + $0xfd4] ss:$8 sps:$4 sm:$0xff]  }
 0x539   : > { %5281 = vmatprep.subr.bf16.mxu1 %v14377_v38  ;;  %v14531_v38 = vld [vmem:[#allocation7 + $0xfd0] ss:$8 sps:$4 sm:$0xff]  }
 0x53c   : > { %5282 = vmatpush1.bf16.msra.mxu1 %v14375_v19  ;;  %v14539_v19 = vld [vmem:[#allocation7 + $0xfe4] ss:$8 sps:$4 sm:$0xff]  }
 0x53d   : > { %5283 = vmatprep.subr.bf16.mxu1 %v14383_v39  ;;  %v14537_v39 = vld [vmem:[#allocation7 + $0xfe0] ss:$8 sps:$4 sm:$0xff]  }
 0x540   : > { %5284 = vmatpush1.bf16.msra.mxu1 %v14381_v58  ;;  %v14545_v58 = vld [vmem:[#allocation7 + $0xff4] ss:$8 sps:$4 sm:$0xff]  }
 0x541   : > { %5285 = vmatprep.subr.bf16.mxu1 %v14389_v41  ;;  %v14543_v41 = vld [vmem:[#allocation7 + $0xff0] ss:$8 sps:$4 sm:$0xff]  }
 0x544   : > { %5286 = vmatpush1.bf16.msra.mxu1 %v14387_v59  ;;  %v14551_v59 = vld [vmem:[#allocation7 + $0x1004] ss:$8 sps:$4 sm:$0xff]  }
 0x545   : > { %5287 = vmatprep.subr.bf16.mxu1 %v14395_v42  ;;  %v14549_v42 = vld [vmem:[#allocation7 + $0x1000] ss:$8 sps:$4 sm:$0xff]  }
 0x548   : > { %5288 = vmatpush1.bf16.msra.mxu1 %v14393_v40  ;;  %v14554_v40 = vld [vmem:[#allocation7 + $0x1014] ss:$8 sps:$4 sm:$0xff]  }
 0x549   : > { %5289 = vmatprep.subr.bf16.mxu1 %v14401_v47  ;;  %v16457_v47 = vld [vmem:[%s16202_s21] ss:$24 sps:$4 sm:$0xff]  }
 0x54c   : > { %5290 = vmatpush1.bf16.msra.mxu1 %v14399_v50  ;;  %v14552_v50 = vld [vmem:[#allocation7 + $0x1010] ss:$8 sps:$4 sm:$0xff]  }
 0x54d   : > { %5291 = vmatprep.subr.bf16.mxu1 %v14407_v52  ;;  %v16461_v52 = vld [vmem:[%s16202_s21 + $0xc] ss:$24 sps:$4 sm:$0xff]  }
 0x550   : > { %5292 = vmatpush1.bf16.msra.mxu1 %v14405_v54  ;;  %v14557_v54 = vld [vmem:[#allocation7 + $0x1024] ss:$8 sps:$4 sm:$0xff]  }
 0x551   : > { %5293 = vmatprep.subr.bf16.mxu1 %v14413_v57  ;;  %v14555_v57 = vld [vmem:[#allocation7 + $0x1020] ss:$8 sps:$4 sm:$0xff]  }
 0x554   : > { %5294 = vmatpush1.bf16.msra.mxu1 %v14411_v60  ;;  %v14560_v60 = vld [vmem:[#allocation7 + $0x1034] ss:$8 sps:$4 sm:$0xff]  }
 0x555   : > { %5295 = vmatprep.subr.bf16.mxu1 %v14419_v61  ;;  %v14558_v61 = vld [vmem:[#allocation7 + $0x1030] ss:$8 sps:$4 sm:$0xff]  }
 0x558   : > { %5296 = vmatpush1.bf16.msra.mxu1 %v14417_v62  ;;  %v14563_v62 = vld [vmem:[#allocation7 + $0x1044] ss:$8 sps:$4 sm:$0xff]  }
 0x559   : > { %5297 = vmatprep.subr.bf16.mxu1 %v14425_v63  ;;  %v14561_v63 = vld [vmem:[#allocation7 + $0x1040] ss:$8 sps:$4 sm:$0xff]  }
 0x55c   : > { %5298 = vmatpush1.bf16.msra.mxu1 %v14423_v45  ;;  %v14566_v45 = vld [vmem:[#allocation7 + $0x1054] ss:$8 sps:$4 sm:$0xff]  }
 0x55d   : > { %5299 = vmatprep.subr.bf16.mxu1 %v14431_v0  ;;  %v14564_v0 = vld [vmem:[#allocation7 + $0x1050] ss:$8 sps:$4 sm:$0xff]  }
 0x560   : > { %5300 = vmatpush1.bf16.msra.mxu1 %v14429_v1  ;;  %v14569_v1 = vld [vmem:[#allocation7 + $0x1064] ss:$8 sps:$4 sm:$0xff]  }
 0x561   : > { %5301 = vmatprep.subr.bf16.mxu1 %v14437_v3  ;;  %v14567_v3 = vld [vmem:[#allocation7 + $0x1060] ss:$8 sps:$4 sm:$0xff]  }
 0x564   : > { %5302 = vmatpush1.bf16.msra.mxu1 %v14435_v4  ;;  %v14572_v4 = vld [vmem:[#allocation7 + $0x1074] ss:$8 sps:$4 sm:$0xff]  }
 0x565   : > { %5303 = vmatprep.subr.bf16.mxu1 %v14443_v5  ;;  %v14570_v5 = vld [vmem:[#allocation7 + $0x1070] ss:$8 sps:$4 sm:$0xff]  }
 0x568   : > { %5304 = vmatpush1.bf16.msra.mxu1 %v14441_v7  ;;  %v14575_v7 = vld [vmem:[#allocation7 + $0x1084] ss:$8 sps:$4 sm:$0xff]  }
 0x569   : > { %5305 = vmatprep.subr.bf16.mxu1 %v14449_v55  ;;  %v14573_v55 = vld [vmem:[#allocation7 + $0x1080] ss:$8 sps:$4 sm:$0xff]  }
 0x56c   : > { %5306 = vmatpush1.bf16.msra.mxu1 %v14447_v8  ;;  %v14578_v8 = vld [vmem:[#allocation7 + $0x1094] ss:$8 sps:$4 sm:$0xff]  }
 0x56d   : > { %6512 = vmatprep.subr.bf16.mxu1 %v14455_v48  ;;  %v14576_v48 = vld [vmem:[#allocation7 + $0x1090] ss:$8 sps:$4 sm:$0xff]  }
 0x56f   : > { %5308 = vmatmul.mubr.bf16.vlgmr.msra.gmra.mrb[20].mxu1 %v16402_v46  ;;  %v14483_v46 = vld [vmem:[#allocation7 + $0xf50] ss:$8 sps:$4 sm:$0xff]  }
 0x570   : > { %6513 = vmatpush1.bf16.msra.mxu1 %v14453_v10  ;;  %6544 = vmatprep.mubr.bf16.mxu1 %v16433_v9  ;;  %v14489_v9 = vld [vmem:[#allocation7 + $0xf60] ss:$8 sps:$4 sm:$0xff]   ;;  %v14581_v10 = vld [vmem:[#allocation7 + $0x10a4] ss:$8 sps:$4 sm:$0xff]  }
 0x571   : > { %6514 = vmatprep.subr.bf16.mxu1 %v14461_v12  ;;  %v14579_v12 = vld [vmem:[#allocation7 + $0x10a0] ss:$8 sps:$4 sm:$0xff]  }
 0x574   : > { %6515 = vmatpush1.bf16.msra.mxu1 %v14459_v13  ;;  %v14584_v13 = vld [vmem:[#allocation7 + $0x10b4] ss:$8 sps:$4 sm:$0xff]  }
 0x575   : > { %6516 = vmatprep.subr.bf16.mxu1 %v14467_v15  ;;  %v14582_v15 = vld [vmem:[#allocation7 + $0x10b0] ss:$8 sps:$4 sm:$0xff]  }
 0x578   : > { %6517 = vmatpush1.bf16.msra.mxu1 %v14465_v21  ;;  %v14587_v21 = vld [vmem:[#allocation7 + $0x10c4] ss:$8 sps:$4 sm:$0xff]  }
 0x579   : > { %6518 = vmatprep.subr.bf16.mxu1 %v14473_v56  ;;  %v14585_v56 = vld [vmem:[#allocation7 + $0x10c0] ss:$8 sps:$4 sm:$0xff]  }
 0x57c   : > { %6519 = vmatpush1.bf16.msra.mxu1 %v14471_v24  ;;  %v14590_v24 = vld [vmem:[#allocation7 + $0x10d4] ss:$8 sps:$4 sm:$0xff]  }
 0x57d   : > { %6520 = vmatprep.subr.bf16.mxu1 %v14479_v17  ;;  %v14588_v17 = vld [vmem:[#allocation7 + $0x10d0] ss:$8 sps:$4 sm:$0xff]  }
 0x580   : > { %6521 = vmatpush1.bf16.msra.mxu1 %v14477_v25  ;;  %v14593_v25 = vld [vmem:[#allocation7 + $0x10e4] ss:$8 sps:$4 sm:$0xff]  }
 0x581   : > { %6522 = vmatprep.subr.bf16.mxu1 %v14485_v26  ;;  %v14591_v26 = vld [vmem:[#allocation7 + $0x10e0] ss:$8 sps:$4 sm:$0xff]  }
 0x584   : > { %6523 = vmatpush1.bf16.msra.mxu1 %v14483_v46  ;;  %v14596_v46 = vld [vmem:[#allocation7 + $0x10f4] ss:$8 sps:$4 sm:$0xff]  }
 0x585   : > { %6524 = vmatprep.subr.bf16.mxu1 %v14491_v27  ;;  %v14594_v27 = vld [vmem:[#allocation7 + $0x10f0] ss:$8 sps:$4 sm:$0xff]  }
 0x588   : > { %6525 = vmatpush1.bf16.msra.mxu1 %v14489_v9  ;;  %v14599_v9 = vld [vmem:[#allocation7 + $0x1104] ss:$8 sps:$4 sm:$0xff]  }
 0x589   : > { %6526 = vmatprep.subr.bf16.mxu1 %v14497_v18  ;;  %v14597_v18 = vld [vmem:[#allocation7 + $0x1100] ss:$8 sps:$4 sm:$0xff]  }
 0x58c   : > { %6527 = vmatpush1.bf16.msra.mxu1 %v14495_v28  ;;  %v14602_v28 = vld [vmem:[#allocation7 + $0x1114] ss:$8 sps:$4 sm:$0xff]  }
 0x58d   : > { %6528 = vmatprep.subr.bf16.mxu1 %v14503_v20  ;;  %v16465_v20 = vld [vmem:[%s16202_s21 + $0x8] ss:$24 sps:$4 sm:$0xff]  }
 0x590   : > { %6529 = vmatpush1.bf16.msra.mxu1 %v14501_v29  ;;  %v14600_v29 = vld [vmem:[#allocation7 + $0x1110] ss:$8 sps:$4 sm:$0xff]  }
 0x591   : > { %6530 = vmatprep.subr.bf16.mxu1 %v14509_v31  ;;  %v16469_v31 = vld [vmem:[%s16202_s21 + $0x14] ss:$24 sps:$4 sm:$0xff]  }
 0x594   : > { %6531 = vmatpush1.bf16.msra.mxu1 %v14507_v32  ;;  %v14605_v32 = vld [vmem:[#allocation7 + $0x1124] ss:$8 sps:$4 sm:$0xff]  }
 0x595   : > { %6532 = vmatprep.subr.bf16.mxu1 %v14515_v23  ;;  %v14603_v23 = vld [vmem:[#allocation7 + $0x1120] ss:$8 sps:$4 sm:$0xff]  }
 0x598   : > { %6533 = vmatpush1.bf16.msra.mxu1 %v14513_v51  ;;  %v14608_v51 = vld [vmem:[#allocation7 + $0x1134] ss:$8 sps:$4 sm:$0xff]  }
 0x599   : > { %6534 = vmatprep.subr.bf16.mxu1 %v14521_v34  ;;  %v14606_v34 = vld [vmem:[#allocation7 + $0x1130] ss:$8 sps:$4 sm:$0xff]  }
 0x59c   : > { %6535 = vmatpush1.bf16.msra.mxu1 %v14519_v53  ;;  %v14611_v53 = vld [vmem:[#allocation7 + $0x1144] ss:$8 sps:$4 sm:$0xff]  }
 0x59d   : > { %6536 = vmatprep.subr.bf16.mxu1 %v14527_v33  ;;  %v14609_v33 = vld [vmem:[#allocation7 + $0x1140] ss:$8 sps:$4 sm:$0xff]  }
 0x5a0   : > { %6537 = vmatpush1.bf16.msra.mxu1 %v14525_v35  ;;  %v14614_v35 = vld [vmem:[#allocation7 + $0x1154] ss:$8 sps:$4 sm:$0xff]  }
 0x5a1   : > { %6538 = vmatprep.subr.bf16.mxu1 %v14533_v36  ;;  %v14612_v36 = vld [vmem:[#allocation7 + $0x1150] ss:$8 sps:$4 sm:$0xff]  }
 0x5a4   : > { %6539 = vmatpush1.bf16.msra.mxu1 %v14531_v38  ;;  %v14617_v38 = vld [vmem:[#allocation7 + $0x1164] ss:$8 sps:$4 sm:$0xff]  }
 0x5a5   : > { %6540 = vmatprep.subr.bf16.mxu1 %v14539_v19  ;;  %v14615_v19 = vld [vmem:[#allocation7 + $0x1160] ss:$8 sps:$4 sm:$0xff]  }
 0x5a8   : > { %6541 = vmatpush1.bf16.msra.mxu1 %v14537_v39 }
 0x5a9   : > { %6542 = vmatprep.subr.bf16.mxu1 %v14545_v58  ;;  %v14620_v58 = vld [vmem:[#allocation7 + $0x1174] ss:$8 sps:$4 sm:$0xff]  }
 0x5ac   : > { %6543 = vmatpush1.bf16.msra.mxu1 %v14543_v41 }
 0x5ad   : > { %6555 = vmatprep.subr.bf16.mxu1 %v14551_v59 }
 0x5af   : > { %6545 = vmatmul.mubr.bf16.vlgmr.msra.gmra.mrb[24].mxu1 %v16457_v47 }
 0x5b0   : > { %6556 = vmatpush1.bf16.msra.mxu1 %v14549_v42  ;;  %6587 = vmatprep.mubr.bf16.mxu1 %v16461_v52 }
 0x5b1   : > { %6557 = vmatprep.subr.bf16.mxu1 %v14554_v40 }
 0x5b4   : > { %6558 = vmatpush1.bf16.msra.mxu1 %v14552_v50 }
 0x5b5   : > { %6559 = vmatprep.subr.bf16.mxu1 %v14557_v54 }
 0x5b8   : > { %6560 = vmatpush1.bf16.msra.mxu1 %v14555_v57  ;;  %v14618_v57 = vld [vmem:[#allocation7 + $0x1170] ss:$8 sps:$4 sm:$0xff]  }
 0x5b9   : > { %6561 = vmatprep.subr.bf16.mxu1 %v14560_v60 }
 0x5bc   : > { %6562 = vmatpush1.bf16.msra.mxu1 %v14558_v61  ;;  %v14623_v61 = vld [vmem:[#allocation7 + $0x1184] ss:$8 sps:$4 sm:$0xff]  }
 0x5bd   : > { %6563 = vmatprep.subr.bf16.mxu1 %v14563_v62 }
 0x5c0   : > { %6564 = vmatpush1.bf16.msra.mxu1 %v14561_v63 }
 0x5c1   : > { %6565 = vmatprep.subr.bf16.mxu1 %v14566_v45 }
 0x5c4   : > { %6566 = vmatpush1.bf16.msra.mxu1 %v14564_v0 }
 0x5c5   : > { %6567 = vmatprep.subr.bf16.mxu1 %v14569_v1  ;;  %v14621_v1 = vld [vmem:[#allocation7 + $0x1180] ss:$8 sps:$4 sm:$0xff]  }
 0x5c8   : > { %6568 = vmatpush1.bf16.msra.mxu1 %v14567_v3  ;;  %v14626_v3 = vld [vmem:[#allocation7 + $0x1194] ss:$8 sps:$4 sm:$0xff]  }
 0x5c9   : > { %6569 = vmatprep.subr.bf16.mxu1 %v14572_v4  ;;  %v14624_v4 = vld [vmem:[#allocation7 + $0x1190] ss:$8 sps:$4 sm:$0xff]  }
 0x5cc   : > { %6570 = vmatpush1.bf16.msra.mxu1 %v14570_v5  ;;  %v14629_v5 = vld [vmem:[#allocation7 + $0x11a4] ss:$8 sps:$4 sm:$0xff]  }
 0x5cd   : > { %6571 = vmatprep.subr.bf16.mxu1 %v14575_v7  ;;  %v14627_v7 = vld [vmem:[#allocation7 + $0x11a0] ss:$8 sps:$4 sm:$0xff]  }
 0x5d0   : > { %6572 = vmatpush1.bf16.msra.mxu1 %v14573_v55  ;;  %v14632_v55 = vld [vmem:[#allocation7 + $0x11b4] ss:$8 sps:$4 sm:$0xff]  }
 0x5d1   : > { %6573 = vmatprep.subr.bf16.mxu1 %v14578_v8  ;;  %v14630_v8 = vld [vmem:[#allocation7 + $0x11b0] ss:$8 sps:$4 sm:$0xff]  }
 0x5d4   : > { %6574 = vmatpush1.bf16.msra.mxu1 %v14576_v48  ;;  %v14635_v48 = vld [vmem:[#allocation7 + $0x11c4] ss:$8 sps:$4 sm:$0xff]  }
 0x5d5   : > { %6575 = vmatprep.subr.bf16.mxu1 %v14581_v10  ;;  %v14633_v10 = vld [vmem:[#allocation7 + $0x11c0] ss:$8 sps:$4 sm:$0xff]  }
 0x5d8   : > { %6576 = vmatpush1.bf16.msra.mxu1 %v14579_v12  ;;  %v14638_v12 = vld [vmem:[#allocation7 + $0x11d4] ss:$8 sps:$4 sm:$0xff]  }
 0x5d9   : > { %6577 = vmatprep.subr.bf16.mxu1 %v14584_v13  ;;  %v14636_v13 = vld [vmem:[#allocation7 + $0x11d0] ss:$8 sps:$4 sm:$0xff]  }
 0x5dc   : > { %6578 = vmatpush1.bf16.msra.mxu1 %v14582_v15  ;;  %v14641_v15 = vld [vmem:[#allocation7 + $0x11e4] ss:$8 sps:$4 sm:$0xff]  }
 0x5dd   : > { %6579 = vmatprep.subr.bf16.mxu1 %v14587_v21  ;;  %v14639_v21 = vld [vmem:[#allocation7 + $0x11e0] ss:$8 sps:$4 sm:$0xff]  }
 0x5e0   : > { %6580 = vmatpush1.bf16.msra.mxu1 %v14585_v56  ;;  %v14644_v56 = vld [vmem:[#allocation7 + $0x11f4] ss:$8 sps:$4 sm:$0xff]  }
 0x5e1   : > { %6581 = vmatprep.subr.bf16.mxu1 %v14590_v24  ;;  %v14642_v24 = vld [vmem:[#allocation7 + $0x11f0] ss:$8 sps:$4 sm:$0xff]  }
 0x5e4   : > { %6582 = vmatpush1.bf16.msra.mxu1 %v14588_v17  ;;  %v16491_v17 = vld [vmem:[%s16202_s21 + $0x10] ss:$24 sps:$4 sm:$0xff]  }
 0x5e5   : > { %6583 = vmatprep.subr.bf16.mxu1 %v14593_v25 }
 0x5e8   : > { %6584 = vmatpush1.bf16.msra.mxu1 %v14591_v26 }
 0x5e9   : > { %6585 = vmatprep.subr.bf16.mxu1 %v14596_v46 }
 0x5ec   : > { %6586 = vmatpush1.bf16.msra.mxu1 %v14594_v27 }
 0x5ed   : > { %6598 = vmatprep.subr.bf16.mxu1 %v14599_v9 }
 0x5ef   : > { %6588 = vmatmul.mubr.bf16.vlgmr.msra.gmra.mrb[24].mxu1 %v16465_v20 }
 0x5f0   : > { %6599 = vmatpush1.bf16.msra.mxu1 %v14597_v18  ;;  %6630 = vmatprep.mubr.bf16.mxu1 %v16469_v31 }
 0x5f1   : > { %6600 = vmatprep.subr.bf16.mxu1 %v14602_v28 }
 0x5f4   : > { %6601 = vmatpush1.bf16.msra.mxu1 %v14600_v29 }
 0x5f5   : > { %6602 = vmatprep.subr.bf16.mxu1 %v14605_v32 }
 0x5f8   : > { %6603 = vmatpush1.bf16.msra.mxu1 %v14603_v23 }
 0x5f9   : > { %6604 = vmatprep.subr.bf16.mxu1 %v14608_v51 }
 0x5fc   : > { %6605 = vmatpush1.bf16.msra.mxu1 %v14606_v34  ;;  %v7350_v39 = vpop.f32.mrb[36].mxu0 }
 0x5fd   : > { %6606 = vmatprep.subr.bf16.mxu1 %v14611_v53  ;;  %v7359_v41 = vrot.slane %v7350_v39, 3  ;;  %v7352_v59 = vpop.f32.mrb[37].mxu0 }
 0x5fe   : > { %v7360_v42 = vrot.slane %v7352_v59, 3  ;;  %v7354_v40 = vpop.f32.mrb[38].mxu0  ;;  %v7414_v59 = vld [vmem:[#allocation16 + $0xa8] sm:$0xff] }
 0x5ff   : > { %v7361_v50 = vrot.slane %v7354_v40, 3  ;;  %v7356_v54 = vpop.f32.mrb[39].mxu0 }
 0x600   : > { %6607 = vmatpush1.bf16.msra.mxu1 %v14609_v33  ;;  %v7362_v60 = vrot.slane %v7356_v54, 3  ;;  %v7418_v54 = vld [vmem:[#allocation16 + $0xc8] sm:$0xff] }
 0x601   : > { %6608 = vmatprep.subr.bf16.mxu1 %v14614_v35  ;;  %v16475_v62 = vsel %vm7363_vm4, %v7359_v41, %v7361_v50  ;;  %v16479_v63 = vsel %vm7363_vm4, %v7361_v50, %v7359_v41  ;;  %v7413_v41 = vld [vmem:[#allocation16 + $0xa0] sm:$0xff] }
 0x602   : > { %v16483_v45 = vsel %vm7363_vm4, %v7360_v42, %v7362_v60  ;;  %v16487_v0 = vsel %vm7363_vm4, %v7362_v60, %v7360_v42  ;;  %v13173_v42 = vpack.c.bf16 %v7414_v59, %v7413_v41  ;;  %v7417_v50 = vld [vmem:[#allocation16 + $0xc0] sm:$0xff]  ;;  %v7419_v60 = vld [vmem:[#allocation16 + $0xd0] sm:$0xff] }
 0x603   : > { %v14720_v41 = vld [vmem:[#allocation7 + $0x15c0] ss:$8 sps:$4 sm:$0xff]   ;;  %v14728_v59 = vld [vmem:[#allocation7 + $0x15d4] ss:$8 sps:$4 sm:$0xff]  }
 0x604   : > { %6609 = vmatpush1.bf16.msra.mxu1 %v14612_v36 }
 0x605   : > { %6610 = vmatprep.subr.bf16.mxu1 %v14617_v38  ;;  %v7409_v38 = vld [vmem:[#allocation16 + $0x80] sm:$0xff] }
 0x608   : > { %6611 = vmatpush1.bf16.msra.mxu1 %v14615_v19  ;;  %v7410_v19 = vld [vmem:[#allocation16 + $0x88] sm:$0xff] }
 0x609   : > { %6612 = vmatprep.subr.bf16.mxu1 %v14620_v58  ;;  %v13167_v39 = vpack.c.bf16 %v7410_v19, %v7409_v38  ;;  %v14702_v38 = vld [vmem:[#allocation7 + $0x1590] ss:$8 sps:$4 sm:$0xff]   ;;  %v14710_v19 = vld [vmem:[#allocation7 + $0x15a4] ss:$8 sps:$4 sm:$0xff]  }
 0x60c   : > { %6613 = vmatpush1.bf16.msra.mxu1 %v14618_v57  ;;  %v13179_v57 = vpack.c.bf16 %v7418_v54, %v7417_v50  ;;  %v14738_v50 = vld [vmem:[#allocation7 + $0x15f0] ss:$8 sps:$4 sm:$0xff]   ;;  %v14746_v54 = vld [vmem:[#allocation7 + $0x1604] ss:$8 sps:$4 sm:$0xff]  }
 0x60d   : > { %6614 = vmatprep.subr.bf16.mxu1 %v14623_v61  ;;  %v7420_v61 = vld [vmem:[#allocation16 + $0xd8] sm:$0xff] }
 0x610   : > { %6615 = vmatpush1.bf16.msra.mxu1 %v14621_v1  ;;  %v13182_v1 = vpack.c.bf16 %v7420_v61, %v7419_v60  ;;  %v14752_v60 = vld [vmem:[#allocation7 + $0x1614] ss:$8 sps:$4 sm:$0xff]   ;;  %v14750_v61 = vld [vmem:[#allocation7 + $0x1610] ss:$8 sps:$4 sm:$0xff]  }
 0x611   : > { %6616 = vmatprep.subr.bf16.mxu1 %v14626_v3  ;;  %v7421_v3 = vld [vmem:[#allocation16 + $0xe0] sm:$0xff] }
 0x614   : > { %6617 = vmatpush1.bf16.msra.mxu1 %v14624_v4  ;;  %v7422_v4 = vld [vmem:[#allocation16 + $0xe8] sm:$0xff] }
 0x615   : > { %6618 = vmatprep.subr.bf16.mxu1 %v14629_v5  ;;  %v13185_v5 = vpack.c.bf16 %v7422_v4, %v7421_v3  ;;  %v14756_v3 = vld [vmem:[#allocation7 + $0x1620] ss:$8 sps:$4 sm:$0xff]   ;;  %v14764_v4 = vld [vmem:[#allocation7 + $0x1634] ss:$8 sps:$4 sm:$0xff]  }
 0x618   : > { %6619 = vmatpush1.bf16.msra.mxu1 %v14627_v7  ;;  %v7423_v7 = vld [vmem:[#allocation16 + $0xf0] sm:$0xff] }
 0x619   : > { %6620 = vmatprep.subr.bf16.mxu1 %v14632_v55  ;;  %v7424_v55 = vld [vmem:[#allocation16 + $0xf8] sm:$0xff] }
 0x61c   : > { %6621 = vmatpush1.bf16.msra.mxu1 %v14630_v8  ;;  %v13188_v8 = vpack.c.bf16 %v7424_v55, %v7423_v7  ;;  %v14770_v7 = vld [vmem:[#allocation7 + $0x1644] ss:$8 sps:$4 sm:$0xff]   ;;  %v14768_v55 = vld [vmem:[#allocation7 + $0x1640] ss:$8 sps:$4 sm:$0xff]  }
 0x61d   : > { %6622 = vmatprep.subr.bf16.mxu1 %v14635_v48  ;;  %v14647_v48 = vld [vmem:[#allocation7 + $0x1804] ss:$8 sps:$4 sm:$0xff]  }
 0x620   : > { %6623 = vmatpush1.bf16.msra.mxu1 %v14633_v10  ;;  %v14650_v10 = vld [vmem:[#allocation7 + $0x1504] ss:$8 sps:$4 sm:$0xff]  }
 0x621   : > { %6624 = vmatprep.subr.bf16.mxu1 %v14638_v12  ;;  %v14648_v12 = vld [vmem:[#allocation7 + $0x1500] ss:$8 sps:$4 sm:$0xff]   ;;  %8787 = vmatprep.subr.bf16.mxu0 %v14650_v10 }
 0x622   : > { %8788 = vmatpush1.bf16.msra.mxu0 %v14648_v12  ;;  %v14782_v12 = vld [vmem:[#allocation7 + $0x1664] ss:$8 sps:$4 sm:$0xff]  }
 0x624   : > { %6625 = vmatpush1.bf16.msra.mxu1 %v14636_v13  ;;  %v14656_v13 = vld [vmem:[#allocation7 + $0x1514] ss:$8 sps:$4 sm:$0xff]  }
 0x625   : > { %6626 = vmatprep.subr.bf16.mxu1 %v14641_v15  ;;  %v14654_v15 = vld [vmem:[#allocation7 + $0x1510] ss:$8 sps:$4 sm:$0xff]   ;;  %8789 = vmatprep.subr.bf16.mxu0 %v14656_v13 }
 0x626   : > { %8790 = vmatpush1.bf16.msra.mxu0 %v14654_v15  ;;  %v7373_v15 = vld [vmem:[#allocation8 + $0x2] sm:$0x3] }
 0x628   : > { %6627 = vmatpush1.bf16.msra.mxu1 %v14639_v21  ;;  %v14662_v21 = vld [vmem:[#allocation7 + $0x1524] ss:$8 sps:$4 sm:$0xff]  }
 0x629   : > { %6628 = vmatprep.subr.bf16.mxu1 %v14644_v56  ;;  %v14660_v56 = vld [vmem:[#allocation7 + $0x1520] ss:$8 sps:$4 sm:$0xff]   ;;  %8791 = vmatprep.subr.bf16.mxu0 %v14662_v21 }
 0x62a   : > { %8792 = vmatpush1.bf16.msra.mxu0 %v14660_v56  ;;  %v14780_v21 = vld [vmem:[#allocation7 + $0x1660] ss:$8 sps:$4 sm:$0xff]  }
 0x62c   : > { %6629 = vmatpush1.bf16.msra.mxu1 %v14642_v24  ;;  %v14668_v24 = vld [vmem:[#allocation7 + $0x1534] ss:$8 sps:$4 sm:$0xff]  }
 0x62d   : > { %13166 = vmatprep.subr.bf16.mxu1 %v15799_v14  ;;  %8793 = vmatprep.subr.bf16.mxu0 %v14668_v24 }
 0x62f   : > { %6631 = vmatmul.mubr.bf16.vlgmr.msra.gmra.mrb[24].mxu1 %v16491_v17 }
 0x630   : > { %13080 = vmatprep.mubr.msk.f32.mxu1 %vm15800_vm0, %v15801_v6  ;;  %13168 = vmatpush3.bf16.msra.mxu1 %v13167_v39  ;;  %v14708_v39 = vld [vmem:[#allocation7 + $0x15a0] ss:$8 sps:$4 sm:$0xff]  }
 0x631   : > { %13169 = vmatprep.subr.bf16.mxu1 %v15799_v14 }
 0x642   : > { %v5309_v25 = vpop.f32.mrb[20].mxu1 }
 0x643   : > { %v5311_v26 = vpop.f32.mrb[21].mxu1  ;;  %v5318_v27 = vrot.slane %v5309_v25, 1  ;;  %v14666_v25 = vld [vmem:[#allocation7 + $0x1530] ss:$8 sps:$4 sm:$0xff]  }
 0x644   : > { %v5313_v46 = vpop.f32.mrb[22].mxu1  ;;  %v5319_v28 = vrot.slane %v5311_v26, 1  ;;  %8794 = vmatpush1.bf16.msra.mxu0 %v14666_v25  ;;  %v14674_v26 = vld [vmem:[#allocation7 + $0x1544] ss:$8 sps:$4 sm:$0xff]  }
 0x645   : > { %v5320_v9 = vrot.slane %v5313_v46, 1  ;;  %v5315_v18 = vpop.f32.mrb[23].mxu1  ;;  %v14672_v46 = vld [vmem:[#allocation7 + $0x1540] ss:$8 sps:$4 sm:$0xff]   ;;  %8795 = vmatprep.subr.bf16.mxu0 %v14674_v26 }
 0x646   : > { %v5321_v29 = vrot.slane %v5315_v18, 1  ;;  %v14686_v18 = vld [vmem:[#allocation7 + $0x1564] ss:$8 sps:$4 sm:$0xff]  }
 0x647   : > { %v5322_v32 = vsel %vm1176_vm1, %v5318_v27, %v5320_v9  ;;  %v5324_v23 = vsel %vm1176_vm1, %v5320_v9, %v5318_v27  ;;  %v14680_v27 = vld [vmem:[#allocation7 + $0x1554] ss:$8 sps:$4 sm:$0xff]   ;;  %v14678_v9 = vld [vmem:[#allocation7 + $0x1550] ss:$8 sps:$4 sm:$0xff]  }
 0x648   : > { %v16501_v51 = vadd.f32 %v16446_v43, %v5322_v32  ;;  %v16504_v34 = vadd.f32 %v16450_v44, %v5324_v23  ;;  %v5323_v53 = vsel %vm1176_vm1, %v5319_v28, %v5321_v29  ;;  %v5325_v33 = vsel %vm1176_vm1, %v5321_v29, %v5319_v28  ;;  %v7411_v43 = vld [vmem:[#allocation16 + $0x90] sm:$0xff]  ;;  %v7412_v44 = vld [vmem:[#allocation16 + $0x98] sm:$0xff]  ;;  %8796 = vmatpush1.bf16.msra.mxu0 %v14672_v46 }
 0x649   : > { %v16511_v35 = vadd.f32 %v16448_v22, %v5323_v53  ;;  %v16514_v36 = vadd.f32 %v16452_v49, %v5325_v33  ;;  %v13170_v58 = vpack.c.bf16 %v7412_v44, %v7411_v43  ;;  %v7415_v22 = vld [vmem:[#allocation16 + $0xb0] sm:$0xff]  ;;  %v7416_v49 = vld [vmem:[#allocation16 + $0xb8] sm:$0xff]  ;;  %8797 = vmatprep.subr.bf16.mxu0 %v14680_v27 }
 0x64a   : > { %v13176_v40 = vpack.c.bf16 %v7416_v49, %v7415_v22  ;;  %v14684_v28 = vld [vmem:[#allocation7 + $0x1560] ss:$8 sps:$4 sm:$0xff]   ;;  %v14692_v29 = vld [vmem:[#allocation7 + $0x1574] ss:$8 sps:$4 sm:$0xff]   ;;  %v14690_v32 = vld [vmem:[#allocation7 + $0x1570] ss:$8 sps:$4 sm:$0xff]  }
 0x64b   : > { %13171 = vmatpush3.bf16.msra.mxu1 %v13170_v58  ;;  %v14698_v23 = vld [vmem:[#allocation7 + $0x1584] ss:$8 sps:$4 sm:$0xff]   ;;  %v14696_v53 = vld [vmem:[#allocation7 + $0x1580] ss:$8 sps:$4 sm:$0xff]   ;;  %v14704_v33 = vld [vmem:[#allocation7 + $0x1594] ss:$8 sps:$4 sm:$0xff]  }
 0x64c   : > { %13172 = vmatprep.subr.bf16.mxu1 %v15799_v14  ;;  %8798 = vmatpush1.bf16.msra.mxu0 %v14678_v9  ;;  %v14716_v43 = vld [vmem:[#allocation7 + $0x15b4] ss:$8 sps:$4 sm:$0xff]   ;;  %v14714_v44 = vld [vmem:[#allocation7 + $0x15b0] ss:$8 sps:$4 sm:$0xff]   ;;  %v14722_v58 = vld [vmem:[#allocation7 + $0x15c4] ss:$8 sps:$4 sm:$0xff]  }
 0x64d   : > { %8799 = vmatprep.subr.bf16.mxu0 %v14686_v18  ;;  %v14734_v22 = vld [vmem:[#allocation7 + $0x15e4] ss:$8 sps:$4 sm:$0xff]   ;;  %v14732_v49 = vld [vmem:[#allocation7 + $0x15e0] ss:$8 sps:$4 sm:$0xff]   ;;  %v7378_v18 = vrot.slane %v7373_v15, %v16407_v2 }
 0x64f   : > { %13174 = vmatpush3.bf16.msra.mxu1 %v13173_v42  ;;  %v14726_v42 = vld [vmem:[#allocation7 + $0x15d0] ss:$8 sps:$4 sm:$0xff]  }
 0x650   : > { %13175 = vmatprep.subr.bf16.mxu1 %v15799_v14  ;;  %8800 = vmatpush1.bf16.msra.mxu0 %v14684_v28  ;;  %v14788_v28 = vld [vmem:[#allocation7 + $0x1674] ss:$8 sps:$4 sm:$0xff]  }
 0x651   : > { %8801 = vmatprep.subr.bf16.mxu0 %v14692_v29 }
 0x653   : > { %13177 = vmatpush3.bf16.msra.mxu1 %v13176_v40  ;;  %v14740_v40 = vld [vmem:[#allocation7 + $0x15f4] ss:$8 sps:$4 sm:$0xff]  }
 0x654   : > { %13178 = vmatprep.subr.bf16.mxu1 %v15799_v14  ;;  %8802 = vmatpush1.bf16.msra.mxu0 %v14690_v32 }
 0x655   : > { %8803 = vmatprep.subr.bf16.mxu0 %v14698_v23 }
 0x657   : > { %13180 = vmatpush3.bf16.msra.mxu1 %v13179_v57  ;;  %v14744_v57 = vld [vmem:[#allocation7 + $0x1600] ss:$8 sps:$4 sm:$0xff]  }
 0x658   : > { %13181 = vmatprep.subr.bf16.mxu1 %v15799_v14  ;;  %8804 = vmatpush1.bf16.msra.mxu0 %v14696_v53 }
 0x659   : > { %8805 = vmatprep.subr.bf16.mxu0 %v14704_v33  ;;  %v14786_v33 = vld [vmem:[#allocation7 + $0x1670] ss:$8 sps:$4 sm:$0xff]  }
 0x65b   : > { %13183 = vmatpush3.bf16.msra.mxu1 %v13182_v1  ;;  %v14758_v1 = vld [vmem:[#allocation7 + $0x1624] ss:$8 sps:$4 sm:$0xff]  }
 0x65c   : > { %13184 = vmatprep.subr.bf16.mxu1 %v15799_v14  ;;  %8806 = vmatpush1.bf16.msra.mxu0 %v14702_v38 }
 0x65d   : > { %8807 = vmatprep.subr.bf16.mxu0 %v14710_v19 }
 0x65f   : > { %13186 = vmatpush3.bf16.msra.mxu1 %v13185_v5  ;;  %v14762_v5 = vld [vmem:[#allocation7 + $0x1630] ss:$8 sps:$4 sm:$0xff]  }
 0x660   : > { %13187 = vmatprep.subr.bf16.mxu1 %v15799_v14  ;;  %8808 = vmatpush1.bf16.msra.mxu0 %v14708_v39 }
 0x661   : > { %8809 = vmatprep.subr.bf16.mxu0 %v14716_v43 }
 0x663   : > { %13189 = vmatpush3.bf16.msra.mxu1 %v13188_v8  ;;  %v14776_v8 = vld [vmem:[#allocation7 + $0x1654] ss:$8 sps:$4 sm:$0xff]  }
 0x664   : > { %8170 = vmatprep.subr.bf16.mxu1 %v14647_v48  ;;  %8810 = vmatpush1.bf16.msra.mxu0 %v14714_v44  ;;  %v14774_v48 = vld [vmem:[#allocation7 + $0x1650] ss:$8 sps:$4 sm:$0xff]   ;;  %v7382_v44 = vrot.slane %v7373_v15, %v16410_v11  ;;  %v14828_v15 = vld [vmem:[#allocation7 + $0x16e0] ss:$8 sps:$4 sm:$0xff]  }
 0x665   : > { %8811 = vmatprep.subr.bf16.mxu0 %v14722_v58  ;;  %v14794_v58 = vld [vmem:[#allocation7 + $0x1684] ss:$8 sps:$4 sm:$0xff]  }
 0x668   : > { %8812 = vmatpush1.bf16.msra.mxu0 %v14720_v41 }
 0x669   : > { %8813 = vmatprep.subr.bf16.mxu0 %v14728_v59 }
 0x66c   : > { %8814 = vmatpush1.bf16.msra.mxu0 %v14726_v42  ;;  %v14792_v42 = vld [vmem:[#allocation7 + $0x1680] ss:$8 sps:$4 sm:$0xff]  }
 0x66d   : > { %8815 = vmatprep.subr.bf16.mxu0 %v14734_v22  ;;  %v14798_v22 = vld [vmem:[#allocation7 + $0x1690] ss:$8 sps:$4 sm:$0xff]  }
 0x670   : > { %8816 = vmatpush1.bf16.msra.mxu0 %v14732_v49  ;;  %v14804_v49 = vld [vmem:[#allocation7 + $0x16a0] ss:$8 sps:$4 sm:$0xff]  }
 0x671   : > { %8817 = vmatprep.subr.bf16.mxu0 %v14740_v40 }
 0x674   : > { %8818 = vmatpush1.bf16.msra.mxu0 %v14738_v50  ;;  %v14812_v50 = vld [vmem:[#allocation7 + $0x16b4] ss:$8 sps:$4 sm:$0xff]  }
 0x675   : > { %8830 = vmatprep.subr.bf16.mxu0 %v14746_v54 }
 0x677   : > { %8820 = vmatmul.mubr.bf16.vlgmr.msra.gmra.mrb[40].mxu0 %v16457_v47 }
 0x678   : > { %8831 = vmatpush1.bf16.msra.mxu0 %v14744_v57  ;;  %8862 = vmatprep.mubr.bf16.mxu0 %v16461_v52 }
 0x679   : > { %8832 = vmatprep.subr.bf16.mxu0 %v14752_v60  ;;  %v14810_v60 = vld [vmem:[#allocation7 + $0x16b0] ss:$8 sps:$4 sm:$0xff]  }
 0x67c   : > { %8833 = vmatpush1.bf16.msra.mxu0 %v14750_v61 }
 0x67d   : > { %8834 = vmatprep.subr.bf16.mxu0 %v14758_v1 }
 0x680   : > { %8835 = vmatpush1.bf16.msra.mxu0 %v14756_v3 }
 0x681   : > { %8836 = vmatprep.subr.bf16.mxu0 %v14764_v4  ;;  %v14818_v4 = vld [vmem:[#allocation7 + $0x16c4] ss:$8 sps:$4 sm:$0xff]  }
 0x684   : > { %8837 = vmatpush1.bf16.msra.mxu0 %v14762_v5 }
 0x685   : > { %8838 = vmatprep.subr.bf16.mxu0 %v14770_v7  ;;  %v14816_v7 = vld [vmem:[#allocation7 + $0x16c0] ss:$8 sps:$4 sm:$0xff]  }
 0x688   : > { %8839 = vmatpush1.bf16.msra.mxu0 %v14768_v55 }
 0x689   : > { %8840 = vmatprep.subr.bf16.mxu0 %v14776_v8 }
 0x68c   : > { %8841 = vmatpush1.bf16.msra.mxu0 %v14774_v48  ;;  %v14824_v48 = vld [vmem:[#allocation7 + $0x16d4] ss:$8 sps:$4 sm:$0xff]  }
 0x68d   : > { %8842 = vmatprep.subr.bf16.mxu0 %v14782_v12 }
 0x690   : > { %8843 = vmatpush1.bf16.msra.mxu0 %v14780_v21 }
 0x691   : > { %8844 = vmatprep.subr.bf16.mxu0 %v14788_v28  ;;  %v16547_v28 = vld [vmem:[%s16202_s21 + $0x4] ss:$24 sps:$4 sm:$0xff]  }
 0x694   : > { %8845 = vmatpush1.bf16.msra.mxu0 %v14786_v33  ;;  %v14846_v33 = vld [vmem:[#allocation7 + $0x1710] ss:$8 sps:$4 sm:$0xff]  }
 0x695   : > { %8846 = vmatprep.subr.bf16.mxu0 %v14794_v58  ;;  %v14866_v58 = vld [vmem:[#allocation7 + $0x1744] ss:$8 sps:$4 sm:$0xff]  }
 0x698   : > { %8847 = vmatpush1.bf16.msra.mxu0 %v14792_v42  ;;  %v14683_v42 = vld [vmem:[#allocation7 + $0x1864] ss:$8 sps:$4 sm:$0xff]  }
 0x702   : > { %v6632_v52 = vpop.f32.mrb[24].mxu1 }
 0x703   : > { %v6634_v10 = vpop.f32.mrb[25].mxu1  ;;  %v6641_v56 = vrot.slane %v6632_v52, 2  ;;  %v14822_v52 = vld [vmem:[#allocation7 + $0x16d0] ss:$8 sps:$4 sm:$0xff]  }
 0x704   : > { %v6636_v13 = vpop.f32.mrb[26].mxu1  ;;  %v6642_v26 = vrot.slane %v6634_v10, 2 }
 0x705   : > { %v6643_v24 = vrot.slane %v6636_v13, 2  ;;  %v6638_v25 = vpop.f32.mrb[27].mxu1  ;;  %v14830_v13 = vld [vmem:[#allocation7 + $0x16e4] ss:$8 sps:$4 sm:$0xff]  }
 0x706   : > { %v6644_v46 = vrot.slane %v6638_v25, 2  ;;  %v14645_v25 = vld [vmem:[#allocation7 + $0x1800] ss:$8 sps:$4 sm:$0xff]  }
 0x707   : > { %v6645_v27 = vsel %vm2100_vm2, %v6641_v56, %v6643_v24  ;;  %v6647_v9 = vsel %vm2100_vm2, %v6643_v24, %v6641_v56  ;;  %v14836_v24 = vld [vmem:[#allocation7 + $0x16f4] ss:$8 sps:$4 sm:$0xff]  }
 0x708   : > { %v6649_v29 = vadd.f32 %v16501_v51, %v6645_v27  ;;  %v6651_v32 = vadd.f32 %v16504_v34, %v6647_v9  ;;  %v6646_v23 = vsel %vm2100_vm2, %v6642_v26, %v6644_v46  ;;  %v6648_v53 = vsel %vm2100_vm2, %v6644_v46, %v6642_v26  ;;  %v14834_v26 = vld [vmem:[#allocation7 + $0x16f0] ss:$8 sps:$4 sm:$0xff]   ;;  %v14653_v27 = vld [vmem:[#allocation7 + $0x1814] ss:$8 sps:$4 sm:$0xff]   ;;  %v14842_v9 = vld [vmem:[#allocation7 + $0x1704] ss:$8 sps:$4 sm:$0xff]  }
 0x709   : > { %v6650_v38 = vadd.f32 %v16511_v35, %v6646_v23  ;;  %v6652_v19 = vadd.f32 %v16514_v36, %v6648_v53  ;;  %v14800_v36 = vld [vmem:[#allocation7 + $0x1694] ss:$8 sps:$4 sm:$0xff]   ;;  %v14657_v53 = vld [vmem:[#allocation7 + $0x1820] ss:$8 sps:$4 sm:$0xff]  }
 0x70a   : > { %v7368_v39 = vadd.f32 %v16475_v62, %v6649_v29  ;;  %v7370_v43 = vadd.f32 %v16479_v63, %v6651_v32  ;;  %8848 = vmatprep.subr.bf16.mxu0 %v14800_v36  ;;  %v14840_v29 = vld [vmem:[#allocation7 + $0x1700] ss:$8 sps:$4 sm:$0xff]   ;;  %v14659_v32 = vld [vmem:[#allocation7 + $0x1824] ss:$8 sps:$4 sm:$0xff]   ;;  %v14848_v23 = vld [vmem:[#allocation7 + $0x1714] ss:$8 sps:$4 sm:$0xff]  }
 0x70b   : > { %v7369_v51 = vadd.f32 %v16483_v45, %v6650_v38  ;;  %v7371_v34 = vadd.f32 %v16487_v0, %v6652_v19  ;;  %8849 = vmatpush1.bf16.msra.mxu0 %v14798_v22  ;;  %v14806_v45 = vld [vmem:[#allocation7 + $0x16a4] ss:$8 sps:$4 sm:$0xff]   ;;  %v14665_v38 = vld [vmem:[#allocation7 + $0x1834] ss:$8 sps:$4 sm:$0xff]   ;;  %v14681_v36 = vld [vmem:[#allocation7 + $0x1860] ss:$8 sps:$4 sm:$0xff]  }
 0x70c   : > { %v7385_v41 = vadd.f32 %v7378_v18, %v7368_v39  ;;  %v7387_v59 = vadd.f32 %v7378_v18, %v7370_v43  ;;  %8850 = vmatprep.subr.bf16.mxu0 %v14806_v45  ;;  %v14651_v18 = vld [vmem:[#allocation7 + $0x1810] ss:$8 sps:$4 sm:$0xff]   ;;  %v14854_v19 = vld [vmem:[#allocation7 + $0x1724] ss:$8 sps:$4 sm:$0xff]   ;;  %v14852_v43 = vld [vmem:[#allocation7 + $0x1720] ss:$8 sps:$4 sm:$0xff]  }
 0x70d   : > { %v7386_v35 = vadd.f32 %v7382_v44, %v7369_v51  ;;  %v7388_v62 = vadd.f32 %v7382_v44, %v7371_v34  ;;  %v14663_v39 = vld [vmem:[#allocation7 + $0x1830] ss:$8 sps:$4 sm:$0xff]   ;;  %v14671_v51 = vld [vmem:[#allocation7 + $0x1844] ss:$8 sps:$4 sm:$0xff]   ;;  %v14669_v34 = vld [vmem:[#allocation7 + $0x1840] ss:$8 sps:$4 sm:$0xff]  }
 0x70e   : > { %15369 = vtanh.f32 %v7385_v41  ;;  %v14858_v44 = vld [vmem:[#allocation7 + $0x1730] ss:$8 sps:$4 sm:$0xff]   ;;  %v14689_v22 = vld [vmem:[#allocation7 + $0x1874] ss:$8 sps:$4 sm:$0xff]  }
 0x70f   : > { %15371 = vtanh.f32 %v7387_v59  ;;  %v7389_v63 = vadd.f32 %v7386_v35, %v16424_v30  ;;  %v7390_v0 = vadd.f32 %v7388_v62, %v16424_v30  ;;  %8851 = vmatpush1.bf16.msra.mxu0 %v14804_v49  ;;  %v14675_v41 = vld [vmem:[#allocation7 + $0x1850] ss:$8 sps:$4 sm:$0xff]   ;;  %v14864_v59 = vld [vmem:[#allocation7 + $0x1740] ss:$8 sps:$4 sm:$0xff]   ;;  %v14872_v35 = vld [vmem:[#allocation7 + $0x1754] ss:$8 sps:$4 sm:$0xff]  }
 0x710   : > { %8852 = vmatprep.subr.bf16.mxu0 %v14812_v50  ;;  %v14870_v62 = vld [vmem:[#allocation7 + $0x1750] ss:$8 sps:$4 sm:$0xff]   ;;  %v14695_v49 = vld [vmem:[#allocation7 + $0x1884] ss:$8 sps:$4 sm:$0xff]   ;;  %v14693_v50 = vld [vmem:[#allocation7 + $0x1880] ss:$8 sps:$4 sm:$0xff]  }
 0x711   : > { %v7393_v40 = vmax.f32 %v7389_v63, 0.0  ;;  %v7394_v57 = vmax.f32 %v7390_v0, 0.0  ;;  %v14878_v63 = vld [vmem:[#allocation7 + $0x1764] ss:$8 sps:$4 sm:$0xff]   ;;  %v14687_v45 = vld [vmem:[#allocation7 + $0x1870] ss:$8 sps:$4 sm:$0xff]  }
 0x712   : > { %v14876_v0 = vld [vmem:[#allocation7 + $0x1760] ss:$8 sps:$4 sm:$0xff]  }
 0x713   : > { %8853 = vmatpush1.bf16.msra.mxu0 %v14810_v60  ;;  %v14890_v60 = vld [vmem:[#allocation7 + $0x1784] ss:$8 sps:$4 sm:$0xff]  }
 0x714   : > { %8854 = vmatprep.subr.bf16.mxu0 %v14818_v4  ;;  %v14896_v4 = vld [vmem:[#allocation7 + $0x1794] ss:$8 sps:$4 sm:$0xff]  }
 0x717   : > { %8855 = vmatpush1.bf16.msra.mxu0 %v14816_v7  ;;  %v14894_v7 = vld [vmem:[#allocation7 + $0x1790] ss:$8 sps:$4 sm:$0xff]  }
 0x718   : > { %v15370_v54 = vpop.eup %15369  ;;  %8856 = vmatprep.subr.bf16.mxu0 %v14824_v48  ;;  %v14711_v48 = vld [vmem:[#allocation7 + $0x18b0] ss:$8 sps:$4 sm:$0xff]  }
 0x719   : > { %v15372_v61 = vpop.eup %15371  ;;  %v7395_v1 = vmul.f32 %v15370_v54, %v7393_v40  ;;  %v14884_v40 = vld [vmem:[#allocation7 + $0x1774] ss:$8 sps:$4 sm:$0xff]   ;;  %v14882_v54 = vld [vmem:[#allocation7 + $0x1770] ss:$8 sps:$4 sm:$0xff]  }
 0x71a   : > { %v7396_v3 = vmul.f32 %v15372_v61, %v7394_v57  ;;  %v14701_v57 = vld [vmem:[#allocation7 + $0x1894] ss:$8 sps:$4 sm:$0xff]   ;;  %v14699_v61 = vld [vmem:[#allocation7 + $0x1890] ss:$8 sps:$4 sm:$0xff]  }
 0x71b   : > { %8857 = vmatpush1.bf16.msra.mxu0 %v14822_v52  ;;  %v14900_v52 = vld [vmem:[#allocation7 + $0x17a0] ss:$8 sps:$4 sm:$0xff]  }
 0x71c   : > { %v7400_v5 = vsel %vm7398_vm5, %v7396_v3, -1e+30  ;;  %8858 = vmatprep.subr.bf16.mxu0 %v14830_v13  ;;  %v14707_v3 = vld [vmem:[#allocation7 + $0x18a4] ss:$8 sps:$4 sm:$0xff]   ;;  %v14717_v13 = vld [vmem:[#allocation7 + $0x18c0] ss:$8 sps:$4 sm:$0xff]  }
 0x71d   : > { %v7401_v55 = vmax.f32 %v7395_v1, %v7400_v5  ;;  %v14888_v1 = vld [vmem:[#allocation7 + $0x1780] ss:$8 sps:$4 sm:$0xff]  }
 0x71e   : > { %v14705_v5 = vld [vmem:[#allocation7 + $0x18a0] ss:$8 sps:$4 sm:$0xff]  }
 0x71f   : > { %v7402_v8 = vrot.slane %v7401_v55, 4  ;;  %8859 = vmatpush1.bf16.msra.mxu0 %v14828_v15  ;;  %v14906_v15 = vld [vmem:[#allocation7 + $0x17b0] ss:$8 sps:$4 sm:$0xff]  }
 0x720   : > { %8860 = vmatprep.subr.bf16.mxu0 %v14836_v24  ;;  %v14723_v24 = vld [vmem:[#allocation7 + $0x18d0] ss:$8 sps:$4 sm:$0xff]  }
 0x721   : > { %v7403_v10 = vmax.f32 %v7401_v55, %v7402_v8  ;;  %v14713_v55 = vld [vmem:[#allocation7 + $0x18b4] ss:$8 sps:$4 sm:$0xff]   ;;  %v14902_v8 = vld [vmem:[#allocation7 + $0x17a4] ss:$8 sps:$4 sm:$0xff]  }
 0x723   : > { %v7404_v12 = vrot.slane %v7403_v10, 2  ;;  %8861 = vmatpush1.bf16.msra.mxu0 %v14834_v26  ;;  %v14731_v26 = vld [vmem:[#allocation7 + $0x18e4] ss:$8 sps:$4 sm:$0xff]  }
 0x724   : > { %8873 = vmatprep.subr.bf16.mxu0 %v14842_v9  ;;  %v14918_v9 = vld [vmem:[#allocation7 + $0x17d0] ss:$8 sps:$4 sm:$0xff]  }
 0x725   : > { %v7405_v21 = vmax.f32 %v7403_v10, %v7404_v12  ;;  %v14719_v10 = vld [vmem:[#allocation7 + $0x18c4] ss:$8 sps:$4 sm:$0xff]   ;;  %v14908_v12 = vld [vmem:[#allocation7 + $0x17b4] ss:$8 sps:$4 sm:$0xff]  }
 0x726   : > { %8863 = vmatmul.mubr.bf16.vlgmr.msra.gmra.mrb[40].mxu0 %v16465_v20  ;;  %v14860_v20 = vld [vmem:[#allocation7 + $0x1734] ss:$8 sps:$4 sm:$0xff]  }
 0x727   : > { %v7406_v56 = vrot.slane %v7405_v21, 1  ;;  %8874 = vmatpush1.bf16.msra.mxu0 %v14840_v29  ;;  %8905 = vmatprep.mubr.bf16.mxu0 %v16469_v31  ;;  %v14677_v31 = vld [vmem:[#allocation7 + $0x1854] ss:$8 sps:$4 sm:$0xff]   ;;  %v14926_v29 = vld [vmem:[#allocation7 + $0x17e4] ss:$8 sps:$4 sm:$0xff]  }
 0x728   : > { %8875 = vmatprep.subr.bf16.mxu0 %v14848_v23  ;;  %v14924_v23 = vld [vmem:[#allocation7 + $0x17e0] ss:$8 sps:$4 sm:$0xff]  }
 0x729   : > { %v7407_v46 = vmax.f32 %v7405_v21, %v7406_v56  ;;  %v14725_v21 = vld [vmem:[#allocation7 + $0x18d4] ss:$8 sps:$4 sm:$0xff]   ;;  %v14914_v56 = vld [vmem:[#allocation7 + $0x17c4] ss:$8 sps:$4 sm:$0xff]  }
 0x72b   : > { %13081 = vmatmul.mubr.f32.vlgmr.msra.gmra.mrb[14].mxu1 %v7407_v46  ;;  %8876 = vmatpush1.bf16.msra.mxu0 %v14846_v33  ;;  %v14920_v46 = vld [vmem:[#allocation7 + $0x17d4] ss:$8 sps:$4 sm:$0xff]  }
 0x72c   : > { %8171 = vmatpush1.bf16.msra.mxu1 %v14645_v25  ;;  %8202 = vmatprep.mubr.bf16.mxu1 %v16547_v28  ;;  %v14912_v25 = vld [vmem:[#allocation7 + $0x17c0] ss:$8 sps:$4 sm:$0xff]   ;;  %v14932_v33 = vld [vmem:[#allocation7 + $0x17f4] ss:$8 sps:$4 sm:$0xff]  }
 0x72d   : > { %8172 = vmatprep.subr.bf16.mxu1 %v14653_v27  ;;  %8877 = vmatprep.subr.bf16.mxu0 %v14854_v19  ;;  %v14729_v27 = vld [vmem:[#allocation7 + $0x18e0] ss:$8 sps:$4 sm:$0xff]   ;;  %v14930_v19 = vld [vmem:[#allocation7 + $0x17f0] ss:$8 sps:$4 sm:$0xff]  }
 0x72f   : > { %8878 = vmatpush1.bf16.msra.mxu0 %v14852_v43  ;;  %v14938_v43 = vld [vmem:[#allocation7 + $0x1e04] ss:$8 sps:$4 sm:$0xff]  }
 0x730   : > { %8173 = vmatpush1.bf16.msra.mxu1 %v14651_v18  ;;  %8879 = vmatprep.subr.bf16.mxu0 %v14860_v20  ;;  %v14737_v18 = vld [vmem:[#allocation7 + $0x18f4] ss:$8 sps:$4 sm:$0xff]  }
 0x731   : > { %8174 = vmatprep.subr.bf16.mxu1 %v14659_v32  ;;  %v14735_v32 = vld [vmem:[#allocation7 + $0x18f0] ss:$8 sps:$4 sm:$0xff]   ;;  %v16554_v20 = vld [vmem:[%s16202_s21 + $0xc] ss:$24 sps:$4 sm:$0xff]  }
 0x733   : > { %8880 = vmatpush1.bf16.msra.mxu0 %v14858_v44  ;;  %v14755_v44 = vld [vmem:[#allocation7 + $0x1924] ss:$8 sps:$4 sm:$0xff]  }
 0x734   : > { %8175 = vmatpush1.bf16.msra.mxu1 %v14657_v53  ;;  %8881 = vmatprep.subr.bf16.mxu0 %v14866_v58  ;;  %v14743_v53 = vld [vmem:[#allocation7 + $0x1904] ss:$8 sps:$4 sm:$0xff]   ;;  %v14942_v58 = vld [vmem:[#allocation7 + $0x1e10] ss:$8 sps:$4 sm:$0xff]  }
 0x735   : > { %8176 = vmatprep.subr.bf16.mxu1 %v14665_v38  ;;  %v14741_v38 = vld [vmem:[#allocation7 + $0x1900] ss:$8 sps:$4 sm:$0xff]  }
 0x737   : > { %8882 = vmatpush1.bf16.msra.mxu0 %v14864_v59  ;;  %v14950_v59 = vld [vmem:[#allocation7 + $0x1e24] ss:$8 sps:$4 sm:$0xff]  }
 0x738   : > { %8177 = vmatpush1.bf16.msra.mxu1 %v14663_v39  ;;  %8883 = vmatprep.subr.bf16.mxu0 %v14872_v35  ;;  %v14749_v39 = vld [vmem:[#allocation7 + $0x1914] ss:$8 sps:$4 sm:$0xff]   ;;  %v14948_v35 = vld [vmem:[#allocation7 + $0x1e20] ss:$8 sps:$4 sm:$0xff]  }
 0x739   : > { %8178 = vmatprep.subr.bf16.mxu1 %v14671_v51  ;;  %v14747_v51 = vld [vmem:[#allocation7 + $0x1910] ss:$8 sps:$4 sm:$0xff]  }
 0x73b   : > { %8884 = vmatpush1.bf16.msra.mxu0 %v14870_v62  ;;  %v14765_v62 = vld [vmem:[#allocation7 + $0x1940] ss:$8 sps:$4 sm:$0xff]  }
 0x73c   : > { %8179 = vmatpush1.bf16.msra.mxu1 %v14669_v34  ;;  %8885 = vmatprep.subr.bf16.mxu0 %v14878_v63  ;;  %v14936_v34 = vld [vmem:[#allocation7 + $0x1e00] ss:$8 sps:$4 sm:$0xff]   ;;  %v14773_v63 = vld [vmem:[#allocation7 + $0x1954] ss:$8 sps:$4 sm:$0xff]  }
 0x73d   : > { %8180 = vmatprep.subr.bf16.mxu1 %v14677_v31  ;;  %v14944_v31 = vld [vmem:[#allocation7 + $0x1e14] ss:$8 sps:$4 sm:$0xff]  }
 0x73f   : > { %8886 = vmatpush1.bf16.msra.mxu0 %v14876_v0  ;;  %v14771_v0 = vld [vmem:[#allocation7 + $0x1950] ss:$8 sps:$4 sm:$0xff]  }
 0x740   : > { %8181 = vmatpush1.bf16.msra.mxu1 %v14675_v41  ;;  %8887 = vmatprep.subr.bf16.mxu0 %v14884_v40  ;;  %v14761_v41 = vld [vmem:[#allocation7 + $0x1934] ss:$8 sps:$4 sm:$0xff]   ;;  %v14779_v40 = vld [vmem:[#allocation7 + $0x1964] ss:$8 sps:$4 sm:$0xff]  }
 0x741   : > { %8182 = vmatprep.subr.bf16.mxu1 %v14683_v42  ;;  %v14759_v42 = vld [vmem:[#allocation7 + $0x1930] ss:$8 sps:$4 sm:$0xff]  }
 0x743   : > { %8888 = vmatpush1.bf16.msra.mxu0 %v14882_v54  ;;  %v14777_v54 = vld [vmem:[#allocation7 + $0x1960] ss:$8 sps:$4 sm:$0xff]  }
 0x744   : > { %8183 = vmatpush1.bf16.msra.mxu1 %v14681_v36  ;;  %8889 = vmatprep.subr.bf16.mxu0 %v14890_v60  ;;  %v14767_v36 = vld [vmem:[#allocation7 + $0x1944] ss:$8 sps:$4 sm:$0xff]   ;;  %v14785_v60 = vld [vmem:[#allocation7 + $0x1974] ss:$8 sps:$4 sm:$0xff]  }
 0x745   : > { %8184 = vmatprep.subr.bf16.mxu1 %v14689_v22  ;;  %v14954_v22 = vld [vmem:[#allocation7 + $0x1e30] ss:$8 sps:$4 sm:$0xff]  }
 0x747   : > { %8890 = vmatpush1.bf16.msra.mxu0 %v14888_v1  ;;  %v14783_v1 = vld [vmem:[#allocation7 + $0x1970] ss:$8 sps:$4 sm:$0xff]  }
 0x748   : > { %8185 = vmatpush1.bf16.msra.mxu1 %v14687_v45  ;;  %8891 = vmatprep.subr.bf16.mxu0 %v14896_v4  ;;  %v14962_v45 = vld [vmem:[#allocation7 + $0x1e44] ss:$8 sps:$4 sm:$0xff]  }
 0x749   : > { %8186 = vmatprep.subr.bf16.mxu1 %v14695_v49  ;;  %v14960_v49 = vld [vmem:[#allocation7 + $0x1e40] ss:$8 sps:$4 sm:$0xff]   ;;  %v14791_v4 = vld [vmem:[#allocation7 + $0x1984] ss:$8 sps:$4 sm:$0xff]  }
 0x74b   : > { %8892 = vmatpush1.bf16.msra.mxu0 %v14894_v7  ;;  %v14789_v7 = vld [vmem:[#allocation7 + $0x1980] ss:$8 sps:$4 sm:$0xff]  }
 0x74c   : > { %8187 = vmatpush1.bf16.msra.mxu1 %v14693_v50  ;;  %8893 = vmatprep.subr.bf16.mxu0 %v14902_v8  ;;  %v14968_v50 = vld [vmem:[#allocation7 + $0x1e54] ss:$8 sps:$4 sm:$0xff]  }
 0x74d   : > { %8188 = vmatprep.subr.bf16.mxu1 %v14701_v57  ;;  %v14966_v57 = vld [vmem:[#allocation7 + $0x1e50] ss:$8 sps:$4 sm:$0xff]   ;;  %v14797_v8 = vld [vmem:[#allocation7 + $0x1994] ss:$8 sps:$4 sm:$0xff]  }
 0x74f   : > { %8894 = vmatpush1.bf16.msra.mxu0 %v14900_v52  ;;  %v14795_v52 = vld [vmem:[#allocation7 + $0x1990] ss:$8 sps:$4 sm:$0xff]  }
 0x750   : > { %8189 = vmatpush1.bf16.msra.mxu1 %v14699_v61  ;;  %8895 = vmatprep.subr.bf16.mxu0 %v14908_v12  ;;  %v14974_v61 = vld [vmem:[#allocation7 + $0x1e64] ss:$8 sps:$4 sm:$0xff]  }
 0x751   : > { %8190 = vmatprep.subr.bf16.mxu1 %v14707_v3  ;;  %v14972_v3 = vld [vmem:[#allocation7 + $0x1e60] ss:$8 sps:$4 sm:$0xff]   ;;  %v14803_v12 = vld [vmem:[#allocation7 + $0x19a4] ss:$8 sps:$4 sm:$0xff]  }
 0x753   : > { %8896 = vmatpush1.bf16.msra.mxu0 %v14906_v15  ;;  %v14801_v15 = vld [vmem:[#allocation7 + $0x19a0] ss:$8 sps:$4 sm:$0xff]  }
 0x754   : > { %8191 = vmatpush1.bf16.msra.mxu1 %v14705_v5  ;;  %8897 = vmatprep.subr.bf16.mxu0 %v14914_v56  ;;  %v14980_v5 = vld [vmem:[#allocation7 + $0x1e74] ss:$8 sps:$4 sm:$0xff]  }
 0x755   : > { %8192 = vmatprep.subr.bf16.mxu1 %v14713_v55  ;;  %v14978_v55 = vld [vmem:[#allocation7 + $0x1e70] ss:$8 sps:$4 sm:$0xff]   ;;  %v14809_v56 = vld [vmem:[#allocation7 + $0x19b4] ss:$8 sps:$4 sm:$0xff]  }
 0x757   : > { %8898 = vmatpush1.bf16.msra.mxu0 %v14912_v25  ;;  %v14807_v25 = vld [vmem:[#allocation7 + $0x19b0] ss:$8 sps:$4 sm:$0xff]  }
 0x758   : > { %8193 = vmatpush1.bf16.msra.mxu1 %v14711_v48  ;;  %8899 = vmatprep.subr.bf16.mxu0 %v14920_v46  ;;  %v14986_v48 = vld [vmem:[#allocation7 + $0x1e84] ss:$8 sps:$4 sm:$0xff]  }
 0x759   : > { %8194 = vmatprep.subr.bf16.mxu1 %v14719_v10  ;;  %v14984_v10 = vld [vmem:[#allocation7 + $0x1e80] ss:$8 sps:$4 sm:$0xff]   ;;  %v14815_v46 = vld [vmem:[#allocation7 + $0x19c4] ss:$8 sps:$4 sm:$0xff]  }
 0x75b   : > { %8900 = vmatpush1.bf16.msra.mxu0 %v14918_v9  ;;  %v14813_v9 = vld [vmem:[#allocation7 + $0x19c0] ss:$8 sps:$4 sm:$0xff]  }
 0x75c   : > { %8195 = vmatpush1.bf16.msra.mxu1 %v14717_v13  ;;  %8901 = vmatprep.subr.bf16.mxu0 %v14926_v29  ;;  %v14992_v13 = vld [vmem:[#allocation7 + $0x1e94] ss:$8 sps:$4 sm:$0xff]  }
 0x75d   : > { %8196 = vmatprep.subr.bf16.mxu1 %v14725_v21  ;;  %v14990_v21 = vld [vmem:[#allocation7 + $0x1e90] ss:$8 sps:$4 sm:$0xff]   ;;  %v14821_v29 = vld [vmem:[#allocation7 + $0x19d4] ss:$8 sps:$4 sm:$0xff]  }
 0x75f   : > { %8902 = vmatpush1.bf16.msra.mxu0 %v14924_v23  ;;  %v14819_v23 = vld [vmem:[#allocation7 + $0x19d0] ss:$8 sps:$4 sm:$0xff]  }
 0x760   : > { %8197 = vmatpush1.bf16.msra.mxu1 %v14723_v24  ;;  %8903 = vmatprep.subr.bf16.mxu0 %v14932_v33  ;;  %v14998_v24 = vld [vmem:[#allocation7 + $0x1ea4] ss:$8 sps:$4 sm:$0xff]  }
 0x761   : > { %8198 = vmatprep.subr.bf16.mxu1 %v14731_v26  ;;  %v14996_v26 = vld [vmem:[#allocation7 + $0x1ea0] ss:$8 sps:$4 sm:$0xff]   ;;  %v14827_v33 = vld [vmem:[#allocation7 + $0x19e4] ss:$8 sps:$4 sm:$0xff]  }
 0x763   : > { %8904 = vmatpush1.bf16.msra.mxu0 %v14930_v19  ;;  %v14825_v19 = vld [vmem:[#allocation7 + $0x19e0] ss:$8 sps:$4 sm:$0xff]  }
 0x764   : > { %8199 = vmatpush1.bf16.msra.mxu1 %v14729_v27  ;;  %10211 = vmatprep.subr.bf16.mxu0 %v14938_v43  ;;  %v15004_v27 = vld [vmem:[#allocation7 + $0x1eb4] ss:$8 sps:$4 sm:$0xff]  }
 0x765   : > { %8200 = vmatprep.subr.bf16.mxu1 %v14737_v18  ;;  %v15002_v18 = vld [vmem:[#allocation7 + $0x1eb0] ss:$8 sps:$4 sm:$0xff]   ;;  %v14833_v43 = vld [vmem:[#allocation7 + $0x19f4] ss:$8 sps:$4 sm:$0xff]  }
 0x766   : > { %8906 = vmatmul.mubr.bf16.vlgmr.msra.gmra.mrb[40].mxu0 %v16491_v17  ;;  %v14956_v17 = vld [vmem:[#allocation7 + $0x1e34] ss:$8 sps:$4 sm:$0xff]  }
 0x767   : > { %10212 = vmatpush1.bf16.msra.mxu0 %v14936_v34  ;;  %10243 = vmatprep.mubr.bf16.mxu0 %v16547_v28  ;;  %v14831_v34 = vld [vmem:[#allocation7 + $0x19f0] ss:$8 sps:$4 sm:$0xff]  }
 0x768   : > { %8201 = vmatpush1.bf16.msra.mxu1 %v14735_v32  ;;  %10213 = vmatprep.subr.bf16.mxu0 %v14944_v31  ;;  %v15010_v32 = vld [vmem:[#allocation7 + $0x1ec4] ss:$8 sps:$4 sm:$0xff]  }
 0x769   : > { %8213 = vmatprep.subr.bf16.mxu1 %v14743_v53  ;;  %v15008_v53 = vld [vmem:[#allocation7 + $0x1ec0] ss:$8 sps:$4 sm:$0xff]   ;;  %v14839_v31 = vld [vmem:[#allocation7 + $0x1a04] ss:$8 sps:$4 sm:$0xff]  }
 0x76b   : > { %8203 = vmatmul.mubr.bf16.vlgmr.msra.gmra.mrb[28].mxu1 %v16457_v47  ;;  %v14753_v47 = vld [vmem:[#allocation7 + $0x1920] ss:$8 sps:$4 sm:$0xff]   ;;  %10214 = vmatpush1.bf16.msra.mxu0 %v14942_v58 }
 0x76c   : > { %8214 = vmatpush1.bf16.msra.mxu1 %v14741_v38  ;;  %8245 = vmatprep.mubr.bf16.mxu1 %v16554_v20  ;;  %v15016_v38 = vld [vmem:[#allocation7 + $0x1ed4] ss:$8 sps:$4 sm:$0xff]   ;;  %v14837_v58 = vld [vmem:[#allocation7 + $0x1a00] ss:$8 sps:$4 sm:$0xff]  }
 0x76d   : > { %8215 = vmatprep.subr.bf16.mxu1 %v14749_v39  ;;  %10215 = vmatprep.subr.bf16.mxu0 %v14950_v59  ;;  %v15014_v39 = vld [vmem:[#allocation7 + $0x1ed0] ss:$8 sps:$4 sm:$0xff]   ;;  %v14845_v59 = vld [vmem:[#allocation7 + $0x1a14] ss:$8 sps:$4 sm:$0xff]  }
 0x76f   : > { %10216 = vmatpush1.bf16.msra.mxu0 %v14948_v35  ;;  %v15034_v35 = vld [vmem:[#allocation7 + $0x1f04] ss:$8 sps:$4 sm:$0xff]  }
 0x770   : > { %8216 = vmatpush1.bf16.msra.mxu1 %v14747_v51  ;;  %10217 = vmatprep.subr.bf16.mxu0 %v14956_v17  ;;  %v15022_v51 = vld [vmem:[#allocation7 + $0x1ee4] ss:$8 sps:$4 sm:$0xff]  }
 0x771   : > { %8217 = vmatprep.subr.bf16.mxu1 %v14755_v44  ;;  %v15020_v44 = vld [vmem:[#allocation7 + $0x1ee0] ss:$8 sps:$4 sm:$0xff]   ;;  %v16564_v17 = vld [vmem:[%s16202_s21 + $0x14] ss:$24 sps:$4 sm:$0xff]  }
 0x773   : > { %10218 = vmatpush1.bf16.msra.mxu0 %v14954_v22  ;;  %v14851_v22 = vld [vmem:[#allocation7 + $0x1a24] ss:$8 sps:$4 sm:$0xff]  }
 0x774   : > { %8218 = vmatpush1.bf16.msra.mxu1 %v14753_v47  ;;  %10219 = vmatprep.subr.bf16.mxu0 %v14962_v45  ;;  %v15028_v47 = vld [vmem:[#allocation7 + $0x1ef4] ss:$8 sps:$4 sm:$0xff]  }
 0x775   : > { %8219 = vmatprep.subr.bf16.mxu1 %v14761_v41  ;;  %v15026_v41 = vld [vmem:[#allocation7 + $0x1ef0] ss:$8 sps:$4 sm:$0xff]   ;;  %v15040_v45 = vld [vmem:[#allocation7 + $0x1f14] ss:$8 sps:$4 sm:$0xff]  }
 0x777   : > { %10220 = vmatpush1.bf16.msra.mxu0 %v14960_v49  ;;  %v15038_v49 = vld [vmem:[#allocation7 + $0x1f10] ss:$8 sps:$4 sm:$0xff]  }
 0x778   : > { %8220 = vmatpush1.bf16.msra.mxu1 %v14759_v42  ;;  %10221 = vmatprep.subr.bf16.mxu0 %v14968_v50  ;;  %v16560_v42 = vld [vmem:[%s16202_s21 + $0x8] ss:$24 sps:$4 sm:$0xff]   ;;  %v15046_v50 = vld [vmem:[#allocation7 + $0x1f24] ss:$8 sps:$4 sm:$0xff]  }
 0x779   : > { %8221 = vmatprep.subr.bf16.mxu1 %v14767_v36  ;;  %v14843_v36 = vld [vmem:[#allocation7 + $0x1a10] ss:$8 sps:$4 sm:$0xff]  }
 0x77b   : > { %10222 = vmatpush1.bf16.msra.mxu0 %v14966_v57  ;;  %v15044_v57 = vld [vmem:[#allocation7 + $0x1f20] ss:$8 sps:$4 sm:$0xff]  }
 0x77c   : > { %8222 = vmatpush1.bf16.msra.mxu1 %v14765_v62  ;;  %10223 = vmatprep.subr.bf16.mxu0 %v14974_v61  ;;  %v15032_v62 = vld [vmem:[#allocation7 + $0x1f00] ss:$8 sps:$4 sm:$0xff]   ;;  %v15052_v61 = vld [vmem:[#allocation7 + $0x1f34] ss:$8 sps:$4 sm:$0xff]  }
 0x77d   : > { %8223 = vmatprep.subr.bf16.mxu1 %v14773_v63  ;;  %v16568_v63 = vld [vmem:[%s16202_s21] ss:$24 sps:$4 sm:$0xff]  }
 0x77f   : > { %10224 = vmatpush1.bf16.msra.mxu0 %v14972_v3  ;;  %v15050_v3 = vld [vmem:[#allocation7 + $0x1f30] ss:$8 sps:$4 sm:$0xff]  }
 0x780   : > { %8224 = vmatpush1.bf16.msra.mxu1 %v14771_v0  ;;  %10225 = vmatprep.subr.bf16.mxu0 %v14980_v5  ;;  %v14849_v0 = vld [vmem:[#allocation7 + $0x1a20] ss:$8 sps:$4 sm:$0xff]   ;;  %v15058_v5 = vld [vmem:[#allocation7 + $0x1f44] ss:$8 sps:$4 sm:$0xff]  }
 0x781   : > { %8225 = vmatprep.subr.bf16.mxu1 %v14779_v40  ;;  %v14857_v40 = vld [vmem:[#allocation7 + $0x1a34] ss:$8 sps:$4 sm:$0xff]  }
 0x783   : > { %10226 = vmatpush1.bf16.msra.mxu0 %v14978_v55  ;;  %v15056_v55 = vld [vmem:[#allocation7 + $0x1f40] ss:$8 sps:$4 sm:$0xff]  }
 0x784   : > { %8226 = vmatpush1.bf16.msra.mxu1 %v14777_v54  ;;  %10227 = vmatprep.subr.bf16.mxu0 %v14986_v48  ;;  %v14855_v54 = vld [vmem:[#allocation7 + $0x1a30] ss:$8 sps:$4 sm:$0xff]   ;;  %v15064_v48 = vld [vmem:[#allocation7 + $0x1f54] ss:$8 sps:$4 sm:$0xff]  }
 0x785   : > { %8227 = vmatprep.subr.bf16.mxu1 %v14785_v60  ;;  %v14863_v60 = vld [vmem:[#allocation7 + $0x1a44] ss:$8 sps:$4 sm:$0xff]  }
 0x787   : > { %10228 = vmatpush1.bf16.msra.mxu0 %v14984_v10  ;;  %v15062_v10 = vld [vmem:[#allocation7 + $0x1f50] ss:$8 sps:$4 sm:$0xff]  }
 0x788   : > { %8228 = vmatpush1.bf16.msra.mxu1 %v14783_v1  ;;  %10229 = vmatprep.subr.bf16.mxu0 %v14992_v13  ;;  %v14861_v1 = vld [vmem:[#allocation7 + $0x1a40] ss:$8 sps:$4 sm:$0xff]   ;;  %v15070_v13 = vld [vmem:[#allocation7 + $0x1f64] ss:$8 sps:$4 sm:$0xff]  }
 0x789   : > { %8229 = vmatprep.subr.bf16.mxu1 %v14791_v4  ;;  %v14869_v4 = vld [vmem:[#allocation7 + $0x1a54] ss:$8 sps:$4 sm:$0xff]  }
 0x78b   : > { %10230 = vmatpush1.bf16.msra.mxu0 %v14990_v21  ;;  %v15068_v21 = vld [vmem:[#allocation7 + $0x1f60] ss:$8 sps:$4 sm:$0xff]  }
 0x78c   : > { %8230 = vmatpush1.bf16.msra.mxu1 %v14789_v7  ;;  %10231 = vmatprep.subr.bf16.mxu0 %v14998_v24  ;;  %v14867_v7 = vld [vmem:[#allocation7 + $0x1a50] ss:$8 sps:$4 sm:$0xff]   ;;  %v15076_v24 = vld [vmem:[#allocation7 + $0x1f74] ss:$8 sps:$4 sm:$0xff]  }
 0x78d   : > { %8231 = vmatprep.subr.bf16.mxu1 %v14797_v8  ;;  %v14875_v8 = vld [vmem:[#allocation7 + $0x1a64] ss:$8 sps:$4 sm:$0xff]  }
 0x78f   : > { %10232 = vmatpush1.bf16.msra.mxu0 %v14996_v26  ;;  %v15074_v26 = vld [vmem:[#allocation7 + $0x1f70] ss:$8 sps:$4 sm:$0xff]  }
 0x790   : > { %8232 = vmatpush1.bf16.msra.mxu1 %v14795_v52  ;;  %10233 = vmatprep.subr.bf16.mxu0 %v15004_v27  ;;  %v14873_v52 = vld [vmem:[#allocation7 + $0x1a60] ss:$8 sps:$4 sm:$0xff]   ;;  %v15082_v27 = vld [vmem:[#allocation7 + $0x1f84] ss:$8 sps:$4 sm:$0xff]  }
 0x791   : > { %8233 = vmatprep.subr.bf16.mxu1 %v14803_v12  ;;  %v14881_v12 = vld [vmem:[#allocation7 + $0x1a74] ss:$8 sps:$4 sm:$0xff]  }
 0x793   : > { %10234 = vmatpush1.bf16.msra.mxu0 %v15002_v18  ;;  %v15080_v18 = vld [vmem:[#allocation7 + $0x1f80] ss:$8 sps:$4 sm:$0xff]  }
 0x794   : > { %8234 = vmatpush1.bf16.msra.mxu1 %v14801_v15  ;;  %10235 = vmatprep.subr.bf16.mxu0 %v15010_v32  ;;  %v14879_v15 = vld [vmem:[#allocation7 + $0x1a70] ss:$8 sps:$4 sm:$0xff]   ;;  %v15088_v32 = vld [vmem:[#allocation7 + $0x1f94] ss:$8 sps:$4 sm:$0xff]  }
 0x795   : > { %8235 = vmatprep.subr.bf16.mxu1 %v14809_v56  ;;  %v14887_v56 = vld [vmem:[#allocation7 + $0x1a84] ss:$8 sps:$4 sm:$0xff]  }
 0x797   : > { %10236 = vmatpush1.bf16.msra.mxu0 %v15008_v53  ;;  %v15086_v53 = vld [vmem:[#allocation7 + $0x1f90] ss:$8 sps:$4 sm:$0xff]  }
 0x798   : > { %8236 = vmatpush1.bf16.msra.mxu1 %v14807_v25  ;;  %10237 = vmatprep.subr.bf16.mxu0 %v15016_v38  ;;  %v14885_v25 = vld [vmem:[#allocation7 + $0x1a80] ss:$8 sps:$4 sm:$0xff]   ;;  %v15094_v38 = vld [vmem:[#allocation7 + $0x1fa4] ss:$8 sps:$4 sm:$0xff]  }
 0x799   : > { %8237 = vmatprep.subr.bf16.mxu1 %v14815_v46  ;;  %v14893_v46 = vld [vmem:[#allocation7 + $0x1a94] ss:$8 sps:$4 sm:$0xff]  }
 0x79b   : > { %10238 = vmatpush1.bf16.msra.mxu0 %v15014_v39  ;;  %v15092_v39 = vld [vmem:[#allocation7 + $0x1fa0] ss:$8 sps:$4 sm:$0xff]  }
 0x79c   : > { %8238 = vmatpush1.bf16.msra.mxu1 %v14813_v9  ;;  %10239 = vmatprep.subr.bf16.mxu0 %v15022_v51  ;;  %v14891_v9 = vld [vmem:[#allocation7 + $0x1a90] ss:$8 sps:$4 sm:$0xff]   ;;  %v15100_v51 = vld [vmem:[#allocation7 + $0x1fb4] ss:$8 sps:$4 sm:$0xff]  }
 0x79d   : > { %8239 = vmatprep.subr.bf16.mxu1 %v14821_v29  ;;  %v14899_v29 = vld [vmem:[#allocation7 + $0x1aa4] ss:$8 sps:$4 sm:$0xff]  }
 0x79f   : > { %10240 = vmatpush1.bf16.msra.mxu0 %v15020_v44  ;;  %v15098_v44 = vld [vmem:[#allocation7 + $0x1fb0] ss:$8 sps:$4 sm:$0xff]  }
 0x7a0   : > { %8240 = vmatpush1.bf16.msra.mxu1 %v14819_v23  ;;  %10241 = vmatprep.subr.bf16.mxu0 %v15028_v47  ;;  %v14897_v23 = vld [vmem:[#allocation7 + $0x1aa0] ss:$8 sps:$4 sm:$0xff]   ;;  %v15106_v47 = vld [vmem:[#allocation7 + $0x1fc4] ss:$8 sps:$4 sm:$0xff]  }
 0x7a1   : > { %8241 = vmatprep.subr.bf16.mxu1 %v14827_v33  ;;  %v14905_v33 = vld [vmem:[#allocation7 + $0x1ab4] ss:$8 sps:$4 sm:$0xff]  }
 0x7a3   : > { %10242 = vmatpush1.bf16.msra.mxu0 %v15026_v41  ;;  %v15104_v41 = vld [vmem:[#allocation7 + $0x1fc0] ss:$8 sps:$4 sm:$0xff]  }
 0x7a4   : > { %8242 = vmatpush1.bf16.msra.mxu1 %v14825_v19  ;;  %10254 = vmatprep.subr.bf16.mxu0 %v15034_v35  ;;  %v14903_v19 = vld [vmem:[#allocation7 + $0x1ab0] ss:$8 sps:$4 sm:$0xff]   ;;  %v15112_v35 = vld [vmem:[#allocation7 + $0x1fd4] ss:$8 sps:$4 sm:$0xff]  }
 0x7a5   : > { %8243 = vmatprep.subr.bf16.mxu1 %v14833_v43  ;;  %v14911_v43 = vld [vmem:[#allocation7 + $0x1ac4] ss:$8 sps:$4 sm:$0xff]  }
 0x7a6   : > { %10244 = vmatmul.mubr.bf16.vlgmr.msra.gmra.mrb[44].mxu0 %v16568_v63 }
 0x7a7   : > { %10255 = vmatpush1.bf16.msra.mxu0 %v15032_v62  ;;  %10286 = vmatprep.mubr.bf16.mxu0 %v16554_v20  ;;  %v15110_v62 = vld [vmem:[#allocation7 + $0x1fd0] ss:$8 sps:$4 sm:$0xff]  }
 0x7a8   : > { %8244 = vmatpush1.bf16.msra.mxu1 %v14831_v34  ;;  %10256 = vmatprep.subr.bf16.mxu0 %v15040_v45  ;;  %v14909_v34 = vld [vmem:[#allocation7 + $0x1ac0] ss:$8 sps:$4 sm:$0xff]   ;;  %v15118_v45 = vld [vmem:[#allocation7 + $0x1fe4] ss:$8 sps:$4 sm:$0xff]  }
 0x7a9   : > { %8256 = vmatprep.subr.bf16.mxu1 %v14839_v31  ;;  %v14917_v31 = vld [vmem:[#allocation7 + $0x1ad4] ss:$8 sps:$4 sm:$0xff]  }
 0x7ab   : > { %8246 = vmatmul.mubr.bf16.vlgmr.msra.gmra.mrb[28].mxu1 %v16560_v42  ;;  %10257 = vmatpush1.bf16.msra.mxu0 %v15038_v49  ;;  %v15116_v49 = vld [vmem:[#allocation7 + $0x1fe0] ss:$8 sps:$4 sm:$0xff]  }
 0x7ac   : > { %8257 = vmatpush1.bf16.msra.mxu1 %v14837_v58  ;;  %8288 = vmatprep.mubr.bf16.mxu1 %v16564_v17  ;;  %v14915_v58 = vld [vmem:[#allocation7 + $0x1ad0] ss:$8 sps:$4 sm:$0xff]  }
 0x7ad   : > { %8258 = vmatprep.subr.bf16.mxu1 %v14845_v59  ;;  %10258 = vmatprep.subr.bf16.mxu0 %v15046_v50  ;;  %v14923_v59 = vld [vmem:[#allocation7 + $0x1ae4] ss:$8 sps:$4 sm:$0xff]   ;;  %v15124_v50 = vld [vmem:[#allocation7 + $0x1ff4] ss:$8 sps:$4 sm:$0xff]  }
 0x7af   : > { %10259 = vmatpush1.bf16.msra.mxu0 %v15044_v57  ;;  %v15122_v57 = vld [vmem:[#allocation7 + $0x1ff0] ss:$8 sps:$4 sm:$0xff]  }
 0x7b0   : > { %8259 = vmatpush1.bf16.msra.mxu1 %v14843_v36  ;;  %10260 = vmatprep.subr.bf16.mxu0 %v15052_v61  ;;  %v14921_v36 = vld [vmem:[#allocation7 + $0x1ae0] ss:$8 sps:$4 sm:$0xff]  }
 0x7b1   : > { %8260 = vmatprep.subr.bf16.mxu1 %v14851_v22  ;;  %v14929_v22 = vld [vmem:[#allocation7 + $0x1af4] ss:$8 sps:$4 sm:$0xff]   ;;  %v16573_v61 = vld [vmem:[%s16202_s21 + $0x10] ss:$24 sps:$4 sm:$0xff]  }
 0x7b3   : > { %10261 = vmatpush1.bf16.msra.mxu0 %v15050_v3  ;;  %v14939_v3 = vld [vmem:[#allocation7 + $0x1b10] ss:$8 sps:$4 sm:$0xff]  }
 0x7b4   : > { %8261 = vmatpush1.bf16.msra.mxu1 %v14849_v0  ;;  %10262 = vmatprep.subr.bf16.mxu0 %v15058_v5  ;;  %v14927_v0 = vld [vmem:[#allocation7 + $0x1af0] ss:$8 sps:$4 sm:$0xff]   ;;  %v14947_v5 = vld [vmem:[#allocation7 + $0x1b24] ss:$8 sps:$4 sm:$0xff]  }
 0x7b5   : > { %8262 = vmatprep.subr.bf16.mxu1 %v14857_v40  ;;  %v14935_v40 = vld [vmem:[#allocation7 + $0x1b04] ss:$8 sps:$4 sm:$0xff]  }
 0x7b7   : > { %10263 = vmatpush1.bf16.msra.mxu0 %v15056_v55  ;;  %v14945_v55 = vld [vmem:[#allocation7 + $0x1b20] ss:$8 sps:$4 sm:$0xff]  }
 0x7b8   : > { %8263 = vmatpush1.bf16.msra.mxu1 %v14855_v54  ;;  %10264 = vmatprep.subr.bf16.mxu0 %v15064_v48  ;;  %v14933_v54 = vld [vmem:[#allocation7 + $0x1b00] ss:$8 sps:$4 sm:$0xff]   ;;  %v14953_v48 = vld [vmem:[#allocation7 + $0x1b34] ss:$8 sps:$4 sm:$0xff]  }
 0x7b9   : > { %8264 = vmatprep.subr.bf16.mxu1 %v14863_v60  ;;  %v14941_v60 = vld [vmem:[#allocation7 + $0x1b14] ss:$8 sps:$4 sm:$0xff]  }
 0x7bb   : > { %10265 = vmatpush1.bf16.msra.mxu0 %v15062_v10  ;;  %v15140_v10 = vld [vmem:[#allocation7 + $0x2020] ss:$8 sps:$4 sm:$0xff]  }
 0x7bc   : > { %8265 = vmatpush1.bf16.msra.mxu1 %v14861_v1  ;;  %10266 = vmatprep.subr.bf16.mxu0 %v15070_v13  ;;  %v15130_v1 = vld [vmem:[#allocation7 + $0x2004] ss:$8 sps:$4 sm:$0xff]   ;;  %v15148_v13 = vld [vmem:[#allocation7 + $0x2034] ss:$8 sps:$4 sm:$0xff]  }
 0x7bd   : > { %8266 = vmatprep.subr.bf16.mxu1 %v14869_v4  ;;  %v15128_v4 = vld [vmem:[#allocation7 + $0x2000] ss:$8 sps:$4 sm:$0xff]  }
 0x7bf   : > { %10267 = vmatpush1.bf16.msra.mxu0 %v15068_v21  ;;  %v15146_v21 = vld [vmem:[#allocation7 + $0x2030] ss:$8 sps:$4 sm:$0xff]  }
 0x7c0   : > { %8267 = vmatpush1.bf16.msra.mxu1 %v14867_v7  ;;  %10268 = vmatprep.subr.bf16.mxu0 %v15076_v24  ;;  %v15136_v7 = vld [vmem:[#allocation7 + $0x2014] ss:$8 sps:$4 sm:$0xff]   ;;  %v15154_v24 = vld [vmem:[#allocation7 + $0x2044] ss:$8 sps:$4 sm:$0xff]  }
 0x7c1   : > { %8268 = vmatprep.subr.bf16.mxu1 %v14875_v8  ;;  %v15134_v8 = vld [vmem:[#allocation7 + $0x2010] ss:$8 sps:$4 sm:$0xff]  }
 0x7c3   : > { %10269 = vmatpush1.bf16.msra.mxu0 %v15074_v26  ;;  %v15152_v26 = vld [vmem:[#allocation7 + $0x2040] ss:$8 sps:$4 sm:$0xff]  }
 0x7c4   : > { %8269 = vmatpush1.bf16.msra.mxu1 %v14873_v52  ;;  %10270 = vmatprep.subr.bf16.mxu0 %v15082_v27  ;;  %v15142_v52 = vld [vmem:[#allocation7 + $0x2024] ss:$8 sps:$4 sm:$0xff]   ;;  %v15160_v27 = vld [vmem:[#allocation7 + $0x2054] ss:$8 sps:$4 sm:$0xff]  }
 0x7c5   : > { %8270 = vmatprep.subr.bf16.mxu1 %v14881_v12  ;;  %v14959_v12 = vld [vmem:[#allocation7 + $0x1b44] ss:$8 sps:$4 sm:$0xff]  }
 0x7c7   : > { %10271 = vmatpush1.bf16.msra.mxu0 %v15080_v18  ;;  %v15158_v18 = vld [vmem:[#allocation7 + $0x2050] ss:$8 sps:$4 sm:$0xff]  }
 0x7c8   : > { %8271 = vmatpush1.bf16.msra.mxu1 %v14879_v15  ;;  %10272 = vmatprep.subr.bf16.mxu0 %v15088_v32  ;;  %v14957_v15 = vld [vmem:[#allocation7 + $0x1b40] ss:$8 sps:$4 sm:$0xff]   ;;  %v15166_v32 = vld [vmem:[#allocation7 + $0x2064] ss:$8 sps:$4 sm:$0xff]  }
 0x7c9   : > { %8272 = vmatprep.subr.bf16.mxu1 %v14887_v56  ;;  %v14965_v56 = vld [vmem:[#allocation7 + $0x1b54] ss:$8 sps:$4 sm:$0xff]  }
 0x7cb   : > { %10273 = vmatpush1.bf16.msra.mxu0 %v15086_v53  ;;  %v15164_v53 = vld [vmem:[#allocation7 + $0x2060] ss:$8 sps:$4 sm:$0xff]  }
 0x7cc   : > { %8273 = vmatpush1.bf16.msra.mxu1 %v14885_v25  ;;  %10274 = vmatprep.subr.bf16.mxu0 %v15094_v38  ;;  %v14963_v25 = vld [vmem:[#allocation7 + $0x1b50] ss:$8 sps:$4 sm:$0xff]   ;;  %v15172_v38 = vld [vmem:[#allocation7 + $0x2074] ss:$8 sps:$4 sm:$0xff]  }
 0x7cd   : > { %8274 = vmatprep.subr.bf16.mxu1 %v14893_v46  ;;  %v14971_v46 = vld [vmem:[#allocation7 + $0x1b64] ss:$8 sps:$4 sm:$0xff]  }
 0x7cf   : > { %10275 = vmatpush1.bf16.msra.mxu0 %v15092_v39  ;;  %v15170_v39 = vld [vmem:[#allocation7 + $0x2070] ss:$8 sps:$4 sm:$0xff]  }
 0x7d0   : > { %8275 = vmatpush1.bf16.msra.mxu1 %v14891_v9  ;;  %10276 = vmatprep.subr.bf16.mxu0 %v15100_v51  ;;  %v14969_v9 = vld [vmem:[#allocation7 + $0x1b60] ss:$8 sps:$4 sm:$0xff]   ;;  %v15178_v51 = vld [vmem:[#allocation7 + $0x2084] ss:$8 sps:$4 sm:$0xff]  }
 0x7d1   : > { %8276 = vmatprep.subr.bf16.mxu1 %v14899_v29  ;;  %v14977_v29 = vld [vmem:[#allocation7 + $0x1b74] ss:$8 sps:$4 sm:$0xff]  }
 0x7d3   : > { %10277 = vmatpush1.bf16.msra.mxu0 %v15098_v44  ;;  %v15176_v44 = vld [vmem:[#allocation7 + $0x2080] ss:$8 sps:$4 sm:$0xff]  }
 0x7d4   : > { %8277 = vmatpush1.bf16.msra.mxu1 %v14897_v23  ;;  %10278 = vmatprep.subr.bf16.mxu0 %v15106_v47  ;;  %v14975_v23 = vld [vmem:[#allocation7 + $0x1b70] ss:$8 sps:$4 sm:$0xff]   ;;  %v15184_v47 = vld [vmem:[#allocation7 + $0x2094] ss:$8 sps:$4 sm:$0xff]  }
 0x7d5   : > { %8278 = vmatprep.subr.bf16.mxu1 %v14905_v33  ;;  %v14983_v33 = vld [vmem:[#allocation7 + $0x1b84] ss:$8 sps:$4 sm:$0xff]  }
 0x7d7   : > { %10279 = vmatpush1.bf16.msra.mxu0 %v15104_v41  ;;  %v15182_v41 = vld [vmem:[#allocation7 + $0x2090] ss:$8 sps:$4 sm:$0xff]  }
 0x7d8   : > { %8279 = vmatpush1.bf16.msra.mxu1 %v14903_v19  ;;  %10280 = vmatprep.subr.bf16.mxu0 %v15112_v35  ;;  %v14981_v19 = vld [vmem:[#allocation7 + $0x1b80] ss:$8 sps:$4 sm:$0xff]   ;;  %v15190_v35 = vld [vmem:[#allocation7 + $0x20a4] ss:$8 sps:$4 sm:$0xff]  }
 0x7d9   : > { %8280 = vmatprep.subr.bf16.mxu1 %v14911_v43  ;;  %v14989_v43 = vld [vmem:[#allocation7 + $0x1b94] ss:$8 sps:$4 sm:$0xff]  }
 0x7db   : > { %10281 = vmatpush1.bf16.msra.mxu0 %v15110_v62  ;;  %v15188_v62 = vld [vmem:[#allocation7 + $0x20a0] ss:$8 sps:$4 sm:$0xff]  }
 0x7dc   : > { %8281 = vmatpush1.bf16.msra.mxu1 %v14909_v34  ;;  %10282 = vmatprep.subr.bf16.mxu0 %v15118_v45  ;;  %v14987_v34 = vld [vmem:[#allocation7 + $0x1b90] ss:$8 sps:$4 sm:$0xff]   ;;  %v15196_v45 = vld [vmem:[#allocation7 + $0x20b4] ss:$8 sps:$4 sm:$0xff]  }
 0x7dd   : > { %8282 = vmatprep.subr.bf16.mxu1 %v14917_v31  ;;  %v14995_v31 = vld [vmem:[#allocation7 + $0x1ba4] ss:$8 sps:$4 sm:$0xff]  }
 0x7df   : > { %10283 = vmatpush1.bf16.msra.mxu0 %v15116_v49  ;;  %v15194_v49 = vld [vmem:[#allocation7 + $0x20b0] ss:$8 sps:$4 sm:$0xff]  }
 0x7e0   : > { %8283 = vmatpush1.bf16.msra.mxu1 %v14915_v58  ;;  %10284 = vmatprep.subr.bf16.mxu0 %v15124_v50  ;;  %v14993_v58 = vld [vmem:[#allocation7 + $0x1ba0] ss:$8 sps:$4 sm:$0xff]   ;;  %v15202_v50 = vld [vmem:[#allocation7 + $0x20c4] ss:$8 sps:$4 sm:$0xff]  }
 0x7e1   : > { %8284 = vmatprep.subr.bf16.mxu1 %v14923_v59  ;;  %v15001_v59 = vld [vmem:[#allocation7 + $0x1bb4] ss:$8 sps:$4 sm:$0xff]  }
 0x7e3   : > { %10285 = vmatpush1.bf16.msra.mxu0 %v15122_v57  ;;  %v15200_v57 = vld [vmem:[#allocation7 + $0x20c0] ss:$8 sps:$4 sm:$0xff]  }
 0x7e4   : > { %8285 = vmatpush1.bf16.msra.mxu1 %v14921_v36  ;;  %10297 = vmatprep.subr.bf16.mxu0 %v15130_v1  ;;  %v14999_v36 = vld [vmem:[#allocation7 + $0x1bb0] ss:$8 sps:$4 sm:$0xff]   ;;  %v15208_v1 = vld [vmem:[#allocation7 + $0x20d4] ss:$8 sps:$4 sm:$0xff]  }
 0x7e5   : > { %8286 = vmatprep.subr.bf16.mxu1 %v14929_v22  ;;  %v15007_v22 = vld [vmem:[#allocation7 + $0x1bc4] ss:$8 sps:$4 sm:$0xff]  }
 0x7e6   : > { %10287 = vmatmul.mubr.bf16.vlgmr.msra.gmra.mrb[44].mxu0 %v16560_v42 }
 0x7e7   : > { %10298 = vmatpush1.bf16.msra.mxu0 %v15128_v4  ;;  %10329 = vmatprep.mubr.bf16.mxu0 %v16564_v17  ;;  %v15206_v4 = vld [vmem:[#allocation7 + $0x20d0] ss:$8 sps:$4 sm:$0xff]  }
 0x7e8   : > { %8287 = vmatpush1.bf16.msra.mxu1 %v14927_v0  ;;  %10299 = vmatprep.subr.bf16.mxu0 %v15136_v7  ;;  %v15005_v0 = vld [vmem:[#allocation7 + $0x1bc0] ss:$8 sps:$4 sm:$0xff]   ;;  %v15214_v7 = vld [vmem:[#allocation7 + $0x20e4] ss:$8 sps:$4 sm:$0xff]  }
 0x7e9   : > { %9493 = vmatprep.subr.bf16.mxu1 %v14935_v40  ;;  %v15013_v40 = vld [vmem:[#allocation7 + $0x1bd4] ss:$8 sps:$4 sm:$0xff]  }
 0x7eb   : > { %8289 = vmatmul.mubr.bf16.vlgmr.msra.gmra.mrb[28].mxu1 %v16573_v61  ;;  %10300 = vmatpush1.bf16.msra.mxu0 %v15134_v8  ;;  %v15212_v8 = vld [vmem:[#allocation7 + $0x20e0] ss:$8 sps:$4 sm:$0xff]  }
 0x7ec   : > { %9494 = vmatpush1.bf16.msra.mxu1 %v14933_v54  ;;  %9525 = vmatprep.mubr.bf16.mxu1 %v16547_v28  ;;  %v14951_v28 = vld [vmem:[#allocation7 + $0x1b30] ss:$8 sps:$4 sm:$0xff]  }
 0x7ed   : > { %9495 = vmatprep.subr.bf16.mxu1 %v14941_v60  ;;  %10301 = vmatprep.subr.bf16.mxu0 %v15142_v52  ;;  %v15011_v54 = vld [vmem:[#allocation7 + $0x1bd0] ss:$8 sps:$4 sm:$0xff]   ;;  %v15019_v60 = vld [vmem:[#allocation7 + $0x1be4] ss:$8 sps:$4 sm:$0xff]   ;;  %v15220_v52 = vld [vmem:[#allocation7 + $0x20f4] ss:$8 sps:$4 sm:$0xff]  }
 0x7ef   : > { %10302 = vmatpush1.bf16.msra.mxu0 %v15140_v10  ;;  %v15218_v10 = vld [vmem:[#allocation7 + $0x20f0] ss:$8 sps:$4 sm:$0xff]  }
 0x7f0   : > { %9496 = vmatpush1.bf16.msra.mxu1 %v14939_v3  ;;  %10303 = vmatprep.subr.bf16.mxu0 %v15148_v13  ;;  %v15017_v3 = vld [vmem:[#allocation7 + $0x1be0] ss:$8 sps:$4 sm:$0xff]   ;;  %v15035_v13 = vld [vmem:[#allocation7 + $0x1c10] ss:$8 sps:$4 sm:$0xff]  }
 0x7f1   : > { %9497 = vmatprep.subr.bf16.mxu1 %v14947_v5  ;;  %v15025_v5 = vld [vmem:[#allocation7 + $0x1bf4] ss:$8 sps:$4 sm:$0xff]  }
 0x7f3   : > { %10304 = vmatpush1.bf16.msra.mxu0 %v15146_v21  ;;  %v15041_v21 = vld [vmem:[#allocation7 + $0x1c20] ss:$8 sps:$4 sm:$0xff]  }
 0x7f4   : > { %9498 = vmatpush1.bf16.msra.mxu1 %v14945_v55  ;;  %10305 = vmatprep.subr.bf16.mxu0 %v15154_v24  ;;  %v15023_v55 = vld [vmem:[#allocation7 + $0x1bf0] ss:$8 sps:$4 sm:$0xff]  }
 0x7f5   : > { %9499 = vmatprep.subr.bf16.mxu1 %v14953_v48  ;;  %v15031_v48 = vld [vmem:[#allocation7 + $0x1c04] ss:$8 sps:$4 sm:$0xff]   ;;  %v15047_v24 = vld [vmem:[#allocation7 + $0x1c30] ss:$8 sps:$4 sm:$0xff]  }
 0x7f7   : > { %10306 = vmatpush1.bf16.msra.mxu0 %v15152_v26  ;;  %v15053_v26 = vld [vmem:[#allocation7 + $0x1c40] ss:$8 sps:$4 sm:$0xff]  }
 0x7f8   : > { %9500 = vmatpush1.bf16.msra.mxu1 %v14951_v28  ;;  %10307 = vmatprep.subr.bf16.mxu0 %v15160_v27  ;;  %v15029_v28 = vld [vmem:[#allocation7 + $0x1c00] ss:$8 sps:$4 sm:$0xff]   ;;  %v15059_v27 = vld [vmem:[#allocation7 + $0x1c50] ss:$8 sps:$4 sm:$0xff]  }
 0x7f9   : > { %9501 = vmatprep.subr.bf16.mxu1 %v14959_v12  ;;  %v15037_v12 = vld [vmem:[#allocation7 + $0x1c14] ss:$8 sps:$4 sm:$0xff]  }
 0x7fb   : > { %10308 = vmatpush1.bf16.msra.mxu0 %v15158_v18  ;;  %v15073_v18 = vld [vmem:[#allocation7 + $0x1c74] ss:$8 sps:$4 sm:$0xff]  }
 0x7fc   : > { %9502 = vmatpush1.bf16.msra.mxu1 %v14957_v15  ;;  %10309 = vmatprep.subr.bf16.mxu0 %v15166_v32  ;;  %v15043_v15 = vld [vmem:[#allocation7 + $0x1c24] ss:$8 sps:$4 sm:$0xff]  }
 0x7fd   : > { %9503 = vmatprep.subr.bf16.mxu1 %v14965_v56  ;;  %v15049_v56 = vld [vmem:[#allocation7 + $0x1c34] ss:$8 sps:$4 sm:$0xff]  }
 0x7ff   : > { %10310 = vmatpush1.bf16.msra.mxu0 %v15164_v53  ;;  %v15071_v53 = vld [vmem:[#allocation7 + $0x1c70] ss:$8 sps:$4 sm:$0xff]  }
 0x800   : > { %9504 = vmatpush1.bf16.msra.mxu1 %v14963_v25  ;;  %10311 = vmatprep.subr.bf16.mxu0 %v15172_v38  ;;  %v15055_v25 = vld [vmem:[#allocation7 + $0x1c44] ss:$8 sps:$4 sm:$0xff]  }
 0x801   : > { %9505 = vmatprep.subr.bf16.mxu1 %v14971_v46  ;;  %v15061_v46 = vld [vmem:[#allocation7 + $0x1c54] ss:$8 sps:$4 sm:$0xff]   ;;  %v15079_v38 = vld [vmem:[#allocation7 + $0x1c84] ss:$8 sps:$4 sm:$0xff]  }
 0x803   : > { %10312 = vmatpush1.bf16.msra.mxu0 %v15170_v39  ;;  %v15085_v39 = vld [vmem:[#allocation7 + $0x1c94] ss:$8 sps:$4 sm:$0xff]  }
 0x804   : > { %9506 = vmatpush1.bf16.msra.mxu1 %v14969_v9  ;;  %10313 = vmatprep.subr.bf16.mxu0 %v15178_v51  ;;  %v15065_v9 = vld [vmem:[#allocation7 + $0x1c60] ss:$8 sps:$4 sm:$0xff]   ;;  %v15091_v51 = vld [vmem:[#allocation7 + $0x1ca4] ss:$8 sps:$4 sm:$0xff]  }
 0x805   : > { %9507 = vmatprep.subr.bf16.mxu1 %v14977_v29 }
 0x807   : > { %10314 = vmatpush1.bf16.msra.mxu0 %v15176_v44  ;;  %v15097_v44 = vld [vmem:[#allocation7 + $0x1cb4] ss:$8 sps:$4 sm:$0xff]  }
 0x808   : > { %9508 = vmatpush1.bf16.msra.mxu1 %v14975_v23  ;;  %10315 = vmatprep.subr.bf16.mxu0 %v15184_v47  ;;  %v15103_v47 = vld [vmem:[#allocation7 + $0x1cc4] ss:$8 sps:$4 sm:$0xff]  }
 0x809   : > { %9509 = vmatprep.subr.bf16.mxu1 %v14983_v33 }
 0x80b   : > { %10316 = vmatpush1.bf16.msra.mxu0 %v15182_v41  ;;  %v15109_v41 = vld [vmem:[#allocation7 + $0x1cd4] ss:$8 sps:$4 sm:$0xff]  }
 0x80c   : > { %9510 = vmatpush1.bf16.msra.mxu1 %v14981_v19  ;;  %10317 = vmatprep.subr.bf16.mxu0 %v15190_v35  ;;  %v15077_v19 = vld [vmem:[#allocation7 + $0x1c80] ss:$8 sps:$4 sm:$0xff]   ;;  %v15115_v35 = vld [vmem:[#allocation7 + $0x1ce4] ss:$8 sps:$4 sm:$0xff]  }
 0x80d   : > { %9511 = vmatprep.subr.bf16.mxu1 %v14989_v43  ;;  %v15083_v43 = vld [vmem:[#allocation7 + $0x1c90] ss:$8 sps:$4 sm:$0xff]  }
 0x80f   : > { %10318 = vmatpush1.bf16.msra.mxu0 %v15188_v62  ;;  %v15121_v62 = vld [vmem:[#allocation7 + $0x1cf4] ss:$8 sps:$4 sm:$0xff]  }
 0x810   : > { %9512 = vmatpush1.bf16.msra.mxu1 %v14987_v34  ;;  %10319 = vmatprep.subr.bf16.mxu0 %v15196_v45  ;;  %v15089_v34 = vld [vmem:[#allocation7 + $0x1ca0] ss:$8 sps:$4 sm:$0xff]   ;;  %v15127_v45 = vld [vmem:[#allocation7 + $0x1d04] ss:$8 sps:$4 sm:$0xff]  }
 0x811   : > { %9513 = vmatprep.subr.bf16.mxu1 %v14995_v31  ;;  %v15095_v31 = vld [vmem:[#allocation7 + $0x1cb0] ss:$8 sps:$4 sm:$0xff]  }
 0x813   : > { %10320 = vmatpush1.bf16.msra.mxu0 %v15194_v49  ;;  %v15133_v49 = vld [vmem:[#allocation7 + $0x1d14] ss:$8 sps:$4 sm:$0xff]  }
 0x814   : > { %9514 = vmatpush1.bf16.msra.mxu1 %v14993_v58  ;;  %10321 = vmatprep.subr.bf16.mxu0 %v15202_v50  ;;  %v15101_v58 = vld [vmem:[#allocation7 + $0x1cc0] ss:$8 sps:$4 sm:$0xff]   ;;  %v15139_v50 = vld [vmem:[#allocation7 + $0x1d24] ss:$8 sps:$4 sm:$0xff]  }
 0x815   : > { %9515 = vmatprep.subr.bf16.mxu1 %v15001_v59  ;;  %v15107_v59 = vld [vmem:[#allocation7 + $0x1cd0] ss:$8 sps:$4 sm:$0xff]  }
 0x817   : > { %10322 = vmatpush1.bf16.msra.mxu0 %v15200_v57  ;;  %v15145_v57 = vld [vmem:[#allocation7 + $0x1d34] ss:$8 sps:$4 sm:$0xff]  }
 0x818   : > { %9516 = vmatpush1.bf16.msra.mxu1 %v14999_v36  ;;  %10323 = vmatprep.subr.bf16.mxu0 %v15208_v1  ;;  %v15113_v36 = vld [vmem:[#allocation7 + $0x1ce0] ss:$8 sps:$4 sm:$0xff]   ;;  %v15151_v1 = vld [vmem:[#allocation7 + $0x1d44] ss:$8 sps:$4 sm:$0xff]  }
 0x819   : > { %9517 = vmatprep.subr.bf16.mxu1 %v15007_v22  ;;  %v15119_v22 = vld [vmem:[#allocation7 + $0x1cf0] ss:$8 sps:$4 sm:$0xff]  }
 0x81b   : > { %10324 = vmatpush1.bf16.msra.mxu0 %v15206_v4  ;;  %v15157_v4 = vld [vmem:[#allocation7 + $0x1d54] ss:$8 sps:$4 sm:$0xff]  }
 0x81c   : > { %9518 = vmatpush1.bf16.msra.mxu1 %v15005_v0  ;;  %10325 = vmatprep.subr.bf16.mxu0 %v15214_v7  ;;  %v15125_v0 = vld [vmem:[#allocation7 + $0x1d00] ss:$8 sps:$4 sm:$0xff]   ;;  %v15169_v7 = vld [vmem:[#allocation7 + $0x1d74] ss:$8 sps:$4 sm:$0xff]  }
 0x81d   : > { %9519 = vmatprep.subr.bf16.mxu1 %v15013_v40  ;;  %v15131_v40 = vld [vmem:[#allocation7 + $0x1d10] ss:$8 sps:$4 sm:$0xff]  }
 0x81f   : > { %10326 = vmatpush1.bf16.msra.mxu0 %v15212_v8  ;;  %v15175_v8 = vld [vmem:[#allocation7 + $0x1d84] ss:$8 sps:$4 sm:$0xff]  }
 0x820   : > { %9520 = vmatpush1.bf16.msra.mxu1 %v15011_v54  ;;  %10327 = vmatprep.subr.bf16.mxu0 %v15220_v52  ;;  %v15137_v54 = vld [vmem:[#allocation7 + $0x1d20] ss:$8 sps:$4 sm:$0xff]   ;;  %v15181_v52 = vld [vmem:[#allocation7 + $0x1d94] ss:$8 sps:$4 sm:$0xff]  }
 0x821   : > { %9521 = vmatprep.subr.bf16.mxu1 %v15019_v60  ;;  %v15143_v60 = vld [vmem:[#allocation7 + $0x1d30] ss:$8 sps:$4 sm:$0xff]  }
 0x823   : > { %10328 = vmatpush1.bf16.msra.mxu0 %v15218_v10  ;;  %v15187_v10 = vld [vmem:[#allocation7 + $0x1da4] ss:$8 sps:$4 sm:$0xff]  }
 0x824   : > { %9522 = vmatpush1.bf16.msra.mxu1 %v15017_v3  ;;  %v15149_v3 = vld [vmem:[#allocation7 + $0x1d40] ss:$8 sps:$4 sm:$0xff]  }
 0x825   : > { %9523 = vmatprep.subr.bf16.mxu1 %v15025_v5  ;;  %v15163_v5 = vld [vmem:[#allocation7 + $0x1d64] ss:$8 sps:$4 sm:$0xff]  }
 0x826   : > { %10330 = vmatmul.mubr.bf16.vlgmr.msra.gmra.mrb[44].mxu0 %v16573_v61 }
 0x828   : > { %9524 = vmatpush1.bf16.msra.mxu1 %v15023_v55  ;;  %v15167_v55 = vld [vmem:[#allocation7 + $0x1d70] ss:$8 sps:$4 sm:$0xff]  }
 0x829   : > { %9536 = vmatprep.subr.bf16.mxu1 %v15031_v48  ;;  %v15173_v48 = vld [vmem:[#allocation7 + $0x1d80] ss:$8 sps:$4 sm:$0xff]  }
 0x82b   : > { %9526 = vmatmul.mubr.bf16.vlgmr.msra.gmra.mrb[32].mxu1 %v16568_v63 }
 0x82c   : > { %9537 = vmatpush1.bf16.msra.mxu1 %v15029_v28  ;;  %9568 = vmatprep.mubr.bf16.mxu1 %v16554_v20  ;;  %v15067_v20 = vld [vmem:[#allocation7 + $0x1c64] ss:$8 sps:$4 sm:$0xff]   ;;  %v15179_v28 = vld [vmem:[#allocation7 + $0x1d90] ss:$8 sps:$4 sm:$0xff]  }
 0x82d   : > { %9538 = vmatprep.subr.bf16.mxu1 %v15037_v12  ;;  %v15185_v12 = vld [vmem:[#allocation7 + $0x1da0] ss:$8 sps:$4 sm:$0xff]  }
 0x830   : > { %9539 = vmatpush1.bf16.msra.mxu1 %v15035_v13  ;;  %v15193_v13 = vld [vmem:[#allocation7 + $0x1db4] ss:$8 sps:$4 sm:$0xff]  }
 0x831   : > { %9540 = vmatprep.subr.bf16.mxu1 %v15043_v15  ;;  %v15191_v15 = vld [vmem:[#allocation7 + $0x1db0] ss:$8 sps:$4 sm:$0xff]  }
 0x834   : > { %9541 = vmatpush1.bf16.msra.mxu1 %v15041_v21  ;;  %v15199_v21 = vld [vmem:[#allocation7 + $0x1dc4] ss:$8 sps:$4 sm:$0xff]  }
 0x835   : > { %9542 = vmatprep.subr.bf16.mxu1 %v15049_v56  ;;  %v15197_v56 = vld [vmem:[#allocation7 + $0x1dc0] ss:$8 sps:$4 sm:$0xff]  }
 0x838   : > { %9543 = vmatpush1.bf16.msra.mxu1 %v15047_v24  ;;  %v15205_v24 = vld [vmem:[#allocation7 + $0x1dd4] ss:$8 sps:$4 sm:$0xff]  }
 0x839   : > { %9544 = vmatprep.subr.bf16.mxu1 %v15055_v25  ;;  %v16582_v29 = vpop.f32.mrb[40].mxu0  ;;  %v15203_v25 = vld [vmem:[#allocation7 + $0x1dd0] ss:$8 sps:$4 sm:$0xff]  }
 0x83a   : > { %v16584_v32 = vpop.f32.mrb[41].mxu0 }
 0x83b   : > { %v16586_v23 = vpop.f32.mrb[42].mxu0 }
 0x83c   : > { %9545 = vmatpush1.bf16.msra.mxu1 %v15053_v26  ;;  %v16588_v33 = vpop.f32.mrb[43].mxu0  ;;  %v15211_v26 = vld [vmem:[#allocation7 + $0x1de4] ss:$8 sps:$4 sm:$0xff]  }
 0x83d   : > { %9546 = vmatprep.subr.bf16.mxu1 %v15061_v46  ;;  %v15209_v46 = vld [vmem:[#allocation7 + $0x1de0] ss:$8 sps:$4 sm:$0xff]  }
 0x840   : > { %9547 = vmatpush1.bf16.msra.mxu1 %v15059_v27  ;;  %v15217_v27 = vld [vmem:[#allocation7 + $0x1df4] ss:$8 sps:$4 sm:$0xff]  }
 0x841   : > { %9548 = vmatprep.subr.bf16.mxu1 %v15067_v20  ;;  %v15215_v20 = vld [vmem:[#allocation7 + $0x1df0] ss:$8 sps:$4 sm:$0xff]  }
 0x844   : > { %9549 = vmatpush1.bf16.msra.mxu1 %v15065_v9  ;;  %v15223_v9 = vld [vmem:[#allocation7 + $0x2104] ss:$8 sps:$4 sm:$0xff]  }
 0x845   : > { %9550 = vmatprep.subr.bf16.mxu1 %v15073_v18  ;;  %v15221_v18 = vld [vmem:[#allocation7 + $0x2100] ss:$8 sps:$4 sm:$0xff]  }
 0x848   : > { %9551 = vmatpush1.bf16.msra.mxu1 %v15071_v53  ;;  %v15226_v53 = vld [vmem:[#allocation7 + $0x2114] ss:$8 sps:$4 sm:$0xff]  }
 0x849   : > { %9552 = vmatprep.subr.bf16.mxu1 %v15079_v38  ;;  %v15224_v38 = vld [vmem:[#allocation7 + $0x2110] ss:$8 sps:$4 sm:$0xff]  }
 0x84c   : > { %9553 = vmatpush1.bf16.msra.mxu1 %v15077_v19  ;;  %v15401_v19 = vld [vmem:[%s16202_s21 + $0x4] ss:$24 sps:$4 sm:$0xff]  }
 0x84d   : > { %9554 = vmatprep.subr.bf16.mxu1 %v15085_v39  ;;  %v15229_v39 = vld [vmem:[#allocation7 + $0x2124] ss:$8 sps:$4 sm:$0xff]  }
 0x850   : > { %9555 = vmatpush1.bf16.msra.mxu1 %v15083_v43  ;;  %v15227_v43 = vld [vmem:[#allocation7 + $0x2120] ss:$8 sps:$4 sm:$0xff]  }
 0x851   : > { %9556 = vmatprep.subr.bf16.mxu1 %v15091_v51  ;;  %v15232_v51 = vld [vmem:[#allocation7 + $0x2134] ss:$8 sps:$4 sm:$0xff]  }
 0x854   : > { %9557 = vmatpush1.bf16.msra.mxu1 %v15089_v34  ;;  %v15230_v34 = vld [vmem:[#allocation7 + $0x2130] ss:$8 sps:$4 sm:$0xff]  }
 0x855   : > { %9558 = vmatprep.subr.bf16.mxu1 %v15097_v44  ;;  %v15235_v44 = vld [vmem:[#allocation7 + $0x2144] ss:$8 sps:$4 sm:$0xff]  }
 0x858   : > { %9559 = vmatpush1.bf16.msra.mxu1 %v15095_v31  ;;  %v15233_v31 = vld [vmem:[#allocation7 + $0x2140] ss:$8 sps:$4 sm:$0xff]  }
 0x859   : > { %9560 = vmatprep.subr.bf16.mxu1 %v15103_v47  ;;  %v15238_v47 = vld [vmem:[#allocation7 + $0x2154] ss:$8 sps:$4 sm:$0xff]  }
 0x85c   : > { %9561 = vmatpush1.bf16.msra.mxu1 %v15101_v58  ;;  %v15236_v58 = vld [vmem:[#allocation7 + $0x2150] ss:$8 sps:$4 sm:$0xff]  }
 0x85d   : > { %9562 = vmatprep.subr.bf16.mxu1 %v15109_v41  ;;  %v15241_v41 = vld [vmem:[#allocation7 + $0x2164] ss:$8 sps:$4 sm:$0xff]  }
 0x860   : > { %9563 = vmatpush1.bf16.msra.mxu1 %v15107_v59 }
 0x861   : > { %9564 = vmatprep.subr.bf16.mxu1 %v15115_v35 }
 0x864   : > { %9565 = vmatpush1.bf16.msra.mxu1 %v15113_v36 }
 0x865   : > { %9566 = vmatprep.subr.bf16.mxu1 %v15121_v62  ;;  %v15239_v62 = vld [vmem:[#allocation7 + $0x2160] ss:$8 sps:$4 sm:$0xff]  }
 0x868   : > { %9567 = vmatpush1.bf16.msra.mxu1 %v15119_v22 }
 0x869   : > { %9579 = vmatprep.subr.bf16.mxu1 %v15127_v45 }
 0x86b   : > { %9569 = vmatmul.mubr.bf16.vlgmr.msra.gmra.mrb[32].mxu1 %v16560_v42  ;;  %v15155_v42 = vld [vmem:[#allocation7 + $0x1d50] ss:$8 sps:$4 sm:$0xff]  }
 0x86c   : > { %9580 = vmatpush1.bf16.msra.mxu1 %v15125_v0  ;;  %9611 = vmatprep.mubr.bf16.mxu1 %v16564_v17  ;;  %v15161_v17 = vld [vmem:[#allocation7 + $0x1d60] ss:$8 sps:$4 sm:$0xff]  }
 0x86d   : > { %9581 = vmatprep.subr.bf16.mxu1 %v15133_v49  ;;  %v15244_v49 = vld [vmem:[#allocation7 + $0x2174] ss:$8 sps:$4 sm:$0xff]  }
 0x870   : > { %9582 = vmatpush1.bf16.msra.mxu1 %v15131_v40 }
 0x871   : > { %9583 = vmatprep.subr.bf16.mxu1 %v15139_v50 }
 0x874   : > { %9584 = vmatpush1.bf16.msra.mxu1 %v15137_v54 }
 0x875   : > { %9585 = vmatprep.subr.bf16.mxu1 %v15145_v57 }
 0x878   : > { %9586 = vmatpush1.bf16.msra.mxu1 %v15143_v60 }
 0x879   : > { %9587 = vmatprep.subr.bf16.mxu1 %v15151_v1 }
 0x87c   : > { %9588 = vmatpush1.bf16.msra.mxu1 %v15149_v3 }
 0x87d   : > { %9589 = vmatprep.subr.bf16.mxu1 %v15157_v4 }
 0x880   : > { %9590 = vmatpush1.bf16.msra.mxu1 %v15155_v42  ;;  %v15242_v42 = vld [vmem:[#allocation7 + $0x2170] ss:$8 sps:$4 sm:$0xff]  }
 0x881   : > { %9591 = vmatprep.subr.bf16.mxu1 %v15163_v5 }
 0x884   : > { %9592 = vmatpush1.bf16.msra.mxu1 %v15161_v17 }
 0x885   : > { %9593 = vmatprep.subr.bf16.mxu1 %v15169_v7  ;;  %v15245_v7 = vld [vmem:[#allocation7 + $0x2180] ss:$8 sps:$4 sm:$0xff]  }
 0x888   : > { %9594 = vmatpush1.bf16.msra.mxu1 %v15167_v55  ;;  %v15250_v55 = vld [vmem:[#allocation7 + $0x2194] ss:$8 sps:$4 sm:$0xff]  }
 0x889   : > { %9595 = vmatprep.subr.bf16.mxu1 %v15175_v8  ;;  %v15253_v8 = vld [vmem:[#allocation7 + $0x21a4] ss:$8 sps:$4 sm:$0xff]  }
 0x88c   : > { %9596 = vmatpush1.bf16.msra.mxu1 %v15173_v48  ;;  %v15251_v48 = vld [vmem:[#allocation7 + $0x21a0] ss:$8 sps:$4 sm:$0xff]  }
 0x88d   : > { %9597 = vmatprep.subr.bf16.mxu1 %v15181_v52  ;;  %v15256_v52 = vld [vmem:[#allocation7 + $0x21b4] ss:$8 sps:$4 sm:$0xff]  }
 0x890   : > { %9598 = vmatpush1.bf16.msra.mxu1 %v15179_v28  ;;  %v15259_v28 = vld [vmem:[#allocation7 + $0x21c4] ss:$8 sps:$4 sm:$0xff]  }
 0x891   : > { %9599 = vmatprep.subr.bf16.mxu1 %v15187_v10  ;;  %v15262_v10 = vld [vmem:[#allocation7 + $0x21d4] ss:$8 sps:$4 sm:$0xff]  }
 0x894   : > { %9600 = vmatpush1.bf16.msra.mxu1 %v15185_v12  ;;  %v15260_v12 = vld [vmem:[#allocation7 + $0x21d0] ss:$8 sps:$4 sm:$0xff]  }
 0x895   : > { %9601 = vmatprep.subr.bf16.mxu1 %v15193_v13  ;;  %v15265_v13 = vld [vmem:[#allocation7 + $0x21e4] ss:$8 sps:$4 sm:$0xff]  }
 0x898   : > { %9602 = vmatpush1.bf16.msra.mxu1 %v15191_v15  ;;  %v15263_v15 = vld [vmem:[#allocation7 + $0x21e0] ss:$8 sps:$4 sm:$0xff]  }
 0x899   : > { %9603 = vmatprep.subr.bf16.mxu1 %v15199_v21  ;;  %v15268_v21 = vld [vmem:[#allocation7 + $0x21f4] ss:$8 sps:$4 sm:$0xff]  }
 0x89c   : > { %9604 = vmatpush1.bf16.msra.mxu1 %v15197_v56  ;;  %v15266_v56 = vld [vmem:[#allocation7 + $0x21f0] ss:$8 sps:$4 sm:$0xff]  }
 0x89d   : > { %9605 = vmatprep.subr.bf16.mxu1 %v15205_v24  ;;  %v15271_v24 = vld [vmem:[#allocation7 + $0x2204] ss:$8 sps:$4 sm:$0xff]  }
 0x8a0   : > { %9606 = vmatpush1.bf16.msra.mxu1 %v15203_v25  ;;  %v15269_v25 = vld [vmem:[#allocation7 + $0x2200] ss:$8 sps:$4 sm:$0xff]  }
 0x8a1   : > { %9607 = vmatprep.subr.bf16.mxu1 %v15211_v26  ;;  %v15274_v26 = vld [vmem:[#allocation7 + $0x2214] ss:$8 sps:$4 sm:$0xff]  }
 0x8a4   : > { %9608 = vmatpush1.bf16.msra.mxu1 %v15209_v46  ;;  %v15272_v46 = vld [vmem:[#allocation7 + $0x2210] ss:$8 sps:$4 sm:$0xff]  }
 0x8a5   : > { %9609 = vmatprep.subr.bf16.mxu1 %v15217_v27  ;;  %v15402_v27 = vld [vmem:[%s16202_s21 + $0xc] ss:$24 sps:$4 sm:$0xff]  }
 0x8a8   : > { %9610 = vmatpush1.bf16.msra.mxu1 %v15215_v20  ;;  %v15277_v20 = vld [vmem:[#allocation7 + $0x2224] ss:$8 sps:$4 sm:$0xff]  }
 0x8a9   : > { %10929 = vmatprep.subr.bf16.mxu1 %v15223_v9  ;;  %v15275_v9 = vld [vmem:[#allocation7 + $0x2220] ss:$8 sps:$4 sm:$0xff]  }
 0x8ab   : > { %9612 = vmatmul.mubr.bf16.vlgmr.msra.gmra.mrb[32].mxu1 %v16573_v61 }
 0x8ac   : > { %10930 = vmatpush1.bf16.msra.mxu1 %v15221_v18  ;;  %10961 = vmatprep.mubr.bf16.mxu1 %v15401_v19  ;;  %v15280_v18 = vld [vmem:[#allocation7 + $0x2234] ss:$8 sps:$4 sm:$0xff]   ;;  %v15281_v19 = vld [vmem:[#allocation7 + $0x2240] ss:$8 sps:$4 sm:$0xff]  }
 0x8ad   : > { %10931 = vmatprep.subr.bf16.mxu1 %v15226_v53  ;;  %v15278_v53 = vld [vmem:[#allocation7 + $0x2230] ss:$8 sps:$4 sm:$0xff]  }
 0x8b0   : > { %10932 = vmatpush1.bf16.msra.mxu1 %v15224_v38  ;;  %v15283_v38 = vld [vmem:[#allocation7 + $0x2244] ss:$8 sps:$4 sm:$0xff]  }
 0x8b1   : > { %10933 = vmatprep.subr.bf16.mxu1 %v15229_v39  ;;  %v15286_v39 = vld [vmem:[#allocation7 + $0x2254] ss:$8 sps:$4 sm:$0xff]  }
 0x8b4   : > { %10934 = vmatpush1.bf16.msra.mxu1 %v15227_v43  ;;  %v15289_v43 = vld [vmem:[#allocation7 + $0x2264] ss:$8 sps:$4 sm:$0xff]  }
 0x8b5   : > { %10935 = vmatprep.subr.bf16.mxu1 %v15232_v51  ;;  %v15287_v51 = vld [vmem:[#allocation7 + $0x2260] ss:$8 sps:$4 sm:$0xff]  }
 0x8b8   : > { %10936 = vmatpush1.bf16.msra.mxu1 %v15230_v34  ;;  %v15292_v34 = vld [vmem:[#allocation7 + $0x2274] ss:$8 sps:$4 sm:$0xff]  }
 0x8b9   : > { %10937 = vmatprep.subr.bf16.mxu1 %v15235_v44 }
 0x8bc   : > { %10938 = vmatpush1.bf16.msra.mxu1 %v15233_v31 }
 0x8bd   : > { %10939 = vmatprep.subr.bf16.mxu1 %v15238_v47 }
 0x8be   : > { %v8290_v59 = vpop.f32.mrb[28].mxu1 }
 0x8bf   : > { %v8292_v35 = vpop.f32.mrb[29].mxu1  ;;  %v8299_v22 = vrot.slane %v8290_v59, 1 }
 0x8c0   : > { %v8294_v36 = vpop.f32.mrb[30].mxu1  ;;  %10940 = vmatpush1.bf16.msra.mxu1 %v15236_v58  ;;  %v8300_v40 = vrot.slane %v8292_v35, 1 }
 0x8c1   : > { %v8301_v45 = vrot.slane %v8294_v36, 1  ;;  %v8296_v0 = vpop.f32.mrb[31].mxu1  ;;  %10941 = vmatprep.subr.bf16.mxu1 %v15241_v41  ;;  %v15290_v41 = vld [vmem:[#allocation7 + $0x2270] ss:$8 sps:$4 sm:$0xff]  }
 0x8c2   : > { %v8302_v50 = vrot.slane %v8296_v0, 1 }
 0x8c3   : > { %v8303_v54 = vsel %vm1176_vm1, %v8299_v22, %v8301_v45  ;;  %v8305_v57 = vsel %vm1176_vm1, %v8301_v45, %v8299_v22 }
 0x8c4   : > { %v16599_v60 = vadd.f32 %v16582_v29, %v8303_v54  ;;  %v8304_v1 = vsel %vm1176_vm1, %v8300_v40, %v8302_v50  ;;  %v16604_v3 = vadd.f32 %v16586_v23, %v8305_v57  ;;  %v8306_v4 = vsel %vm1176_vm1, %v8302_v50, %v8300_v40  ;;  %10942 = vmatpush1.bf16.msra.mxu1 %v15239_v62  ;;  %v15247_v29 = vld [vmem:[#allocation7 + $0x2184] ss:$8 sps:$4 sm:$0xff]   ;;  %v15248_v23 = vld [vmem:[#allocation7 + $0x2190] ss:$8 sps:$4 sm:$0xff]   ;;  %v15293_v50 = vld [vmem:[#allocation7 + $0x2280] ss:$8 sps:$4 sm:$0xff]  }
 0x8c5   : > { %v16609_v5 = vadd.f32 %v16584_v32, %v8304_v1  ;;  %v16612_v17 = vadd.f32 %v16588_v33, %v8306_v4  ;;  %10943 = vmatprep.subr.bf16.mxu1 %v15244_v49  ;;  %v15254_v32 = vld [vmem:[#allocation7 + $0x21b0] ss:$8 sps:$4 sm:$0xff]   ;;  %v15257_v33 = vld [vmem:[#allocation7 + $0x21c0] ss:$8 sps:$4 sm:$0xff]   ;;  %v15295_v62 = vld [vmem:[#allocation7 + $0x2284] ss:$8 sps:$4 sm:$0xff]  }
 0x8c6   : > { %v15298_v54 = vld [vmem:[#allocation7 + $0x2294] ss:$8 sps:$4 sm:$0xff]   ;;  %v15296_v57 = vld [vmem:[#allocation7 + $0x2290] ss:$8 sps:$4 sm:$0xff]   ;;  %v15301_v1 = vld [vmem:[#allocation7 + $0x22a4] ss:$8 sps:$4 sm:$0xff]  }
 0x8c7   : > { %v15299_v4 = vld [vmem:[#allocation7 + $0x22a0] ss:$8 sps:$4 sm:$0xff]  }
 0x8c8   : > { %10944 = vmatpush1.bf16.msra.mxu1 %v15242_v42  ;;  %v15304_v42 = vld [vmem:[#allocation7 + $0x22b4] ss:$8 sps:$4 sm:$0xff]  }
 0x8c9   : > { %10945 = vmatprep.subr.bf16.mxu1 %v15247_v29  ;;  %v15302_v29 = vld [vmem:[#allocation7 + $0x22b0] ss:$8 sps:$4 sm:$0xff]  }
 0x8cc   : > { %10946 = vmatpush1.bf16.msra.mxu1 %v15245_v7  ;;  %v15307_v7 = vld [vmem:[#allocation7 + $0x22c4] ss:$8 sps:$4 sm:$0xff]  }
 0x8cd   : > { %10947 = vmatprep.subr.bf16.mxu1 %v15250_v55  ;;  %v15305_v55 = vld [vmem:[#allocation7 + $0x22c0] ss:$8 sps:$4 sm:$0xff]  }
 0x8d0   : > { %10948 = vmatpush1.bf16.msra.mxu1 %v15248_v23  ;;  %v15310_v23 = vld [vmem:[#allocation7 + $0x22d4] ss:$8 sps:$4 sm:$0xff]  }
 0x8d1   : > { %10949 = vmatprep.subr.bf16.mxu1 %v15253_v8  ;;  %v15308_v8 = vld [vmem:[#allocation7 + $0x22d0] ss:$8 sps:$4 sm:$0xff]  }
 0x8d4   : > { %10950 = vmatpush1.bf16.msra.mxu1 %v15251_v48  ;;  %v15313_v48 = vld [vmem:[#allocation7 + $0x22e4] ss:$8 sps:$4 sm:$0xff]  }
 0x8d5   : > { %10951 = vmatprep.subr.bf16.mxu1 %v15256_v52  ;;  %v15311_v52 = vld [vmem:[#allocation7 + $0x22e0] ss:$8 sps:$4 sm:$0xff]  }
 0x8d8   : > { %10952 = vmatpush1.bf16.msra.mxu1 %v15254_v32  ;;  %v15316_v32 = vld [vmem:[#allocation7 + $0x22f4] ss:$8 sps:$4 sm:$0xff]  }
 0x8d9   : > { %10953 = vmatprep.subr.bf16.mxu1 %v15259_v28  ;;  %v15314_v28 = vld [vmem:[#allocation7 + $0x22f0] ss:$8 sps:$4 sm:$0xff]  }
 0x8dc   : > { %10954 = vmatpush1.bf16.msra.mxu1 %v15257_v33  ;;  %v15319_v33 = vld [vmem:[#allocation7 + $0x2304] ss:$8 sps:$4 sm:$0xff]  }
 0x8dd   : > { %10955 = vmatprep.subr.bf16.mxu1 %v15262_v10  ;;  %v15317_v10 = vld [vmem:[#allocation7 + $0x2300] ss:$8 sps:$4 sm:$0xff]  }
 0x8e0   : > { %10956 = vmatpush1.bf16.msra.mxu1 %v15260_v12  ;;  %v15322_v12 = vld [vmem:[#allocation7 + $0x2314] ss:$8 sps:$4 sm:$0xff]  }
 0x8e1   : > { %10957 = vmatprep.subr.bf16.mxu1 %v15265_v13  ;;  %v15403_v13 = vld [vmem:[%s16202_s21 + $0x8] ss:$24 sps:$4 sm:$0xff]  }
 0x8e4   : > { %10958 = vmatpush1.bf16.msra.mxu1 %v15263_v15  ;;  %v15320_v15 = vld [vmem:[#allocation7 + $0x2310] ss:$8 sps:$4 sm:$0xff]  }
 0x8e5   : > { %10959 = vmatprep.subr.bf16.mxu1 %v15268_v21  ;;  %v15404_v21 = vld [vmem:[%s16202_s21 + $0x14] ss:$24 sps:$4 sm:$0xff]  }
 0x8e8   : > { %10960 = vmatpush1.bf16.msra.mxu1 %v15266_v56  ;;  %v15325_v56 = vld [vmem:[#allocation7 + $0x2324] ss:$8 sps:$4 sm:$0xff]  }
 0x8e9   : > { %10972 = vmatprep.subr.bf16.mxu1 %v15271_v24  ;;  %v15323_v24 = vld [vmem:[#allocation7 + $0x2320] ss:$8 sps:$4 sm:$0xff]  }
 0x8eb   : > { %10962 = vmatmul.mubr.bf16.vlgmr.msra.gmra.mrb[36].mxu1 %v16568_v63  ;;  %v15284_v63 = vld [vmem:[#allocation7 + $0x2250] ss:$8 sps:$4 sm:$0xff]  }
 0x8ec   : > { %10973 = vmatpush1.bf16.msra.mxu1 %v15269_v25  ;;  %11004 = vmatprep.mubr.bf16.mxu1 %v15402_v27  ;;  %v15328_v25 = vld [vmem:[#allocation7 + $0x2334] ss:$8 sps:$4 sm:$0xff]   ;;  %v15329_v27 = vld [vmem:[#allocation7 + $0x2340] ss:$8 sps:$4 sm:$0xff]  }
 0x8ed   : > { %10974 = vmatprep.subr.bf16.mxu1 %v15274_v26  ;;  %v15326_v26 = vld [vmem:[#allocation7 + $0x2330] ss:$8 sps:$4 sm:$0xff]  }
 0x8f0   : > { %10975 = vmatpush1.bf16.msra.mxu1 %v15272_v46  ;;  %v15331_v46 = vld [vmem:[#allocation7 + $0x2344] ss:$8 sps:$4 sm:$0xff]  }
 0x8f1   : > { %10976 = vmatprep.subr.bf16.mxu1 %v15277_v20  ;;  %v15334_v20 = vld [vmem:[#allocation7 + $0x2354] ss:$8 sps:$4 sm:$0xff]  }
 0x8f4   : > { %10977 = vmatpush1.bf16.msra.mxu1 %v15275_v9  ;;  %v15332_v9 = vld [vmem:[#allocation7 + $0x2350] ss:$8 sps:$4 sm:$0xff]  }
 0x8f5   : > { %10978 = vmatprep.subr.bf16.mxu1 %v15280_v18  ;;  %v15337_v18 = vld [vmem:[#allocation7 + $0x2364] ss:$8 sps:$4 sm:$0xff]  }
 0x8f8   : > { %10979 = vmatpush1.bf16.msra.mxu1 %v15278_v53  ;;  %v15335_v53 = vld [vmem:[#allocation7 + $0x2360] ss:$8 sps:$4 sm:$0xff]  }
 0x8f9   : > { %10980 = vmatprep.subr.bf16.mxu1 %v15283_v38  ;;  %v10331_v44 = vpop.f32.mrb[44].mxu0  ;;  %v15340_v38 = vld [vmem:[#allocation7 + $0x2374] ss:$8 sps:$4 sm:$0xff]  }
 0x8fa   : > { %v10333_v31 = vpop.f32.mrb[45].mxu0  ;;  %v10340_v47 = vrot.slane %v10331_v44, 3  ;;  %v15347_v44 = vld [vmem:[#allocation7 + $0x23a0] ss:$8 sps:$4 sm:$0xff]  }
 0x8fb   : > { %v10335_v58 = vpop.f32.mrb[46].mxu0  ;;  %v10341_v59 = vrot.slane %v10333_v31, 3  ;;  %v15352_v31 = vld [vmem:[#allocation7 + $0x23b4] ss:$8 sps:$4 sm:$0xff]  }
 0x8fc   : > { %10981 = vmatpush1.bf16.msra.mxu1 %v15281_v19  ;;  %v10342_v35 = vrot.slane %v10335_v58, 3  ;;  %v10337_v36 = vpop.f32.mrb[47].mxu0  ;;  %v15338_v19 = vld [vmem:[#allocation7 + $0x2370] ss:$8 sps:$4 sm:$0xff]   ;;  %v15355_v58 = vld [vmem:[#allocation7 + $0x23c4] ss:$8 sps:$4 sm:$0xff]  }
 0x8fd   : > { %10982 = vmatprep.subr.bf16.mxu1 %v15286_v39  ;;  %v10343_v22 = vrot.slane %v10337_v36, 3  ;;  %v15343_v39 = vld [vmem:[#allocation7 + $0x2384] ss:$8 sps:$4 sm:$0xff]  }
 0x8fe   : > { %v16618_v45 = vsel %vm7363_vm4, %v10340_v47, %v10342_v35  ;;  %v16622_v0 = vsel %vm7363_vm4, %v10342_v35, %v10340_v47  ;;  %v15350_v47 = vld [vmem:[#allocation7 + $0x23b0] ss:$8 sps:$4 sm:$0xff]   ;;  %v15361_v36 = vld [vmem:[#allocation7 + $0x23e4] ss:$8 sps:$4 sm:$0xff]  }
 0x8ff   : > { %v16626_v49 = vsel %vm7363_vm4, %v10341_v59, %v10343_v22  ;;  %v16630_v40 = vsel %vm7363_vm4, %v10343_v22, %v10341_v59  ;;  %v15358_v59 = vld [vmem:[#allocation7 + $0x23d4] ss:$8 sps:$4 sm:$0xff]   ;;  %v15356_v35 = vld [vmem:[#allocation7 + $0x23d0] ss:$8 sps:$4 sm:$0xff]  }
 0x900   : > { %10983 = vmatpush1.bf16.msra.mxu1 %v15284_v63  ;;  %v15341_v63 = vld [vmem:[#allocation7 + $0x2380] ss:$8 sps:$4 sm:$0xff]   ;;  %v15364_v22 = vld [vmem:[#allocation7 + $0x23f4] ss:$8 sps:$4 sm:$0xff]  }
 0x901   : > { %10984 = vmatprep.subr.bf16.mxu1 %v15289_v43  ;;  %v15346_v43 = vld [vmem:[#allocation7 + $0x2394] ss:$8 sps:$4 sm:$0xff]  }
 0x904   : > { %10985 = vmatpush1.bf16.msra.mxu1 %v15287_v51  ;;  %v15344_v51 = vld [vmem:[#allocation7 + $0x2390] ss:$8 sps:$4 sm:$0xff]  }
 0x905   : > { %10986 = vmatprep.subr.bf16.mxu1 %v15292_v34  ;;  %v15349_v34 = vld [vmem:[#allocation7 + $0x23a4] ss:$8 sps:$4 sm:$0xff]  }
 0x908   : > { %10987 = vmatpush1.bf16.msra.mxu1 %v15290_v41  ;;  %v15353_v41 = vld [vmem:[#allocation7 + $0x23c0] ss:$8 sps:$4 sm:$0xff]  }
 0x909   : > { %10988 = vmatprep.subr.bf16.mxu1 %v15295_v62  ;;  %v15359_v62 = vld [vmem:[#allocation7 + $0x23e0] ss:$8 sps:$4 sm:$0xff]  }
 0x90c   : > { %10989 = vmatpush1.bf16.msra.mxu1 %v15293_v50  ;;  %v15362_v50 = vld [vmem:[#allocation7 + $0x23f0] ss:$8 sps:$4 sm:$0xff]  }
 0x90d   : > { %10990 = vmatprep.subr.bf16.mxu1 %v15298_v54 }
 0x910   : > { %10991 = vmatpush1.bf16.msra.mxu1 %v15296_v57 }
 0x911   : > { %10992 = vmatprep.subr.bf16.mxu1 %v15301_v1 }
 0x914   : > { %10993 = vmatpush1.bf16.msra.mxu1 %v15299_v4 }
 0x915   : > { %10994 = vmatprep.subr.bf16.mxu1 %v15304_v42 }
 0x918   : > { %10995 = vmatpush1.bf16.msra.mxu1 %v15302_v29 }
 0x919   : > { %10996 = vmatprep.subr.bf16.mxu1 %v15307_v7 }
 0x91c   : > { %10997 = vmatpush1.bf16.msra.mxu1 %v15305_v55 }
 0x91d   : > { %10998 = vmatprep.subr.bf16.mxu1 %v15310_v23 }
 0x920   : > { %10999 = vmatpush1.bf16.msra.mxu1 %v15308_v8 }
 0x921   : > { %11000 = vmatprep.subr.bf16.mxu1 %v15313_v48 }
 0x924   : > { %11001 = vmatpush1.bf16.msra.mxu1 %v15311_v52 }
 0x925   : > { %11002 = vmatprep.subr.bf16.mxu1 %v15316_v32 }
 0x928   : > { %11003 = vmatpush1.bf16.msra.mxu1 %v15314_v28 }
 0x929   : > { %11015 = vmatprep.subr.bf16.mxu1 %v15319_v33 }
 0x92b   : > { %11005 = vmatmul.mubr.bf16.vlgmr.msra.gmra.mrb[36].mxu1 %v15403_v13  ;;  %v11108_v13 = vld [vmem:[#allocation16 + $0x100] sm:$0xff] }
 0x92c   : > { %11016 = vmatpush1.bf16.msra.mxu1 %v15317_v10  ;;  %11047 = vmatprep.mubr.bf16.mxu1 %v15404_v21  ;;  %v11110_v21 = vld [vmem:[#allocation16 + $0x110] sm:$0xff] }
 0x92d   : > { %11017 = vmatprep.subr.bf16.mxu1 %v15322_v12 }
 0x930   : > { %11018 = vmatpush1.bf16.msra.mxu1 %v15320_v15 }
 0x931   : > { %11019 = vmatprep.subr.bf16.mxu1 %v15325_v56  ;;  %v11111_v56 = vld [vmem:[#allocation16 + $0x118] sm:$0xff] }
 0x934   : > { %11020 = vmatpush1.bf16.msra.mxu1 %v15323_v24  ;;  %v13194_v24 = vpack.c.bf16 %v11111_v56, %v11110_v21 }
 0x935   : > { %11021 = vmatprep.subr.bf16.mxu1 %v15328_v25  ;;  %v11116_v25 = vld [vmem:[#allocation16 + $0x140] sm:$0xff] }
 0x938   : > { %11022 = vmatpush1.bf16.msra.mxu1 %v15326_v26  ;;  %v11117_v26 = vld [vmem:[#allocation16 + $0x148] sm:$0xff] }
 0x939   : > { %11023 = vmatprep.subr.bf16.mxu1 %v15331_v46  ;;  %v13203_v46 = vpack.c.bf16 %v11117_v26, %v11116_v25 }
 0x93c   : > { %11024 = vmatpush1.bf16.msra.mxu1 %v15329_v27  ;;  %v11118_v27 = vld [vmem:[#allocation16 + $0x150] sm:$0xff] }
 0x93d   : > { %11025 = vmatprep.subr.bf16.mxu1 %v15334_v20  ;;  %v11119_v20 = vld [vmem:[#allocation16 + $0x158] sm:$0xff] }
 0x940   : > { %11026 = vmatpush1.bf16.msra.mxu1 %v15332_v9  ;;  %v13206_v9 = vpack.c.bf16 %v11119_v20, %v11118_v27 }
 0x941   : > { %11027 = vmatprep.subr.bf16.mxu1 %v15337_v18  ;;  %v11120_v18 = vld [vmem:[#allocation16 + $0x160] sm:$0xff] }
 0x944   : > { %11028 = vmatpush1.bf16.msra.mxu1 %v15335_v53  ;;  %v11121_v53 = vld [vmem:[#allocation16 + $0x168] sm:$0xff] }
 0x945   : > { %11029 = vmatprep.subr.bf16.mxu1 %v15340_v38  ;;  %v13209_v38 = vpack.c.bf16 %v11121_v53, %v11120_v18 }
 0x948   : > { %11030 = vmatpush1.bf16.msra.mxu1 %v15338_v19  ;;  %v11122_v19 = vld [vmem:[#allocation16 + $0x170] sm:$0xff] }
 0x949   : > { %11031 = vmatprep.subr.bf16.mxu1 %v15343_v39  ;;  %v11123_v39 = vld [vmem:[#allocation16 + $0x178] sm:$0xff] }
 0x94c   : > { %11032 = vmatpush1.bf16.msra.mxu1 %v15341_v63  ;;  %v13212_v63 = vpack.c.bf16 %v11123_v39, %v11122_v19 }
 0x94d   : > { %11033 = vmatprep.subr.bf16.mxu1 %v15346_v43 }
 0x950   : > { %11034 = vmatpush1.bf16.msra.mxu1 %v15344_v51 }
 0x951   : > { %11035 = vmatprep.subr.bf16.mxu1 %v15349_v34  ;;  %v11072_v34 = vld [vmem:[#allocation8 + $0x4] sm:$0x3] }
 0x954   : > { %11036 = vmatpush1.bf16.msra.mxu1 %v15347_v44 }
 0x955   : > { %11037 = vmatprep.subr.bf16.mxu1 %v15352_v31 }
 0x958   : > { %11038 = vmatpush1.bf16.msra.mxu1 %v15350_v47 }
 0x959   : > { %11039 = vmatprep.subr.bf16.mxu1 %v15355_v58 }
 0x95c   : > { %11040 = vmatpush1.bf16.msra.mxu1 %v15353_v41 }
 0x95d   : > { %11041 = vmatprep.subr.bf16.mxu1 %v15358_v59  ;;  %v11077_v59 = vrot.slane %v11072_v34, %v16407_v2 }
 0x960   : > { %11042 = vmatpush1.bf16.msra.mxu1 %v15356_v35 }
 0x961   : > { %11043 = vmatprep.subr.bf16.mxu1 %v15361_v36 }
 0x964   : > { %11044 = vmatpush1.bf16.msra.mxu1 %v15359_v62 }
 0x965   : > { %11045 = vmatprep.subr.bf16.mxu1 %v15364_v22 }
 0x968   : > { %11046 = vmatpush1.bf16.msra.mxu1 %v15362_v50 }
 0x969   : > { %13190 = vmatprep.subr.bf16.mxu1 %v15799_v14 }
 0x96b   : > { %11048 = vmatmul.mubr.bf16.vlgmr.msra.gmra.mrb[36].mxu1 %v16573_v61 }
 0x96c   : > { %13115 = vmatprep.mubr.msk.f32.mxu1 %vm15800_vm0, %v15801_v6 }
 0x97e   : > { %v9613_v54 = vpop.f32.mrb[32].mxu1 }
 0x97f   : > { %v9615_v57 = vpop.f32.mrb[33].mxu1  ;;  %v9622_v4 = vrot.slane %v9613_v54, 2 }
 0x980   : > { %v9617_v1 = vpop.f32.mrb[34].mxu1  ;;  %v9623_v7 = vrot.slane %v9615_v57, 2 }
 0x981   : > { %v9624_v42 = vrot.slane %v9617_v1, 2  ;;  %v9619_v29 = vpop.f32.mrb[35].mxu1 }
 0x982   : > { %v9625_v55 = vrot.slane %v9619_v29, 2 }
 0x983   : > { %v9626_v23 = vsel %vm2100_vm2, %v9622_v4, %v9624_v42  ;;  %v9628_v8 = vsel %vm2100_vm2, %v9624_v42, %v9622_v4  ;;  %v11081_v4 = vrot.slane %v11072_v34, %v16410_v11 }
 0x984   : > { %v9630_v48 = vadd.f32 %v16599_v60, %v9626_v23  ;;  %v9632_v61 = vadd.f32 %v16604_v3, %v9628_v8  ;;  %v9627_v6 = vsel %vm2100_vm2, %v9623_v7, %v9625_v55  ;;  %v9629_v52 = vsel %vm2100_vm2, %v9625_v55, %v9623_v7  ;;  %v11109_v3 = vld [vmem:[#allocation16 + $0x108] sm:$0xff] }
 0x985   : > { %v9631_v32 = vadd.f32 %v16609_v5, %v9627_v6  ;;  %v9633_v28 = vadd.f32 %v16612_v17, %v9629_v52  ;;  %v13191_v15 = vpack.c.bf16 %v11109_v3, %v11108_v13  ;;  %v11112_v5 = vld [vmem:[#allocation16 + $0x120] sm:$0xff]  ;;  %v11113_v17 = vld [vmem:[#allocation16 + $0x128] sm:$0xff] }
 0x986   : > { %v10348_v33 = vadd.f32 %v16618_v45, %v9630_v48  ;;  %v10350_v10 = vadd.f32 %v16622_v0, %v9632_v61  ;;  %v13197_v45 = vpack.c.bf16 %v11113_v17, %v11112_v5  ;;  %v11114_v0 = vld [vmem:[#allocation16 + $0x130] sm:$0xff]  ;;  %v2219_v13 = vld [vmem:[#allocation17] sm:$0x1] }
 0x987   : > { %v10349_v12 = vadd.f32 %v16626_v49, %v9631_v32  ;;  %v10351_v60 = vadd.f32 %v16630_v40, %v9633_v28  ;;  %13192 = vmatpush3.bf16.msra.mxu1 %v13191_v15  ;;  %v11115_v49 = vld [vmem:[#allocation16 + $0x138] sm:$0xff] }
 0x988   : > { %13193 = vmatprep.subr.bf16.mxu1 %v15799_v14  ;;  %v13200_v40 = vpack.c.bf16 %v11115_v49, %v11114_v0 }
 0x98b   : > { %13195 = vmatpush3.bf16.msra.mxu1 %v13194_v24 }
 0x98c   : > { %13196 = vmatprep.subr.bf16.mxu1 %v15799_v14 }
 0x98f   : > { %13198 = vmatpush3.bf16.msra.mxu1 %v13197_v45 }
 0x990   : > { %13199 = vmatprep.subr.bf16.mxu1 %v15799_v14 }
 0x993   : > { %13201 = vmatpush3.bf16.msra.mxu1 %v13200_v40 }
 0x994   : > { %13202 = vmatprep.subr.bf16.mxu1 %v15799_v14 }
 0x997   : > { %13204 = vmatpush3.bf16.msra.mxu1 %v13203_v46 }
 0x998   : > { %13205 = vmatprep.subr.bf16.mxu1 %v15799_v14 }
 0x99b   : > { %13207 = vmatpush3.bf16.msra.mxu1 %v13206_v9 }
 0x99c   : > { %13208 = vmatprep.subr.bf16.mxu1 %v15799_v14 }
 0x99f   : > { %13210 = vmatpush3.bf16.msra.mxu1 %v13209_v38 }
 0x9a0   : > { %13211 = vmatprep.subr.bf16.mxu1 %v15799_v14 }
 0x9a3   : > { %13213 = vmatpush3.bf16.msra.mxu1 %v13212_v63 }
 0xa3e   : > { %v11049_v43 = vpop.f32.mrb[36].mxu1 }
 0xa3f   : > { %v11051_v51 = vpop.f32.mrb[37].mxu1  ;;  %v11058_v31 = vrot.slane %v11049_v43, 4 }
 0xa40   : > { %v11053_v44 = vpop.f32.mrb[38].mxu1  ;;  %v11059_v41 = vrot.slane %v11051_v51, 4 }
 0xa41   : > { %v11060_v47 = vrot.slane %v11053_v44, 4  ;;  %v11055_v58 = vpop.f32.mrb[39].mxu1 }
 0xa42   : > { %v11061_v35 = vrot.slane %v11055_v58, 4 }
 0xa43   : > { %v11063_v36 = vsel %vm11062_vm6, %v11058_v31, %v11060_v47  ;;  %v11065_v62 = vsel %vm11062_vm6, %v11060_v47, %v11058_v31 }
 0xa44   : > { %v11067_v22 = vadd.f32 %v11063_v36, %v10348_v33  ;;  %v11069_v50 = vadd.f32 %v11065_v62, %v10350_v10  ;;  %v11064_v54 = vsel %vm11062_vm6, %v11059_v41, %v11061_v35  ;;  %v11066_v14 = vsel %vm11062_vm6, %v11061_v35, %v11059_v41 }
 0xa45   : > { %v11068_v57 = vadd.f32 %v11064_v54, %v10349_v12  ;;  %v11070_v1 = vadd.f32 %v11066_v14, %v10351_v60 }
 0xa46   : > { %v11084_v42 = vadd.f32 %v11077_v59, %v11067_v22  ;;  %v11086_v29 = vadd.f32 %v11077_v59, %v11069_v50 }
 0xa47   : > { %v11085_v16 = vadd.f32 %v11081_v4, %v11068_v57  ;;  %v11087_v7 = vadd.f32 %v11081_v4, %v11070_v1 }
 0xa48   : > { %15373 = vtanh.f32 %v11084_v42 }
 0xa49   : > { %15375 = vtanh.f32 %v11086_v29  ;;  %v11088_v55 = vadd.f32 %v11085_v16, %v16424_v30  ;;  %v11089_v2 = vadd.f32 %v11087_v7, %v16424_v30 }
 0xa4b   : > { %v11092_v23 = vmax.f32 %v11088_v55, 0.0  ;;  %v11093_v48 = vmax.f32 %v11089_v2, 0.0 }
 0xa52   : > { %v15374_v8 = vpop.eup %15373 }
 0xa53   : > { %v15376_v61 = vpop.eup %15375  ;;  %v11094_v6 = vmul.f32 %v15374_v8, %v11092_v23 }
 0xa54   : > { %v11095_v11 = vmul.f32 %v15376_v61, %v11093_v48 }
 0xa56   : > { %v11099_v52 = vsel %vm11097_vm7, %v11095_v11, -1e+30 }
 0xa57   : > { %v11100_v32 = vmax.f32 %v11094_v6, %v11099_v52 }
 0xa59   : > { %v11101_v28 = vrot.slane %v11100_v32, 4 }
 0xa5b   : > { %v11102_v33 = vmax.f32 %v11100_v32, %v11101_v28 }
 0xa5d   : > { %v11103_v10 = vrot.slane %v11102_v33, 2 }
 0xa5f   : > { %v11104_v12 = vmax.f32 %v11102_v33, %v11103_v10 }
 0xa61   : > { %v11105_v60 = vrot.slane %v11104_v12, 1 }
 0xa63   : > { %v11106_v30 = vmax.f32 %v11104_v12, %v11105_v60 }
 0xa65   : > { %13116 = vmatmul.mubr.f32.vlgmr.msra.gmra.mrb[14].mxu1 %v11106_v30 }
 0xb38   : > { %v11190_v3 = vpop.f32.mrb[14].mxu1 }
 0xb39   : > { %v13218_v15 = vadd.f32 %v11190_v3, %v2219_v13  ;;  %v13117_v21 = vpop.f32.mrb[15].mxu1 }
 0xb3b   : > { %11195 = vst [vmem:[%s528_s27] sm:$0x1] %v13218_v15 }
 0xb3c   : > { %15702 = shalt.err (!%p15699_p1)
}
 0xb3d   : > { %s15703_s18 = scalar_lea.hbm %s16672_s22, 16  ;;  %s15707_s0 = scalar_lea.hbm %s16772_s24, 32 }
 0xb3e   : > { %p15704_p11 = scmp.ne.s32.totalorder %s16672_s22, %s15703_s18  ;;  %p15708_p13 = scmp.lt.u32.totalorder %s16672_s22, %s16772_s24 }
 0xb3f   : > { %p15709_p7 = scmp.lt.u32.totalorder %s15707_s0, %s15703_s18  ;;  %p15711_p6 = scmp.lt.u32.totalorder %s15703_s18, %s16672_s22 }
 0xb40   : > { %p15705_p12 = pnand %p15704_p11, %p16773_p2 }
 0xb41   : > { %p15710_p9 = por %p15709_p7, %p15708_p13 }
 0xb42   : > { %p15706_p0 = pneg %p15705_p12 }
 0xb43   : > { %p15712_p5 = por %p15711_p6, %p15710_p9 }
 0xb45   : > { %p15713_p8 = pnand %p15712_p5, %p15706_p0 }
 0xb47   : > { %15716 = shalt.err (!%p15713_p8)
}
 0xb48   : > { %13368 = dma.vmem_to_hbm [thread:$0]  (%p16773_p2), %s16674_s26, 16, %s16672_s22, %s11197_s2  }
 0xb49 PF: > { %s11221_s30 = sand.u32 1, %s15767_s13   ;;  %p16774_p4 = scmp.ne.s32.totalorder %s16756_s10, 0 }
 0xb4a   : > { %p16775_p3 = scmp.ge.s32.totalorder %s15779_s16, 2  ;;  %s11222_s27 = scalar_lea.sflag [#allocation4], %s11221_s30 }
 0xb4c   : > { %p13403_p10 = pnand %p16775_p3, %p16774_p4 }
 0xb4e   : > { %15762 = dma.done.wait (!%p13403_p10), %s11222_s27, 16  }
 0xb4f   : > { %15764 = vsyncadd (!%p13403_p10), %s11222_s27, 4294967280  ;;  %p30_p1 = scmp.ge.s32.totalorder %s16075_s23, 4   ;;  %s16776_s13 = smov %s15771_s14 }
 0xb50   : > { %s16777_s14 = smov %s15775_s15  ;;  %s16778_s15 = smov %s16086_s25 }
 0xb51   : > { %s16779_s16 = smov %s16075_s23  ;;  %32 = sbr.rel (!%p30_p1) target bundleno = 18 (0x12), region = 167 }
 0xb58   :  { %11226 = vsyncpa [#allocation3], 1 }
 0xb59   :  { %11228 = vsyncpa [#allocation3 + $0x1], 1 }
 0xb5a   :  { %11229 = vsyncpa [#allocation6], 1 }
 0xb5b   :  { %11231 = vsyncpa [#allocation6 + $0x1], 1 }
 0xb5c   :  { %11232 = vsyncpa [#allocation9], 1 }
 0xb5d   :  { %11233 = vsyncpa [#allocation12], 1 }
 0xb5e   :  { %11234 = vsyncpa [#allocation15], 1 }
 0xb5f   :  { %11235 = vsyncpa [#allocation18], 1 }
 0xb60   :  { %11236 = vsyncpa [#allocation4], 1 }
 0xb61   :  { %11238 = vsyncpa [#allocation4 + $0x1], 1 }

</bundles_post_ra>
